<compile_context>
chip_gen: v7x
topology: tpu7x:2x2x1
jax: 0.10.0
libtpu: 0.0.40
codegen_flags: <defaults>
</compile_context>

<pallas_src>
import functools

import jax
import jax.numpy as jnp
from jax.experimental import pallas as pl
from jax.experimental.pallas import tpu as pltpu

EPS = 0.2
WEIGHT_DTYPE = jnp.bfloat16                   # MXU-native input; accumulate f32
VMEM_SPEC = pl.BlockSpec(memory_space=pltpu.MemorySpace.VMEM)


# ------------------------------ fused kernel -------------------------------- #

def _fused_forward_kernel(
    # activations
    x_ref,                                    # (2B, C)  pooled image features
    # backbone stand-in + trunk
    wb_ref, bb_ref,                           # (C,512), (1,512)
    w1_ref, b1_ref,                           # (512,256), (1,256)
    w2_ref, b2_ref,                           # (256,256), (1,256)
    # folded batch-norm (scale, shift)
    bn1s_ref, bn1b_ref,                       # (1,256)
    bn2s_ref, bn2b_ref,                       # (1,256)
    bn1s4_ref, bn1b4_ref,                     # (1,1024)  bn1 tiled x4
    bn3s_ref, bn3b_ref,                       # (1,128)
    bn4s_ref, bn4b_ref,                       # (1,64)
    # branch projections (x11..x14 / x21..x24 stacked on the output dim)
    wbr1_ref, bbr1_ref,                       # (256,1024), (1,1024)
    wbr2_ref, bbr2_ref,                       # (256,1024), (1,1024)
    # weighting heads, stacked over the 4 heads; 512-in layer split top/bottom
    wh1t_ref, wh1b_ref, bh1_ref,              # (4,256,128) x2, (4,1,128)
    wh2_ref, bh2_ref,                         # (4,128,64), (4,1,64)
    wh3_ref, bh3_ref,                         # (4,64,64),  (4,1,64)
    wy_ref, by_ref,                           # (4,64,2),   (4,1,2)
    # x*c layers (512 -> 256) split top/bottom, stacked over heads
    wct_ref, wcb_ref, bc_ref,                 # (4,256,256) x2, (4,1,256)
    # final output heads packed block-diagonally
    wo_ref, bo_ref,                           # (1024,16), (1,16)
    # output
    o_ref,                                    # (B, 16)
    *, batch):
    f32 = jnp.float32

    def mm(a, w):
        return jnp.dot(a.astype(w.dtype), w, preferred_element_type=f32)

    def relu_bn(z, s, b):
        return jnp.maximum(z, 0.0) * s + b

    # ---- backbone + trunk on both streams stacked along batch: (2B, 256) ----
    t = mm(x_ref[...], wb_ref[...]) + bb_ref[...]
    t = relu_bn(mm(t, w1_ref[...]) + b1_ref[...], bn1s_ref[...], bn1b_ref[...])
    t = relu_bn(mm(t, w2_ref[...]) + b2_ref[...], bn2s_ref[...], bn2b_ref[...])
    x1_out = t[:batch]                        # (B, 256)
    x2_out = t[batch:]                        # (B, 256)

    # ---- 4 branch projections per stream as one wide matmul: (B, 1024) ----
    x1b = relu_bn(mm(x1_out, wbr1_ref[...]) + bbr1_ref[...],
                  bn1s4_ref[...], bn1b4_ref[...])
    x2b = relu_bn(mm(x2_out, wbr2_ref[...]) + bbr2_ref[...],
                  bn1s4_ref[...], bn1b4_ref[...])

    bn1s, bn1b = bn1s_ref[...], bn1b_ref[...]
    bn3s, bn3b = bn3s_ref[...], bn3b_ref[...]
    bn4s, bn4b = bn4s_ref[...], bn4b_ref[...]

    xc_blocks = []
    for k in range(4):                        # static unroll over the 4 heads
        a = x1b[:, 256 * k:256 * (k + 1)]     # (B, 256)  == x1{k}
        b = x2b[:, 256 * k:256 * (k + 1)]     # (B, 256)  == x2{k}

        # weighting head: concat(a,b) @ W == a @ W_top + b @ W_bot
        # (512 -> 128 -> 64 -> 64 -> 2, softmax)
        h = mm(a, wh1t_ref[k]) + mm(b, wh1b_ref[k]) + bh1_ref[k]
        h = relu_bn(h, bn3s, bn3b)
        h = relu_bn(mm(h, wh2_ref[k]) + bh2_ref[k], bn4s, bn4b)
        h = relu_bn(mm(h, wh3_ref[k]) + bh3_ref[k], bn4s, bn4b)
        z = mm(h, wy_ref[k]) + by_ref[k]      # (B, 2)
        z = z - jnp.max(z, axis=1, keepdims=True)
        e = jnp.exp(z)
        yw = e / jnp.sum(e, axis=1, keepdims=True)        # softmax weights (B,2)

        # weighted concat + x{k}c layer, with the concat folded away:
        #   cat(a*w0, b*w1) @ Wc == (a*w0) @ Wc_top + (b*w1) @ Wc_bot
        c = (mm(a * yw[:, 0:1], wct_ref[k])
             + mm(b * yw[:, 1:2], wcb_ref[k]) + bc_ref[k])
        xc_blocks.append(relu_bn(c, bn1s, bn1b))          # dropout = identity

    xc_all = jnp.concatenate(xc_blocks, axis=1)           # (B, 1024)
    logits = mm(xc_all, wo_ref[...]) + bo_ref[...]        # (B, 16)

    # per-head softmax over segments [0:3], [3:6], [6:12], [12:16], done
    # full-width with masks so the single (B,16) store stays lane-contiguous.
    col = jax.lax.broadcasted_iota(jnp.int32, (batch, 16), 1)
    seg = jnp.where(col < 3, 0, jnp.where(col < 6, 1, jnp.where(col < 12, 2, 3)))
    out = jnp.zeros_like(logits)
    for s in range(4):
        mask = seg == s
        m = jnp.max(jnp.where(mask, logits, -jnp.inf), axis=1, keepdims=True)
        e = jnp.where(mask, jnp.exp(logits - m), 0.0)
        out = out + e / jnp.sum(e, axis=1, keepdims=True)
    o_ref[...] = out


_OPERAND_ORDER = (
    "wb", "bb", "w1", "b1", "w2", "b2",
    "bn1_s", "bn1_b", "bn2_s", "bn2_b", "bn1_s4", "bn1_b4",
    "bn3_s", "bn3_b", "bn4_s", "bn4_b",
    "wbr1", "bbr1", "wbr2", "bbr2",
    "wh1t", "wh1b", "bh1", "wh2", "bh2", "wh3", "bh3", "wy", "by",
    "wct", "wcb", "bc", "wo", "bo",
)


def _fused_forward(packed, x_pool):
    two_b = x_pool.shape[0]
    batch = two_b // 2
    operands = [packed[name] for name in _OPERAND_ORDER]
    return pl.pallas_call(
        functools.partial(_fused_forward_kernel, batch=batch),
        out_shape=jax.ShapeDtypeStruct((batch, 16), jnp.float32),
        in_specs=[VMEM_SPEC] * (1 + len(operands)),
        out_specs=VMEM_SPEC,
        compiler_params=pltpu.CompilerParams(
            vmem_limit_bytes=32 * 1024 * 1024),   # insurance; model is ~3 MiB bf16
    )(x_pool, *operands)


# ----------------------------- forward pass --------------------------------- #

def forward(packed, x1_input, x2_input):
    # TODO(synk): model_core (ResNet backbone) is an external module; stand-in =
    # global-average-pool over HxW + Linear(C, 512).
    pooled = jnp.concatenate([jnp.mean(x1_input, axis=(2, 3)),
                              jnp.mean(x2_input, axis=(2, 3))], axis=0)  # (2B, C)
    out = _fused_forward(packed, pooled)                                 # (B, 16)
    return out[:, 0:3], out[:, 3:6], out[:, 6:12], out[:, 12:16]


# ----------------------------- parameters ----------------------------------- #

def _make_linear(key, in_f, out_f):
    """Xavier-normal weight (stored pre-transposed (in, out)), PyTorch-default bias."""
    kw, kb = jax.random.split(key)
    std = (2.0 / (in_f + out_f)) ** 0.5
    w = std * jax.random.normal(kw, (in_f, out_f), jnp.float32)
    bound = 1.0 / (in_f ** 0.5)
    b = jax.random.uniform(kb, (1, out_f), jnp.float32, -bound, bound)
    return (w, b)


def _make_bn(num_features):
    g = jnp.ones((1, num_features), jnp.float32)
    be = jnp.zeros((1, num_features), jnp.float32)
    m = jnp.zeros((1, num_features), jnp.float32)
    v = jnp.ones((1, num_features), jnp.float32)
    return (g, be, m, v)


def init_raw_params(key, in_channels):
    names_shapes = [
        ("backbone", in_channels, 512),  # stand-in for model_core
        ("x1", 512, 256), ("x2", 256, 256),
        ("x11", 256, 256), ("x12", 256, 256), ("x13", 256, 256), ("x14", 256, 256),
        ("x21", 256, 256), ("x22", 256, 256), ("x23", 256, 256), ("x24", 256, 256),
        ("x1c", 512, 256), ("x2c", 512, 256), ("x3c", 512, 256), ("x4c", 512, 256),
        ("y1o", 256, 3), ("y2o", 256, 3), ("y3o", 256, 6), ("y4o", 256, 4),
        ("xw11", 512, 128), ("xw12", 128, 64), ("xw13", 64, 64), ("y1", 64, 2),
        ("xw21", 512, 128), ("xw22", 128, 64), ("xw23", 64, 64), ("y2", 64, 2),
        ("xw31", 512, 128), ("xw32", 128, 64), ("xw33", 64, 64), ("y3", 64, 2),
        ("xw41", 512, 128), ("xw42", 128, 64), ("xw43", 64, 64), ("y4", 64, 2),
    ]
    keys = jax.random.split(key, len(names_shapes))
    raw = {name: _make_linear(k, i, o)
           for k, (name, i, o) in zip(keys, names_shapes)}
    raw["bn1"] = _make_bn(256)
    raw["bn2"] = _make_bn(256)
    raw["bn3"] = _make_bn(128)
    raw["bn4"] = _make_bn(64)
    return raw


def pack_params(raw, wdtype=WEIGHT_DTYPE):
    """Pack per-layer weights into the fused/stacked operands the kernel consumes."""
    def W(n): return raw[n][0].astype(wdtype)
    def B(n): return raw[n][1]                       # (1, out) f32

    p = {}
    p["wb"], p["bb"] = W("backbone"), B("backbone")
    p["w1"], p["b1"] = W("x1"), B("x1")
    p["w2"], p["b2"] = W("x2"), B("x2")

    # inference-mode BatchNorm folded to (scale, shift)
    for n in ("bn1", "bn2", "bn3", "bn4"):
        g, be, m, v = raw[n]
        s = g * jax.lax.rsqrt(v + EPS)
        p[n + "_s"], p[n + "_b"] = s, be - m * s
    p["bn1_s4"] = jnp.tile(p["bn1_s"], (1, 4))
    p["bn1_b4"] = jnp.tile(p["bn1_b"], (1, 4))

    # 4 branch projections per stream stacked along the output dim
    p["wbr1"] = jnp.concatenate([W(n) for n in ("x11", "x12", "x13", "x14")], axis=1)
    p["bbr1"] = jnp.concatenate([B(n) for n in ("x11", "x12", "x13", "x14")], axis=1)
    p["wbr2"] = jnp.concatenate([W(n) for n in ("x21", "x22", "x23", "x24")], axis=1)
    p["bbr2"] = jnp.concatenate([B(n) for n in ("x21", "x22", "x23", "x24")], axis=1)

    # weighting heads stacked over the 4 heads; 512-in layer split top/bottom so
    # concat(x1k, x2k) never materializes
    h1 = [raw[n][0] for n in ("xw11", "xw21", "xw31", "xw41")]
    p["wh1t"] = jnp.stack([w[:256] for w in h1]).astype(wdtype)
    p["wh1b"] = jnp.stack([w[256:] for w in h1]).astype(wdtype)
    p["bh1"] = jnp.stack([B(n) for n in ("xw11", "xw21", "xw31", "xw41")])
    p["wh2"] = jnp.stack([W(n) for n in ("xw12", "xw22", "xw32", "xw42")])
    p["bh2"] = jnp.stack([B(n) for n in ("xw12", "xw22", "xw32", "xw42")])
    p["wh3"] = jnp.stack([W(n) for n in ("xw13", "xw23", "xw33", "xw43")])
    p["bh3"] = jnp.stack([B(n) for n in ("xw13", "xw23", "xw33", "xw43")])
    p["wy"] = jnp.stack([W(n) for n in ("y1", "y2", "y3", "y4")])
    p["by"] = jnp.stack([B(n) for n in ("y1", "y2", "y3", "y4")])

    # x*c layers (512 -> 256) split top/bottom, stacked over heads
    c = [raw[n][0] for n in ("x1c", "x2c", "x3c", "x4c")]
    p["wct"] = jnp.stack([w[:256] for w in c]).astype(wdtype)
    p["wcb"] = jnp.stack([w[256:] for w in c]).astype(wdtype)
    p["bc"] = jnp.stack([B(n) for n in ("x1c", "x2c", "x3c", "x4c")])

    # final output heads packed block-diagonally into one (1024, 16) matmul
    wo = jnp.zeros((1024, 16), jnp.float32)
    for (row, c0, c1), n in zip(((0, 0, 3), (256, 3, 6), (512, 6, 12), (768, 12, 16)),
                                ("y1o", "y2o", "y3o", "y4o")):
        wo = wo.at[row:row + 256, c0:c1].set(raw[n][0])
    p["wo"] = wo.astype(wdtype)
    p["bo"] = jnp.concatenate([B(n) for n in ("y1o", "y2o", "y3o", "y4o")], axis=1)
    return p


# ----------------------------- main ------------------------------------------ #

if __name__ == "__main__":
    B, C, H, W = 2, 4, 16, 16
    root = jax.random.PRNGKey(0)
    k_params, k_x1, k_x2 = jax.random.split(root, 3)

    raw = init_raw_params(k_params, C)
    packed = pack_params(raw)
    x1_input = jax.random.normal(k_x1, (B, C, H, W), jnp.float32)
    x2_input = jax.random.normal(k_x2, (B, C, H, W), jnp.float32)

    outs = jax.jit(forward)(packed, x1_input, x2_input)
    outs = jax.block_until_ready(outs)

    expected_shapes = [(B, 3), (B, 3), (B, 6), (B, 4)]
    for o, es in zip(outs, expected_shapes):
        assert o.shape == es, (o.shape, es)
        assert bool(jnp.all(jnp.isfinite(o)))
        # softmax rows sum to 1
        assert bool(jnp.allclose(jnp.sum(o, axis=1), 1.0, atol=1e-5))

    print("KERNEL_OK")
</pallas_src>

<mosaic_0001>
module attributes {stable_mosaic.version = 11 : i64} {
  func.func @_fused_forward_kernel(%arg0: memref<4x4xf32, #tpu.memory_space<vmem>>, %arg1: memref<4x512xbf16, #tpu.memory_space<vmem>>, %arg2: memref<1x512xf32, #tpu.memory_space<vmem>>, %arg3: memref<512x256xbf16, #tpu.memory_space<vmem>>, %arg4: memref<1x256xf32, #tpu.memory_space<vmem>>, %arg5: memref<256x256xbf16, #tpu.memory_space<vmem>>, %arg6: memref<1x256xf32, #tpu.memory_space<vmem>>, %arg7: memref<1x256xf32, #tpu.memory_space<vmem>>, %arg8: memref<1x256xf32, #tpu.memory_space<vmem>>, %arg9: memref<1x256xf32, #tpu.memory_space<vmem>>, %arg10: memref<1x256xf32, #tpu.memory_space<vmem>>, %arg11: memref<1x1024xf32, #tpu.memory_space<vmem>>, %arg12: memref<1x1024xf32, #tpu.memory_space<vmem>>, %arg13: memref<1x128xf32, #tpu.memory_space<vmem>>, %arg14: memref<1x128xf32, #tpu.memory_space<vmem>>, %arg15: memref<1x64xf32, #tpu.memory_space<vmem>>, %arg16: memref<1x64xf32, #tpu.memory_space<vmem>>, %arg17: memref<256x1024xbf16, #tpu.memory_space<vmem>>, %arg18: memref<1x1024xf32, #tpu.memory_space<vmem>>, %arg19: memref<256x1024xbf16, #tpu.memory_space<vmem>>, %arg20: memref<1x1024xf32, #tpu.memory_space<vmem>>, %arg21: memref<4x256x128xbf16, #tpu.memory_space<vmem>>, %arg22: memref<4x256x128xbf16, #tpu.memory_space<vmem>>, %arg23: memref<4x1x128xf32, #tpu.memory_space<vmem>>, %arg24: memref<4x128x64xbf16, #tpu.memory_space<vmem>>, %arg25: memref<4x1x64xf32, #tpu.memory_space<vmem>>, %arg26: memref<4x64x64xbf16, #tpu.memory_space<vmem>>, %arg27: memref<4x1x64xf32, #tpu.memory_space<vmem>>, %arg28: memref<4x64x2xbf16, #tpu.memory_space<vmem>>, %arg29: memref<4x1x2xf32, #tpu.memory_space<vmem>>, %arg30: memref<4x256x256xbf16, #tpu.memory_space<vmem>>, %arg31: memref<4x256x256xbf16, #tpu.memory_space<vmem>>, %arg32: memref<4x1x256xf32, #tpu.memory_space<vmem>>, %arg33: memref<1024x16xbf16, #tpu.memory_space<vmem>>, %arg34: memref<1x16xf32, #tpu.memory_space<vmem>>, %arg35: memref<2x16xf32, #tpu.memory_space<vmem>>) attributes {dimension_semantics = [], scalar_prefetch = 0 : i64, scratch_operands = 0 : i64, tpu.core_type = #tpu.core_type<tc>} {
    %c0 = arith.constant 0 : index
    %c0_0 = arith.constant 0 : index
    %0 = vector.load %arg0[%c0, %c0_0] : memref<4x4xf32, #tpu.memory_space<vmem>>, vector<4x4xf32>
    %c0_1 = arith.constant 0 : index
    %c0_2 = arith.constant 0 : index
    %1 = vector.load %arg1[%c0_1, %c0_2] : memref<4x512xbf16, #tpu.memory_space<vmem>>, vector<4x512xbf16>
    %2 = arith.truncf %0 : vector<4x4xf32> to vector<4x4xbf16>
    %cst = arith.constant dense<0.000000e+00> : vector<4x512xf32>
    %3 = tpu.matmul %2, %1, %cst {dimension_numbers = #tpu.dot_dimension_numbers<[1], [0], [0], [1], [0, 0, 1, 1], [], []>} : vector<4x4xbf16>, vector<4x512xbf16>, vector<4x512xf32> -> vector<4x512xf32>
    %c0_3 = arith.constant 0 : index
    %c0_4 = arith.constant 0 : index
    %4 = vector.load %arg2[%c0_3, %c0_4] : memref<1x512xf32, #tpu.memory_space<vmem>>, vector<1x512xf32>
    %5 = vector.broadcast %4 : vector<1x512xf32> to vector<4x512xf32>
    %6 = arith.addf %3, %5 : vector<4x512xf32>
    %c0_5 = arith.constant 0 : index
    %c0_6 = arith.constant 0 : index
    %7 = vector.load %arg3[%c0_5, %c0_6] : memref<512x256xbf16, #tpu.memory_space<vmem>>, vector<512x256xbf16>
    %8 = arith.truncf %6 : vector<4x512xf32> to vector<4x512xbf16>
    %cst_7 = arith.constant dense<0.000000e+00> : vector<4x256xf32>
    %9 = tpu.matmul %8, %7, %cst_7 {dimension_numbers = #tpu.dot_dimension_numbers<[1], [0], [0], [1], [0, 0, 1, 1], [], []>} : vector<4x512xbf16>, vector<512x256xbf16>, vector<4x256xf32> -> vector<4x256xf32>
    %c0_8 = arith.constant 0 : index
    %c0_9 = arith.constant 0 : index
    %10 = vector.load %arg4[%c0_8, %c0_9] : memref<1x256xf32, #tpu.memory_space<vmem>>, vector<1x256xf32>
    %11 = vector.broadcast %10 : vector<1x256xf32> to vector<4x256xf32>
    %12 = arith.addf %9, %11 : vector<4x256xf32>
    %c0_10 = arith.constant 0 : index
    %c0_11 = arith.constant 0 : index
    %13 = vector.load %arg7[%c0_10, %c0_11] : memref<1x256xf32, #tpu.memory_space<vmem>>, vector<1x256xf32>
    %c0_12 = arith.constant 0 : index
    %c0_13 = arith.constant 0 : index
    %14 = vector.load %arg8[%c0_12, %c0_13] : memref<1x256xf32, #tpu.memory_space<vmem>>, vector<1x256xf32>
    %cst_14 = arith.constant 0.000000e+00 : f32
    %15 = vector.broadcast %cst_14 : f32 to vector<4x256xf32>
    %16 = arith.maximumf %12, %15 : vector<4x256xf32>
    %17 = vector.broadcast %13 : vector<1x256xf32> to vector<4x256xf32>
    %18 = arith.mulf %16, %17 : vector<4x256xf32>
    %19 = vector.broadcast %14 : vector<1x256xf32> to vector<4x256xf32>
    %20 = arith.addf %18, %19 : vector<4x256xf32>
    %c0_15 = arith.constant 0 : index
    %c0_16 = arith.constant 0 : index
    %21 = vector.load %arg5[%c0_15, %c0_16] : memref<256x256xbf16, #tpu.memory_space<vmem>>, vector<256x256xbf16>
    %22 = arith.truncf %20 : vector<4x256xf32> to vector<4x256xbf16>
    %cst_17 = arith.constant dense<0.000000e+00> : vector<4x256xf32>
    %23 = tpu.matmul %22, %21, %cst_17 {dimension_numbers = #tpu.dot_dimension_numbers<[1], [0], [0], [1], [0, 0, 1, 1], [], []>} : vector<4x256xbf16>, vector<256x256xbf16>, vector<4x256xf32> -> vector<4x256xf32>
    %c0_18 = arith.constant 0 : index
    %c0_19 = arith.constant 0 : index
    %24 = vector.load %arg6[%c0_18, %c0_19] : memref<1x256xf32, #tpu.memory_space<vmem>>, vector<1x256xf32>
    %25 = vector.broadcast %24 : vector<1x256xf32> to vector<4x256xf32>
    %26 = arith.addf %23, %25 : vector<4x256xf32>
    %c0_20 = arith.constant 0 : index
    %c0_21 = arith.constant 0 : index
    %27 = vector.load %arg9[%c0_20, %c0_21] : memref<1x256xf32, #tpu.memory_space<vmem>>, vector<1x256xf32>
    %c0_22 = arith.constant 0 : index
    %c0_23 = arith.constant 0 : index
    %28 = vector.load %arg10[%c0_22, %c0_23] : memref<1x256xf32, #tpu.memory_space<vmem>>, vector<1x256xf32>
    %cst_24 = arith.constant 0.000000e+00 : f32
    %29 = vector.broadcast %cst_24 : f32 to vector<4x256xf32>
    %30 = arith.maximumf %26, %29 : vector<4x256xf32>
    %31 = vector.broadcast %27 : vector<1x256xf32> to vector<4x256xf32>
    %32 = arith.mulf %30, %31 : vector<4x256xf32>
    %33 = vector.broadcast %28 : vector<1x256xf32> to vector<4x256xf32>
    %34 = arith.addf %32, %33 : vector<4x256xf32>
    %35 = vector.extract_strided_slice %34 {offsets = [0, 0], sizes = [2, 256], strides = [1, 1]} : vector<4x256xf32> to vector<2x256xf32>
    %36 = vector.extract_strided_slice %34 {offsets = [2, 0], sizes = [2, 256], strides = [1, 1]} : vector<4x256xf32> to vector<2x256xf32>
    %c0_25 = arith.constant 0 : index
    %c0_26 = arith.constant 0 : index
    %37 = vector.load %arg17[%c0_25, %c0_26] : memref<256x1024xbf16, #tpu.memory_space<vmem>>, vector<256x1024xbf16>
    %38 = arith.truncf %35 : vector<2x256xf32> to vector<2x256xbf16>
    %cst_27 = arith.constant dense<0.000000e+00> : vector<2x1024xf32>
    %39 = tpu.matmul %38, %37, %cst_27 {dimension_numbers = #tpu.dot_dimension_numbers<[1], [0], [0], [1], [0, 0, 1, 1], [], []>} : vector<2x256xbf16>, vector<256x1024xbf16>, vector<2x1024xf32> -> vector<2x1024xf32>
    %c0_28 = arith.constant 0 : index
    %c0_29 = arith.constant 0 : index
    %40 = vector.load %arg18[%c0_28, %c0_29] : memref<1x1024xf32, #tpu.memory_space<vmem>>, vector<1x1024xf32>
    %41 = vector.broadcast %40 : vector<1x1024xf32> to vector<2x1024xf32>
    %42 = arith.addf %39, %41 : vector<2x1024xf32>
    %c0_30 = arith.constant 0 : index
    %c0_31 = arith.constant 0 : index
    %43 = vector.load %arg11[%c0_30, %c0_31] : memref<1x1024xf32, #tpu.memory_space<vmem>>, vector<1x1024xf32>
    %c0_32 = arith.constant 0 : index
    %c0_33 = arith.constant 0 : index
    %44 = vector.load %arg12[%c0_32, %c0_33] : memref<1x1024xf32, #tpu.memory_space<vmem>>, vector<1x1024xf32>
    %cst_34 = arith.constant 0.000000e+00 : f32
    %45 = vector.broadcast %cst_34 : f32 to vector<2x1024xf32>
    %46 = arith.maximumf %42, %45 : vector<2x1024xf32>
    %47 = vector.broadcast %43 : vector<1x1024xf32> to vector<2x1024xf32>
    %48 = arith.mulf %46, %47 : vector<2x1024xf32>
    %49 = vector.broadcast %44 : vector<1x1024xf32> to vector<2x1024xf32>
    %50 = arith.addf %48, %49 : vector<2x1024xf32>
    %c0_35 = arith.constant 0 : index
    %c0_36 = arith.constant 0 : index
    %51 = vector.load %arg19[%c0_35, %c0_36] : memref<256x1024xbf16, #tpu.memory_space<vmem>>, vector<256x1024xbf16>
    %52 = arith.truncf %36 : vector<2x256xf32> to vector<2x256xbf16>
    %cst_37 = arith.constant dense<0.000000e+00> : vector<2x1024xf32>
    %53 = tpu.matmul %52, %51, %cst_37 {dimension_numbers = #tpu.dot_dimension_numbers<[1], [0], [0], [1], [0, 0, 1, 1], [], []>} : vector<2x256xbf16>, vector<256x1024xbf16>, vector<2x1024xf32> -> vector<2x1024xf32>
    %c0_38 = arith.constant 0 : index
    %c0_39 = arith.constant 0 : index
    %54 = vector.load %arg20[%c0_38, %c0_39] : memref<1x1024xf32, #tpu.memory_space<vmem>>, vector<1x1024xf32>
    %55 = vector.broadcast %54 : vector<1x1024xf32> to vector<2x1024xf32>
    %56 = arith.addf %53, %55 : vector<2x1024xf32>
    %c0_40 = arith.constant 0 : index
    %c0_41 = arith.constant 0 : index
    %57 = vector.load %arg11[%c0_40, %c0_41] : memref<1x1024xf32, #tpu.memory_space<vmem>>, vector<1x1024xf32>
    %c0_42 = arith.constant 0 : index
    %c0_43 = arith.constant 0 : index
    %58 = vector.load %arg12[%c0_42, %c0_43] : memref<1x1024xf32, #tpu.memory_space<vmem>>, vector<1x1024xf32>
    %cst_44 = arith.constant 0.000000e+00 : f32
    %59 = vector.broadcast %cst_44 : f32 to vector<2x1024xf32>
    %60 = arith.maximumf %56, %59 : vector<2x1024xf32>
    %61 = vector.broadcast %57 : vector<1x1024xf32> to vector<2x1024xf32>
    %62 = arith.mulf %60, %61 : vector<2x1024xf32>
    %63 = vector.broadcast %58 : vector<1x1024xf32> to vector<2x1024xf32>
    %64 = arith.addf %62, %63 : vector<2x1024xf32>
    %c0_45 = arith.constant 0 : index
    %c0_46 = arith.constant 0 : index
    %65 = vector.load %arg7[%c0_45, %c0_46] : memref<1x256xf32, #tpu.memory_space<vmem>>, vector<1x256xf32>
    %c0_47 = arith.constant 0 : index
    %c0_48 = arith.constant 0 : index
    %66 = vector.load %arg8[%c0_47, %c0_48] : memref<1x256xf32, #tpu.memory_space<vmem>>, vector<1x256xf32>
    %c0_49 = arith.constant 0 : index
    %c0_50 = arith.constant 0 : index
    %67 = vector.load %arg13[%c0_49, %c0_50] : memref<1x128xf32, #tpu.memory_space<vmem>>, vector<1x128xf32>
    %c0_51 = arith.constant 0 : index
    %c0_52 = arith.constant 0 : index
    %68 = vector.load %arg14[%c0_51, %c0_52] : memref<1x128xf32, #tpu.memory_space<vmem>>, vector<1x128xf32>
    %c0_53 = arith.constant 0 : index
    %c0_54 = arith.constant 0 : index
    %69 = vector.load %arg15[%c0_53, %c0_54] : memref<1x64xf32, #tpu.memory_space<vmem>>, vector<1x64xf32>
    %c0_55 = arith.constant 0 : index
    %c0_56 = arith.constant 0 : index
    %70 = vector.load %arg16[%c0_55, %c0_56] : memref<1x64xf32, #tpu.memory_space<vmem>>, vector<1x64xf32>
    %71 = vector.extract_strided_slice %50 {offsets = [0, 0], sizes = [2, 256], strides = [1, 1]} : vector<2x1024xf32> to vector<2x256xf32>
    %72 = vector.extract_strided_slice %64 {offsets = [0, 0], sizes = [2, 256], strides = [1, 1]} : vector<2x1024xf32> to vector<2x256xf32>
    %c0_57 = arith.constant 0 : index
    %c0_58 = arith.constant 0 : index
    %c0_59 = arith.constant 0 : index
    %73 = vector.load %arg21[%c0_57, %c0_58, %c0_59] : memref<4x256x128xbf16, #tpu.memory_space<vmem>>, vector<1x256x128xbf16>
    %74 = vector.shape_cast %73 : vector<1x256x128xbf16> to vector<256x128xbf16>
    %75 = arith.truncf %71 : vector<2x256xf32> to vector<2x256xbf16>
    %cst_60 = arith.constant dense<0.000000e+00> : vector<2x128xf32>
    %76 = tpu.matmul %75, %74, %cst_60 {dimension_numbers = #tpu.dot_dimension_numbers<[1], [0], [0], [1], [0, 0, 1, 1], [], []>} : vector<2x256xbf16>, vector<256x128xbf16>, vector<2x128xf32> -> vector<2x128xf32>
    %c0_61 = arith.constant 0 : index
    %c0_62 = arith.constant 0 : index
    %c0_63 = arith.constant 0 : index
    %77 = vector.load %arg22[%c0_61, %c0_62, %c0_63] : memref<4x256x128xbf16, #tpu.memory_space<vmem>>, vector<1x256x128xbf16>
    %78 = vector.shape_cast %77 : vector<1x256x128xbf16> to vector<256x128xbf16>
    %79 = arith.truncf %72 : vector<2x256xf32> to vector<2x256xbf16>
    %cst_64 = arith.constant dense<0.000000e+00> : vector<2x128xf32>
    %80 = tpu.matmul %79, %78, %cst_64 {dimension_numbers = #tpu.dot_dimension_numbers<[1], [0], [0], [1], [0, 0, 1, 1], [], []>} : vector<2x256xbf16>, vector<256x128xbf16>, vector<2x128xf32> -> vector<2x128xf32>
    %81 = arith.addf %76, %80 : vector<2x128xf32>
    %c0_65 = arith.constant 0 : index
    %c0_66 = arith.constant 0 : index
    %c0_67 = arith.constant 0 : index
    %82 = vector.load %arg23[%c0_65, %c0_66, %c0_67] : memref<4x1x128xf32, #tpu.memory_space<vmem>>, vector<1x1x128xf32>
    %83 = vector.shape_cast %82 : vector<1x1x128xf32> to vector<1x128xf32>
    %84 = vector.broadcast %83 : vector<1x128xf32> to vector<2x128xf32>
    %85 = arith.addf %81, %84 : vector<2x128xf32>
    %cst_68 = arith.constant 0.000000e+00 : f32
    %86 = vector.broadcast %cst_68 : f32 to vector<2x128xf32>
    %87 = arith.maximumf %85, %86 : vector<2x128xf32>
    %88 = vector.broadcast %67 : vector<1x128xf32> to vector<2x128xf32>
    %89 = arith.mulf %87, %88 : vector<2x128xf32>
    %90 = vector.broadcast %68 : vector<1x128xf32> to vector<2x128xf32>
    %91 = arith.addf %89, %90 : vector<2x128xf32>
    %c0_69 = arith.constant 0 : index
    %c0_70 = arith.constant 0 : index
    %c0_71 = arith.constant 0 : index
    %92 = vector.load %arg24[%c0_69, %c0_70, %c0_71] : memref<4x128x64xbf16, #tpu.memory_space<vmem>>, vector<1x128x64xbf16>
    %93 = vector.shape_cast %92 : vector<1x128x64xbf16> to vector<128x64xbf16>
    %94 = arith.truncf %91 : vector<2x128xf32> to vector<2x128xbf16>
    %cst_72 = arith.constant dense<0.000000e+00> : vector<2x64xf32>
    %95 = tpu.matmul %94, %93, %cst_72 {dimension_numbers = #tpu.dot_dimension_numbers<[1], [0], [0], [1], [0, 0, 1, 1], [], []>} : vector<2x128xbf16>, vector<128x64xbf16>, vector<2x64xf32> -> vector<2x64xf32>
    %c0_73 = arith.constant 0 : index
    %c0_74 = arith.constant 0 : index
    %c0_75 = arith.constant 0 : index
    %96 = vector.load %arg25[%c0_73, %c0_74, %c0_75] : memref<4x1x64xf32, #tpu.memory_space<vmem>>, vector<1x1x64xf32>
    %97 = vector.shape_cast %96 : vector<1x1x64xf32> to vector<1x64xf32>
    %98 = vector.broadcast %97 : vector<1x64xf32> to vector<2x64xf32>
    %99 = arith.addf %95, %98 : vector<2x64xf32>
    %cst_76 = arith.constant 0.000000e+00 : f32
    %100 = vector.broadcast %cst_76 : f32 to vector<2x64xf32>
    %101 = arith.maximumf %99, %100 : vector<2x64xf32>
    %102 = vector.broadcast %69 : vector<1x64xf32> to vector<2x64xf32>
    %103 = arith.mulf %101, %102 : vector<2x64xf32>
    %104 = vector.broadcast %70 : vector<1x64xf32> to vector<2x64xf32>
    %105 = arith.addf %103, %104 : vector<2x64xf32>
    %c0_77 = arith.constant 0 : index
    %c0_78 = arith.constant 0 : index
    %c0_79 = arith.constant 0 : index
    %106 = vector.load %arg26[%c0_77, %c0_78, %c0_79] : memref<4x64x64xbf16, #tpu.memory_space<vmem>>, vector<1x64x64xbf16>
    %107 = vector.shape_cast %106 : vector<1x64x64xbf16> to vector<64x64xbf16>
    %108 = arith.truncf %105 : vector<2x64xf32> to vector<2x64xbf16>
    %cst_80 = arith.constant dense<0.000000e+00> : vector<2x64xf32>
    %109 = tpu.matmul %108, %107, %cst_80 {dimension_numbers = #tpu.dot_dimension_numbers<[1], [0], [0], [1], [0, 0, 1, 1], [], []>} : vector<2x64xbf16>, vector<64x64xbf16>, vector<2x64xf32> -> vector<2x64xf32>
    %c0_81 = arith.constant 0 : index
    %c0_82 = arith.constant 0 : index
    %c0_83 = arith.constant 0 : index
    %110 = vector.load %arg27[%c0_81, %c0_82, %c0_83] : memref<4x1x64xf32, #tpu.memory_space<vmem>>, vector<1x1x64xf32>
    %111 = vector.shape_cast %110 : vector<1x1x64xf32> to vector<1x64xf32>
    %112 = vector.broadcast %111 : vector<1x64xf32> to vector<2x64xf32>
    %113 = arith.addf %109, %112 : vector<2x64xf32>
    %cst_84 = arith.constant 0.000000e+00 : f32
    %114 = vector.broadcast %cst_84 : f32 to vector<2x64xf32>
    %115 = arith.maximumf %113, %114 : vector<2x64xf32>
    %116 = vector.broadcast %69 : vector<1x64xf32> to vector<2x64xf32>
    %117 = arith.mulf %115, %116 : vector<2x64xf32>
    %118 = vector.broadcast %70 : vector<1x64xf32> to vector<2x64xf32>
    %119 = arith.addf %117, %118 : vector<2x64xf32>
    %c0_85 = arith.constant 0 : index
    %c0_86 = arith.constant 0 : index
    %c0_87 = arith.constant 0 : index
    %120 = vector.load %arg28[%c0_85, %c0_86, %c0_87] : memref<4x64x2xbf16, #tpu.memory_space<vmem>>, vector<1x64x2xbf16>
    %121 = vector.shape_cast %120 : vector<1x64x2xbf16> to vector<64x2xbf16>
    %122 = arith.truncf %119 : vector<2x64xf32> to vector<2x64xbf16>
    %cst_88 = arith.constant dense<0.000000e+00> : vector<2x2xf32>
    %123 = tpu.matmul %122, %121, %cst_88 {dimension_numbers = #tpu.dot_dimension_numbers<[1], [0], [0], [1], [0, 0, 1, 1], [], []>} : vector<2x64xbf16>, vector<64x2xbf16>, vector<2x2xf32> -> vector<2x2xf32>
    %c0_89 = arith.constant 0 : index
    %c0_90 = arith.constant 0 : index
    %c0_91 = arith.constant 0 : index
    %124 = vector.load %arg29[%c0_89, %c0_90, %c0_91] : memref<4x1x2xf32, #tpu.memory_space<vmem>>, vector<1x1x2xf32>
    %125 = vector.shape_cast %124 : vector<1x1x2xf32> to vector<1x2xf32>
    %126 = vector.broadcast %125 : vector<1x2xf32> to vector<2x2xf32>
    %127 = arith.addf %123, %126 : vector<2x2xf32>
    %cst_92 = arith.constant dense<0xFF800000> : vector<2xf32>
    %128 = vector.multi_reduction <maximumf>, %127, %cst_92 [1] : vector<2x2xf32> to vector<2xf32>
    %129 = vector.shape_cast %128 : vector<2xf32> to vector<2x1xf32>
    %130 = vector.broadcast %129 : vector<2x1xf32> to vector<2x2xf32>
    %131 = arith.subf %127, %130 : vector<2x2xf32>
    %132 = math.exp %131 : vector<2x2xf32>
    %cst_93 = arith.constant dense<0.000000e+00> : vector<2xf32>
    %133 = vector.multi_reduction <add>, %132, %cst_93 [1] : vector<2x2xf32> to vector<2xf32>
    %134 = vector.shape_cast %133 : vector<2xf32> to vector<2x1xf32>
    %135 = vector.broadcast %134 : vector<2x1xf32> to vector<2x2xf32>
    %136 = arith.divf %132, %135 : vector<2x2xf32>
    %137 = vector.extract_strided_slice %136 {offsets = [0, 0], sizes = [2, 1], strides = [1, 1]} : vector<2x2xf32> to vector<2x1xf32>
    %138 = vector.broadcast %137 : vector<2x1xf32> to vector<2x256xf32>
    %139 = arith.mulf %71, %138 : vector<2x256xf32>
    %c0_94 = arith.constant 0 : index
    %c0_95 = arith.constant 0 : index
    %c0_96 = arith.constant 0 : index
    %140 = vector.load %arg30[%c0_94, %c0_95, %c0_96] : memref<4x256x256xbf16, #tpu.memory_space<vmem>>, vector<1x256x256xbf16>
    %141 = vector.shape_cast %140 : vector<1x256x256xbf16> to vector<256x256xbf16>
    %142 = arith.truncf %139 : vector<2x256xf32> to vector<2x256xbf16>
    %cst_97 = arith.constant dense<0.000000e+00> : vector<2x256xf32>
    %143 = tpu.matmul %142, %141, %cst_97 {dimension_numbers = #tpu.dot_dimension_numbers<[1], [0], [0], [1], [0, 0, 1, 1], [], []>} : vector<2x256xbf16>, vector<256x256xbf16>, vector<2x256xf32> -> vector<2x256xf32>
    %144 = vector.extract_strided_slice %136 {offsets = [0, 1], sizes = [2, 1], strides = [1, 1]} : vector<2x2xf32> to vector<2x1xf32>
    %145 = vector.broadcast %144 : vector<2x1xf32> to vector<2x256xf32>
    %146 = arith.mulf %72, %145 : vector<2x256xf32>
    %c0_98 = arith.constant 0 : index
    %c0_99 = arith.constant 0 : index
    %c0_100 = arith.constant 0 : index
    %147 = vector.load %arg31[%c0_98, %c0_99, %c0_100] : memref<4x256x256xbf16, #tpu.memory_space<vmem>>, vector<1x256x256xbf16>
    %148 = vector.shape_cast %147 : vector<1x256x256xbf16> to vector<256x256xbf16>
    %149 = arith.truncf %146 : vector<2x256xf32> to vector<2x256xbf16>
    %cst_101 = arith.constant dense<0.000000e+00> : vector<2x256xf32>
    %150 = tpu.matmul %149, %148, %cst_101 {dimension_numbers = #tpu.dot_dimension_numbers<[1], [0], [0], [1], [0, 0, 1, 1], [], []>} : vector<2x256xbf16>, vector<256x256xbf16>, vector<2x256xf32> -> vector<2x256xf32>
    %151 = arith.addf %143, %150 : vector<2x256xf32>
    %c0_102 = arith.constant 0 : index
    %c0_103 = arith.constant 0 : index
    %c0_104 = arith.constant 0 : index
    %152 = vector.load %arg32[%c0_102, %c0_103, %c0_104] : memref<4x1x256xf32, #tpu.memory_space<vmem>>, vector<1x1x256xf32>
    %153 = vector.shape_cast %152 : vector<1x1x256xf32> to vector<1x256xf32>
    %154 = vector.broadcast %153 : vector<1x256xf32> to vector<2x256xf32>
    %155 = arith.addf %151, %154 : vector<2x256xf32>
    %cst_105 = arith.constant 0.000000e+00 : f32
    %156 = vector.broadcast %cst_105 : f32 to vector<2x256xf32>
    %157 = arith.maximumf %155, %156 : vector<2x256xf32>
    %158 = vector.broadcast %65 : vector<1x256xf32> to vector<2x256xf32>
    %159 = arith.mulf %157, %158 : vector<2x256xf32>
    %160 = vector.broadcast %66 : vector<1x256xf32> to vector<2x256xf32>
    %161 = arith.addf %159, %160 : vector<2x256xf32>
    %162 = vector.extract_strided_slice %50 {offsets = [0, 256], sizes = [2, 256], strides = [1, 1]} : vector<2x1024xf32> to vector<2x256xf32>
    %163 = vector.extract_strided_slice %64 {offsets = [0, 256], sizes = [2, 256], strides = [1, 1]} : vector<2x1024xf32> to vector<2x256xf32>
    %c1 = arith.constant 1 : index
    %c0_106 = arith.constant 0 : index
    %c0_107 = arith.constant 0 : index
    %164 = vector.load %arg21[%c1, %c0_106, %c0_107] : memref<4x256x128xbf16, #tpu.memory_space<vmem>>, vector<1x256x128xbf16>
    %165 = vector.shape_cast %164 : vector<1x256x128xbf16> to vector<256x128xbf16>
    %166 = arith.truncf %162 : vector<2x256xf32> to vector<2x256xbf16>
    %cst_108 = arith.constant dense<0.000000e+00> : vector<2x128xf32>
    %167 = tpu.matmul %166, %165, %cst_108 {dimension_numbers = #tpu.dot_dimension_numbers<[1], [0], [0], [1], [0, 0, 1, 1], [], []>} : vector<2x256xbf16>, vector<256x128xbf16>, vector<2x128xf32> -> vector<2x128xf32>
    %c1_109 = arith.constant 1 : index
    %c0_110 = arith.constant 0 : index
    %c0_111 = arith.constant 0 : index
    %168 = vector.load %arg22[%c1_109, %c0_110, %c0_111] : memref<4x256x128xbf16, #tpu.memory_space<vmem>>, vector<1x256x128xbf16>
    %169 = vector.shape_cast %168 : vector<1x256x128xbf16> to vector<256x128xbf16>
    %170 = arith.truncf %163 : vector<2x256xf32> to vector<2x256xbf16>
    %cst_112 = arith.constant dense<0.000000e+00> : vector<2x128xf32>
    %171 = tpu.matmul %170, %169, %cst_112 {dimension_numbers = #tpu.dot_dimension_numbers<[1], [0], [0], [1], [0, 0, 1, 1], [], []>} : vector<2x256xbf16>, vector<256x128xbf16>, vector<2x128xf32> -> vector<2x128xf32>
    %172 = arith.addf %167, %171 : vector<2x128xf32>
    %c1_113 = arith.constant 1 : index
    %c0_114 = arith.constant 0 : index
    %c0_115 = arith.constant 0 : index
    %173 = vector.load %arg23[%c1_113, %c0_114, %c0_115] : memref<4x1x128xf32, #tpu.memory_space<vmem>>, vector<1x1x128xf32>
    %174 = vector.shape_cast %173 : vector<1x1x128xf32> to vector<1x128xf32>
    %175 = vector.broadcast %174 : vector<1x128xf32> to vector<2x128xf32>
    %176 = arith.addf %172, %175 : vector<2x128xf32>
    %cst_116 = arith.constant 0.000000e+00 : f32
    %177 = vector.broadcast %cst_116 : f32 to vector<2x128xf32>
    %178 = arith.maximumf %176, %177 : vector<2x128xf32>
    %179 = vector.broadcast %67 : vector<1x128xf32> to vector<2x128xf32>
    %180 = arith.mulf %178, %179 : vector<2x128xf32>
    %181 = vector.broadcast %68 : vector<1x128xf32> to vector<2x128xf32>
    %182 = arith.addf %180, %181 : vector<2x128xf32>
    %c1_117 = arith.constant 1 : index
    %c0_118 = arith.constant 0 : index
    %c0_119 = arith.constant 0 : index
    %183 = vector.load %arg24[%c1_117, %c0_118, %c0_119] : memref<4x128x64xbf16, #tpu.memory_space<vmem>>, vector<1x128x64xbf16>
    %184 = vector.shape_cast %183 : vector<1x128x64xbf16> to vector<128x64xbf16>
    %185 = arith.truncf %182 : vector<2x128xf32> to vector<2x128xbf16>
    %cst_120 = arith.constant dense<0.000000e+00> : vector<2x64xf32>
    %186 = tpu.matmul %185, %184, %cst_120 {dimension_numbers = #tpu.dot_dimension_numbers<[1], [0], [0], [1], [0, 0, 1, 1], [], []>} : vector<2x128xbf16>, vector<128x64xbf16>, vector<2x64xf32> -> vector<2x64xf32>
    %c1_121 = arith.constant 1 : index
    %c0_122 = arith.constant 0 : index
    %c0_123 = arith.constant 0 : index
    %187 = vector.load %arg25[%c1_121, %c0_122, %c0_123] : memref<4x1x64xf32, #tpu.memory_space<vmem>>, vector<1x1x64xf32>
    %188 = vector.shape_cast %187 : vector<1x1x64xf32> to vector<1x64xf32>
    %189 = vector.broadcast %188 : vector<1x64xf32> to vector<2x64xf32>
    %190 = arith.addf %186, %189 : vector<2x64xf32>
    %cst_124 = arith.constant 0.000000e+00 : f32
    %191 = vector.broadcast %cst_124 : f32 to vector<2x64xf32>
    %192 = arith.maximumf %190, %191 : vector<2x64xf32>
    %193 = vector.broadcast %69 : vector<1x64xf32> to vector<2x64xf32>
    %194 = arith.mulf %192, %193 : vector<2x64xf32>
    %195 = vector.broadcast %70 : vector<1x64xf32> to vector<2x64xf32>
    %196 = arith.addf %194, %195 : vector<2x64xf32>
    %c1_125 = arith.constant 1 : index
    %c0_126 = arith.constant 0 : index
    %c0_127 = arith.constant 0 : index
    %197 = vector.load %arg26[%c1_125, %c0_126, %c0_127] : memref<4x64x64xbf16, #tpu.memory_space<vmem>>, vector<1x64x64xbf16>
    %198 = vector.shape_cast %197 : vector<1x64x64xbf16> to vector<64x64xbf16>
    %199 = arith.truncf %196 : vector<2x64xf32> to vector<2x64xbf16>
    %cst_128 = arith.constant dense<0.000000e+00> : vector<2x64xf32>
    %200 = tpu.matmul %199, %198, %cst_128 {dimension_numbers = #tpu.dot_dimension_numbers<[1], [0], [0], [1], [0, 0, 1, 1], [], []>} : vector<2x64xbf16>, vector<64x64xbf16>, vector<2x64xf32> -> vector<2x64xf32>
    %c1_129 = arith.constant 1 : index
    %c0_130 = arith.constant 0 : index
    %c0_131 = arith.constant 0 : index
    %201 = vector.load %arg27[%c1_129, %c0_130, %c0_131] : memref<4x1x64xf32, #tpu.memory_space<vmem>>, vector<1x1x64xf32>
    %202 = vector.shape_cast %201 : vector<1x1x64xf32> to vector<1x64xf32>
    %203 = vector.broadcast %202 : vector<1x64xf32> to vector<2x64xf32>
    %204 = arith.addf %200, %203 : vector<2x64xf32>
    %cst_132 = arith.constant 0.000000e+00 : f32
    %205 = vector.broadcast %cst_132 : f32 to vector<2x64xf32>
    %206 = arith.maximumf %204, %205 : vector<2x64xf32>
    %207 = vector.broadcast %69 : vector<1x64xf32> to vector<2x64xf32>
    %208 = arith.mulf %206, %207 : vector<2x64xf32>
    %209 = vector.broadcast %70 : vector<1x64xf32> to vector<2x64xf32>
    %210 = arith.addf %208, %209 : vector<2x64xf32>
    %c1_133 = arith.constant 1 : index
    %c0_134 = arith.constant 0 : index
    %c0_135 = arith.constant 0 : index
    %211 = vector.load %arg28[%c1_133, %c0_134, %c0_135] : memref<4x64x2xbf16, #tpu.memory_space<vmem>>, vector<1x64x2xbf16>
    %212 = vector.shape_cast %211 : vector<1x64x2xbf16> to vector<64x2xbf16>
    %213 = arith.truncf %210 : vector<2x64xf32> to vector<2x64xbf16>
    %cst_136 = arith.constant dense<0.000000e+00> : vector<2x2xf32>
    %214 = tpu.matmul %213, %212, %cst_136 {dimension_numbers = #tpu.dot_dimension_numbers<[1], [0], [0], [1], [0, 0, 1, 1], [], []>} : vector<2x64xbf16>, vector<64x2xbf16>, vector<2x2xf32> -> vector<2x2xf32>
    %c1_137 = arith.constant 1 : index
    %c0_138 = arith.constant 0 : index
    %c0_139 = arith.constant 0 : index
    %215 = vector.load %arg29[%c1_137, %c0_138, %c0_139] : memref<4x1x2xf32, #tpu.memory_space<vmem>>, vector<1x1x2xf32>
    %216 = vector.shape_cast %215 : vector<1x1x2xf32> to vector<1x2xf32>
    %217 = vector.broadcast %216 : vector<1x2xf32> to vector<2x2xf32>
    %218 = arith.addf %214, %217 : vector<2x2xf32>
    %cst_140 = arith.constant dense<0xFF800000> : vector<2xf32>
    %219 = vector.multi_reduction <maximumf>, %218, %cst_140 [1] : vector<2x2xf32> to vector<2xf32>
    %220 = vector.shape_cast %219 : vector<2xf32> to vector<2x1xf32>
    %221 = vector.broadcast %220 : vector<2x1xf32> to vector<2x2xf32>
    %222 = arith.subf %218, %221 : vector<2x2xf32>
    %223 = math.exp %222 : vector<2x2xf32>
    %cst_141 = arith.constant dense<0.000000e+00> : vector<2xf32>
    %224 = vector.multi_reduction <add>, %223, %cst_141 [1] : vector<2x2xf32> to vector<2xf32>
    %225 = vector.shape_cast %224 : vector<2xf32> to vector<2x1xf32>
    %226 = vector.broadcast %225 : vector<2x1xf32> to vector<2x2xf32>
    %227 = arith.divf %223, %226 : vector<2x2xf32>
    %228 = vector.extract_strided_slice %227 {offsets = [0, 0], sizes = [2, 1], strides = [1, 1]} : vector<2x2xf32> to vector<2x1xf32>
    %229 = vector.broadcast %228 : vector<2x1xf32> to vector<2x256xf32>
    %230 = arith.mulf %162, %229 : vector<2x256xf32>
    %c1_142 = arith.constant 1 : index
    %c0_143 = arith.constant 0 : index
    %c0_144 = arith.constant 0 : index
    %231 = vector.load %arg30[%c1_142, %c0_143, %c0_144] : memref<4x256x256xbf16, #tpu.memory_space<vmem>>, vector<1x256x256xbf16>
    %232 = vector.shape_cast %231 : vector<1x256x256xbf16> to vector<256x256xbf16>
    %233 = arith.truncf %230 : vector<2x256xf32> to vector<2x256xbf16>
    %cst_145 = arith.constant dense<0.000000e+00> : vector<2x256xf32>
    %234 = tpu.matmul %233, %232, %cst_145 {dimension_numbers = #tpu.dot_dimension_numbers<[1], [0], [0], [1], [0, 0, 1, 1], [], []>} : vector<2x256xbf16>, vector<256x256xbf16>, vector<2x256xf32> -> vector<2x256xf32>
    %235 = vector.extract_strided_slice %227 {offsets = [0, 1], sizes = [2, 1], strides = [1, 1]} : vector<2x2xf32> to vector<2x1xf32>
    %236 = vector.broadcast %235 : vector<2x1xf32> to vector<2x256xf32>
    %237 = arith.mulf %163, %236 : vector<2x256xf32>
    %c1_146 = arith.constant 1 : index
    %c0_147 = arith.constant 0 : index
    %c0_148 = arith.constant 0 : index
    %238 = vector.load %arg31[%c1_146, %c0_147, %c0_148] : memref<4x256x256xbf16, #tpu.memory_space<vmem>>, vector<1x256x256xbf16>
    %239 = vector.shape_cast %238 : vector<1x256x256xbf16> to vector<256x256xbf16>
    %240 = arith.truncf %237 : vector<2x256xf32> to vector<2x256xbf16>
    %cst_149 = arith.constant dense<0.000000e+00> : vector<2x256xf32>
    %241 = tpu.matmul %240, %239, %cst_149 {dimension_numbers = #tpu.dot_dimension_numbers<[1], [0], [0], [1], [0, 0, 1, 1], [], []>} : vector<2x256xbf16>, vector<256x256xbf16>, vector<2x256xf32> -> vector<2x256xf32>
    %242 = arith.addf %234, %241 : vector<2x256xf32>
    %c1_150 = arith.constant 1 : index
    %c0_151 = arith.constant 0 : index
    %c0_152 = arith.constant 0 : index
    %243 = vector.load %arg32[%c1_150, %c0_151, %c0_152] : memref<4x1x256xf32, #tpu.memory_space<vmem>>, vector<1x1x256xf32>
    %244 = vector.shape_cast %243 : vector<1x1x256xf32> to vector<1x256xf32>
    %245 = vector.broadcast %244 : vector<1x256xf32> to vector<2x256xf32>
    %246 = arith.addf %242, %245 : vector<2x256xf32>
    %cst_153 = arith.constant 0.000000e+00 : f32
    %247 = vector.broadcast %cst_153 : f32 to vector<2x256xf32>
    %248 = arith.maximumf %246, %247 : vector<2x256xf32>
    %249 = vector.broadcast %65 : vector<1x256xf32> to vector<2x256xf32>
    %250 = arith.mulf %248, %249 : vector<2x256xf32>
    %251 = vector.broadcast %66 : vector<1x256xf32> to vector<2x256xf32>
    %252 = arith.addf %250, %251 : vector<2x256xf32>
    %253 = vector.extract_strided_slice %50 {offsets = [0, 512], sizes = [2, 256], strides = [1, 1]} : vector<2x1024xf32> to vector<2x256xf32>
    %254 = vector.extract_strided_slice %64 {offsets = [0, 512], sizes = [2, 256], strides = [1, 1]} : vector<2x1024xf32> to vector<2x256xf32>
    %c2 = arith.constant 2 : index
    %c0_154 = arith.constant 0 : index
    %c0_155 = arith.constant 0 : index
    %255 = vector.load %arg21[%c2, %c0_154, %c0_155] : memref<4x256x128xbf16, #tpu.memory_space<vmem>>, vector<1x256x128xbf16>
    %256 = vector.shape_cast %255 : vector<1x256x128xbf16> to vector<256x128xbf16>
    %257 = arith.truncf %253 : vector<2x256xf32> to vector<2x256xbf16>
    %cst_156 = arith.constant dense<0.000000e+00> : vector<2x128xf32>
    %258 = tpu.matmul %257, %256, %cst_156 {dimension_numbers = #tpu.dot_dimension_numbers<[1], [0], [0], [1], [0, 0, 1, 1], [], []>} : vector<2x256xbf16>, vector<256x128xbf16>, vector<2x128xf32> -> vector<2x128xf32>
    %c2_157 = arith.constant 2 : index
    %c0_158 = arith.constant 0 : index
    %c0_159 = arith.constant 0 : index
    %259 = vector.load %arg22[%c2_157, %c0_158, %c0_159] : memref<4x256x128xbf16, #tpu.memory_space<vmem>>, vector<1x256x128xbf16>
    %260 = vector.shape_cast %259 : vector<1x256x128xbf16> to vector<256x128xbf16>
    %261 = arith.truncf %254 : vector<2x256xf32> to vector<2x256xbf16>
    %cst_160 = arith.constant dense<0.000000e+00> : vector<2x128xf32>
    %262 = tpu.matmul %261, %260, %cst_160 {dimension_numbers = #tpu.dot_dimension_numbers<[1], [0], [0], [1], [0, 0, 1, 1], [], []>} : vector<2x256xbf16>, vector<256x128xbf16>, vector<2x128xf32> -> vector<2x128xf32>
    %263 = arith.addf %258, %262 : vector<2x128xf32>
    %c2_161 = arith.constant 2 : index
    %c0_162 = arith.constant 0 : index
    %c0_163 = arith.constant 0 : index
    %264 = vector.load %arg23[%c2_161, %c0_162, %c0_163] : memref<4x1x128xf32, #tpu.memory_space<vmem>>, vector<1x1x128xf32>
    %265 = vector.shape_cast %264 : vector<1x1x128xf32> to vector<1x128xf32>
    %266 = vector.broadcast %265 : vector<1x128xf32> to vector<2x128xf32>
    %267 = arith.addf %263, %266 : vector<2x128xf32>
    %cst_164 = arith.constant 0.000000e+00 : f32
    %268 = vector.broadcast %cst_164 : f32 to vector<2x128xf32>
    %269 = arith.maximumf %267, %268 : vector<2x128xf32>
    %270 = vector.broadcast %67 : vector<1x128xf32> to vector<2x128xf32>
    %271 = arith.mulf %269, %270 : vector<2x128xf32>
    %272 = vector.broadcast %68 : vector<1x128xf32> to vector<2x128xf32>
    %273 = arith.addf %271, %272 : vector<2x128xf32>
    %c2_165 = arith.constant 2 : index
    %c0_166 = arith.constant 0 : index
    %c0_167 = arith.constant 0 : index
    %274 = vector.load %arg24[%c2_165, %c0_166, %c0_167] : memref<4x128x64xbf16, #tpu.memory_space<vmem>>, vector<1x128x64xbf16>
    %275 = vector.shape_cast %274 : vector<1x128x64xbf16> to vector<128x64xbf16>
    %276 = arith.truncf %273 : vector<2x128xf32> to vector<2x128xbf16>
    %cst_168 = arith.constant dense<0.000000e+00> : vector<2x64xf32>
    %277 = tpu.matmul %276, %275, %cst_168 {dimension_numbers = #tpu.dot_dimension_numbers<[1], [0], [0], [1], [0, 0, 1, 1], [], []>} : vector<2x128xbf16>, vector<128x64xbf16>, vector<2x64xf32> -> vector<2x64xf32>
    %c2_169 = arith.constant 2 : index
    %c0_170 = arith.constant 0 : index
    %c0_171 = arith.constant 0 : index
    %278 = vector.load %arg25[%c2_169, %c0_170, %c0_171] : memref<4x1x64xf32, #tpu.memory_space<vmem>>, vector<1x1x64xf32>
    %279 = vector.shape_cast %278 : vector<1x1x64xf32> to vector<1x64xf32>
    %280 = vector.broadcast %279 : vector<1x64xf32> to vector<2x64xf32>
    %281 = arith.addf %277, %280 : vector<2x64xf32>
    %cst_172 = arith.constant 0.000000e+00 : f32
    %282 = vector.broadcast %cst_172 : f32 to vector<2x64xf32>
    %283 = arith.maximumf %281, %282 : vector<2x64xf32>
    %284 = vector.broadcast %69 : vector<1x64xf32> to vector<2x64xf32>
    %285 = arith.mulf %283, %284 : vector<2x64xf32>
    %286 = vector.broadcast %70 : vector<1x64xf32> to vector<2x64xf32>
    %287 = arith.addf %285, %286 : vector<2x64xf32>
    %c2_173 = arith.constant 2 : index
    %c0_174 = arith.constant 0 : index
    %c0_175 = arith.constant 0 : index
    %288 = vector.load %arg26[%c2_173, %c0_174, %c0_175] : memref<4x64x64xbf16, #tpu.memory_space<vmem>>, vector<1x64x64xbf16>
    %289 = vector.shape_cast %288 : vector<1x64x64xbf16> to vector<64x64xbf16>
    %290 = arith.truncf %287 : vector<2x64xf32> to vector<2x64xbf16>
    %cst_176 = arith.constant dense<0.000000e+00> : vector<2x64xf32>
    %291 = tpu.matmul %290, %289, %cst_176 {dimension_numbers = #tpu.dot_dimension_numbers<[1], [0], [0], [1], [0, 0, 1, 1], [], []>} : vector<2x64xbf16>, vector<64x64xbf16>, vector<2x64xf32> -> vector<2x64xf32>
    %c2_177 = arith.constant 2 : index
    %c0_178 = arith.constant 0 : index
    %c0_179 = arith.constant 0 : index
    %292 = vector.load %arg27[%c2_177, %c0_178, %c0_179] : memref<4x1x64xf32, #tpu.memory_space<vmem>>, vector<1x1x64xf32>
    %293 = vector.shape_cast %292 : vector<1x1x64xf32> to vector<1x64xf32>
    %294 = vector.broadcast %293 : vector<1x64xf32> to vector<2x64xf32>
    %295 = arith.addf %291, %294 : vector<2x64xf32>
    %cst_180 = arith.constant 0.000000e+00 : f32
    %296 = vector.broadcast %cst_180 : f32 to vector<2x64xf32>
    %297 = arith.maximumf %295, %296 : vector<2x64xf32>
    %298 = vector.broadcast %69 : vector<1x64xf32> to vector<2x64xf32>
    %299 = arith.mulf %297, %298 : vector<2x64xf32>
    %300 = vector.broadcast %70 : vector<1x64xf32> to vector<2x64xf32>
    %301 = arith.addf %299, %300 : vector<2x64xf32>
    %c2_181 = arith.constant 2 : index
    %c0_182 = arith.constant 0 : index
    %c0_183 = arith.constant 0 : index
    %302 = vector.load %arg28[%c2_181, %c0_182, %c0_183] : memref<4x64x2xbf16, #tpu.memory_space<vmem>>, vector<1x64x2xbf16>
    %303 = vector.shape_cast %302 : vector<1x64x2xbf16> to vector<64x2xbf16>
    %304 = arith.truncf %301 : vector<2x64xf32> to vector<2x64xbf16>
    %cst_184 = arith.constant dense<0.000000e+00> : vector<2x2xf32>
    %305 = tpu.matmul %304, %303, %cst_184 {dimension_numbers = #tpu.dot_dimension_numbers<[1], [0], [0], [1], [0, 0, 1, 1], [], []>} : vector<2x64xbf16>, vector<64x2xbf16>, vector<2x2xf32> -> vector<2x2xf32>
    %c2_185 = arith.constant 2 : index
    %c0_186 = arith.constant 0 : index
    %c0_187 = arith.constant 0 : index
    %306 = vector.load %arg29[%c2_185, %c0_186, %c0_187] : memref<4x1x2xf32, #tpu.memory_space<vmem>>, vector<1x1x2xf32>
    %307 = vector.shape_cast %306 : vector<1x1x2xf32> to vector<1x2xf32>
    %308 = vector.broadcast %307 : vector<1x2xf32> to vector<2x2xf32>
    %309 = arith.addf %305, %308 : vector<2x2xf32>
    %cst_188 = arith.constant dense<0xFF800000> : vector<2xf32>
    %310 = vector.multi_reduction <maximumf>, %309, %cst_188 [1] : vector<2x2xf32> to vector<2xf32>
    %311 = vector.shape_cast %310 : vector<2xf32> to vector<2x1xf32>
    %312 = vector.broadcast %311 : vector<2x1xf32> to vector<2x2xf32>
    %313 = arith.subf %309, %312 : vector<2x2xf32>
    %314 = math.exp %313 : vector<2x2xf32>
    %cst_189 = arith.constant dense<0.000000e+00> : vector<2xf32>
    %315 = vector.multi_reduction <add>, %314, %cst_189 [1] : vector<2x2xf32> to vector<2xf32>
    %316 = vector.shape_cast %315 : vector<2xf32> to vector<2x1xf32>
    %317 = vector.broadcast %316 : vector<2x1xf32> to vector<2x2xf32>
    %318 = arith.divf %314, %317 : vector<2x2xf32>
    %319 = vector.extract_strided_slice %318 {offsets = [0, 0], sizes = [2, 1], strides = [1, 1]} : vector<2x2xf32> to vector<2x1xf32>
    %320 = vector.broadcast %319 : vector<2x1xf32> to vector<2x256xf32>
    %321 = arith.mulf %253, %320 : vector<2x256xf32>
    %c2_190 = arith.constant 2 : index
    %c0_191 = arith.constant 0 : index
    %c0_192 = arith.constant 0 : index
    %322 = vector.load %arg30[%c2_190, %c0_191, %c0_192] : memref<4x256x256xbf16, #tpu.memory_space<vmem>>, vector<1x256x256xbf16>
    %323 = vector.shape_cast %322 : vector<1x256x256xbf16> to vector<256x256xbf16>
    %324 = arith.truncf %321 : vector<2x256xf32> to vector<2x256xbf16>
    %cst_193 = arith.constant dense<0.000000e+00> : vector<2x256xf32>
    %325 = tpu.matmul %324, %323, %cst_193 {dimension_numbers = #tpu.dot_dimension_numbers<[1], [0], [0], [1], [0, 0, 1, 1], [], []>} : vector<2x256xbf16>, vector<256x256xbf16>, vector<2x256xf32> -> vector<2x256xf32>
    %326 = vector.extract_strided_slice %318 {offsets = [0, 1], sizes = [2, 1], strides = [1, 1]} : vector<2x2xf32> to vector<2x1xf32>
    %327 = vector.broadcast %326 : vector<2x1xf32> to vector<2x256xf32>
    %328 = arith.mulf %254, %327 : vector<2x256xf32>
    %c2_194 = arith.constant 2 : index
    %c0_195 = arith.constant 0 : index
    %c0_196 = arith.constant 0 : index
    %329 = vector.load %arg31[%c2_194, %c0_195, %c0_196] : memref<4x256x256xbf16, #tpu.memory_space<vmem>>, vector<1x256x256xbf16>
    %330 = vector.shape_cast %329 : vector<1x256x256xbf16> to vector<256x256xbf16>
    %331 = arith.truncf %328 : vector<2x256xf32> to vector<2x256xbf16>
    %cst_197 = arith.constant dense<0.000000e+00> : vector<2x256xf32>
    %332 = tpu.matmul %331, %330, %cst_197 {dimension_numbers = #tpu.dot_dimension_numbers<[1], [0], [0], [1], [0, 0, 1, 1], [], []>} : vector<2x256xbf16>, vector<256x256xbf16>, vector<2x256xf32> -> vector<2x256xf32>
    %333 = arith.addf %325, %332 : vector<2x256xf32>
    %c2_198 = arith.constant 2 : index
    %c0_199 = arith.constant 0 : index
    %c0_200 = arith.constant 0 : index
    %334 = vector.load %arg32[%c2_198, %c0_199, %c0_200] : memref<4x1x256xf32, #tpu.memory_space<vmem>>, vector<1x1x256xf32>
    %335 = vector.shape_cast %334 : vector<1x1x256xf32> to vector<1x256xf32>
    %336 = vector.broadcast %335 : vector<1x256xf32> to vector<2x256xf32>
    %337 = arith.addf %333, %336 : vector<2x256xf32>
    %cst_201 = arith.constant 0.000000e+00 : f32
    %338 = vector.broadcast %cst_201 : f32 to vector<2x256xf32>
    %339 = arith.maximumf %337, %338 : vector<2x256xf32>
    %340 = vector.broadcast %65 : vector<1x256xf32> to vector<2x256xf32>
    %341 = arith.mulf %339, %340 : vector<2x256xf32>
    %342 = vector.broadcast %66 : vector<1x256xf32> to vector<2x256xf32>
    %343 = arith.addf %341, %342 : vector<2x256xf32>
    %344 = vector.extract_strided_slice %50 {offsets = [0, 768], sizes = [2, 256], strides = [1, 1]} : vector<2x1024xf32> to vector<2x256xf32>
    %345 = vector.extract_strided_slice %64 {offsets = [0, 768], sizes = [2, 256], strides = [1, 1]} : vector<2x1024xf32> to vector<2x256xf32>
    %c3 = arith.constant 3 : index
    %c0_202 = arith.constant 0 : index
    %c0_203 = arith.constant 0 : index
    %346 = vector.load %arg21[%c3, %c0_202, %c0_203] : memref<4x256x128xbf16, #tpu.memory_space<vmem>>, vector<1x256x128xbf16>
    %347 = vector.shape_cast %346 : vector<1x256x128xbf16> to vector<256x128xbf16>
    %348 = arith.truncf %344 : vector<2x256xf32> to vector<2x256xbf16>
    %cst_204 = arith.constant dense<0.000000e+00> : vector<2x128xf32>
    %349 = tpu.matmul %348, %347, %cst_204 {dimension_numbers = #tpu.dot_dimension_numbers<[1], [0], [0], [1], [0, 0, 1, 1], [], []>} : vector<2x256xbf16>, vector<256x128xbf16>, vector<2x128xf32> -> vector<2x128xf32>
    %c3_205 = arith.constant 3 : index
    %c0_206 = arith.constant 0 : index
    %c0_207 = arith.constant 0 : index
    %350 = vector.load %arg22[%c3_205, %c0_206, %c0_207] : memref<4x256x128xbf16, #tpu.memory_space<vmem>>, vector<1x256x128xbf16>
    %351 = vector.shape_cast %350 : vector<1x256x128xbf16> to vector<256x128xbf16>
    %352 = arith.truncf %345 : vector<2x256xf32> to vector<2x256xbf16>
    %cst_208 = arith.constant dense<0.000000e+00> : vector<2x128xf32>
    %353 = tpu.matmul %352, %351, %cst_208 {dimension_numbers = #tpu.dot_dimension_numbers<[1], [0], [0], [1], [0, 0, 1, 1], [], []>} : vector<2x256xbf16>, vector<256x128xbf16>, vector<2x128xf32> -> vector<2x128xf32>
    %354 = arith.addf %349, %353 : vector<2x128xf32>
    %c3_209 = arith.constant 3 : index
    %c0_210 = arith.constant 0 : index
    %c0_211 = arith.constant 0 : index
    %355 = vector.load %arg23[%c3_209, %c0_210, %c0_211] : memref<4x1x128xf32, #tpu.memory_space<vmem>>, vector<1x1x128xf32>
    %356 = vector.shape_cast %355 : vector<1x1x128xf32> to vector<1x128xf32>
    %357 = vector.broadcast %356 : vector<1x128xf32> to vector<2x128xf32>
    %358 = arith.addf %354, %357 : vector<2x128xf32>
    %cst_212 = arith.constant 0.000000e+00 : f32
    %359 = vector.broadcast %cst_212 : f32 to vector<2x128xf32>
    %360 = arith.maximumf %358, %359 : vector<2x128xf32>
    %361 = vector.broadcast %67 : vector<1x128xf32> to vector<2x128xf32>
    %362 = arith.mulf %360, %361 : vector<2x128xf32>
    %363 = vector.broadcast %68 : vector<1x128xf32> to vector<2x128xf32>
    %364 = arith.addf %362, %363 : vector<2x128xf32>
    %c3_213 = arith.constant 3 : index
    %c0_214 = arith.constant 0 : index
    %c0_215 = arith.constant 0 : index
    %365 = vector.load %arg24[%c3_213, %c0_214, %c0_215] : memref<4x128x64xbf16, #tpu.memory_space<vmem>>, vector<1x128x64xbf16>
    %366 = vector.shape_cast %365 : vector<1x128x64xbf16> to vector<128x64xbf16>
    %367 = arith.truncf %364 : vector<2x128xf32> to vector<2x128xbf16>
    %cst_216 = arith.constant dense<0.000000e+00> : vector<2x64xf32>
    %368 = tpu.matmul %367, %366, %cst_216 {dimension_numbers = #tpu.dot_dimension_numbers<[1], [0], [0], [1], [0, 0, 1, 1], [], []>} : vector<2x128xbf16>, vector<128x64xbf16>, vector<2x64xf32> -> vector<2x64xf32>
    %c3_217 = arith.constant 3 : index
    %c0_218 = arith.constant 0 : index
    %c0_219 = arith.constant 0 : index
    %369 = vector.load %arg25[%c3_217, %c0_218, %c0_219] : memref<4x1x64xf32, #tpu.memory_space<vmem>>, vector<1x1x64xf32>
    %370 = vector.shape_cast %369 : vector<1x1x64xf32> to vector<1x64xf32>
    %371 = vector.broadcast %370 : vector<1x64xf32> to vector<2x64xf32>
    %372 = arith.addf %368, %371 : vector<2x64xf32>
    %cst_220 = arith.constant 0.000000e+00 : f32
    %373 = vector.broadcast %cst_220 : f32 to vector<2x64xf32>
    %374 = arith.maximumf %372, %373 : vector<2x64xf32>
    %375 = vector.broadcast %69 : vector<1x64xf32> to vector<2x64xf32>
    %376 = arith.mulf %374, %375 : vector<2x64xf32>
    %377 = vector.broadcast %70 : vector<1x64xf32> to vector<2x64xf32>
    %378 = arith.addf %376, %377 : vector<2x64xf32>
    %c3_221 = arith.constant 3 : index
    %c0_222 = arith.constant 0 : index
    %c0_223 = arith.constant 0 : index
    %379 = vector.load %arg26[%c3_221, %c0_222, %c0_223] : memref<4x64x64xbf16, #tpu.memory_space<vmem>>, vector<1x64x64xbf16>
    %380 = vector.shape_cast %379 : vector<1x64x64xbf16> to vector<64x64xbf16>
    %381 = arith.truncf %378 : vector<2x64xf32> to vector<2x64xbf16>
    %cst_224 = arith.constant dense<0.000000e+00> : vector<2x64xf32>
    %382 = tpu.matmul %381, %380, %cst_224 {dimension_numbers = #tpu.dot_dimension_numbers<[1], [0], [0], [1], [0, 0, 1, 1], [], []>} : vector<2x64xbf16>, vector<64x64xbf16>, vector<2x64xf32> -> vector<2x64xf32>
    %c3_225 = arith.constant 3 : index
    %c0_226 = arith.constant 0 : index
    %c0_227 = arith.constant 0 : index
    %383 = vector.load %arg27[%c3_225, %c0_226, %c0_227] : memref<4x1x64xf32, #tpu.memory_space<vmem>>, vector<1x1x64xf32>
    %384 = vector.shape_cast %383 : vector<1x1x64xf32> to vector<1x64xf32>
    %385 = vector.broadcast %384 : vector<1x64xf32> to vector<2x64xf32>
    %386 = arith.addf %382, %385 : vector<2x64xf32>
    %cst_228 = arith.constant 0.000000e+00 : f32
    %387 = vector.broadcast %cst_228 : f32 to vector<2x64xf32>
    %388 = arith.maximumf %386, %387 : vector<2x64xf32>
    %389 = vector.broadcast %69 : vector<1x64xf32> to vector<2x64xf32>
    %390 = arith.mulf %388, %389 : vector<2x64xf32>
    %391 = vector.broadcast %70 : vector<1x64xf32> to vector<2x64xf32>
    %392 = arith.addf %390, %391 : vector<2x64xf32>
    %c3_229 = arith.constant 3 : index
    %c0_230 = arith.constant 0 : index
    %c0_231 = arith.constant 0 : index
    %393 = vector.load %arg28[%c3_229, %c0_230, %c0_231] : memref<4x64x2xbf16, #tpu.memory_space<vmem>>, vector<1x64x2xbf16>
    %394 = vector.shape_cast %393 : vector<1x64x2xbf16> to vector<64x2xbf16>
    %395 = arith.truncf %392 : vector<2x64xf32> to vector<2x64xbf16>
    %cst_232 = arith.constant dense<0.000000e+00> : vector<2x2xf32>
    %396 = tpu.matmul %395, %394, %cst_232 {dimension_numbers = #tpu.dot_dimension_numbers<[1], [0], [0], [1], [0, 0, 1, 1], [], []>} : vector<2x64xbf16>, vector<64x2xbf16>, vector<2x2xf32> -> vector<2x2xf32>
    %c3_233 = arith.constant 3 : index
    %c0_234 = arith.constant 0 : index
    %c0_235 = arith.constant 0 : index
    %397 = vector.load %arg29[%c3_233, %c0_234, %c0_235] : memref<4x1x2xf32, #tpu.memory_space<vmem>>, vector<1x1x2xf32>
    %398 = vector.shape_cast %397 : vector<1x1x2xf32> to vector<1x2xf32>
    %399 = vector.broadcast %398 : vector<1x2xf32> to vector<2x2xf32>
    %400 = arith.addf %396, %399 : vector<2x2xf32>
    %cst_236 = arith.constant dense<0xFF800000> : vector<2xf32>
    %401 = vector.multi_reduction <maximumf>, %400, %cst_236 [1] : vector<2x2xf32> to vector<2xf32>
    %402 = vector.shape_cast %401 : vector<2xf32> to vector<2x1xf32>
    %403 = vector.broadcast %402 : vector<2x1xf32> to vector<2x2xf32>
    %404 = arith.subf %400, %403 : vector<2x2xf32>
    %405 = math.exp %404 : vector<2x2xf32>
    %cst_237 = arith.constant dense<0.000000e+00> : vector<2xf32>
    %406 = vector.multi_reduction <add>, %405, %cst_237 [1] : vector<2x2xf32> to vector<2xf32>
    %407 = vector.shape_cast %406 : vector<2xf32> to vector<2x1xf32>
    %408 = vector.broadcast %407 : vector<2x1xf32> to vector<2x2xf32>
    %409 = arith.divf %405, %408 : vector<2x2xf32>
    %410 = vector.extract_strided_slice %409 {offsets = [0, 0], sizes = [2, 1], strides = [1, 1]} : vector<2x2xf32> to vector<2x1xf32>
    %411 = vector.broadcast %410 : vector<2x1xf32> to vector<2x256xf32>
    %412 = arith.mulf %344, %411 : vector<2x256xf32>
    %c3_238 = arith.constant 3 : index
    %c0_239 = arith.constant 0 : index
    %c0_240 = arith.constant 0 : index
    %413 = vector.load %arg30[%c3_238, %c0_239, %c0_240] : memref<4x256x256xbf16, #tpu.memory_space<vmem>>, vector<1x256x256xbf16>
    %414 = vector.shape_cast %413 : vector<1x256x256xbf16> to vector<256x256xbf16>
    %415 = arith.truncf %412 : vector<2x256xf32> to vector<2x256xbf16>
    %cst_241 = arith.constant dense<0.000000e+00> : vector<2x256xf32>
    %416 = tpu.matmul %415, %414, %cst_241 {dimension_numbers = #tpu.dot_dimension_numbers<[1], [0], [0], [1], [0, 0, 1, 1], [], []>} : vector<2x256xbf16>, vector<256x256xbf16>, vector<2x256xf32> -> vector<2x256xf32>
    %417 = vector.extract_strided_slice %409 {offsets = [0, 1], sizes = [2, 1], strides = [1, 1]} : vector<2x2xf32> to vector<2x1xf32>
    %418 = vector.broadcast %417 : vector<2x1xf32> to vector<2x256xf32>
    %419 = arith.mulf %345, %418 : vector<2x256xf32>
    %c3_242 = arith.constant 3 : index
    %c0_243 = arith.constant 0 : index
    %c0_244 = arith.constant 0 : index
    %420 = vector.load %arg31[%c3_242, %c0_243, %c0_244] : memref<4x256x256xbf16, #tpu.memory_space<vmem>>, vector<1x256x256xbf16>
    %421 = vector.shape_cast %420 : vector<1x256x256xbf16> to vector<256x256xbf16>
    %422 = arith.truncf %419 : vector<2x256xf32> to vector<2x256xbf16>
    %cst_245 = arith.constant dense<0.000000e+00> : vector<2x256xf32>
    %423 = tpu.matmul %422, %421, %cst_245 {dimension_numbers = #tpu.dot_dimension_numbers<[1], [0], [0], [1], [0, 0, 1, 1], [], []>} : vector<2x256xbf16>, vector<256x256xbf16>, vector<2x256xf32> -> vector<2x256xf32>
    %424 = arith.addf %416, %423 : vector<2x256xf32>
    %c3_246 = arith.constant 3 : index
    %c0_247 = arith.constant 0 : index
    %c0_248 = arith.constant 0 : index
    %425 = vector.load %arg32[%c3_246, %c0_247, %c0_248] : memref<4x1x256xf32, #tpu.memory_space<vmem>>, vector<1x1x256xf32>
    %426 = vector.shape_cast %425 : vector<1x1x256xf32> to vector<1x256xf32>
    %427 = vector.broadcast %426 : vector<1x256xf32> to vector<2x256xf32>
    %428 = arith.addf %424, %427 : vector<2x256xf32>
    %cst_249 = arith.constant 0.000000e+00 : f32
    %429 = vector.broadcast %cst_249 : f32 to vector<2x256xf32>
    %430 = arith.maximumf %428, %429 : vector<2x256xf32>
    %431 = vector.broadcast %65 : vector<1x256xf32> to vector<2x256xf32>
    %432 = arith.mulf %430, %431 : vector<2x256xf32>
    %433 = vector.broadcast %66 : vector<1x256xf32> to vector<2x256xf32>
    %434 = arith.addf %432, %433 : vector<2x256xf32>
    %435 = tpu.concatenate %161, %252, %343, %434 in 1 : vector<2x256xf32>, vector<2x256xf32>, vector<2x256xf32>, vector<2x256xf32> -> vector<2x1024xf32>
    %c0_250 = arith.constant 0 : index
    %c0_251 = arith.constant 0 : index
    %436 = vector.load %arg33[%c0_250, %c0_251] : memref<1024x16xbf16, #tpu.memory_space<vmem>>, vector<1024x16xbf16>
    %437 = arith.truncf %435 : vector<2x1024xf32> to vector<2x1024xbf16>
    %cst_252 = arith.constant dense<0.000000e+00> : vector<2x16xf32>
    %438 = tpu.matmul %437, %436, %cst_252 {dimension_numbers = #tpu.dot_dimension_numbers<[1], [0], [0], [1], [0, 0, 1, 1], [], []>} : vector<2x1024xbf16>, vector<1024x16xbf16>, vector<2x16xf32> -> vector<2x16xf32>
    %c0_253 = arith.constant 0 : index
    %c0_254 = arith.constant 0 : index
    %439 = vector.load %arg34[%c0_253, %c0_254] : memref<1x16xf32, #tpu.memory_space<vmem>>, vector<1x16xf32>
    %440 = vector.broadcast %439 : vector<1x16xf32> to vector<2x16xf32>
    %441 = arith.addf %438, %440 : vector<2x16xf32>
    %442 = tpu.iota {dimensions = array<i32: 1>} : vector<2x16xi32>
    %c3_i32 = arith.constant 3 : i32
    %443 = vector.broadcast %c3_i32 : i32 to vector<2x16xi32>
    %444 = arith.cmpi slt, %442, %443 : vector<2x16xi32>
    %c6_i32 = arith.constant 6 : i32
    %445 = vector.broadcast %c6_i32 : i32 to vector<2x16xi32>
    %446 = arith.cmpi slt, %442, %445 : vector<2x16xi32>
    %c12_i32 = arith.constant 12 : i32
    %447 = vector.broadcast %c12_i32 : i32 to vector<2x16xi32>
    %448 = arith.cmpi slt, %442, %447 : vector<2x16xi32>
    %c2_i32 = arith.constant 2 : i32
    %c3_i32_255 = arith.constant 3 : i32
    %449 = vector.broadcast %c2_i32 : i32 to vector<2x16xi32>
    %450 = vector.broadcast %c3_i32_255 : i32 to vector<2x16xi32>
    %451 = arith.select %448, %449, %450 : vector<2x16xi1>, vector<2x16xi32>
    %c1_i32 = arith.constant 1 : i32
    %452 = vector.broadcast %c1_i32 : i32 to vector<2x16xi32>
    %453 = arith.select %446, %452, %451 : vector<2x16xi1>, vector<2x16xi32>
    %c0_i32 = arith.constant 0 : i32
    %454 = vector.broadcast %c0_i32 : i32 to vector<2x16xi32>
    %455 = arith.select %444, %454, %453 : vector<2x16xi1>, vector<2x16xi32>
    %cst_256 = arith.constant 0.000000e+00 : f32
    %456 = vector.broadcast %cst_256 : f32 to vector<2x16xf32>
    %c0_i32_257 = arith.constant 0 : i32
    %457 = vector.broadcast %c0_i32_257 : i32 to vector<2x16xi32>
    %458 = arith.cmpi eq, %455, %457 : vector<2x16xi32>
    %cst_258 = arith.constant 0xFF800000 : f32
    %459 = vector.broadcast %cst_258 : f32 to vector<2x16xf32>
    %460 = arith.select %458, %441, %459 : vector<2x16xi1>, vector<2x16xf32>
    %cst_259 = arith.constant dense<0xFF800000> : vector<2xf32>
    %461 = vector.multi_reduction <maximumf>, %460, %cst_259 [1] : vector<2x16xf32> to vector<2xf32>
    %462 = vector.shape_cast %461 : vector<2xf32> to vector<2x1xf32>
    %463 = vector.broadcast %462 : vector<2x1xf32> to vector<2x16xf32>
    %464 = arith.subf %441, %463 : vector<2x16xf32>
    %465 = math.exp %464 : vector<2x16xf32>
    %cst_260 = arith.constant 0.000000e+00 : f32
    %466 = vector.broadcast %cst_260 : f32 to vector<2x16xf32>
    %467 = arith.select %458, %465, %466 : vector<2x16xi1>, vector<2x16xf32>
    %cst_261 = arith.constant dense<0.000000e+00> : vector<2xf32>
    %468 = vector.multi_reduction <add>, %467, %cst_261 [1] : vector<2x16xf32> to vector<2xf32>
    %469 = vector.shape_cast %468 : vector<2xf32> to vector<2x1xf32>
    %470 = vector.broadcast %469 : vector<2x1xf32> to vector<2x16xf32>
    %471 = arith.divf %467, %470 : vector<2x16xf32>
    %472 = arith.addf %456, %471 : vector<2x16xf32>
    %c1_i32_262 = arith.constant 1 : i32
    %473 = vector.broadcast %c1_i32_262 : i32 to vector<2x16xi32>
    %474 = arith.cmpi eq, %455, %473 : vector<2x16xi32>
    %cst_263 = arith.constant 0xFF800000 : f32
    %475 = vector.broadcast %cst_263 : f32 to vector<2x16xf32>
    %476 = arith.select %474, %441, %475 : vector<2x16xi1>, vector<2x16xf32>
    %cst_264 = arith.constant dense<0xFF800000> : vector<2xf32>
    %477 = vector.multi_reduction <maximumf>, %476, %cst_264 [1] : vector<2x16xf32> to vector<2xf32>
    %478 = vector.shape_cast %477 : vector<2xf32> to vector<2x1xf32>
    %479 = vector.broadcast %478 : vector<2x1xf32> to vector<2x16xf32>
    %480 = arith.subf %441, %479 : vector<2x16xf32>
    %481 = math.exp %480 : vector<2x16xf32>
    %cst_265 = arith.constant 0.000000e+00 : f32
    %482 = vector.broadcast %cst_265 : f32 to vector<2x16xf32>
    %483 = arith.select %474, %481, %482 : vector<2x16xi1>, vector<2x16xf32>
    %cst_266 = arith.constant dense<0.000000e+00> : vector<2xf32>
    %484 = vector.multi_reduction <add>, %483, %cst_266 [1] : vector<2x16xf32> to vector<2xf32>
    %485 = vector.shape_cast %484 : vector<2xf32> to vector<2x1xf32>
    %486 = vector.broadcast %485 : vector<2x1xf32> to vector<2x16xf32>
    %487 = arith.divf %483, %486 : vector<2x16xf32>
    %488 = arith.addf %472, %487 : vector<2x16xf32>
    %c2_i32_267 = arith.constant 2 : i32
    %489 = vector.broadcast %c2_i32_267 : i32 to vector<2x16xi32>
    %490 = arith.cmpi eq, %455, %489 : vector<2x16xi32>
    %cst_268 = arith.constant 0xFF800000 : f32
    %491 = vector.broadcast %cst_268 : f32 to vector<2x16xf32>
    %492 = arith.select %490, %441, %491 : vector<2x16xi1>, vector<2x16xf32>
    %cst_269 = arith.constant dense<0xFF800000> : vector<2xf32>
    %493 = vector.multi_reduction <maximumf>, %492, %cst_269 [1] : vector<2x16xf32> to vector<2xf32>
    %494 = vector.shape_cast %493 : vector<2xf32> to vector<2x1xf32>
    %495 = vector.broadcast %494 : vector<2x1xf32> to vector<2x16xf32>
    %496 = arith.subf %441, %495 : vector<2x16xf32>
    %497 = math.exp %496 : vector<2x16xf32>
    %cst_270 = arith.constant 0.000000e+00 : f32
    %498 = vector.broadcast %cst_270 : f32 to vector<2x16xf32>
    %499 = arith.select %490, %497, %498 : vector<2x16xi1>, vector<2x16xf32>
    %cst_271 = arith.constant dense<0.000000e+00> : vector<2xf32>
    %500 = vector.multi_reduction <add>, %499, %cst_271 [1] : vector<2x16xf32> to vector<2xf32>
    %501 = vector.shape_cast %500 : vector<2xf32> to vector<2x1xf32>
    %502 = vector.broadcast %501 : vector<2x1xf32> to vector<2x16xf32>
    %503 = arith.divf %499, %502 : vector<2x16xf32>
    %504 = arith.addf %488, %503 : vector<2x16xf32>
    %c3_i32_272 = arith.constant 3 : i32
    %505 = vector.broadcast %c3_i32_272 : i32 to vector<2x16xi32>
    %506 = arith.cmpi eq, %455, %505 : vector<2x16xi32>
    %cst_273 = arith.constant 0xFF800000 : f32
    %507 = vector.broadcast %cst_273 : f32 to vector<2x16xf32>
    %508 = arith.select %506, %441, %507 : vector<2x16xi1>, vector<2x16xf32>
    %cst_274 = arith.constant dense<0xFF800000> : vector<2xf32>
    %509 = vector.multi_reduction <maximumf>, %508, %cst_274 [1] : vector<2x16xf32> to vector<2xf32>
    %510 = vector.shape_cast %509 : vector<2xf32> to vector<2x1xf32>
    %511 = vector.broadcast %510 : vector<2x1xf32> to vector<2x16xf32>
    %512 = arith.subf %441, %511 : vector<2x16xf32>
    %513 = math.exp %512 : vector<2x16xf32>
    %cst_275 = arith.constant 0.000000e+00 : f32
    %514 = vector.broadcast %cst_275 : f32 to vector<2x16xf32>
    %515 = arith.select %506, %513, %514 : vector<2x16xi1>, vector<2x16xf32>
    %cst_276 = arith.constant dense<0.000000e+00> : vector<2xf32>
    %516 = vector.multi_reduction <add>, %515, %cst_276 [1] : vector<2x16xf32> to vector<2xf32>
    %517 = vector.shape_cast %516 : vector<2xf32> to vector<2x1xf32>
    %518 = vector.broadcast %517 : vector<2x1xf32> to vector<2x16xf32>
    %519 = arith.divf %515, %518 : vector<2x16xf32>
    %520 = arith.addf %504, %519 : vector<2x16xf32>
    %c0_277 = arith.constant 0 : index
    %c0_278 = arith.constant 0 : index
    %521 = vector.load %arg35[%c0_277, %c0_278] : memref<2x16xf32, #tpu.memory_space<vmem>>, vector<2x16xf32>
    tpu.vector_store %arg35[%c0_277, %c0_278], %520 {strides = array<i32>} : memref<2x16xf32, #tpu.memory_space<vmem>>, vector<2x16xf32>,
    return
  }
}

</mosaic_0001>

<bundles_post_ra>
// kernel: forward.1
= control target key start
LH: loop header
LB: loop body
LE: loop exit
PB: predicated region body
PF: predicated region fallthrough
CT: control target
= control target key end

     0   :  { %s11909_s6 = smov 1   ;;  %s11910_s10 = smov 2   ;;  %s13121_s0 = inlined_call_operand.smem [shape: u32[36], index: -1, kind: input, shape index: {}] }
   0x1   :  { %s11991_s5 = sld [smem:[%s13121_s0]]   ;;  %s11911_s14 = smov 3  }
   0x2   :  { %s11996_s9 = sld [smem:[%s13121_s0 + %s11909_s6]]   ;;  %s11912_s18 = smov 4  }
   0x3   :  { %s12001_s13 = sld [smem:[%s13121_s0 + %s11910_s10]]   ;;  %s11913_s22 = smov 5  }
   0x4   :  { %s12006_s17 = sld [smem:[%s13121_s0 + %s11911_s14]]   ;;  %s11914_s26 = smov 6  }
   0x5   :  { %s12011_s21 = sld [smem:[%s13121_s0 + %s11912_s18]]   ;;  %s11915_s30 = smov 7  }
   0x6   :  { %s12016_s25 = sld [smem:[%s13121_s0 + %s11913_s22]]   ;;  %s11916_s4 = smov 8  }
   0x7   :  { %13137 = sst [smem:[#allocation52_spill]] %s11991_s5  ;;  %s11917_s10 = smov 9  }
   0x8   :  { %13138 = sst [smem:[#allocation53_spill]] %s11996_s9  ;;  %s11918_s15 = smov 10  }
   0x9   :  { %13139 = sst [smem:[#allocation54_spill]] %s12001_s13  ;;  %s11919_s20 = smov 11  }
   0xa   :  { %s12021_s29 = sld [smem:[%s13121_s0 + %s11914_s26]]   ;;  %s11920_s26 = smov 12  }
   0xb   :  { %s12026_s3 = sld [smem:[%s13121_s0 + %s11915_s30]]   ;;  %s11921_s1 = smov 13  }
   0xc   :  { %13140 = sst [smem:[#allocation55_spill]] %s12016_s25  ;;  %s11922_s7 = smov 14  }
   0xd   :  { %s12031_s8 = sld [smem:[%s13121_s0 + %s11916_s4]]   ;;  %s11924_s22 = smov 16  }
   0xe   :  { %s12036_s14 = sld [smem:[%s13121_s0 + %s11917_s10]]   ;;  %s11925_s28 = smov 17  }
   0xf   :  { %s12041_s19 = sld [smem:[%s13121_s0 + %s11918_s15]]   ;;  %s11923_s15 = smov 15  }
  0x10   :  { %s12046_s24 = sld [smem:[%s13121_s0 + %s11919_s20]]  }
  0x11   :  { %s12051_s30 = sld [smem:[%s13121_s0 + %s11920_s26]]  }
  0x12   :  { %s12056_s6 = sld [smem:[%s13121_s0 + %s11921_s1]]  }
  0x13   :  { %s12061_s12 = sld [smem:[%s13121_s0 + %s11922_s7]]   ;;  %s11926_s7 = smov 18  }
  0x14   :  { %s12066_s20 = sld [smem:[%s13121_s0 + %s11923_s15]]   ;;  %s11927_s15 = smov 19  }
  0x15   :  { %13141 = sst [smem:[#allocation56_spill]] %s12041_s19 }
  0x16   :  { %s12071_s27 = sld [smem:[%s13121_s0 + %s11924_s22]]   ;;  %s11928_s22 = smov 20  }
  0x17   :  { %13142 = sst [smem:[#allocation57_spill]] %s12051_s30 }
  0x18   :  { %13143 = sst [smem:[#allocation58_spill]] %s12056_s6 }
  0x19   :  { %s12076_s4 = sld [smem:[%s13121_s0 + %s11925_s28]]   ;;  %s11929_s28 = smov 21  }
  0x1a   :  { %13144 = sst [smem:[#allocation59_spill]] %s12066_s20 }
  0x1b   :  { %s12081_s6 = sld [smem:[%s13121_s0 + %s11926_s7]]   ;;  %s11930_s7 = smov 22  }
  0x1c   :  { %s12086_s13 = sld [smem:[%s13121_s0 + %s11927_s15]]   ;;  %s11931_s15 = smov 23  }
  0x1d   :  { %s12091_s25 = sld [smem:[%s13121_s0 + %s11928_s22]]   ;;  %s11932_s22 = smov 24  }
  0x1e   :  { %s12101_s5 = sld [smem:[%s13121_s0 + %s11930_s7]]   ;;  %s11934_s7 = smov 26  }
  0x1f   :  { %13145 = sst [smem:[#allocation60_spill]] %s12076_s4 }
  0x20   :  { %s12096_s4 = sld [smem:[%s13121_s0 + %s11929_s28]]   ;;  %s11933_s28 = smov 25  }
  0x21   :  { %13146 = sst [smem:[#allocation61_spill]] %s12081_s6 }
  0x22   :  { %s12106_s9 = sld [smem:[%s13121_s0 + %s11931_s15]]   ;;  %s11935_s15 = smov 27  }
  0x23   :  { %13147 = sst [smem:[#allocation62_spill]] %s12091_s25 }
  0x24   :  { %13148 = sst [smem:[#allocation63_spill]] %s12101_s5 }
  0x25   :  { %s12111_s25 = sld [smem:[%s13121_s0 + %s11932_s22]]   ;;  %s11936_s22 = smov 28  }
  0x26   :  { %s12116_s6 = sld [smem:[%s13121_s0 + %s11933_s28]]   ;;  %s11937_s28 = smov 29  }
  0x27   :  { %s12121_s5 = sld [smem:[%s13121_s0 + %s11934_s7]]   ;;  %s11938_s7 = smov 30  }
  0x28   :  { %s12126_s20 = sld [smem:[%s13121_s0 + %s11935_s15]]   ;;  %s11939_s15 = smov 31  }
  0x29   :  { %s12146_s30 = sld [smem:[%s13121_s0 + %s11939_s15]]   ;;  %s11943_s15 = smov 35  }
  0x2a   :  { %s12166_s19 = sld [smem:[%s13121_s0 + %s11943_s15]]  }
  0x2b   :  { %13149 = sst [smem:[#allocation64_spill]] %s12111_s25 }
  0x2c   :  { %13150 = sst [smem:[#allocation65_spill]] %s12116_s6 }
  0x2d   :  { %13151 = sst [smem:[#allocation66_spill]] %s12121_s5 }
  0x2e   :  { %s12131_s25 = sld [smem:[%s13121_s0 + %s11936_s22]]   ;;  %s11940_s22 = smov 32  }
  0x2f   :  { %s12136_s6 = sld [smem:[%s13121_s0 + %s11937_s28]]   ;;  %s11941_s28 = smov 33  }
  0x30   :  { %s12141_s5 = sld [smem:[%s13121_s0 + %s11938_s7]]   ;;  %s11942_s7 = smov 34  }
  0x34   :  { %13152 = sst [smem:[#allocation67_spill]] %s12131_s25 }
  0x35   :  { %13153 = sst [smem:[#allocation68_spill]] %s12136_s6 }
  0x36   :  { %13154 = sst [smem:[#allocation69_spill]] %s12141_s5 }
  0x37   :  { %s12151_s25 = sld [smem:[%s13121_s0 + %s11940_s22]]  }
  0x38   :  { %s12156_s6 = sld [smem:[%s13121_s0 + %s11941_s28]]  }
  0x39   :  { %s12161_s5 = sld [smem:[%s13121_s0 + %s11942_s7]]  }
  0x3a   :  { %76 = vsyncpa [#allocation3], 0 }
  0x3b   :  { %77 = vsyncpa [#allocation5], 0 }
  0x3c   :  { %78 = vsyncpa [#allocation8], 0 }
  0x3d   :  { %79 = vsyncpa [#allocation11], 0 }
  0x3e   :  { %80 = vsyncpa [#allocation14], 0 }
  0x3f   :  { %81 = vsyncpa [#allocation17], 0 }
  0x40   :  { %82 = vsyncpa [#allocation20], 0 }
  0x41   :  { %83 = vsyncpa [#allocation23], 0 }
  0x42   :  { %84 = vsyncpa [#allocation26], 0 }
  0x43   :  { %85 = vsyncpa [#allocation29], 0 }
  0x44   :  { %86 = vsyncpa [#allocation32], 0 }
  0x45   :  { %87 = vsyncpa [#allocation35], 0 }
  0x46   :  { %88 = vsyncpa [#allocation38], 0  ;;  %s11944_s22 = smov [#allocation4]   ;;  %s11945_s0 = smov [#allocation7]  }
  0x47   :  { %s113_s23 = sshll.u32 %s11944_s22, 4  ;;  %s135_s26 = sshll.u32 %s11945_s0, 4  ;;  %s114_s23 = int_to_ptr.vmem [resolvable:$true] %s113_s23  ;;  %s136_s26 = int_to_ptr.vmem [resolvable:$true] %s135_s26 }
  0x48   :  { %s11355_s28 = scalar_lea.hbm %s12011_s21, 32 }
  0x49   :  { %p11356_p0 = scmp.ne.s32.totalorder %s12011_s21, %s11355_s28  ;;  %p11359_p1 = scmp.lt.u32.totalorder %s11355_s28, %s12011_s21 }
  0x4b   :  { %p11361_p2 = pnand %p11359_p1, %p11356_p0 }
  0x4d   :  { %11364 = shalt.err (!%p11361_p2)
}
  0x4e   :  { %s11365_s1 = scalar_lea.vmem %s114_s23, 32  ;;  %p11370_p4 = scmp.lt.s32.totalorder %s114_s23, %s114_s23 }
  0x4f   :  { %p11366_p3 = scmp.ne.s32.totalorder %s114_s23, %s11365_s1  ;;  %p11371_p5 = scmp.lt.s32.totalorder %s11365_s1, %s11365_s1 }
  0x51   :  { %p11372_p6 = por %p11371_p5, %p11370_p4 }
  0x53   :  { %p11373_p7 = pnand %p11372_p6, %p11366_p3 }
  0x55   :  { %11376 = shalt.err (!%p11373_p7)
}
  0x56   :  { %116 = dma.hbm_to_vmem [thread:$0]  %s12011_s21, 32, %s114_s23, [#allocation5]  }
  0x57   :  { %s11377_s2 = scalar_lea.hbm %s12026_s3, 32 }
  0x58   :  { %p11378_p8 = scmp.ne.s32.totalorder %s12026_s3, %s11377_s2  ;;  %p11381_p9 = scmp.lt.u32.totalorder %s11377_s2, %s12026_s3 }
  0x5a   :  { %p11383_p10 = pnand %p11381_p9, %p11378_p8 }
  0x5c   :  { %11386 = shalt.err (!%p11383_p10)
}
  0x5d   :  { %s11387_s7 = scalar_lea.vmem %s136_s26, 32  ;;  %p11392_p12 = scmp.lt.s32.totalorder %s136_s26, %s136_s26 }
  0x5e   :  { %p11388_p11 = scmp.ne.s32.totalorder %s136_s26, %s11387_s7  ;;  %p11393_p13 = scmp.lt.s32.totalorder %s11387_s7, %s11387_s7 }
  0x60   :  { %p11394_p0 = por %p11393_p13, %p11392_p12 }
  0x62   :  { %p11395_p1 = pnand %p11394_p0, %p11388_p11 }
  0x64   :  { %11398 = shalt.err (!%p11395_p1)
}
  0x65   :  { %138 = dma.hbm_to_vmem [thread:$0]  %s12026_s3, 32, %s136_s26, [#allocation8]  }
  0x66   :  { %s11946_s10 = smov [#allocation10]   ;;  %s11947_s21 = smov [#allocation13]  }
  0x67   :  { %s155_s11 = sshll.u32 %s11946_s10, 4  ;;  %s175_s15 = sshll.u32 %s11947_s21, 4  ;;  %s156_s11 = int_to_ptr.vmem [resolvable:$true] %s155_s11  ;;  %s176_s15 = int_to_ptr.vmem [resolvable:$true] %s175_s15 }
  0x68   :  { %s11399_s16 = scalar_lea.hbm %s12036_s14, 32 }
  0x69   :  { %p11400_p2 = scmp.ne.s32.totalorder %s12036_s14, %s11399_s16  ;;  %p11403_p3 = scmp.lt.u32.totalorder %s11399_s16, %s12036_s14 }
  0x6b   :  { %p11405_p4 = pnand %p11403_p3, %p11400_p2 }
  0x6d   :  { %11408 = shalt.err (!%p11405_p4)
}
  0x6e   :  { %s11409_s18 = scalar_lea.vmem %s156_s11, 32  ;;  %p11414_p6 = scmp.lt.s32.totalorder %s156_s11, %s156_s11 }
  0x6f   :  { %p11410_p5 = scmp.ne.s32.totalorder %s156_s11, %s11409_s18  ;;  %p11415_p7 = scmp.lt.s32.totalorder %s11409_s18, %s11409_s18 }
  0x71   :  { %p11416_p8 = por %p11415_p7, %p11414_p6 }
  0x73   :  { %p11417_p9 = pnand %p11416_p8, %p11410_p5 }
  0x75   :  { %11420 = shalt.err (!%p11417_p9)
}
  0x76   :  { %158 = dma.hbm_to_vmem [thread:$0]  %s12036_s14, 32, %s156_s11, [#allocation11]  }
  0x77   :  { %s11421_s3 = scalar_lea.hbm %s12046_s24, 128 }
  0x78   :  { %p11422_p10 = scmp.ne.s32.totalorder %s12046_s24, %s11421_s3  ;;  %p11425_p11 = scmp.lt.u32.totalorder %s11421_s3, %s12046_s24 }
  0x7a   :  { %p11427_p12 = pnand %p11425_p11, %p11422_p10 }
  0x7c   :  { %11430 = shalt.err (!%p11427_p12)
}
  0x7d   :  { %s11431_s22 = scalar_lea.vmem %s176_s15, 128  ;;  %p11436_p0 = scmp.lt.s32.totalorder %s176_s15, %s176_s15 }
  0x7e   :  { %p11432_p13 = scmp.ne.s32.totalorder %s176_s15, %s11431_s22  ;;  %p11437_p1 = scmp.lt.s32.totalorder %s11431_s22, %s11431_s22 }
  0x80   :  { %p11438_p2 = por %p11437_p1, %p11436_p0 }
  0x82   :  { %p11439_p3 = pnand %p11438_p2, %p11432_p13 }
  0x84   :  { %11442 = shalt.err (!%p11439_p3)
}
  0x85   :  { %178 = dma.hbm_to_vmem [thread:$0]  %s12046_s24, 128, %s176_s15, [#allocation14]  }
  0x86   :  { %s11948_s23 = smov [#allocation16]   ;;  %s11949_s14 = smov [#allocation19]  }
  0x87   :  { %s197_s0 = sshll.u32 %s11948_s23, 4  ;;  %s217_s26 = sshll.u32 %s11949_s14, 4  ;;  %s198_s0 = int_to_ptr.vmem [resolvable:$true] %s197_s0  ;;  %s218_s26 = int_to_ptr.vmem [resolvable:$true] %s217_s26 }
  0x88   :  { %s11443_s28 = scalar_lea.hbm %s12061_s12, 16 }
  0x89   :  { %p11444_p4 = scmp.ne.s32.totalorder %s12061_s12, %s11443_s28  ;;  %p11447_p5 = scmp.lt.u32.totalorder %s11443_s28, %s12061_s12 }
  0x8b   :  { %p11449_p6 = pnand %p11447_p5, %p11444_p4 }
  0x8d   :  { %11452 = shalt.err (!%p11449_p6)
}
  0x8e   :  { %s11453_s1 = scalar_lea.vmem %s198_s0, 16  ;;  %s11457_s2 = scalar_lea.vmem %s198_s0, 32 }
  0x8f   :  { %p11454_p7 = scmp.ne.s32.totalorder %s198_s0, %s11453_s1  ;;  %p11458_p8 = scmp.lt.s32.totalorder %s198_s0, %s198_s0 }
  0x90   :  { %p11459_p9 = scmp.lt.s32.totalorder %s11457_s2, %s11453_s1 }
  0x92   :  { %p11460_p10 = por %p11459_p9, %p11458_p8 }
  0x94   :  { %p11461_p11 = pnand %p11460_p10, %p11454_p7 }
  0x96   :  { %11464 = shalt.err (!%p11461_p11)
}
  0x97   :  { %200 = dma.hbm_to_vmem [thread:$0]  %s12061_s12, 16, %s198_s0, [#allocation17]  }
  0x98   :  { %s11465_s24 = scalar_lea.hbm %s12071_s27, 16 }
  0x99   :  { %p11466_p12 = scmp.ne.s32.totalorder %s12071_s27, %s11465_s24  ;;  %p11469_p13 = scmp.lt.u32.totalorder %s11465_s24, %s12071_s27 }
  0x9b   :  { %p11471_p0 = pnand %p11469_p13, %p11466_p12 }
  0x9d   :  { %11474 = shalt.err (!%p11471_p0)
}
  0x9e   :  { %s11475_s7 = scalar_lea.vmem %s218_s26, 16  ;;  %s11479_s10 = scalar_lea.vmem %s218_s26, 32 }
  0x9f   :  { %p11476_p1 = scmp.ne.s32.totalorder %s218_s26, %s11475_s7  ;;  %p11480_p2 = scmp.lt.s32.totalorder %s218_s26, %s218_s26 }
  0xa0   :  { %p11481_p3 = scmp.lt.s32.totalorder %s11479_s10, %s11475_s7 }
  0xa2   :  { %p11482_p4 = por %p11481_p3, %p11480_p2 }
  0xa4   :  { %p11483_p5 = pnand %p11482_p4, %p11476_p1 }
  0xa6   :  { %11486 = shalt.err (!%p11483_p5)
}
  0xa7   :  { %220 = dma.hbm_to_vmem [thread:$0]  %s12071_s27, 16, %s218_s26, [#allocation20]  }
  0xa8   :  { %s11950_s11 = smov [#allocation22]   ;;  %s11487_s21 = scalar_lea.hbm %s12086_s13, 16384 }
  0xa9   :  { %s238_s12 = sshll.u32 %s11950_s11, 4  ;;  %p11488_p6 = scmp.ne.s32.totalorder %s12086_s13, %s11487_s21  ;;  %s239_s12 = int_to_ptr.vmem [resolvable:$true] %s238_s12 }
  0xaa   :  { %p11491_p7 = scmp.lt.u32.totalorder %s11487_s21, %s12086_s13 }
  0xac   :  { %p11493_p8 = pnand %p11491_p7, %p11488_p6 }
  0xae   :  { %11496 = shalt.err (!%p11493_p8)
}
  0xaf   :  { %s11497_s15 = scalar_lea.vmem %s239_s12, 16384  ;;  %p11502_p10 = scmp.lt.s32.totalorder %s239_s12, %s239_s12 }
  0xb0   :  { %p11498_p9 = scmp.ne.s32.totalorder %s239_s12, %s11497_s15  ;;  %p11503_p11 = scmp.lt.s32.totalorder %s11497_s15, %s11497_s15 }
  0xb2   :  { %p11504_p12 = por %p11503_p11, %p11502_p10 }
  0xb4   :  { %p11505_p13 = pnand %p11504_p12, %p11498_p9 }
  0xb6   :  { %11508 = shalt.err (!%p11505_p13)
}
  0xb7   :  { %s11951_s16 = smov 512   ;;  %s11952_s27 = smov 32  }
  0xb8   :  { %244 = dma.hbm_to_vmem [thread:$0]  %s12086_s13, 16384, %s239_s12, [#allocation23], %s11951_s16, %s11951_s16, %s11952_s27  }
  0xb9   :  { %s11953_s18 = smov [#allocation25]   ;;  %s11509_s22 = scalar_lea.hbm %s12096_s4, 8192 }
  0xba   :  { %s260_s3 = sshll.u32 %s11953_s18, 4  ;;  %p11510_p0 = scmp.ne.s32.totalorder %s12096_s4, %s11509_s22  ;;  %s261_s3 = int_to_ptr.vmem [resolvable:$true] %s260_s3 }
  0xbb   :  { %p11513_p1 = scmp.lt.u32.totalorder %s11509_s22, %s12096_s4 }
  0xbd   :  { %p11515_p2 = pnand %p11513_p1, %p11510_p0 }
  0xbf   :  { %11518 = shalt.err (!%p11515_p2)
}
  0xc0   :  { %s11519_s23 = scalar_lea.vmem %s261_s3, 8192  ;;  %p11524_p4 = scmp.lt.s32.totalorder %s261_s3, %s261_s3 }
  0xc1   :  { %p11520_p3 = scmp.ne.s32.totalorder %s261_s3, %s11519_s23  ;;  %p11525_p5 = scmp.lt.s32.totalorder %s11519_s23, %s11519_s23 }
  0xc3   :  { %p11526_p6 = por %p11525_p5, %p11524_p4 }
  0xc5   :  { %p11527_p7 = pnand %p11526_p6, %p11520_p3 }
  0xc7   :  { %11530 = shalt.err (!%p11527_p7)
}
  0xc8   :  { %s11954_s0 = smov 64   ;;  %s11955_s13 = smov 4  }
  0xc9   :  { %266 = dma.hbm_to_vmem [thread:$0]  %s12096_s4, 8192, %s261_s3, [#allocation26], %s11954_s0, %s11954_s0, %s11955_s13  }
  0xca   :  { %s11956_s14 = smov [#allocation28]   ;;  %s11531_s28 = scalar_lea.hbm %s12106_s9, 64 }
  0xcb   :  { %s284_s26 = sshll.u32 %s11956_s14, 4  ;;  %p11532_p8 = scmp.ne.s32.totalorder %s12106_s9, %s11531_s28  ;;  %s285_s26 = int_to_ptr.vmem [resolvable:$true] %s284_s26 }
  0xcc   :  { %p11535_p9 = scmp.lt.u32.totalorder %s11531_s28, %s12106_s9 }
  0xce   :  { %p11537_p10 = pnand %p11535_p9, %p11532_p8 }
  0xd0   :  { %11540 = shalt.err (!%p11537_p10)
}
  0xd1   :  { %s11541_s1 = scalar_lea.vmem %s285_s26, 64  ;;  %p11546_p12 = scmp.lt.s32.totalorder %s285_s26, %s285_s26 }
  0xd2   :  { %p11542_p11 = scmp.ne.s32.totalorder %s285_s26, %s11541_s1  ;;  %p11547_p13 = scmp.lt.s32.totalorder %s11541_s1, %s11541_s1 }
  0xd4   :  { %p11548_p0 = por %p11547_p13, %p11546_p12 }
  0xd6   :  { %p11549_p1 = pnand %p11548_p0, %p11542_p11 }
  0xd8   :  { %11552 = shalt.err (!%p11549_p1)
}
  0xd9   :  { %s11957_s2 = smov 16   ;;  %s11958_s4 = smov 1  }
  0xda   :  { %290 = dma.hbm_to_vmem [thread:$0]  %s12106_s9, 64, %s285_s26, [#allocation29], %s11957_s2, %s11957_s2, %s11958_s4  }
  0xdb   :  { %s11959_s24 = smov [#allocation31]   ;;  %s11553_s10 = scalar_lea.hbm %s12126_s20, 64 }
  0xdc   :  { %s312_s7 = sshll.u32 %s11959_s24, 4  ;;  %p11554_p2 = scmp.ne.s32.totalorder %s12126_s20, %s11553_s10  ;;  %s313_s7 = int_to_ptr.vmem [resolvable:$true] %s312_s7 }
  0xdd   :  { %p11557_p3 = scmp.lt.u32.totalorder %s11553_s10, %s12126_s20 }
  0xdf   :  { %p11559_p4 = pnand %p11557_p3, %p11554_p2 }
  0xe1   :  { %11562 = shalt.err (!%p11559_p4)
}
  0xe2   :  { %s11563_s11 = scalar_lea.vmem %s313_s7, 64  ;;  %p11568_p6 = scmp.lt.s32.totalorder %s313_s7, %s313_s7 }
  0xe3   :  { %p11564_p5 = scmp.ne.s32.totalorder %s313_s7, %s11563_s11  ;;  %p11569_p7 = scmp.lt.s32.totalorder %s11563_s11, %s11563_s11 }
  0xe5   :  { %p11570_p8 = por %p11569_p7, %p11568_p6 }
  0xe7   :  { %p11571_p9 = pnand %p11570_p8, %p11564_p5 }
  0xe9   :  { %11574 = shalt.err (!%p11571_p9)
}
  0xea   :  { %318 = dma.hbm_to_vmem [thread:$0]  %s12126_s20, 64, %s313_s7, [#allocation32], %s11957_s2, %s11957_s2, %s11958_s4  }
  0xeb   :  { %s11960_s9 = smov [#allocation34]   ;;  %s11961_s21 = smov [#allocation2]  }
  0xec   :  { %s340_s12 = sshll.u32 %s11960_s9, 4  ;;  %s100_s15 = sshll.u32 %s11961_s21, 4  ;;  %s341_s12 = int_to_ptr.vmem [resolvable:$true] %s340_s12  ;;  %s12218_s15 = int_to_ptr.vmem [resolvable:$true] %s100_s15 }
  0xed   :  { %s11575_s16 = scalar_lea.hbm %s12146_s30, 16384 }
  0xee   :  { %p11576_p10 = scmp.ne.s32.totalorder %s12146_s30, %s11575_s16  ;;  %p11579_p11 = scmp.lt.u32.totalorder %s11575_s16, %s12146_s30 }
  0xf0   :  { %p11581_p12 = pnand %p11579_p11, %p11576_p10 }
  0xf2   :  { %11584 = shalt.err (!%p11581_p12)
}
  0xf3   :  { %s11585_s18 = scalar_lea.vmem %s341_s12, 16384  ;;  %p11590_p0 = scmp.lt.s32.totalorder %s341_s12, %s341_s12 }
  0xf4   :  { %p11586_p13 = scmp.ne.s32.totalorder %s341_s12, %s11585_s18  ;;  %p11591_p1 = scmp.lt.s32.totalorder %s11585_s18, %s11585_s18 }
  0xf6   :  { %p11592_p2 = por %p11591_p1, %p11590_p0 }
  0xf8   :  { %p11593_p3 = pnand %p11592_p2, %p11586_p13 }
  0xfa   :  { %11596 = shalt.err (!%p11593_p3)
}
  0xfb   :  { %s11962_s20 = smov 128   ;;  %s11963_s3 = smov 8  }
  0xfc   :  { %346 = dma.hbm_to_vmem [thread:$0]  %s12146_s30, 16384, %s341_s12, [#allocation35], %s11962_s20, %s11962_s20, %s11963_s3  }
  0xfd   :  { %s11597_s22 = scalar_lea.hbm %s12006_s17, 8192 }
  0xfe   :  { %p11598_p4 = scmp.ne.s32.totalorder %s12006_s17, %s11597_s22  ;;  %p11601_p5 = scmp.lt.u32.totalorder %s11597_s22, %s12006_s17 }
 0x100   :  { %p11603_p6 = pnand %p11601_p5, %p11598_p4 }
 0x102   :  { %11606 = shalt.err (!%p11603_p6)
}
 0x103   :  { %s11607_s23 = scalar_lea.vmem %s12218_s15, 8192  ;;  %p11612_p8 = scmp.lt.s32.totalorder %s12218_s15, %s12218_s15 }
 0x104   :  { %p11608_p7 = scmp.ne.s32.totalorder %s12218_s15, %s11607_s23  ;;  %p11613_p9 = scmp.lt.s32.totalorder %s11607_s23, %s11607_s23 }
 0x106   :  { %p11614_p10 = por %p11613_p9, %p11612_p8 }
 0x108   :  { %p11615_p11 = pnand %p11614_p10, %p11608_p7 }
 0x10a   :  { %11618 = shalt.err (!%p11615_p11)
}
 0x10b   :  { %106 = dma.hbm_to_vmem [thread:$0]  %s12006_s17, 8192, %s12218_s15, [#allocation3], %s11962_s20, %s11962_s20, %s11963_s3  }
 0x10c   :  { %s11964_s30 = smov [#allocation6]   ;;  %s11965_s26 = smov [#allocation9]  }
 0x10d   :  { %s125_s14 = sshll.u32 %s11964_s30, 4  ;;  %s145_s28 = sshll.u32 %s11965_s26, 4  ;;  %s126_s14 = int_to_ptr.vmem [resolvable:$true] %s125_s14  ;;  %s146_s28 = int_to_ptr.vmem [resolvable:$true] %s145_s28 }
 0x10e   :  { %s11619_s1 = scalar_lea.hbm %s12021_s29, 32 }
 0x10f   :  { %p11620_p12 = scmp.ne.s32.totalorder %s12021_s29, %s11619_s1  ;;  %p11623_p13 = scmp.lt.u32.totalorder %s11619_s1, %s12021_s29 }
 0x111   :  { %p11625_p0 = pnand %p11623_p13, %p11620_p12 }
 0x113   :  { %11628 = shalt.err (!%p11625_p0)
}
 0x114   :  { %s11629_s24 = scalar_lea.vmem %s126_s14, 32  ;;  %p11634_p2 = scmp.lt.s32.totalorder %s126_s14, %s126_s14 }
 0x115   :  { %p11630_p1 = scmp.ne.s32.totalorder %s126_s14, %s11629_s24  ;;  %p11635_p3 = scmp.lt.s32.totalorder %s11629_s24, %s11629_s24 }
 0x117   :  { %p11636_p4 = por %p11635_p3, %p11634_p2 }
 0x119   :  { %p11637_p5 = pnand %p11636_p4, %p11630_p1 }
 0x11b   :  { %11640 = shalt.err (!%p11637_p5)
}
 0x11c   :  { %128 = dma.hbm_to_vmem [thread:$0]  %s12021_s29, 32, %s126_s14, [#allocation5]  }
 0x11d   :  { %s11641_s17 = scalar_lea.hbm %s12031_s8, 32 }
 0x11e   :  { %p11642_p6 = scmp.ne.s32.totalorder %s12031_s8, %s11641_s17  ;;  %p11645_p7 = scmp.lt.u32.totalorder %s11641_s17, %s12031_s8 }
 0x120   :  { %p11647_p8 = pnand %p11645_p7, %p11642_p6 }
 0x122   :  { %11650 = shalt.err (!%p11647_p8)
}
 0x123   :  { %s11651_s7 = scalar_lea.vmem %s146_s28, 32  ;;  %p11656_p10 = scmp.lt.s32.totalorder %s146_s28, %s146_s28 }
 0x124   :  { %p11652_p9 = scmp.ne.s32.totalorder %s146_s28, %s11651_s7  ;;  %p11657_p11 = scmp.lt.s32.totalorder %s11651_s7, %s11651_s7 }
 0x126   :  { %p11658_p12 = por %p11657_p11, %p11656_p10 }
 0x128   :  { %p11659_p13 = pnand %p11658_p12, %p11652_p9 }
 0x12a   :  { %11662 = shalt.err (!%p11659_p13)
}
 0x12b   :  { %s13155_s10 = sld [smem:[#allocation56_spill]]  ;;  %s11966_s11 = smov [#allocation12]  }
 0x12c   :  { %148 = dma.hbm_to_vmem [thread:$0]  %s12031_s8, 32, %s146_s28, [#allocation8]  }
 0x12d   :  { %s165_s9 = sshll.u32 %s11966_s11, 4  ;;  %s11967_s29 = smov [#allocation15]   ;;  %s166_s9 = int_to_ptr.vmem [resolvable:$true] %s165_s9 }
 0x12e   :  { %s185_s12 = sshll.u32 %s11967_s29, 4  ;;  %s186_s12 = int_to_ptr.vmem [resolvable:$true] %s185_s12 }
 0x131   :  { %s11663_s21 = scalar_lea.hbm %s13155_s10, 32 }
 0x132   :  { %p11664_p0 = scmp.ne.s32.totalorder %s13155_s10, %s11663_s21  ;;  %p11667_p1 = scmp.lt.u32.totalorder %s11663_s21, %s13155_s10 }
 0x134   :  { %p11669_p2 = pnand %p11667_p1, %p11664_p0 }
 0x136   :  { %11672 = shalt.err (!%p11669_p2)
}
 0x137   :  { %s11673_s15 = scalar_lea.vmem %s166_s9, 32  ;;  %p11678_p4 = scmp.lt.s32.totalorder %s166_s9, %s166_s9 }
 0x138   :  { %p11674_p3 = scmp.ne.s32.totalorder %s166_s9, %s11673_s15  ;;  %p11679_p5 = scmp.lt.s32.totalorder %s11673_s15, %s11673_s15 }
 0x13a   :  { %p11680_p6 = por %p11679_p5, %p11678_p4 }
 0x13c   :  { %p11681_p7 = pnand %p11680_p6, %p11674_p3 }
 0x13e   :  { %11684 = shalt.err (!%p11681_p7)
}
 0x13f   :  { %s13156_s8 = sld [smem:[#allocation57_spill]] }
 0x140   :  { %168 = dma.hbm_to_vmem [thread:$0]  %s13155_s10, 32, %s166_s9, [#allocation11]  }
 0x145   :  { %s11685_s16 = scalar_lea.hbm %s13156_s8, 128 }
 0x146   :  { %p11686_p8 = scmp.ne.s32.totalorder %s13156_s8, %s11685_s16  ;;  %p11689_p9 = scmp.lt.u32.totalorder %s11685_s16, %s13156_s8 }
 0x148   :  { %p11691_p10 = pnand %p11689_p9, %p11686_p8 }
 0x14a   :  { %11694 = shalt.err (!%p11691_p10)
}
 0x14b   :  { %s11695_s18 = scalar_lea.vmem %s186_s12, 128  ;;  %p11700_p12 = scmp.lt.s32.totalorder %s186_s12, %s186_s12 }
 0x14c   :  { %p11696_p11 = scmp.ne.s32.totalorder %s186_s12, %s11695_s18  ;;  %p11701_p13 = scmp.lt.s32.totalorder %s11695_s18, %s11695_s18 }
 0x14e   :  { %p11702_p0 = por %p11701_p13, %p11700_p12 }
 0x150   :  { %p11703_p1 = pnand %p11702_p0, %p11696_p11 }
 0x152   :  { %11706 = shalt.err (!%p11703_p1)
}
 0x153   :  { %s13157_s22 = sld [smem:[#allocation59_spill]]  ;;  %s11968_s23 = smov [#allocation18]  }
 0x154   :  { %188 = dma.hbm_to_vmem [thread:$0]  %s13156_s8, 128, %s186_s12, [#allocation14]  }
 0x155   :  { %s207_s30 = sshll.u32 %s11968_s23, 4  ;;  %s11969_s14 = smov [#allocation21]   ;;  %s208_s30 = int_to_ptr.vmem [resolvable:$true] %s207_s30 }
 0x156   :  { %s229_s26 = sshll.u32 %s11969_s14, 4  ;;  %s230_s26 = int_to_ptr.vmem [resolvable:$true] %s229_s26 }
 0x159   :  { %s11707_s28 = scalar_lea.hbm %s13157_s22, 16 }
 0x15a   :  { %p11708_p2 = scmp.ne.s32.totalorder %s13157_s22, %s11707_s28  ;;  %p11711_p3 = scmp.lt.u32.totalorder %s11707_s28, %s13157_s22 }
 0x15c   :  { %p11713_p4 = pnand %p11711_p3, %p11708_p2 }
 0x15e   :  { %11716 = shalt.err (!%p11713_p4)
}
 0x15f   :  { %s11717_s1 = scalar_lea.vmem %s208_s30, 16  ;;  %s11721_s24 = scalar_lea.vmem %s208_s30, 32 }
 0x160   :  { %p11718_p5 = scmp.ne.s32.totalorder %s208_s30, %s11717_s1  ;;  %p11722_p6 = scmp.lt.s32.totalorder %s208_s30, %s208_s30 }
 0x161   :  { %p11723_p7 = scmp.lt.s32.totalorder %s11721_s24, %s11717_s1 }
 0x163   :  { %p11724_p8 = por %p11723_p7, %p11722_p6 }
 0x165   :  { %p11725_p9 = pnand %p11724_p8, %p11718_p5 }
 0x167   :  { %11728 = shalt.err (!%p11725_p9)
}
 0x168   :  { %s13158_s17 = sld [smem:[#allocation61_spill]] }
 0x169   :  { %210 = dma.hbm_to_vmem [thread:$0]  %s13157_s22, 16, %s208_s30, [#allocation17]  }
 0x16e   :  { %s11729_s7 = scalar_lea.hbm %s13158_s17, 128 }
 0x16f   :  { %p11730_p10 = scmp.ne.s32.totalorder %s13158_s17, %s11729_s7  ;;  %p11733_p11 = scmp.lt.u32.totalorder %s11729_s7, %s13158_s17 }
 0x171   :  { %p11735_p12 = pnand %p11733_p11, %p11730_p10 }
 0x173   :  { %11738 = shalt.err (!%p11735_p12)
}
 0x174   :  { %s11739_s10 = scalar_lea.vmem %s230_s26, 128  ;;  %p11744_p0 = scmp.lt.s32.totalorder %s230_s26, %s230_s26 }
 0x175   :  { %p11740_p13 = scmp.ne.s32.totalorder %s230_s26, %s11739_s10  ;;  %p11745_p1 = scmp.lt.s32.totalorder %s11739_s10, %s11739_s10 }
 0x177   :  { %p11746_p2 = por %p11745_p1, %p11744_p0 }
 0x179   :  { %p11747_p3 = pnand %p11746_p2, %p11740_p13 }
 0x17b   :  { %11750 = shalt.err (!%p11747_p3)
}
 0x17c   :  { %s13159_s11 = sld [smem:[#allocation62_spill]]  ;;  %s11970_s9 = smov [#allocation24]  }
 0x17d   :  { %232 = dma.hbm_to_vmem [thread:$0]  %s13158_s17, 128, %s230_s26, [#allocation20]  }
 0x17e   :  { %s251_s29 = sshll.u32 %s11970_s9, 4  ;;  %s11971_s12 = smov [#allocation27]   ;;  %s252_s29 = int_to_ptr.vmem [resolvable:$true] %s251_s29 }
 0x17f   :  { %s272_s21 = sshll.u32 %s11971_s12, 4  ;;  %s12263_s21 = int_to_ptr.vmem [resolvable:$true] %s272_s21 }
 0x182   :  { %s11751_s15 = scalar_lea.hbm %s13159_s11, 128 }
 0x183   :  { %p11752_p4 = scmp.ne.s32.totalorder %s13159_s11, %s11751_s15  ;;  %p11755_p5 = scmp.lt.u32.totalorder %s11751_s15, %s13159_s11 }
 0x185   :  { %p11757_p6 = pnand %p11755_p5, %p11752_p4 }
 0x187   :  { %11760 = shalt.err (!%p11757_p6)
}
 0x188   :  { %s11761_s8 = scalar_lea.vmem %s252_s29, 128  ;;  %p11766_p8 = scmp.lt.s32.totalorder %s252_s29, %s252_s29 }
 0x189   :  { %p11762_p7 = scmp.ne.s32.totalorder %s252_s29, %s11761_s8  ;;  %p11767_p9 = scmp.lt.s32.totalorder %s11761_s8, %s11761_s8 }
 0x18b   :  { %p11768_p10 = por %p11767_p9, %p11766_p8 }
 0x18d   :  { %p11769_p11 = pnand %p11768_p10, %p11762_p7 }
 0x18f   :  { %11772 = shalt.err (!%p11769_p11)
}
 0x190   :  { %s13160_s16 = sld [smem:[#allocation63_spill]] }
 0x191   :  { %254 = dma.hbm_to_vmem [thread:$0]  %s13159_s11, 128, %s252_s29, [#allocation23]  }
 0x196   :  { %s11773_s18 = scalar_lea.hbm %s13160_s16, 8192 }
 0x197   :  { %p11774_p12 = scmp.ne.s32.totalorder %s13160_s16, %s11773_s18  ;;  %p11777_p13 = scmp.lt.u32.totalorder %s11773_s18, %s13160_s16 }
 0x199   :  { %p11779_p0 = pnand %p11777_p13, %p11774_p12 }
 0x19b   :  { %11782 = shalt.err (!%p11779_p0)
}
 0x19c   :  { %s11783_s22 = scalar_lea.vmem %s12263_s21, 8192  ;;  %p11788_p2 = scmp.lt.s32.totalorder %s12263_s21, %s12263_s21 }
 0x19d   :  { %p11784_p1 = scmp.ne.s32.totalorder %s12263_s21, %s11783_s22  ;;  %p11789_p3 = scmp.lt.s32.totalorder %s11783_s22, %s11783_s22 }
 0x19f   :  { %p11790_p4 = por %p11789_p3, %p11788_p2 }
 0x1a1   :  { %p11791_p5 = pnand %p11790_p4, %p11784_p1 }
 0x1a3   :  { %11794 = shalt.err (!%p11791_p5)
}
 0x1a4   :  { %s13161_s23 = sld [smem:[#allocation65_spill]]  ;;  %s11972_s30 = smov [#allocation30]  }
 0x1a5   :  { %278 = dma.hbm_to_vmem [thread:$0]  %s13160_s16, 8192, %s12263_s21, [#allocation26], %s11954_s0, %s11954_s0, %s11955_s13  }
 0x1a6   :  { %s298_s14 = sshll.u32 %s11972_s30, 4  ;;  %s11973_s26 = smov [#allocation33]   ;;  %s299_s14 = int_to_ptr.vmem [resolvable:$true] %s298_s14 }
 0x1a7   :  { %s328_s28 = sshll.u32 %s11973_s26, 4  ;;  %s12281_s28 = int_to_ptr.vmem [resolvable:$true] %s328_s28 }
 0x1aa   :  { %s11795_s1 = scalar_lea.hbm %s13161_s23, 64 }
 0x1ab   :  { %p11796_p6 = scmp.ne.s32.totalorder %s13161_s23, %s11795_s1  ;;  %p11799_p7 = scmp.lt.u32.totalorder %s11795_s1, %s13161_s23 }
 0x1ad   :  { %p11801_p8 = pnand %p11799_p7, %p11796_p6 }
 0x1af   :  { %11804 = shalt.err (!%p11801_p8)
}
 0x1b0   :  { %s11805_s24 = scalar_lea.vmem %s299_s14, 64  ;;  %p11810_p10 = scmp.lt.s32.totalorder %s299_s14, %s299_s14 }
 0x1b1   :  { %p11806_p9 = scmp.ne.s32.totalorder %s299_s14, %s11805_s24  ;;  %p11811_p11 = scmp.lt.s32.totalorder %s11805_s24, %s11805_s24 }
 0x1b3   :  { %p11812_p12 = por %p11811_p11, %p11810_p10 }
 0x1b5   :  { %p11813_p13 = pnand %p11812_p12, %p11806_p9 }
 0x1b7   :  { %11816 = shalt.err (!%p11813_p13)
}
 0x1b8   :  { %s13162_s0 = sld [smem:[#allocation69_spill]] }
 0x1b9   :  { %304 = dma.hbm_to_vmem [thread:$0]  %s13161_s23, 64, %s299_s14, [#allocation29], %s11957_s2, %s11957_s2, %s11958_s4  }
 0x1be   :  { %s11817_s13 = scalar_lea.hbm %s13162_s0, 16384 }
 0x1bf   :  { %p11818_p0 = scmp.ne.s32.totalorder %s13162_s0, %s11817_s13  ;;  %p11821_p1 = scmp.lt.u32.totalorder %s11817_s13, %s13162_s0 }
 0x1c1   :  { %p11823_p2 = pnand %p11821_p1, %p11818_p0 }
 0x1c3   :  { %11826 = shalt.err (!%p11823_p2)
}
 0x1c4   :  { %s11827_s17 = scalar_lea.vmem %s12281_s28, 16384  ;;  %p11832_p4 = scmp.lt.s32.totalorder %s12281_s28, %s12281_s28 }
 0x1c5   :  { %p11828_p3 = scmp.ne.s32.totalorder %s12281_s28, %s11827_s17  ;;  %p11833_p5 = scmp.lt.s32.totalorder %s11827_s17, %s11827_s17 }
 0x1c7   :  { %p11834_p6 = por %p11833_p5, %p11832_p4 }
 0x1c9   :  { %p11835_p7 = pnand %p11834_p6, %p11828_p3 }
 0x1cb   :  { %11838 = shalt.err (!%p11835_p7)
}
 0x1cc   :  { %334 = dma.hbm_to_vmem [thread:$0]  %s13162_s0, 16384, %s12281_s28, [#allocation32], %s11962_s20, %s11962_s20, %s11963_s3  }
 0x1cd   :  { %s11974_s2 = smov [#allocation36]   ;;  %s11975_s7 = smov [#allocation37]  }
 0x1ce   :  { %s352_s4 = sshll.u32 %s11974_s2, 4  ;;  %s367_s10 = sshll.u32 %s11975_s7, 4  ;;  %s353_s4 = int_to_ptr.vmem [resolvable:$true] %s352_s4  ;;  %s368_s10 = int_to_ptr.vmem [resolvable:$true] %s367_s10 }
 0x1cf   :  { %s11839_s11 = scalar_lea.hbm %s12151_s25, 128 }
 0x1d0   :  { %p11840_p8 = scmp.ne.s32.totalorder %s12151_s25, %s11839_s11  ;;  %p11843_p9 = scmp.lt.u32.totalorder %s11839_s11, %s12151_s25 }
 0x1d2   :  { %p11845_p10 = pnand %p11843_p9, %p11840_p8 }
 0x1d4   :  { %11848 = shalt.err (!%p11845_p10)
}
 0x1d5   :  { %s11849_s9 = scalar_lea.vmem %s353_s4, 128  ;;  %p11854_p12 = scmp.lt.s32.totalorder %s353_s4, %s353_s4 }
 0x1d6   :  { %p11850_p11 = scmp.ne.s32.totalorder %s353_s4, %s11849_s9  ;;  %p11855_p13 = scmp.lt.s32.totalorder %s11849_s9, %s11849_s9 }
 0x1d8   :  { %p11856_p0 = por %p11855_p13, %p11854_p12 }
 0x1da   :  { %p11857_p1 = pnand %p11856_p0, %p11850_p11 }
 0x1dc   :  { %11860 = shalt.err (!%p11857_p1)
}
 0x1dd   :  { %s11976_s29 = smov 2   ;;  %s11861_s20 = scalar_lea.hbm %s12161_s5, 16 }
 0x1de   :  { %358 = dma.hbm_to_vmem [thread:$0]  %s12151_s25, 128, %s353_s4, [#allocation35], %s11952_s27, %s11952_s27, %s11976_s29  }
 0x1df   :  { %p11862_p2 = scmp.ne.s32.totalorder %s12161_s5, %s11861_s20  ;;  %p11865_p3 = scmp.lt.u32.totalorder %s11861_s20, %s12161_s5 }
 0x1e1   :  { %p11867_p4 = pnand %p11865_p3, %p11862_p2 }
 0x1e3   :  { %11870 = shalt.err (!%p11867_p4)
}
 0x1e4   :  { %s11871_s3 = scalar_lea.vmem %s368_s10, 16  ;;  %s11875_s12 = scalar_lea.vmem %s368_s10, 32 }
 0x1e5   :  { %p11872_p5 = scmp.ne.s32.totalorder %s368_s10, %s11871_s3  ;;  %p11876_p6 = scmp.lt.s32.totalorder %s368_s10, %s368_s10 }
 0x1e6   :  { %p11877_p7 = scmp.lt.s32.totalorder %s11875_s12, %s11871_s3 }
 0x1e8   :  { %p11878_p8 = por %p11877_p7, %p11876_p6 }
 0x1ea   :  { %p11879_p9 = pnand %p11878_p8, %p11872_p5 }
 0x1ec   :  { %11882 = shalt.err (!%p11879_p9)
}
 0x1ed   :  { %370 = dma.hbm_to_vmem [thread:$0]  %s12161_s5, 16, %s368_s10, [#allocation38]  }
 0x1ee   :  { %11883 = dma.done.wait [#allocation3], 8192  }
 0x1ef   :  { %11884 = vsyncadd [#allocation3], 4294959104 }
 0x1f0   :  { %11885 = dma.done.wait [#allocation5], 64  }
 0x1f1   :  { %11886 = vsyncadd [#allocation5], 4294967232 }
 0x1f2   :  { %11887 = dma.done.wait [#allocation8], 64  }
 0x1f3   :  { %11888 = vsyncadd [#allocation8], 4294967232 }
 0x1f4   :  { %11889 = dma.done.wait [#allocation11], 64  }
 0x1f5   :  { %11890 = vsyncadd [#allocation11], 4294967232 }
 0x1f6   :  { %11891 = dma.done.wait [#allocation14], 256  }
 0x1f7   :  { %11892 = vsyncadd [#allocation14], 4294967040 }
 0x1f8   :  { %11893 = dma.done.wait [#allocation17], 32  }
 0x1f9   :  { %11894 = vsyncadd [#allocation17], 4294967264 }
 0x1fa   :  { %11895 = dma.done.wait [#allocation20], 144  }
 0x1fb   :  { %11896 = vsyncadd [#allocation20], 4294967152 }
 0x1fc   :  { %11897 = dma.done.wait [#allocation23], 16512  }
 0x1fd   :  { %11898 = vsyncadd [#allocation23], 4294950784 }
 0x1fe   :  { %11899 = dma.done.wait [#allocation26], 16384  }
 0x1ff   :  { %11900 = vsyncadd [#allocation26], 4294950912 }
 0x200   :  { %11901 = dma.done.wait [#allocation29], 128  }
 0x201   :  { %11902 = vsyncadd [#allocation29], 4294967168 }
 0x202   :  { %11903 = dma.done.wait [#allocation32], 16448  }
 0x203   :  { %11904 = vsyncadd [#allocation32], 4294950848 }
 0x204   :  { %11905 = dma.done.wait [#allocation35], 16512  }
 0x205   :  { %11906 = vsyncadd [#allocation35], 4294950784 }
 0x206   :  { %11907 = dma.done.wait [#allocation38], 16  }
 0x207   :  { %11908 = vsyncadd [#allocation38], 4294967280  ;;  %s13163_s5 = sld [smem:[#allocation53_spill]]  ;;  %s13164_s25 = sld [smem:[#allocation52_spill]]  ;;  %v449_v0 = vlaneseq  ;;  %v11977_v1 = vmov 1983009808  }
 0x208   :  { %v472_v2 = vunpack.c.l.s4 %v11977_v1  ;;  %v11978_v3 = vmov 0   ;;  %vm491_vm0 = vcmask 1041408   ;;  %v10533_v14 = vld [vmem:[#allocation2 + $0x4] ss:$8 sps:$4 sm:$0xff]   ;;  %vm487_vm1 = vcmask 31744   ;;  %s13165_s27 = sld [smem:[#allocation55_spill]] }
 0x209   :  { %536 = vmatprep.mubr.bf16.mxu0 %v11978_v3  ;;  %577 = vmatprep.mubr.bf16.mxu1 %v11978_v3  ;;  %v12313_v4 = vshrl.u32 %v449_v0, 7  ;;  %v10531_v18 = vld [vmem:[#allocation2] ss:$8 sps:$4 sm:$0xff]   ;;  %v10536_v19 = vld [vmem:[#allocation2 + $0x14] ss:$8 sps:$4 sm:$0xff]   ;;  %s13166_s21 = sld [smem:[#allocation54_spill]] }
 0x20a   :  { %10526 = vset.pattern.permute.xlu1 %v11978_v3  ;;  %10528 = vset.pattern.permute.xlu0 %v11978_v3  ;;  %v473_v5 = vunpack.c.0.s8 %v472_v2  ;;  %v10534_v20 = vld [vmem:[#allocation2 + $0x10] ss:$8 sps:$4 sm:$0xff]   ;;  %v10539_v21 = vld [vmem:[#allocation2 + $0x24] ss:$8 sps:$4 sm:$0xff]   ;;  %v10537_v22 = vld [vmem:[#allocation2 + $0x20] ss:$8 sps:$4 sm:$0xff]  }
 0x20b   :  { %v10542_v23 = vld [vmem:[#allocation2 + $0x34] ss:$8 sps:$4 sm:$0xff]   ;;  %v10540_v24 = vld [vmem:[#allocation2 + $0x30] ss:$8 sps:$4 sm:$0xff]   ;;  %v10545_v25 = vld [vmem:[#allocation2 + $0x44] ss:$8 sps:$4 sm:$0xff]  }
 0x20c   :  { %v476_v6 = vsub.s32 %v473_v5, %v12313_v4  ;;  %v10543_v26 = vld [vmem:[#allocation2 + $0x40] ss:$8 sps:$4 sm:$0xff]   ;;  %v10548_v27 = vld [vmem:[#allocation2 + $0x54] ss:$8 sps:$4 sm:$0xff]   ;;  %v10546_v28 = vld [vmem:[#allocation2 + $0x50] ss:$8 sps:$4 sm:$0xff]  }
 0x20d   :  { %v445_v7 = vld [vmem:[%s13163_s5] sm:$0xff]  ;;  %v10554_v31 = vld [vmem:[#allocation2 + $0x74] ss:$8 sps:$4 sm:$0xff]   ;;  %v10552_v32 = vld [vmem:[#allocation2 + $0x70] ss:$8 sps:$4 sm:$0xff]   ;;  %s13167_s15 = sld [smem:[#allocation60_spill]] }
 0x20e   :  { %v477_v8 = vrot.slane %v445_v7, %v476_v6  ;;  %v470_v9 = vcombine.high %v445_v7, %v445_v7  ;;  %v444_v10 = vld [vmem:[%s13164_s25] sm:$0xf]  ;;  %v10551_v29 = vld [vmem:[#allocation2 + $0x64] ss:$8 sps:$4 sm:$0xff]   ;;  %v10560_v35 = vld [vmem:[#allocation2 + $0x94] ss:$8 sps:$4 sm:$0xff]  }
 0x20f   :  { %v446_v15 = vpack.c.bf16 %v444_v10, %v444_v10  ;;  %v10549_v30 = vld [vmem:[#allocation2 + $0x60] ss:$8 sps:$4 sm:$0xff]   ;;  %v10557_v33 = vld [vmem:[#allocation2 + $0x84] ss:$8 sps:$4 sm:$0xff]   ;;  %v10558_v36 = vld [vmem:[#allocation2 + $0x90] ss:$8 sps:$4 sm:$0xff]  }
 0x210   :  { %v485_v11 = vcombine.high %v477_v8, %v477_v8  ;;  %v493_v12 = vsel %vm491_vm0, %v477_v8, 0  ;;  %v484_v13 = vrot.slane %v470_v9, %v476_v6  ;;  %v10555_v34 = vld [vmem:[#allocation2 + $0x80] ss:$8 sps:$4 sm:$0xff]   ;;  %v10563_v37 = vld [vmem:[#allocation2 + $0xa4] ss:$8 sps:$4 sm:$0xff]   ;;  %s13168_s8 = sld [smem:[#allocation64_spill]] }
 0x211   :  { %v10561_v38 = vld [vmem:[#allocation2 + $0xa0] ss:$8 sps:$4 sm:$0xff]   ;;  %v10566_v39 = vld [vmem:[#allocation2 + $0xb4] ss:$8 sps:$4 sm:$0xff]   ;;  %v10564_v40 = vld [vmem:[#allocation2 + $0xb0] ss:$8 sps:$4 sm:$0xff]  }
 0x212   :  { %8934 = vmatprep.subr.msk.bf16.mxu0 %vm491_vm0, %v485_v11  ;;  %v486_v16 = vcombine.high %v484_v13, %v484_v13  ;;  %v499_v17 = vsel %vm491_vm0, %v484_v13, 0  ;;  %v10569_v41 = vld [vmem:[#allocation2 + $0xc4] ss:$8 sps:$4 sm:$0xff]   ;;  %v10567_v42 = vld [vmem:[#allocation2 + $0xc0] ss:$8 sps:$4 sm:$0xff]   ;;  %s13169_s16 = sld [smem:[#allocation66_spill]] }
 0x213   :  { %505 = vmatpush1.bf16.msra.mxu0 %v493_v12  ;;  %v10572_v43 = vld [vmem:[#allocation2 + $0xd4] ss:$8 sps:$4 sm:$0xff]   ;;  %v10570_v44 = vld [vmem:[#allocation2 + $0xd0] ss:$8 sps:$4 sm:$0xff]   ;;  %v10575_v45 = vld [vmem:[#allocation2 + $0xe4] ss:$8 sps:$4 sm:$0xff]  }
 0x214   :  { %8936 = vmatprep.subr.msk.bf16.mxu1 %vm491_vm0, %v486_v16  ;;  %986 = vmatprep.subr.bf16.mxu0 %v10533_v14  ;;  %v10573_v46 = vld [vmem:[#allocation2 + $0xe0] ss:$8 sps:$4 sm:$0xff]   ;;  %v10578_v47 = vld [vmem:[#allocation2 + $0xf4] ss:$8 sps:$4 sm:$0xff]   ;;  %v10576_v48 = vld [vmem:[#allocation2 + $0xf0] ss:$8 sps:$4 sm:$0xff]  }
 0x215   :  { %546 = vmatpush1.bf16.msra.mxu1 %v499_v17  ;;  %v10581_v49 = vld [vmem:[#allocation2 + $0x104] ss:$8 sps:$4 sm:$0xff]   ;;  %v10627_v50 = vld [vmem:[%s13165_s27] ss:$8 sps:$4 sm:$0xff]   ;;  %v10632_v52 = vld [vmem:[%s13165_s27 + $0x14] ss:$8 sps:$4 sm:$0xff]  }
 0x216   :  { %8935 = vmatmul.mubr.msk.bf16.vlgmr.msra.gmra.mrb[0].mxu0 %vm487_vm1, %v446_v15  ;;  %v10629_v51 = vld [vmem:[%s13165_s27 + $0x4] ss:$8 sps:$4 sm:$0xff]   ;;  %v10630_v53 = vld [vmem:[%s13165_s27 + $0x10] ss:$8 sps:$4 sm:$0xff]   ;;  %v10633_v55 = vld [vmem:[%s13165_s27 + $0x20] ss:$8 sps:$4 sm:$0xff]  }
 0x217   :  { %987 = vmatpush1.bf16.msra.mxu0 %v10531_v18  ;;  %1304 = vmatprep.subr.bf16.mxu1 %v10629_v51  ;;  %v10635_v54 = vld [vmem:[%s13165_s27 + $0x24] ss:$8 sps:$4 sm:$0xff]   ;;  %v10638_v56 = vld [vmem:[%s13165_s27 + $0x34] ss:$8 sps:$4 sm:$0xff]   ;;  %v10636_v57 = vld [vmem:[%s13165_s27 + $0x30] ss:$8 sps:$4 sm:$0xff]  }
 0x218   :  { %8937 = vmatmul.mubr.msk.bf16.vlgmr.msra.gmra.mrb[0].mxu1 %vm487_vm1, %v446_v15  ;;  %988 = vmatprep.subr.bf16.mxu0 %v10536_v19  ;;  %v10641_v58 = vld [vmem:[%s13165_s27 + $0x44] ss:$8 sps:$4 sm:$0xff]   ;;  %v10639_v59 = vld [vmem:[%s13165_s27 + $0x40] ss:$8 sps:$4 sm:$0xff]   ;;  %v10644_v60 = vld [vmem:[%s13165_s27 + $0x54] ss:$8 sps:$4 sm:$0xff]  }
 0x219   :  { %1305 = vmatpush1.bf16.msra.mxu1 %v10627_v50  ;;  %v10642_v61 = vld [vmem:[%s13165_s27 + $0x50] ss:$8 sps:$4 sm:$0xff]   ;;  %v10647_v62 = vld [vmem:[%s13165_s27 + $0x64] ss:$8 sps:$4 sm:$0xff]   ;;  %v10645_v63 = vld [vmem:[%s13165_s27 + $0x60] ss:$8 sps:$4 sm:$0xff]  }
 0x21a   :  { %1306 = vmatprep.subr.bf16.mxu1 %v10632_v52  ;;  %v10650_v1 = vld [vmem:[%s13165_s27 + $0x74] ss:$8 sps:$4 sm:$0xff]   ;;  %v10648_v2 = vld [vmem:[%s13165_s27 + $0x70] ss:$8 sps:$4 sm:$0xff]   ;;  %v10653_v3 = vld [vmem:[%s13165_s27 + $0x84] ss:$8 sps:$4 sm:$0xff]  }
 0x21b   :  { %989 = vmatpush1.bf16.msra.mxu0 %v10534_v20  ;;  %v10651_v5 = vld [vmem:[%s13165_s27 + $0x80] ss:$8 sps:$4 sm:$0xff]   ;;  %v10656_v6 = vld [vmem:[%s13165_s27 + $0x94] ss:$8 sps:$4 sm:$0xff]   ;;  %v10654_v7 = vld [vmem:[%s13165_s27 + $0x90] ss:$8 sps:$4 sm:$0xff]  }
 0x21c   :  { %990 = vmatprep.subr.bf16.mxu0 %v10539_v21  ;;  %v10659_v8 = vld [vmem:[%s13165_s27 + $0xa4] ss:$8 sps:$4 sm:$0xff]   ;;  %v10657_v9 = vld [vmem:[%s13165_s27 + $0xa0] ss:$8 sps:$4 sm:$0xff]   ;;  %v10662_v10 = vld [vmem:[%s13165_s27 + $0xb4] ss:$8 sps:$4 sm:$0xff]  }
 0x21d   :  { %1307 = vmatpush1.bf16.msra.mxu1 %v10630_v53  ;;  %v10660_v11 = vld [vmem:[%s13165_s27 + $0xb0] ss:$8 sps:$4 sm:$0xff]   ;;  %v10665_v12 = vld [vmem:[%s13165_s27 + $0xc4] ss:$8 sps:$4 sm:$0xff]   ;;  %v10663_v13 = vld [vmem:[%s13165_s27 + $0xc0] ss:$8 sps:$4 sm:$0xff]  }
 0x21e   :  { %1308 = vmatprep.subr.bf16.mxu1 %v10635_v54  ;;  %v12345_v14 = vld [vmem:[%s13166_s21] sm:$0xf]  ;;  %v12348_v15 = vsub.s32 0, %v12313_v4  ;;  %v12351_v16 = vsub.s32 1, %v12313_v4  ;;  %v12354_v17 = vsub.s32 3, %v12313_v4  ;;  %vm11980_vm2 = vmmov 0  }
 0x21f   :  { %991 = vmatpush1.bf16.msra.mxu0 %v10537_v22  ;;  %v10605_v50 = vld [vmem:[#allocation2 + $0x184] ss:$8 sps:$4 sm:$0xff]   ;;  %v10603_v51 = vld [vmem:[#allocation2 + $0x180] ss:$8 sps:$4 sm:$0xff]   ;;  %v10608_v52 = vld [vmem:[#allocation2 + $0x194] ss:$8 sps:$4 sm:$0xff]  }
 0x220   :  { %992 = vmatprep.subr.bf16.mxu0 %v10542_v23  ;;  %v452_v18 = vrot.slane %v12345_v14, %v12348_v15  ;;  %v456_v19 = vrot.slane %v12345_v14, %v12351_v16  ;;  %v464_v21 = vrot.slane %v12345_v14, %v12354_v17  ;;  %v10606_v53 = vld [vmem:[#allocation2 + $0x190] ss:$8 sps:$4 sm:$0xff]   ;;  %v10611_v54 = vld [vmem:[#allocation2 + $0x1a4] ss:$8 sps:$4 sm:$0xff]   ;;  %s13170_s18 = sld [smem:[#allocation58_spill]]  ;;  %s13171_s22 = sld [smem:[#allocation67_spill]] }
 0x221   :  { %1309 = vmatpush1.bf16.msra.mxu1 %v10633_v55  ;;  %v10609_v55 = vld [vmem:[#allocation2 + $0x1a0] ss:$8 sps:$4 sm:$0xff]   ;;  %vm3997_vm3 = vcmask 523264   ;;  %s13172_s23 = sld [smem:[#allocation68_spill]]  ;;  %vm4127_vm4 = vcmask 9216   ;;  %vm8822_vm10 = vcmask 123904  }
 0x222   :  { %1310 = vmatprep.subr.bf16.mxu1 %v10638_v56  ;;  %v10614_v56 = vld [vmem:[#allocation2 + $0x1b4] ss:$8 sps:$4 sm:$0xff]  }
 0x223   :  { %993 = vmatpush1.bf16.msra.mxu0 %v10540_v24 }
 0x224   :  { %994 = vmatprep.subr.bf16.mxu0 %v10545_v25 }
 0x225   :  { %1311 = vmatpush1.bf16.msra.mxu1 %v10636_v57  ;;  %v10612_v57 = vld [vmem:[#allocation2 + $0x1b0] ss:$8 sps:$4 sm:$0xff]  }
 0x226   :  { %1312 = vmatprep.subr.bf16.mxu1 %v10641_v58  ;;  %v10617_v58 = vld [vmem:[#allocation2 + $0x1c4] ss:$8 sps:$4 sm:$0xff]  }
 0x227   :  { %995 = vmatpush1.bf16.msra.mxu0 %v10543_v26  ;;  %v10579_v26 = vld [vmem:[#allocation2 + $0x100] ss:$8 sps:$4 sm:$0xff]  }
 0x228   :  { %996 = vmatprep.subr.bf16.mxu0 %v10548_v27 }
 0x229   :  { %1313 = vmatpush1.bf16.msra.mxu1 %v10639_v59  ;;  %v10615_v59 = vld [vmem:[#allocation2 + $0x1c0] ss:$8 sps:$4 sm:$0xff]  }
 0x22a   :  { %1314 = vmatprep.subr.bf16.mxu1 %v10644_v60  ;;  %v10620_v60 = vld [vmem:[#allocation2 + $0x1d4] ss:$8 sps:$4 sm:$0xff]  }
 0x22b   :  { %997 = vmatpush1.bf16.msra.mxu0 %v10546_v28 }
 0x22c   :  { %998 = vmatprep.subr.bf16.mxu0 %v10551_v29  ;;  %v10584_v29 = vld [vmem:[#allocation2 + $0x114] ss:$8 sps:$4 sm:$0xff]  }
 0x22d   :  { %1315 = vmatpush1.bf16.msra.mxu1 %v10642_v61  ;;  %v10618_v61 = vld [vmem:[#allocation2 + $0x1d0] ss:$8 sps:$4 sm:$0xff]  }
 0x22e   :  { %1316 = vmatprep.subr.bf16.mxu1 %v10647_v62  ;;  %v10623_v62 = vld [vmem:[#allocation2 + $0x1e4] ss:$8 sps:$4 sm:$0xff]  }
 0x22f   :  { %999 = vmatpush1.bf16.msra.mxu0 %v10549_v30 }
 0x230   :  { %1000 = vmatprep.subr.bf16.mxu0 %v10554_v31 }
 0x231   :  { %1317 = vmatpush1.bf16.msra.mxu1 %v10645_v63  ;;  %v12365_v63 = vsub.s32 2, %v12313_v4 }
 0x232   :  { %1318 = vmatprep.subr.bf16.mxu1 %v10650_v1  ;;  %v10621_v1 = vld [vmem:[#allocation2 + $0x1e0] ss:$8 sps:$4 sm:$0xff]  }
 0x233   :  { %1001 = vmatpush1.bf16.msra.mxu0 %v10552_v32 }
 0x234   :  { %1002 = vmatprep.subr.bf16.mxu0 %v10557_v33 }
 0x235   :  { %1319 = vmatpush1.bf16.msra.mxu1 %v10648_v2  ;;  %v10626_v2 = vld [vmem:[#allocation2 + $0x1f4] ss:$8 sps:$4 sm:$0xff]  }
 0x236   :  { %1320 = vmatprep.subr.bf16.mxu1 %v10653_v3  ;;  %v460_v3 = vrot.slane %v12345_v14, %v12365_v63  ;;  %v12377_v14 = vld [vmem:[%s13167_s15] sm:$0xff] }
 0x237   :  { %1003 = vmatpush1.bf16.msra.mxu0 %v10555_v34 }
 0x238   :  { %1004 = vmatprep.subr.bf16.mxu0 %v10560_v35 }
 0x239   :  { %1321 = vmatpush1.bf16.msra.mxu1 %v10651_v5  ;;  %v10624_v5 = vld [vmem:[#allocation2 + $0x1f0] ss:$8 sps:$4 sm:$0xff]  }
 0x23a   :  { %1322 = vmatprep.subr.bf16.mxu1 %v10656_v6 }
 0x23b   :  { %1005 = vmatpush1.bf16.msra.mxu0 %v10558_v36  ;;  %v10582_v36 = vld [vmem:[#allocation2 + $0x110] ss:$8 sps:$4 sm:$0xff]  }
 0x23c   :  { %1006 = vmatprep.subr.bf16.mxu0 %v10563_v37 }
 0x23d   :  { %1323 = vmatpush1.bf16.msra.mxu1 %v10654_v7 }
 0x23e   :  { %1324 = vmatprep.subr.bf16.mxu1 %v10659_v8  ;;  %v10668_v8 = vld [vmem:[%s13165_s27 + $0xd4] ss:$8 sps:$4 sm:$0xff]  }
 0x23f   :  { %1007 = vmatpush1.bf16.msra.mxu0 %v10561_v38  ;;  %v10587_v38 = vld [vmem:[#allocation2 + $0x124] ss:$8 sps:$4 sm:$0xff]  }
 0x240   :  { %1008 = vmatprep.subr.bf16.mxu0 %v10566_v39  ;;  %v10585_v39 = vld [vmem:[#allocation2 + $0x120] ss:$8 sps:$4 sm:$0xff]  }
 0x241   :  { %1325 = vmatpush1.bf16.msra.mxu1 %v10657_v9  ;;  %v10666_v9 = vld [vmem:[%s13165_s27 + $0xd0] ss:$8 sps:$4 sm:$0xff]  }
 0x242   :  { %1326 = vmatprep.subr.bf16.mxu1 %v10662_v10  ;;  %v10671_v10 = vld [vmem:[%s13165_s27 + $0xe4] ss:$8 sps:$4 sm:$0xff]  }
 0x243   :  { %1009 = vmatpush1.bf16.msra.mxu0 %v10564_v40  ;;  %v10590_v40 = vld [vmem:[#allocation2 + $0x134] ss:$8 sps:$4 sm:$0xff]  }
 0x244   :  { %1010 = vmatprep.subr.bf16.mxu0 %v10569_v41  ;;  %v10588_v41 = vld [vmem:[#allocation2 + $0x130] ss:$8 sps:$4 sm:$0xff]  }
 0x245   :  { %1327 = vmatpush1.bf16.msra.mxu1 %v10660_v11  ;;  %v10669_v11 = vld [vmem:[%s13165_s27 + $0xe0] ss:$8 sps:$4 sm:$0xff]  }
 0x246   :  { %1328 = vmatprep.subr.bf16.mxu1 %v10665_v12  ;;  %v10674_v12 = vld [vmem:[%s13165_s27 + $0xf4] ss:$8 sps:$4 sm:$0xff]  }
 0x247   :  { %1011 = vmatpush1.bf16.msra.mxu0 %v10567_v42  ;;  %v10593_v42 = vld [vmem:[#allocation2 + $0x144] ss:$8 sps:$4 sm:$0xff]  }
 0x248   :  { %1012 = vmatprep.subr.bf16.mxu0 %v10572_v43  ;;  %v10591_v43 = vld [vmem:[#allocation2 + $0x140] ss:$8 sps:$4 sm:$0xff]  }
 0x249   :  { %1329 = vmatpush1.bf16.msra.mxu1 %v10663_v13  ;;  %v10672_v13 = vld [vmem:[%s13165_s27 + $0xf0] ss:$8 sps:$4 sm:$0xff]  }
 0x24a   :  { %1330 = vmatprep.subr.bf16.mxu1 %v10668_v8  ;;  %v1472_v8 = vld [vmem:[%s13167_s15 + $0x308] sm:$0xff] }
 0x24b   :  { %1013 = vmatpush1.bf16.msra.mxu0 %v10570_v44  ;;  %v10596_v44 = vld [vmem:[#allocation2 + $0x154] ss:$8 sps:$4 sm:$0xff]  }
 0x24c   :  { %1014 = vmatprep.subr.bf16.mxu0 %v10575_v45  ;;  %v10594_v45 = vld [vmem:[#allocation2 + $0x150] ss:$8 sps:$4 sm:$0xff]  }
 0x24d   :  { %1331 = vmatpush1.bf16.msra.mxu1 %v10666_v9  ;;  %v1476_v9 = vld [vmem:[%s13167_s15 + $0x328] sm:$0xff] }
 0x24e   :  { %1332 = vmatprep.subr.bf16.mxu1 %v10671_v10  ;;  %v9133_v10 = vcombine.high %v1472_v8, %v1476_v9 }
 0x24f   :  { %1015 = vmatpush1.bf16.msra.mxu0 %v10573_v46  ;;  %v10599_v46 = vld [vmem:[#allocation2 + $0x164] ss:$8 sps:$4 sm:$0xff]  }
 0x250   :  { %1016 = vmatprep.subr.bf16.mxu0 %v10578_v47  ;;  %v10597_v47 = vld [vmem:[#allocation2 + $0x160] ss:$8 sps:$4 sm:$0xff]  }
 0x251   :  { %1333 = vmatpush1.bf16.msra.mxu1 %v10669_v11  ;;  %v9132_v11 = vcombine.low %v1472_v8, %v1476_v9  ;;  %v1447_v8 = vld [vmem:[%s13167_s15 + $0x240] sm:$0xff] }
 0x252   :  { %1334 = vmatprep.subr.bf16.mxu1 %v10674_v12  ;;  %v654_v12 = vld [vmem:[#allocation4] sm:$0x3] }
 0x253   :  { %1017 = vmatpush1.bf16.msra.mxu0 %v10576_v48  ;;  %v10602_v48 = vld [vmem:[#allocation2 + $0x174] ss:$8 sps:$4 sm:$0xff]   ;;  %v1451_v9 = vld [vmem:[%s13167_s15 + $0x260] sm:$0xff] }
 0x254   :  { %1027 = vmatprep.subr.bf16.mxu0 %v10581_v49  ;;  %v10600_v49 = vld [vmem:[#allocation2 + $0x170] ss:$8 sps:$4 sm:$0xff]  }
 0x255   :  { %1335 = vmatpush1.bf16.msra.mxu1 %v10672_v13  ;;  %v659_v13 = vrot.slane %v654_v12, %v12348_v15 }
 0x2e9   :  { %v538_v20 = vpop.f32.mrb[0].mxu0 }
 0x2ea   :  { %v539_v22 = vadd.f32 %v538_v20, %v452_v18  ;;  %v540_v23 = vpop.f32.mrb[1].mxu0  ;;  %v12380_v18 = vld [vmem:[%s13167_s15 + $0x20] sm:$0xff] }
 0x2eb   :  { %v541_v24 = vadd.f32 %v540_v23, %v456_v19  ;;  %v542_v25 = vpop.f32.mrb[2].mxu0  ;;  %v12362_v27 = vpop.f32.mrb[0].mxu1  ;;  %v1376_v19 = vld [vmem:[%s13167_s15 + $0x8] sm:$0xff]  ;;  %v9034_v20 = vcombine.low %v12377_v14, %v12380_v18 }
 0x2ec   :  { %v543_v28 = vpop.f32.mrb[3].mxu0  ;;  %v581_v30 = vpop.f32.mrb[1].mxu1  ;;  %v650_v34 = vpack.c.bf16 %v539_v22, %v539_v22  ;;  %v580_v6 = vadd.f32 %v12362_v27, %v460_v3  ;;  %v1380_v22 = vld [vmem:[%s13167_s15 + $0x28] sm:$0xff] }
 0x2ed   :  { %v651_v31 = vpack.c.bf16 %v541_v24, %v541_v24  ;;  %v582_v32 = vadd.f32 %v581_v30, %v464_v21  ;;  %v583_v33 = vpop.f32.mrb[2].mxu1  ;;  %v9035_v21 = vcombine.high %v12377_v14, %v12380_v18  ;;  %v9036_v23 = vcombine.low %v1376_v19, %v1380_v22  ;;  %v1384_v25 = vld [vmem:[%s13167_s15 + $0x48] sm:$0xff]  ;;  %v1415_v18 = vld [vmem:[%s13167_s15 + $0x140] sm:$0xff] }
 0x2ee   :  { %v584_v35 = vpop.f32.mrb[3].mxu1  ;;  %v652_v7 = vpack.c.bf16 %v580_v6, %v580_v6  ;;  %v9037_v24 = vcombine.high %v1376_v19, %v1380_v22  ;;  %v1396_v30 = vld [vmem:[%s13167_s15 + $0xa8] sm:$0xff]  ;;  %v1068_v19 = vld [vmem:[#allocation7] sm:$0x3] }
 0x2ef   :  { %1018 = vmatprep.mubr.bf16.mxu0 %v651_v31  ;;  %v653_v37 = vpack.c.bf16 %v582_v32, %v582_v32  ;;  %2187 = vmatprep.subr.bf16.mxu1 %v9035_v21  ;;  %v1400_v33 = vld [vmem:[%s13167_s15 + $0xc8] sm:$0xff]  ;;  %v663_v21 = vrot.slane %v654_v12, %v12351_v16  ;;  %v1455_v12 = vld [vmem:[%s13167_s15 + $0x280] sm:$0xff] }
 0x2f0   :  { %1019 = vmatmul.mubr.bf16.vlgmr.msra.gmra.mrb[4].mxu0 %v650_v34  ;;  %v1404_v34 = vld [vmem:[%s13167_s15 + $0xe8] sm:$0xff] }
 0x2f1   :  { %1028 = vmatpush1.bf16.msra.mxu0 %v10579_v26  ;;  %1059 = vmatprep.mubr.bf16.mxu0 %v653_v37  ;;  %v1388_v26 = vld [vmem:[%s13167_s15 + $0x68] sm:$0xff]  ;;  %v9061_v35 = vcombine.high %v1400_v33, %v1404_v34 }
 0x2f2   :  { %1029 = vmatprep.subr.bf16.mxu0 %v10584_v29  ;;  %v9045_v27 = vcombine.high %v1384_v25, %v1388_v26  ;;  %v9044_v28 = vcombine.low %v1384_v25, %v1388_v26  ;;  %v1392_v29 = vld [vmem:[%s13167_s15 + $0x88] sm:$0xff]  ;;  %v12415_v25 = vrot.slane %v1068_v19, %v12348_v15 }
 0x2f3   :  { %v9053_v31 = vcombine.high %v1392_v29, %v1396_v30  ;;  %v9052_v32 = vcombine.low %v1392_v29, %v1396_v30  ;;  %v1408_v37 = vld [vmem:[%s13167_s15 + $0x108] sm:$0xff] }
 0x2f4   :  { %v1464_v3 = vld [vmem:[%s13167_s15 + $0x2c8] sm:$0xff] }
 0x2f5   :  { %1030 = vmatpush1.bf16.msra.mxu0 %v10582_v36  ;;  %v9060_v36 = vcombine.low %v1400_v33, %v1404_v34 }
 0x2f6   :  { %1031 = vmatprep.subr.bf16.mxu0 %v10587_v38  ;;  %v1412_v38 = vld [vmem:[%s13167_s15 + $0x128] sm:$0xff] }
 0x2f9   :  { %1032 = vmatpush1.bf16.msra.mxu0 %v10585_v39  ;;  %v9069_v39 = vcombine.high %v1408_v37, %v1412_v38 }
 0x2fa   :  { %1033 = vmatprep.subr.bf16.mxu0 %v10590_v40  ;;  %v9068_v40 = vcombine.low %v1408_v37, %v1412_v38 }
 0x2fd   :  { %1034 = vmatpush1.bf16.msra.mxu0 %v10588_v41  ;;  %v1416_v41 = vld [vmem:[%s13167_s15 + $0x148] sm:$0xff] }
 0x2fe   :  { %1035 = vmatprep.subr.bf16.mxu0 %v10593_v42  ;;  %v1420_v42 = vld [vmem:[%s13167_s15 + $0x168] sm:$0xff] }
 0x301   :  { %1036 = vmatpush1.bf16.msra.mxu0 %v10591_v43  ;;  %v9077_v43 = vcombine.high %v1416_v41, %v1420_v42 }
 0x302   :  { %1037 = vmatprep.subr.bf16.mxu0 %v10596_v44  ;;  %v9076_v44 = vcombine.low %v1416_v41, %v1420_v42 }
 0x305   :  { %1038 = vmatpush1.bf16.msra.mxu0 %v10594_v45  ;;  %v1424_v45 = vld [vmem:[%s13167_s15 + $0x188] sm:$0xff] }
 0x306   :  { %1039 = vmatprep.subr.bf16.mxu0 %v10599_v46  ;;  %v1428_v46 = vld [vmem:[%s13167_s15 + $0x1a8] sm:$0xff] }
 0x309   :  { %1040 = vmatpush1.bf16.msra.mxu0 %v10597_v47  ;;  %v9085_v47 = vcombine.high %v1424_v45, %v1428_v46 }
 0x30a   :  { %1041 = vmatprep.subr.bf16.mxu0 %v10602_v48  ;;  %v9084_v48 = vcombine.low %v1424_v45, %v1428_v46  ;;  %v1395_v45 = vld [vmem:[%s13167_s15 + $0xa0] sm:$0xff] }
 0x30d   :  { %1042 = vmatpush1.bf16.msra.mxu0 %v10600_v49  ;;  %v1432_v49 = vld [vmem:[%s13167_s15 + $0x1c8] sm:$0xff] }
 0x30e   :  { %1043 = vmatprep.subr.bf16.mxu0 %v10605_v50  ;;  %v1436_v50 = vld [vmem:[%s13167_s15 + $0x1e8] sm:$0xff] }
 0x311   :  { %1044 = vmatpush1.bf16.msra.mxu0 %v10603_v51  ;;  %v9093_v51 = vcombine.high %v1432_v49, %v1436_v50 }
 0x312   :  { %1045 = vmatprep.subr.bf16.mxu0 %v10608_v52  ;;  %v9092_v52 = vcombine.low %v1432_v49, %v1436_v50  ;;  %v1403_v49 = vld [vmem:[%s13167_s15 + $0xe0] sm:$0xff] }
 0x315   :  { %1046 = vmatpush1.bf16.msra.mxu0 %v10606_v53  ;;  %v1440_v53 = vld [vmem:[%s13167_s15 + $0x208] sm:$0xff] }
 0x316   :  { %1047 = vmatprep.subr.bf16.mxu0 %v10611_v54  ;;  %v1444_v54 = vld [vmem:[%s13167_s15 + $0x228] sm:$0xff] }
 0x319   :  { %1048 = vmatpush1.bf16.msra.mxu0 %v10609_v55  ;;  %v9101_v55 = vcombine.high %v1440_v53, %v1444_v54 }
 0x31a   :  { %1049 = vmatprep.subr.bf16.mxu0 %v10614_v56  ;;  %v9100_v56 = vcombine.low %v1440_v53, %v1444_v54  ;;  %v1411_v53 = vld [vmem:[%s13167_s15 + $0x120] sm:$0xff] }
 0x31d   :  { %1050 = vmatpush1.bf16.msra.mxu0 %v10612_v57  ;;  %v1448_v57 = vld [vmem:[%s13167_s15 + $0x248] sm:$0xff] }
 0x31e   :  { %1051 = vmatprep.subr.bf16.mxu0 %v10617_v58  ;;  %v1452_v58 = vld [vmem:[%s13167_s15 + $0x268] sm:$0xff] }
 0x321   :  { %1052 = vmatpush1.bf16.msra.mxu0 %v10615_v59  ;;  %v9109_v59 = vcombine.high %v1448_v57, %v1452_v58 }
 0x322   :  { %1053 = vmatprep.subr.bf16.mxu0 %v10620_v60  ;;  %v9108_v60 = vcombine.low %v1448_v57, %v1452_v58  ;;  %v1423_v57 = vld [vmem:[%s13167_s15 + $0x180] sm:$0xff] }
 0x323   :  { %v1427_v58 = vld [vmem:[%s13167_s15 + $0x1a0] sm:$0xff] }
 0x325   :  { %1054 = vmatpush1.bf16.msra.mxu0 %v10618_v61  ;;  %v1456_v61 = vld [vmem:[%s13167_s15 + $0x288] sm:$0xff] }
 0x326   :  { %1055 = vmatprep.subr.bf16.mxu0 %v10623_v62  ;;  %v1460_v62 = vld [vmem:[%s13167_s15 + $0x2a8] sm:$0xff] }
 0x329   :  { %1056 = vmatpush1.bf16.msra.mxu0 %v10621_v1  ;;  %v9117_v1 = vcombine.high %v1456_v61, %v1460_v62 }
 0x32a   :  { %1057 = vmatprep.subr.bf16.mxu0 %v10626_v2  ;;  %v9116_v2 = vcombine.low %v1456_v61, %v1460_v62  ;;  %v1431_v61 = vld [vmem:[%s13167_s15 + $0x1c0] sm:$0xff] }
 0x32b   :  { %v1435_v62 = vld [vmem:[%s13167_s15 + $0x1e0] sm:$0xff] }
 0x32d   :  { %1058 = vmatpush1.bf16.msra.mxu0 %v10624_v5  ;;  %v1468_v5 = vld [vmem:[%s13167_s15 + $0x2e8] sm:$0xff] }
 0x32e   :  { %2228 = vmatprep.subr.bf16.mxu0 %v9037_v24  ;;  %v9125_v6 = vcombine.high %v1464_v3, %v1468_v5 }
 0x330   :  { %1060 = vmatmul.mubr.bf16.vlgmr.msra.gmra.mrb[4].mxu0 %v652_v7  ;;  %v9124_v7 = vcombine.low %v1464_v3, %v1468_v5  ;;  %v1439_v3 = vld [vmem:[%s13167_s15 + $0x200] sm:$0xff] }
 0x331   :  { %2229 = vmatpush1.bf16.msra.mxu0 %v9036_v23  ;;  %v1069_v23 = vld [vmem:[#allocation9] sm:$0x3] }
 0x332   :  { %2230 = vmatprep.subr.bf16.mxu0 %v9045_v27  ;;  %v12424_v34 = vrot.slane %v1069_v23, %v12351_v16  ;;  %v1443_v5 = vld [vmem:[%s13167_s15 + $0x220] sm:$0xff] }
 0x335   :  { %2231 = vmatpush1.bf16.msra.mxu0 %v9044_v28  ;;  %v12418_v28 = vrot.slane %v1068_v19, %v12351_v16  ;;  %v9106_v19 = vcombine.low %v1447_v8, %v1451_v9 }
 0x336   :  { %2232 = vmatprep.subr.bf16.mxu0 %v9053_v31  ;;  %v12421_v31 = vrot.slane %v1069_v23, %v12348_v15  ;;  %v1467_v23 = vld [vmem:[%s13167_s15 + $0x2e0] sm:$0xff] }
 0x339   :  { %2233 = vmatpush1.bf16.msra.mxu0 %v9052_v32 }
 0x33a   :  { %2234 = vmatprep.subr.bf16.mxu0 %v9061_v35 }
 0x33d   :  { %2235 = vmatpush1.bf16.msra.mxu0 %v9060_v36 }
 0x33e   :  { %2236 = vmatprep.subr.bf16.mxu0 %v9069_v39  ;;  %v1383_v39 = vld [vmem:[%s13167_s15 + $0x40] sm:$0xff] }
 0x341   :  { %2237 = vmatpush1.bf16.msra.mxu0 %v9068_v40  ;;  %v1387_v40 = vld [vmem:[%s13167_s15 + $0x60] sm:$0xff] }
 0x342   :  { %2238 = vmatprep.subr.bf16.mxu0 %v9077_v43  ;;  %v9043_v43 = vcombine.high %v1383_v39, %v1387_v40  ;;  %v9042_v46 = vcombine.low %v1383_v39, %v1387_v40  ;;  %v1484_v39 = vld [vmem:[%s13167_s15 + $0x368] sm:$0xff] }
 0x345   :  { %2239 = vmatpush1.bf16.msra.mxu0 %v9076_v44  ;;  %v1391_v44 = vld [vmem:[%s13167_s15 + $0x80] sm:$0xff] }
 0x346   :  { %2240 = vmatprep.subr.bf16.mxu0 %v9085_v47  ;;  %v9051_v47 = vcombine.high %v1391_v44, %v1395_v45  ;;  %v9050_v50 = vcombine.low %v1391_v44, %v1395_v45  ;;  %v1491_v44 = vld [vmem:[%s13167_s15 + $0x3a0] sm:$0xff]  ;;  %v1488_v45 = vld [vmem:[%s13167_s15 + $0x388] sm:$0xff] }
 0x349   :  { %2241 = vmatpush1.bf16.msra.mxu0 %v9084_v48  ;;  %v1399_v48 = vld [vmem:[%s13167_s15 + $0xc0] sm:$0xff] }
 0x34a   :  { %2242 = vmatprep.subr.bf16.mxu0 %v9093_v51  ;;  %v9059_v51 = vcombine.high %v1399_v48, %v1403_v49  ;;  %v9058_v54 = vcombine.low %v1399_v48, %v1403_v49 }
 0x34d   :  { %2243 = vmatpush1.bf16.msra.mxu0 %v9092_v52  ;;  %v1407_v52 = vld [vmem:[%s13167_s15 + $0x100] sm:$0xff] }
 0x34e   :  { %2244 = vmatprep.subr.bf16.mxu0 %v9101_v55  ;;  %v9067_v14 = vcombine.high %v1407_v52, %v1411_v53  ;;  %v9066_v55 = vcombine.low %v1407_v52, %v1411_v53  ;;  %v1499_v52 = vld [vmem:[%s13167_s15 + $0x3e0] sm:$0xff]  ;;  %v1496_v53 = vld [vmem:[%s13167_s15 + $0x3c8] sm:$0xff] }
 0x351   :  { %2245 = vmatpush1.bf16.msra.mxu0 %v9100_v56 }
 0x352   :  { %2246 = vmatprep.subr.bf16.mxu0 %v9109_v59 }
 0x355   :  { %2247 = vmatpush1.bf16.msra.mxu0 %v9108_v60  ;;  %v9083_v60 = vcombine.high %v1423_v57, %v1427_v58 }
 0x356   :  { %2248 = vmatprep.subr.bf16.mxu0 %v9117_v1  ;;  %v9082_v1 = vcombine.low %v1423_v57, %v1427_v58  ;;  %v1381_v57 = vld [vmem:[%s13167_s15 + $0x30] sm:$0xff]  ;;  %v1378_v58 = vld [vmem:[%s13167_s15 + $0x18] sm:$0xff] }
 0x359   :  { %2249 = vmatpush1.bf16.msra.mxu0 %v9116_v2  ;;  %v9091_v2 = vcombine.high %v1431_v61, %v1435_v62 }
 0x35a   :  { %2250 = vmatprep.subr.bf16.mxu0 %v9125_v6  ;;  %v9090_v6 = vcombine.low %v1431_v61, %v1435_v62 }
 0x35d   :  { %2251 = vmatpush1.bf16.msra.mxu0 %v9124_v7  ;;  %v9099_v7 = vcombine.high %v1439_v3, %v1443_v5 }
 0x35e   :  { %2252 = vmatprep.subr.bf16.mxu0 %v9133_v10  ;;  %v9098_v10 = vcombine.low %v1439_v3, %v1443_v5  ;;  %v1345_v5 = vld [vmem:[#allocation10] sm:$0x3] }
 0x361   :  { %2253 = vmatpush1.bf16.msra.mxu0 %v9132_v11  ;;  %v9107_v11 = vcombine.high %v1447_v8, %v1451_v9  ;;  %v1346_v8 = vld [vmem:[#allocation12] sm:$0x3] }
 0x403   :  { %v1061_v22 = vpop.f32.mrb[4].mxu0 }
 0x404   :  { %v10446_v24 = vadd.f32 %v1061_v22, %v659_v13  ;;  %v1063_v26 = vpop.f32.mrb[5].mxu0  ;;  %v1459_v13 = vld [vmem:[%s13167_s15 + $0x2a0] sm:$0xff] }
 0x405   :  { %v10447_v27 = vadd.f32 %v1063_v26, %v663_v21  ;;  %v1065_v29 = vpop.f32.mrb[6].mxu0  ;;  %v9115_v21 = vcombine.high %v1455_v12, %v1459_v13  ;;  %v1463_v22 = vld [vmem:[%s13167_s15 + $0x2c0] sm:$0xff] }
 0x406   :  { %v1070_v30 = vmax.f32 %v10446_v24, 0.0  ;;  %v1066_v32 = vpop.f32.mrb[7].mxu0  ;;  %v9114_v24 = vcombine.low %v1455_v12, %v1459_v13  ;;  %v9123_v26 = vcombine.high %v1463_v22, %v1467_v23  ;;  %v1475_v29 = vld [vmem:[%s13167_s15 + $0x320] sm:$0xff]  ;;  %v1357_v13 = vrot.slane %v1345_v5, %v12351_v16 }
 0x407   :  { %v1071_v33 = vmax.f32 %v10447_v27, 0.0  ;;  %v1471_v27 = vld [vmem:[%s13167_s15 + $0x300] sm:$0xff] }
 0x408   :  { %v1083_v35 = vmul.f32 %v12415_v25, %v1070_v30  ;;  %v9122_v30 = vcombine.low %v1463_v22, %v1467_v23  ;;  %v9131_v32 = vcombine.high %v1471_v27, %v1475_v29  ;;  %v1366_v22 = vrot.slane %v1346_v8, %v12348_v15 }
 0x409   :  { %v1084_v36 = vmul.f32 %v12418_v28, %v1071_v33  ;;  %v9130_v33 = vcombine.low %v1471_v27, %v1475_v29 }
 0x40a   :  { %v1096_v37 = vadd.f32 %v12421_v31, %v1083_v35  ;;  %v1479_v35 = vld [vmem:[%s13167_s15 + $0x340] sm:$0xff] }
 0x40b   :  { %v1097_v38 = vadd.f32 %v12424_v34, %v1084_v36  ;;  %v1483_v36 = vld [vmem:[%s13167_s15 + $0x360] sm:$0xff] }
 0x40c   :  { %v1130_v42 = vpack.c.bf16 %v1096_v37, %v1096_v37  ;;  %v1480_v37 = vld [vmem:[%s13167_s15 + $0x348] sm:$0xff]  ;;  %v9138_v40 = vcombine.low %v1479_v35, %v1483_v36 }
 0x40d   :  { %v1131_v41 = vpack.c.bf16 %v1097_v38, %v1097_v38  ;;  %v9139_v38 = vcombine.high %v1479_v35, %v1483_v36  ;;  %v1389_v35 = vld [vmem:[%s13167_s15 + $0x70] sm:$0xff]  ;;  %v1386_v36 = vld [vmem:[%s13167_s15 + $0x58] sm:$0xff] }
 0x40f   :  { %1336 = vmatprep.mubr.bf16.mxu1 %v1131_v41  ;;  %v9140_v41 = vcombine.low %v1480_v37, %v1484_v39 }
 0x410   :  { %1337 = vmatmul.mubr.bf16.vlgmr.msra.gmra.mrb[4].mxu1 %v1130_v42  ;;  %v9141_v42 = vcombine.high %v1480_v37, %v1484_v39  ;;  %v1390_v37 = vld [vmem:[%s13167_s15 + $0x78] sm:$0xff] }
 0x411   :  { %2188 = vmatpush1.bf16.msra.mxu1 %v9034_v20  ;;  %v1419_v20 = vld [vmem:[%s13167_s15 + $0x160] sm:$0xff] }
 0x412   :  { %2189 = vmatprep.subr.bf16.mxu1 %v9043_v43  ;;  %v9075_v56 = vcombine.high %v1415_v18, %v1419_v20  ;;  %v9074_v59 = vcombine.low %v1415_v18, %v1419_v20  ;;  %2254 = vmatprep.subr.bf16.mxu0 %v9141_v42  ;;  %v1487_v43 = vld [vmem:[%s13167_s15 + $0x380] sm:$0xff]  ;;  %v9049_v42 = vcombine.high %v1386_v36, %v1390_v37 }
 0x413   :  { %2255 = vmatpush1.bf16.msra.mxu0 %v9140_v41  ;;  %v9147_v48 = vcombine.high %v1487_v43, %v1491_v44 }
 0x415   :  { %2190 = vmatpush1.bf16.msra.mxu1 %v9042_v46  ;;  %v1492_v46 = vld [vmem:[%s13167_s15 + $0x3a8] sm:$0xff] }
 0x416   :  { %2191 = vmatprep.subr.bf16.mxu1 %v9051_v47  ;;  %v9146_v47 = vcombine.low %v1487_v43, %v1491_v44  ;;  %v9148_v49 = vcombine.low %v1488_v45, %v1492_v46  ;;  %v1397_v43 = vld [vmem:[%s13167_s15 + $0xb0] sm:$0xff]  ;;  %v1394_v44 = vld [vmem:[%s13167_s15 + $0x98] sm:$0xff] }
 0x419   :  { %2192 = vmatpush1.bf16.msra.mxu1 %v9050_v50  ;;  %v9149_v50 = vcombine.high %v1488_v45, %v1492_v46  ;;  %v1398_v45 = vld [vmem:[%s13167_s15 + $0xb8] sm:$0xff] }
 0x41a   :  { %2193 = vmatprep.subr.bf16.mxu1 %v9059_v51  ;;  %v1495_v51 = vld [vmem:[%s13167_s15 + $0x3c0] sm:$0xff] }
 0x41b   :  { %2256 = vmatprep.subr.bf16.mxu0 %v9149_v50  ;;  %v9154_v18 = vcombine.low %v1495_v51, %v1499_v52  ;;  %v1401_v50 = vld [vmem:[%s13167_s15 + $0xd0] sm:$0xff] }
 0x41c   :  { %2257 = vmatpush1.bf16.msra.mxu0 %v9148_v49  ;;  %v9057_v49 = vcombine.high %v1394_v44, %v1398_v45 }
 0x41d   :  { %2194 = vmatpush1.bf16.msra.mxu1 %v9058_v54  ;;  %v9155_v54 = vcombine.high %v1495_v51, %v1499_v52  ;;  %v1405_v51 = vld [vmem:[%s13167_s15 + $0xf0] sm:$0xff]  ;;  %v1402_v52 = vld [vmem:[%s13167_s15 + $0xd8] sm:$0xff] }
 0x41e   :  { %2195 = vmatprep.subr.bf16.mxu1 %v9067_v14  ;;  %v1500_v14 = vld [vmem:[%s13167_s15 + $0x3e8] sm:$0xff] }
 0x41f   :  { %v9156_v20 = vcombine.low %v1496_v53, %v1500_v14 }
 0x421   :  { %2196 = vmatpush1.bf16.msra.mxu1 %v9066_v55  ;;  %v9157_v55 = vcombine.high %v1496_v53, %v1500_v14  ;;  %v1406_v53 = vld [vmem:[%s13167_s15 + $0xf8] sm:$0xff]  ;;  %v9056_v14 = vcombine.low %v1394_v44, %v1398_v45 }
 0x422   :  { %2197 = vmatprep.subr.bf16.mxu1 %v9075_v56  ;;  %v1377_v56 = vld [vmem:[%s13167_s15 + $0x10] sm:$0xff] }
 0x423   :  { %2258 = vmatprep.subr.bf16.mxu0 %v9157_v55  ;;  %v9038_v61 = vcombine.low %v1377_v56, %v1381_v57  ;;  %v1409_v55 = vld [vmem:[%s13167_s15 + $0x110] sm:$0xff] }
 0x424   :  { %2259 = vmatpush1.bf16.msra.mxu0 %v9156_v20  ;;  %v9065_v20 = vcombine.high %v1402_v52, %v1406_v53 }
 0x425   :  { %2198 = vmatpush1.bf16.msra.mxu1 %v9074_v59  ;;  %v9039_v59 = vcombine.high %v1377_v56, %v1381_v57  ;;  %v1413_v56 = vld [vmem:[%s13167_s15 + $0x130] sm:$0xff]  ;;  %v1410_v57 = vld [vmem:[%s13167_s15 + $0x118] sm:$0xff] }
 0x426   :  { %2199 = vmatprep.subr.bf16.mxu1 %v9083_v60  ;;  %v1382_v60 = vld [vmem:[%s13167_s15 + $0x38] sm:$0xff] }
 0x427   :  { %v9040_v62 = vcombine.low %v1378_v58, %v1382_v60 }
 0x429   :  { %2200 = vmatpush1.bf16.msra.mxu1 %v9082_v1  ;;  %v9041_v1 = vcombine.high %v1378_v58, %v1382_v60  ;;  %v1414_v58 = vld [vmem:[%s13167_s15 + $0x138] sm:$0xff]  ;;  %v9064_v60 = vcombine.low %v1402_v52, %v1406_v53 }
 0x42a   :  { %2201 = vmatprep.subr.bf16.mxu1 %v9091_v2  ;;  %v1132_v2 = vld [vmem:[#allocation6] sm:$0x3] }
 0x42b   :  { %2310 = vmatprep.subr.bf16.mxu0 %v9041_v1  ;;  %v1137_v3 = vrot.slane %v1132_v2, %v12348_v15  ;;  %v1417_v1 = vld [vmem:[%s13167_s15 + $0x150] sm:$0xff] }
 0x42d   :  { %2202 = vmatpush1.bf16.msra.mxu1 %v9090_v6  ;;  %v1141_v6 = vrot.slane %v1132_v2, %v12351_v16  ;;  %v1421_v2 = vld [vmem:[%s13167_s15 + $0x170] sm:$0xff] }
 0x42e   :  { %2203 = vmatprep.subr.bf16.mxu1 %v9099_v7 }
 0x431   :  { %2204 = vmatpush1.bf16.msra.mxu1 %v9098_v10  ;;  %v1353_v10 = vrot.slane %v1345_v5, %v12348_v15  ;;  %v1422_v5 = vld [vmem:[%s13167_s15 + $0x178] sm:$0xff] }
 0x432   :  { %2205 = vmatprep.subr.bf16.mxu1 %v9107_v11 }
 0x435   :  { %2206 = vmatpush1.bf16.msra.mxu1 %v9106_v19 }
 0x436   :  { %2207 = vmatprep.subr.bf16.mxu1 %v9115_v21 }
 0x439   :  { %2208 = vmatpush1.bf16.msra.mxu1 %v9114_v24 }
 0x43a   :  { %2209 = vmatprep.subr.bf16.mxu1 %v9123_v26  ;;  %v1370_v26 = vrot.slane %v1346_v8, %v12351_v16  ;;  %v9079_v8 = vcombine.high %v1417_v1, %v1421_v2 }
 0x43d   :  { %2210 = vmatpush1.bf16.msra.mxu1 %v9122_v30 }
 0x43e   :  { %2211 = vmatprep.subr.bf16.mxu1 %v9131_v32 }
 0x441   :  { %2212 = vmatpush1.bf16.msra.mxu1 %v9130_v33  ;;  %v1385_v33 = vld [vmem:[%s13167_s15 + $0x50] sm:$0xff] }
 0x442   :  { %2213 = vmatprep.subr.bf16.mxu1 %v9139_v38  ;;  %v9047_v41 = vcombine.high %v1385_v33, %v1389_v35  ;;  %v9046_v46 = vcombine.low %v1385_v33, %v1389_v35 }
 0x445   :  { %2214 = vmatpush1.bf16.msra.mxu1 %v9138_v40  ;;  %v1393_v40 = vld [vmem:[%s13167_s15 + $0x90] sm:$0xff] }
 0x446   :  { %2215 = vmatprep.subr.bf16.mxu1 %v9147_v48  ;;  %v9055_v48 = vcombine.high %v1393_v40, %v1397_v43 }
 0x449   :  { %2216 = vmatpush1.bf16.msra.mxu1 %v9146_v47  ;;  %v9048_v47 = vcombine.low %v1386_v36, %v1390_v37  ;;  %v1441_v36 = vld [vmem:[%s13167_s15 + $0x210] sm:$0xff] }
 0x44a   :  { %2217 = vmatprep.subr.bf16.mxu1 %v9155_v54  ;;  %v9054_v54 = vcombine.low %v1393_v40, %v1397_v43  ;;  %v1445_v37 = vld [vmem:[%s13167_s15 + $0x230] sm:$0xff]  ;;  %v1442_v40 = vld [vmem:[%s13167_s15 + $0x218] sm:$0xff] }
 0x44b   :  { %v9103_v44 = vcombine.high %v1441_v36, %v1445_v37 }
 0x44d   :  { %2218 = vmatpush1.bf16.msra.mxu1 %v9154_v18  ;;  %v9063_v18 = vcombine.high %v1401_v50, %v1405_v51 }
 0x44e   :  { %2269 = vmatprep.subr.bf16.mxu1 %v9039_v59  ;;  %v9062_v59 = vcombine.low %v1401_v50, %v1405_v51  ;;  %v9102_v50 = vcombine.low %v1441_v36, %v1445_v37 }
 0x4e3   :  { %v1338_v7 = vpop.f32.mrb[4].mxu1 }
 0x4e4   :  { %v1339_v9 = vadd.f32 %v1338_v7, %v1137_v3  ;;  %v1340_v11 = vpop.f32.mrb[5].mxu1  ;;  %v1418_v3 = vld [vmem:[%s13167_s15 + $0x158] sm:$0xff]  ;;  %v9072_v7 = vcombine.low %v1410_v57, %v1414_v58 }
 0x4e5   :  { %v1341_v12 = vadd.f32 %v1340_v11, %v1141_v6  ;;  %v1342_v19 = vpop.f32.mrb[6].mxu1  ;;  %v9070_v6 = vcombine.low %v1409_v55, %v1413_v56  ;;  %v1429_v11 = vld [vmem:[%s13167_s15 + $0x1b0] sm:$0xff] }
 0x4e6   :  { %v1347_v21 = vmax.f32 %v1339_v9, 0.0  ;;  %v1343_v23 = vpop.f32.mrb[7].mxu1  ;;  %v9081_v9 = vcombine.high %v1418_v3, %v1422_v5  ;;  %v9078_v19 = vcombine.low %v1417_v1, %v1421_v2 }
 0x4e7   :  { %v1348_v24 = vmax.f32 %v1341_v12, 0.0  ;;  %v1426_v12 = vld [vmem:[%s13167_s15 + $0x198] sm:$0xff] }
 0x4e8   :  { %v1360_v27 = vmul.f32 %v1353_v10, %v1347_v21  ;;  %v1425_v10 = vld [vmem:[%s13167_s15 + $0x190] sm:$0xff]  ;;  %v9080_v21 = vcombine.low %v1418_v3, %v1422_v5 }
 0x4e9   :  { %v1361_v29 = vmul.f32 %v1357_v13, %v1348_v24  ;;  %v1430_v13 = vld [vmem:[%s13167_s15 + $0x1b8] sm:$0xff]  ;;  %v1433_v24 = vld [vmem:[%s13167_s15 + $0x1d0] sm:$0xff] }
 0x4ea   :  { %v1373_v30 = vadd.f32 %v1366_v22, %v1360_v27  ;;  %v9087_v22 = vcombine.high %v1425_v10, %v1429_v11  ;;  %v9089_v23 = vcombine.high %v1426_v12, %v1430_v13  ;;  %v1434_v27 = vld [vmem:[%s13167_s15 + $0x1d8] sm:$0xff] }
 0x4eb   :  { %v1374_v32 = vadd.f32 %v1370_v26, %v1361_v29  ;;  %v1437_v26 = vld [vmem:[%s13167_s15 + $0x1f0] sm:$0xff]  ;;  %v1438_v29 = vld [vmem:[%s13167_s15 + $0x1f8] sm:$0xff] }
 0x4ec   :  { %v12485_v39 = vpack.c.bf16 %v1373_v30, %v1373_v30  ;;  %v9086_v30 = vcombine.low %v1425_v10, %v1429_v11  ;;  %v9095_v33 = vcombine.high %v1433_v24, %v1437_v26  ;;  %v9097_v35 = vcombine.high %v1434_v27, %v1438_v29 }
 0x4ed   :  { %v12483_v38 = vpack.c.bf16 %v1374_v32, %v1374_v32  ;;  %v9088_v32 = vcombine.low %v1426_v12, %v1430_v13  ;;  %v9096_v43 = vcombine.low %v1434_v27, %v1438_v29 }
 0x4ef   :  { %2219 = vmatprep.mubr.bf16.mxu1 %v12483_v38  ;;  %2260 = vmatprep.mubr.bf16.mxu0 %v12483_v38 }
 0x4f0   :  { %2220 = vmatmul.mubr.bf16.vlgmr.msra.gmra.mrb[8].mxu1 %v12485_v39  ;;  %2261 = vmatmul.mubr.bf16.vlgmr.msra.gmra.mrb[8].mxu0 %v12485_v39 }
 0x4f1   :  { %2270 = vmatpush1.bf16.msra.mxu1 %v9038_v61  ;;  %2311 = vmatpush1.bf16.msra.mxu0 %v9040_v62  ;;  %v9071_v61 = vcombine.high %v1409_v55, %v1413_v56  ;;  %v9073_v62 = vcombine.high %v1410_v57, %v1414_v58 }
 0x4f2   :  { %2301 = vmatprep.mubr.bf16.mxu1 %v12483_v38  ;;  %2342 = vmatprep.mubr.bf16.mxu0 %v12483_v38 }
 0x4f3   :  { %2271 = vmatprep.subr.bf16.mxu1 %v9047_v41  ;;  %2312 = vmatprep.subr.bf16.mxu0 %v9049_v42  ;;  %v1446_v41 = vld [vmem:[%s13167_s15 + $0x238] sm:$0xff]  ;;  %v9094_v42 = vcombine.low %v1433_v24, %v1437_v26 }
 0x4f4   :  { %v9105_v45 = vcombine.high %v1442_v40, %v1446_v41  ;;  %v9104_v51 = vcombine.low %v1442_v40, %v1446_v41 }
 0x4f5   :  { %2272 = vmatpush1.bf16.msra.mxu1 %v9046_v46  ;;  %2313 = vmatpush1.bf16.msra.mxu0 %v9048_v47  ;;  %v1449_v46 = vld [vmem:[%s13167_s15 + $0x250] sm:$0xff] }
 0x4f6   :  { %2273 = vmatprep.subr.bf16.mxu1 %v9055_v48  ;;  %2314 = vmatprep.subr.bf16.mxu0 %v9057_v49  ;;  %v1453_v47 = vld [vmem:[%s13167_s15 + $0x270] sm:$0xff]  ;;  %v1450_v48 = vld [vmem:[%s13167_s15 + $0x258] sm:$0xff] }
 0x4f7   :  { %v1454_v49 = vld [vmem:[%s13167_s15 + $0x278] sm:$0xff]  ;;  %v9111_v52 = vcombine.high %v1449_v46, %v1453_v47  ;;  %v9110_v55 = vcombine.low %v1449_v46, %v1453_v47 }
 0x4f8   :  { %v9113_v53 = vcombine.high %v1450_v48, %v1454_v49  ;;  %v9112_v56 = vcombine.low %v1450_v48, %v1454_v49 }
 0x4f9   :  { %2274 = vmatpush1.bf16.msra.mxu1 %v9054_v54  ;;  %2315 = vmatpush1.bf16.msra.mxu0 %v9056_v14  ;;  %v1457_v54 = vld [vmem:[%s13167_s15 + $0x290] sm:$0xff] }
 0x4fa   :  { %2275 = vmatprep.subr.bf16.mxu1 %v9063_v18  ;;  %2316 = vmatprep.subr.bf16.mxu0 %v9065_v20  ;;  %v1461_v14 = vld [vmem:[%s13167_s15 + $0x2b0] sm:$0xff]  ;;  %v1458_v18 = vld [vmem:[%s13167_s15 + $0x298] sm:$0xff] }
 0x4fb   :  { %v1462_v20 = vld [vmem:[%s13167_s15 + $0x2b8] sm:$0xff]  ;;  %v9119_v57 = vcombine.high %v1457_v54, %v1461_v14  ;;  %v9118_v1 = vcombine.low %v1457_v54, %v1461_v14 }
 0x4fc   :  { %v9121_v58 = vcombine.high %v1458_v18, %v1462_v20  ;;  %v9120_v2 = vcombine.low %v1458_v18, %v1462_v20 }
 0x4fd   :  { %2276 = vmatpush1.bf16.msra.mxu1 %v9062_v59  ;;  %2317 = vmatpush1.bf16.msra.mxu0 %v9064_v60  ;;  %v1465_v59 = vld [vmem:[%s13167_s15 + $0x2d0] sm:$0xff] }
 0x4fe   :  { %2277 = vmatprep.subr.bf16.mxu1 %v9071_v61  ;;  %2318 = vmatprep.subr.bf16.mxu0 %v9073_v62  ;;  %v1469_v60 = vld [vmem:[%s13167_s15 + $0x2f0] sm:$0xff]  ;;  %v1466_v61 = vld [vmem:[%s13167_s15 + $0x2d8] sm:$0xff] }
 0x4ff   :  { %v1470_v62 = vld [vmem:[%s13167_s15 + $0x2f8] sm:$0xff]  ;;  %v9127_v3 = vcombine.high %v1465_v59, %v1469_v60  ;;  %v9126_v10 = vcombine.low %v1465_v59, %v1469_v60 }
 0x500   :  { %v9129_v5 = vcombine.high %v1466_v61, %v1470_v62  ;;  %v9128_v11 = vcombine.low %v1466_v61, %v1470_v62  ;;  %v12550_v61 = vrot.slane %v12483_v38, 1 }
 0x501   :  { %2278 = vmatpush1.bf16.msra.mxu1 %v9070_v6  ;;  %2319 = vmatpush1.bf16.msra.mxu0 %v9072_v7  ;;  %v1473_v6 = vld [vmem:[%s13167_s15 + $0x310] sm:$0xff] }
 0x502   :  { %2279 = vmatprep.subr.bf16.mxu1 %v9079_v8  ;;  %2320 = vmatprep.subr.bf16.mxu0 %v9081_v9  ;;  %v1477_v7 = vld [vmem:[%s13167_s15 + $0x330] sm:$0xff]  ;;  %v1474_v8 = vld [vmem:[%s13167_s15 + $0x318] sm:$0xff] }
 0x503   :  { %v1478_v9 = vld [vmem:[%s13167_s15 + $0x338] sm:$0xff]  ;;  %v9135_v12 = vcombine.high %v1473_v6, %v1477_v7  ;;  %v9134_v24 = vcombine.low %v1473_v6, %v1477_v7 }
 0x504   :  { %v9137_v13 = vcombine.high %v1474_v8, %v1478_v9  ;;  %v9136_v26 = vcombine.low %v1474_v8, %v1478_v9  ;;  %v2480_v6 = vld [vmem:[#allocation22 + $0xa8] sm:$0xff] }
 0x505   :  { %2280 = vmatpush1.bf16.msra.mxu1 %v9078_v19  ;;  %2321 = vmatpush1.bf16.msra.mxu0 %v9080_v21  ;;  %v1481_v19 = vld [vmem:[%s13167_s15 + $0x350] sm:$0xff] }
 0x506   :  { %2281 = vmatprep.subr.bf16.mxu1 %v9087_v22  ;;  %2322 = vmatprep.subr.bf16.mxu0 %v9089_v23  ;;  %v1485_v21 = vld [vmem:[%s13167_s15 + $0x370] sm:$0xff]  ;;  %v1482_v22 = vld [vmem:[%s13167_s15 + $0x358] sm:$0xff] }
 0x507   :  { %v1486_v23 = vld [vmem:[%s13167_s15 + $0x378] sm:$0xff]  ;;  %v9143_v27 = vcombine.high %v1481_v19, %v1485_v21  ;;  %v9142_v36 = vcombine.low %v1481_v19, %v1485_v21 }
 0x508   :  { %v9145_v29 = vcombine.high %v1482_v22, %v1486_v23  ;;  %v9144_v37 = vcombine.low %v1482_v22, %v1486_v23 }
 0x509   :  { %2282 = vmatpush1.bf16.msra.mxu1 %v9086_v30  ;;  %2323 = vmatpush1.bf16.msra.mxu0 %v9088_v32  ;;  %v1489_v30 = vld [vmem:[%s13167_s15 + $0x390] sm:$0xff] }
 0x50a   :  { %2283 = vmatprep.subr.bf16.mxu1 %v9095_v33  ;;  %2324 = vmatprep.subr.bf16.mxu0 %v9097_v35  ;;  %v1493_v32 = vld [vmem:[%s13167_s15 + $0x3b0] sm:$0xff]  ;;  %v1490_v33 = vld [vmem:[%s13167_s15 + $0x398] sm:$0xff] }
 0x50b   :  { %v1494_v35 = vld [vmem:[%s13167_s15 + $0x3b8] sm:$0xff]  ;;  %v9151_v40 = vcombine.high %v1489_v30, %v1493_v32  ;;  %v9150_v46 = vcombine.low %v1489_v30, %v1493_v32 }
 0x50c   :  { %v9153_v41 = vcombine.high %v1490_v33, %v1494_v35  ;;  %v9152_v47 = vcombine.low %v1490_v33, %v1494_v35 }
 0x50d   :  { %2284 = vmatpush1.bf16.msra.mxu1 %v9094_v42  ;;  %2325 = vmatpush1.bf16.msra.mxu0 %v9096_v43  ;;  %v1497_v42 = vld [vmem:[%s13167_s15 + $0x3d0] sm:$0xff] }
 0x50e   :  { %2285 = vmatprep.subr.bf16.mxu1 %v9103_v44  ;;  %2326 = vmatprep.subr.bf16.mxu0 %v9105_v45  ;;  %v1501_v43 = vld [vmem:[%s13167_s15 + $0x3f0] sm:$0xff]  ;;  %v1498_v44 = vld [vmem:[%s13167_s15 + $0x3d8] sm:$0xff] }
 0x50f   :  { %v1502_v45 = vld [vmem:[%s13167_s15 + $0x3f8] sm:$0xff]  ;;  %v9159_v48 = vcombine.high %v1497_v42, %v1501_v43  ;;  %v9158_v54 = vcombine.low %v1497_v42, %v1501_v43 }
 0x510   :  { %v9161_v49 = vcombine.high %v1498_v44, %v1502_v45  ;;  %v9160_v14 = vcombine.low %v1498_v44, %v1502_v45 }
 0x511   :  { %2286 = vmatpush1.bf16.msra.mxu1 %v9102_v50  ;;  %2327 = vmatpush1.bf16.msra.mxu0 %v9104_v51  ;;  %v2459_v50 = vld [vmem:[#allocation22] sm:$0xff] }
 0x512   :  { %2287 = vmatprep.subr.bf16.mxu1 %v9111_v52  ;;  %2328 = vmatprep.subr.bf16.mxu0 %v9113_v53  ;;  %v2463_v51 = vld [vmem:[#allocation22 + $0x20] sm:$0xff]  ;;  %v2460_v52 = vld [vmem:[#allocation22 + $0x8] sm:$0xff] }
 0x513   :  { %v2464_v53 = vld [vmem:[#allocation22 + $0x28] sm:$0xff]  ;;  %v9163_v18 = vcombine.high %v2459_v50, %v2463_v51  ;;  %v9162_v59 = vcombine.low %v2459_v50, %v2463_v51 }
 0x514   :  { %v9165_v20 = vcombine.high %v2460_v52, %v2464_v53  ;;  %v9164_v60 = vcombine.low %v2460_v52, %v2464_v53 }
 0x515   :  { %2288 = vmatpush1.bf16.msra.mxu1 %v9110_v55  ;;  %2329 = vmatpush1.bf16.msra.mxu0 %v9112_v56  ;;  %v2467_v55 = vld [vmem:[#allocation22 + $0x40] sm:$0xff] }
 0x516   :  { %2289 = vmatprep.subr.bf16.mxu1 %v9119_v57  ;;  %2330 = vmatprep.subr.bf16.mxu0 %v9121_v58  ;;  %v2471_v56 = vld [vmem:[#allocation22 + $0x60] sm:$0xff]  ;;  %v2468_v57 = vld [vmem:[#allocation22 + $0x48] sm:$0xff] }
 0x517   :  { %v2472_v58 = vld [vmem:[#allocation22 + $0x68] sm:$0xff]  ;;  %v9171_v62 = vcombine.high %v2467_v55, %v2471_v56  ;;  %v9170_v7 = vcombine.low %v2467_v55, %v2471_v56 }
 0x518   :  { %v9172_v8 = vcombine.low %v2468_v57, %v2472_v58 }
 0x519   :  { %2290 = vmatpush1.bf16.msra.mxu1 %v9118_v1  ;;  %2331 = vmatpush1.bf16.msra.mxu0 %v9120_v2  ;;  %v9173_v1 = vcombine.high %v2468_v57, %v2472_v58  ;;  %v2475_v2 = vld [vmem:[#allocation22 + $0x80] sm:$0xff] }
 0x51a   :  { %2291 = vmatprep.subr.bf16.mxu1 %v9127_v3  ;;  %2332 = vmatprep.subr.bf16.mxu0 %v9129_v5  ;;  %v2479_v3 = vld [vmem:[#allocation22 + $0xa0] sm:$0xff]  ;;  %v2476_v5 = vld [vmem:[#allocation22 + $0x88] sm:$0xff] }
 0x51b   :  { %v9179_v38 = vcombine.high %v2475_v2, %v2479_v3  ;;  %v9181_v9 = vcombine.high %v2476_v5, %v2480_v6  ;;  %v9178_v19 = vcombine.low %v2475_v2, %v2479_v3  ;;  %v9180_v21 = vcombine.low %v2476_v5, %v2480_v6 }
 0x51d   :  { %2292 = vmatpush1.bf16.msra.mxu1 %v9126_v10  ;;  %2333 = vmatpush1.bf16.msra.mxu0 %v9128_v11  ;;  %v2483_v10 = vld [vmem:[#allocation22 + $0xc0] sm:$0xff] }
 0x51e   :  { %2293 = vmatprep.subr.bf16.mxu1 %v9135_v12  ;;  %2334 = vmatprep.subr.bf16.mxu0 %v9137_v13  ;;  %v2487_v11 = vld [vmem:[#allocation22 + $0xe0] sm:$0xff]  ;;  %v2484_v12 = vld [vmem:[#allocation22 + $0xc8] sm:$0xff] }
 0x51f   :  { %v2488_v13 = vld [vmem:[#allocation22 + $0xe8] sm:$0xff]  ;;  %v9187_v22 = vcombine.high %v2483_v10, %v2487_v11  ;;  %v9186_v30 = vcombine.low %v2483_v10, %v2487_v11 }
 0x520   :  { %v9189_v23 = vcombine.high %v2484_v12, %v2488_v13  ;;  %v9188_v32 = vcombine.low %v2484_v12, %v2488_v13 }
 0x521   :  { %2294 = vmatpush1.bf16.msra.mxu1 %v9134_v24  ;;  %2335 = vmatpush1.bf16.msra.mxu0 %v9136_v26  ;;  %v2491_v24 = vld [vmem:[#allocation22 + $0x100] sm:$0xff] }
 0x522   :  { %2295 = vmatprep.subr.bf16.mxu1 %v9143_v27  ;;  %2336 = vmatprep.subr.bf16.mxu0 %v9145_v29  ;;  %v2495_v26 = vld [vmem:[#allocation22 + $0x120] sm:$0xff]  ;;  %v2492_v27 = vld [vmem:[#allocation22 + $0x108] sm:$0xff] }
 0x523   :  { %v2496_v29 = vld [vmem:[#allocation22 + $0x128] sm:$0xff]  ;;  %v9195_v33 = vcombine.high %v2491_v24, %v2495_v26  ;;  %v9194_v42 = vcombine.low %v2491_v24, %v2495_v26 }
 0x524   :  { %v9197_v35 = vcombine.high %v2492_v27, %v2496_v29  ;;  %v9196_v43 = vcombine.low %v2492_v27, %v2496_v29 }
 0x525   :  { %2296 = vmatpush1.bf16.msra.mxu1 %v9142_v36  ;;  %2337 = vmatpush1.bf16.msra.mxu0 %v9144_v37  ;;  %v2499_v36 = vld [vmem:[#allocation22 + $0x140] sm:$0xff] }
 0x526   :  { %2297 = vmatprep.subr.bf16.mxu1 %v9151_v40  ;;  %2338 = vmatprep.subr.bf16.mxu0 %v9153_v41  ;;  %v2503_v37 = vld [vmem:[#allocation22 + $0x160] sm:$0xff]  ;;  %v2500_v40 = vld [vmem:[#allocation22 + $0x148] sm:$0xff] }
 0x527   :  { %v2504_v41 = vld [vmem:[#allocation22 + $0x168] sm:$0xff]  ;;  %v9203_v44 = vcombine.high %v2499_v36, %v2503_v37  ;;  %v9202_v50 = vcombine.low %v2499_v36, %v2503_v37 }
 0x528   :  { %v9205_v45 = vcombine.high %v2500_v40, %v2504_v41  ;;  %v9204_v51 = vcombine.low %v2500_v40, %v2504_v41 }
 0x529   :  { %2298 = vmatpush1.bf16.msra.mxu1 %v9150_v46  ;;  %2339 = vmatpush1.bf16.msra.mxu0 %v9152_v47  ;;  %v2507_v46 = vld [vmem:[#allocation22 + $0x180] sm:$0xff] }
 0x52a   :  { %2299 = vmatprep.subr.bf16.mxu1 %v9159_v48  ;;  %2340 = vmatprep.subr.bf16.mxu0 %v9161_v49  ;;  %v2511_v47 = vld [vmem:[#allocation22 + $0x1a0] sm:$0xff]  ;;  %v2508_v48 = vld [vmem:[#allocation22 + $0x188] sm:$0xff] }
 0x52b   :  { %v2512_v49 = vld [vmem:[#allocation22 + $0x1a8] sm:$0xff]  ;;  %v9211_v52 = vcombine.high %v2507_v46, %v2511_v47  ;;  %v9210_v55 = vcombine.low %v2507_v46, %v2511_v47 }
 0x52c   :  { %v9213_v53 = vcombine.high %v2508_v48, %v2512_v49  ;;  %v9212_v56 = vcombine.low %v2508_v48, %v2512_v49 }
 0x52d   :  { %2300 = vmatpush1.bf16.msra.mxu1 %v9158_v54  ;;  %2341 = vmatpush1.bf16.msra.mxu0 %v9160_v14  ;;  %v2515_v54 = vld [vmem:[#allocation22 + $0x1c0] sm:$0xff] }
 0x52e   :  { %3275 = vmatprep.subr.bf16.mxu1 %v9163_v18  ;;  %3316 = vmatprep.subr.bf16.mxu0 %v9165_v20  ;;  %v2519_v14 = vld [vmem:[#allocation22 + $0x1e0] sm:$0xff]  ;;  %v2516_v18 = vld [vmem:[#allocation22 + $0x1c8] sm:$0xff] }
 0x52f   :  { %v2520_v20 = vld [vmem:[#allocation22 + $0x1e8] sm:$0xff]  ;;  %v9219_v57 = vcombine.high %v2515_v54, %v2519_v14  ;;  %v9218_v2 = vcombine.low %v2515_v54, %v2519_v14 }
 0x530   :  { %2302 = vmatmul.mubr.bf16.vlgmr.msra.gmra.mrb[12].mxu1 %v12485_v39  ;;  %2343 = vmatmul.mubr.bf16.vlgmr.msra.gmra.mrb[12].mxu0 %v12485_v39  ;;  %v9221_v58 = vcombine.high %v2516_v18, %v2520_v20  ;;  %v9220_v3 = vcombine.low %v2516_v18, %v2520_v20 }
 0x531   :  { %3276 = vmatpush1.bf16.msra.mxu1 %v9162_v59  ;;  %3307 = vmatprep.mubr.bf16.mxu1 %v12550_v61  ;;  %v2523_v59 = vld [vmem:[#allocation22 + $0x200] sm:$0xff] }
 0x532   :  { %3317 = vmatpush1.bf16.msra.mxu0 %v9164_v60  ;;  %3348 = vmatprep.mubr.bf16.mxu0 %v12550_v61  ;;  %v2527_v60 = vld [vmem:[#allocation22 + $0x220] sm:$0xff] }
 0x533   :  { %3277 = vmatprep.subr.bf16.mxu1 %v9171_v62  ;;  %3318 = vmatprep.subr.bf16.mxu0 %v9173_v1  ;;  %v2524_v62 = vld [vmem:[#allocation22 + $0x208] sm:$0xff]  ;;  %v9227_v5 = vcombine.high %v2523_v59, %v2527_v60  ;;  %v9226_v10 = vcombine.low %v2523_v59, %v2527_v60 }
 0x534   :  { %v2528_v1 = vld [vmem:[#allocation22 + $0x228] sm:$0xff] }
 0x535   :  { %3278 = vmatpush1.bf16.msra.mxu1 %v9170_v7  ;;  %v9229_v6 = vcombine.high %v2524_v62, %v2528_v1  ;;  %v2531_v7 = vld [vmem:[#allocation22 + $0x240] sm:$0xff]  ;;  %v9228_v11 = vcombine.low %v2524_v62, %v2528_v1 }
 0x536   :  { %3319 = vmatpush1.bf16.msra.mxu0 %v9172_v8  ;;  %3279 = vmatprep.subr.bf16.mxu1 %v9179_v38  ;;  %v2535_v8 = vld [vmem:[#allocation22 + $0x260] sm:$0xff]  ;;  %v2532_v38 = vld [vmem:[#allocation22 + $0x248] sm:$0xff] }
 0x537   :  { %3320 = vmatprep.subr.bf16.mxu0 %v9181_v9  ;;  %v2536_v9 = vld [vmem:[#allocation22 + $0x268] sm:$0xff]  ;;  %v9235_v12 = vcombine.high %v2531_v7, %v2535_v8  ;;  %v9234_v24 = vcombine.low %v2531_v7, %v2535_v8 }
 0x538   :  { %v9237_v13 = vcombine.high %v2532_v38, %v2536_v9  ;;  %v9236_v26 = vcombine.low %v2532_v38, %v2536_v9 }
 0x539   :  { %3280 = vmatpush1.bf16.msra.mxu1 %v9178_v19  ;;  %v2539_v19 = vld [vmem:[#allocation22 + $0x280] sm:$0xff] }
 0x53a   :  { %3321 = vmatpush1.bf16.msra.mxu0 %v9180_v21  ;;  %3281 = vmatprep.subr.bf16.mxu1 %v9187_v22  ;;  %v2543_v21 = vld [vmem:[#allocation22 + $0x2a0] sm:$0xff]  ;;  %v2540_v22 = vld [vmem:[#allocation22 + $0x288] sm:$0xff] }
 0x53b   :  { %3322 = vmatprep.subr.bf16.mxu0 %v9189_v23  ;;  %v2544_v23 = vld [vmem:[#allocation22 + $0x2a8] sm:$0xff]  ;;  %v9243_v27 = vcombine.high %v2539_v19, %v2543_v21  ;;  %v9242_v36 = vcombine.low %v2539_v19, %v2543_v21 }
 0x53c   :  { %v9245_v29 = vcombine.high %v2540_v22, %v2544_v23  ;;  %v9244_v37 = vcombine.low %v2540_v22, %v2544_v23 }
 0x53d   :  { %3282 = vmatpush1.bf16.msra.mxu1 %v9186_v30  ;;  %v2547_v30 = vld [vmem:[#allocation22 + $0x2c0] sm:$0xff] }
 0x53e   :  { %3323 = vmatpush1.bf16.msra.mxu0 %v9188_v32  ;;  %3283 = vmatprep.subr.bf16.mxu1 %v9195_v33  ;;  %v2551_v32 = vld [vmem:[#allocation22 + $0x2e0] sm:$0xff]  ;;  %v2548_v33 = vld [vmem:[#allocation22 + $0x2c8] sm:$0xff] }
 0x53f   :  { %3324 = vmatprep.subr.bf16.mxu0 %v9197_v35  ;;  %v2552_v35 = vld [vmem:[#allocation22 + $0x2e8] sm:$0xff]  ;;  %v9251_v40 = vcombine.high %v2547_v30, %v2551_v32  ;;  %v9250_v46 = vcombine.low %v2547_v30, %v2551_v32  ;;  %v2474_v30 = vld [vmem:[#allocation22 + $0x78] sm:$0xff]  ;;  %v12557_v32 = vrot.slane %v12485_v39, 1 }
 0x540   :  { %v9253_v41 = vcombine.high %v2548_v33, %v2552_v35  ;;  %v9252_v47 = vcombine.low %v2548_v33, %v2552_v35 }
 0x541   :  { %3284 = vmatpush1.bf16.msra.mxu1 %v9194_v42  ;;  %v2555_v42 = vld [vmem:[#allocation22 + $0x300] sm:$0xff] }
 0x542   :  { %3325 = vmatpush1.bf16.msra.mxu0 %v9196_v43  ;;  %3285 = vmatprep.subr.bf16.mxu1 %v9203_v44  ;;  %v2559_v43 = vld [vmem:[#allocation22 + $0x320] sm:$0xff]  ;;  %v2556_v44 = vld [vmem:[#allocation22 + $0x308] sm:$0xff] }
 0x543   :  { %3326 = vmatprep.subr.bf16.mxu0 %v9205_v45  ;;  %v2560_v45 = vld [vmem:[#allocation22 + $0x328] sm:$0xff]  ;;  %v9259_v48 = vcombine.high %v2555_v42, %v2559_v43  ;;  %v9258_v54 = vcombine.low %v2555_v42, %v2559_v43  ;;  %v2482_v42 = vld [vmem:[#allocation22 + $0xb8] sm:$0xff] }
 0x544   :  { %v9261_v49 = vcombine.high %v2556_v44, %v2560_v45  ;;  %v9260_v14 = vcombine.low %v2556_v44, %v2560_v45 }
 0x545   :  { %3286 = vmatpush1.bf16.msra.mxu1 %v9202_v50  ;;  %v2563_v50 = vld [vmem:[#allocation22 + $0x340] sm:$0xff] }
 0x546   :  { %3327 = vmatpush1.bf16.msra.mxu0 %v9204_v51  ;;  %3287 = vmatprep.subr.bf16.mxu1 %v9211_v52  ;;  %v2567_v51 = vld [vmem:[#allocation22 + $0x360] sm:$0xff]  ;;  %v2564_v52 = vld [vmem:[#allocation22 + $0x348] sm:$0xff] }
 0x547   :  { %3328 = vmatprep.subr.bf16.mxu0 %v9213_v53  ;;  %v2568_v53 = vld [vmem:[#allocation22 + $0x368] sm:$0xff]  ;;  %v9267_v18 = vcombine.high %v2563_v50, %v2567_v51  ;;  %v9266_v59 = vcombine.low %v2563_v50, %v2567_v51 }
 0x548   :  { %v9269_v20 = vcombine.high %v2564_v52, %v2568_v53  ;;  %v9268_v60 = vcombine.low %v2564_v52, %v2568_v53 }
 0x549   :  { %3288 = vmatpush1.bf16.msra.mxu1 %v9210_v55  ;;  %v2571_v55 = vld [vmem:[#allocation22 + $0x380] sm:$0xff] }
 0x54a   :  { %3329 = vmatpush1.bf16.msra.mxu0 %v9212_v56  ;;  %3289 = vmatprep.subr.bf16.mxu1 %v9219_v57  ;;  %v2575_v56 = vld [vmem:[#allocation22 + $0x3a0] sm:$0xff]  ;;  %v2572_v57 = vld [vmem:[#allocation22 + $0x388] sm:$0xff] }
 0x54b   :  { %3330 = vmatprep.subr.bf16.mxu0 %v9221_v58  ;;  %v2576_v58 = vld [vmem:[#allocation22 + $0x3a8] sm:$0xff]  ;;  %v9275_v62 = vcombine.high %v2571_v55, %v2575_v56  ;;  %v9274_v7 = vcombine.low %v2571_v55, %v2575_v56 }
 0x54c   :  { %v9277_v1 = vcombine.high %v2572_v57, %v2576_v58  ;;  %v9276_v8 = vcombine.low %v2572_v57, %v2576_v58  ;;  %v2501_v58 = vld [vmem:[#allocation22 + $0x150] sm:$0xff] }
 0x54d   :  { %3290 = vmatpush1.bf16.msra.mxu1 %v9218_v2  ;;  %v2579_v2 = vld [vmem:[#allocation22 + $0x3c0] sm:$0xff] }
 0x54e   :  { %3331 = vmatpush1.bf16.msra.mxu0 %v9220_v3  ;;  %3291 = vmatprep.subr.bf16.mxu1 %v9227_v5  ;;  %v2583_v3 = vld [vmem:[#allocation22 + $0x3e0] sm:$0xff]  ;;  %v2580_v5 = vld [vmem:[#allocation22 + $0x3c8] sm:$0xff] }
 0x54f   :  { %3332 = vmatprep.subr.bf16.mxu0 %v9229_v6  ;;  %v2584_v6 = vld [vmem:[#allocation22 + $0x3e8] sm:$0xff]  ;;  %v9283_v38 = vcombine.high %v2579_v2, %v2583_v3  ;;  %v9282_v19 = vcombine.low %v2579_v2, %v2583_v3 }
 0x550   :  { %v9285_v9 = vcombine.high %v2580_v5, %v2584_v6  ;;  %v9284_v21 = vcombine.low %v2580_v5, %v2584_v6  ;;  %v2509_v6 = vld [vmem:[#allocation22 + $0x190] sm:$0xff] }
 0x551   :  { %3292 = vmatpush1.bf16.msra.mxu1 %v9226_v10  ;;  %v2461_v10 = vld [vmem:[#allocation22 + $0x10] sm:$0xff] }
 0x552   :  { %3333 = vmatpush1.bf16.msra.mxu0 %v9228_v11  ;;  %3293 = vmatprep.subr.bf16.mxu1 %v9235_v12  ;;  %v2465_v11 = vld [vmem:[#allocation22 + $0x30] sm:$0xff]  ;;  %v2462_v12 = vld [vmem:[#allocation22 + $0x18] sm:$0xff] }
 0x553   :  { %3334 = vmatprep.subr.bf16.mxu0 %v9237_v13  ;;  %v2466_v13 = vld [vmem:[#allocation22 + $0x38] sm:$0xff]  ;;  %v9167_v22 = vcombine.high %v2461_v10, %v2465_v11 }
 0x554   :  { %v9169_v23 = vcombine.high %v2462_v12, %v2466_v13  ;;  %v9168_v33 = vcombine.low %v2462_v12, %v2466_v13  ;;  %v2517_v13 = vld [vmem:[#allocation22 + $0x1d0] sm:$0xff] }
 0x555   :  { %3294 = vmatpush1.bf16.msra.mxu1 %v9234_v24  ;;  %v2469_v24 = vld [vmem:[#allocation22 + $0x50] sm:$0xff] }
 0x556   :  { %3335 = vmatpush1.bf16.msra.mxu0 %v9236_v26  ;;  %3295 = vmatprep.subr.bf16.mxu1 %v9243_v27  ;;  %v2473_v26 = vld [vmem:[#allocation22 + $0x70] sm:$0xff]  ;;  %v9166_v27 = vcombine.low %v2461_v10, %v2465_v11 }
 0x557   :  { %3336 = vmatprep.subr.bf16.mxu0 %v9245_v29  ;;  %v2470_v29 = vld [vmem:[#allocation22 + $0x58] sm:$0xff]  ;;  %v9175_v35 = vcombine.high %v2469_v24, %v2473_v26  ;;  %v9174_v43 = vcombine.low %v2469_v24, %v2473_v26 }
 0x558   :  { %v9176_v39 = vcombine.low %v2470_v29, %v2474_v30 }
 0x559   :  { %3296 = vmatpush1.bf16.msra.mxu1 %v9242_v36  ;;  %v2477_v36 = vld [vmem:[#allocation22 + $0x90] sm:$0xff] }
 0x55a   :  { %3337 = vmatpush1.bf16.msra.mxu0 %v9244_v37  ;;  %3297 = vmatprep.subr.bf16.mxu1 %v9251_v40  ;;  %v2481_v37 = vld [vmem:[#allocation22 + $0xb0] sm:$0xff]  ;;  %v9177_v40 = vcombine.high %v2470_v29, %v2474_v30 }
 0x55b   :  { %3338 = vmatprep.subr.bf16.mxu0 %v9253_v41  ;;  %v2478_v41 = vld [vmem:[#allocation22 + $0x98] sm:$0xff]  ;;  %v9183_v44 = vcombine.high %v2477_v36, %v2481_v37  ;;  %v9182_v50 = vcombine.low %v2477_v36, %v2481_v37  ;;  %v2525_v29 = vld [vmem:[#allocation22 + $0x210] sm:$0xff] }
 0x55c   :  { %v9185_v45 = vcombine.high %v2478_v41, %v2482_v42  ;;  %v9184_v51 = vcombine.low %v2478_v41, %v2482_v42  ;;  %v2529_v30 = vld [vmem:[#allocation22 + $0x230] sm:$0xff] }
 0x55d   :  { %3298 = vmatpush1.bf16.msra.mxu1 %v9250_v46  ;;  %v2485_v46 = vld [vmem:[#allocation22 + $0xd0] sm:$0xff] }
 0x55e   :  { %3339 = vmatpush1.bf16.msra.mxu0 %v9252_v47  ;;  %3299 = vmatprep.subr.bf16.mxu1 %v9259_v48  ;;  %v2489_v47 = vld [vmem:[#allocation22 + $0xf0] sm:$0xff]  ;;  %v2486_v48 = vld [vmem:[#allocation22 + $0xd8] sm:$0xff] }
 0x55f   :  { %3340 = vmatprep.subr.bf16.mxu0 %v9261_v49  ;;  %v2490_v49 = vld [vmem:[#allocation22 + $0xf8] sm:$0xff]  ;;  %v9191_v52 = vcombine.high %v2485_v46, %v2489_v47  ;;  %v2533_v42 = vld [vmem:[#allocation22 + $0x250] sm:$0xff] }
 0x560   :  { %v9193_v53 = vcombine.high %v2486_v48, %v2490_v49  ;;  %v9192_v55 = vcombine.low %v2486_v48, %v2490_v49  ;;  %v2541_v49 = vld [vmem:[#allocation22 + $0x290] sm:$0xff] }
 0x561   :  { %3300 = vmatpush1.bf16.msra.mxu1 %v9258_v54  ;;  %v2493_v54 = vld [vmem:[#allocation22 + $0x110] sm:$0xff] }
 0x562   :  { %3341 = vmatpush1.bf16.msra.mxu0 %v9260_v14  ;;  %3301 = vmatprep.subr.bf16.mxu1 %v9267_v18  ;;  %v2497_v14 = vld [vmem:[#allocation22 + $0x130] sm:$0xff]  ;;  %v2494_v18 = vld [vmem:[#allocation22 + $0x118] sm:$0xff] }
 0x563   :  { %3342 = vmatprep.subr.bf16.mxu0 %v9269_v20  ;;  %v2498_v20 = vld [vmem:[#allocation22 + $0x138] sm:$0xff]  ;;  %v9199_v56 = vcombine.high %v2493_v54, %v2497_v14 }
 0x564   :  { %v9201_v57 = vcombine.high %v2494_v18, %v2498_v20  ;;  %v9200_v2 = vcombine.low %v2494_v18, %v2498_v20  ;;  %v2549_v20 = vld [vmem:[#allocation22 + $0x2d0] sm:$0xff] }
 0x565   :  { %3302 = vmatpush1.bf16.msra.mxu1 %v9266_v59  ;;  %v2505_v59 = vld [vmem:[#allocation22 + $0x170] sm:$0xff] }
 0x566   :  { %3343 = vmatpush1.bf16.msra.mxu0 %v9268_v60  ;;  %3303 = vmatprep.subr.bf16.mxu1 %v9275_v62  ;;  %v2502_v60 = vld [vmem:[#allocation22 + $0x158] sm:$0xff]  ;;  %v9207_v3 = vcombine.high %v2501_v58, %v2505_v59 }
 0x567   :  { %3344 = vmatprep.subr.bf16.mxu0 %v9277_v1  ;;  %v2506_v62 = vld [vmem:[#allocation22 + $0x178] sm:$0xff]  ;;  %v9198_v1 = vcombine.low %v2493_v54, %v2497_v14 }
 0x568   :  { %v9209_v5 = vcombine.high %v2502_v60, %v2506_v62  ;;  %v9208_v10 = vcombine.low %v2502_v60, %v2506_v62  ;;  %v2557_v62 = vld [vmem:[#allocation22 + $0x310] sm:$0xff] }
 0x569   :  { %3304 = vmatpush1.bf16.msra.mxu1 %v9274_v7  ;;  %v2513_v7 = vld [vmem:[#allocation22 + $0x1b0] sm:$0xff] }
 0x56a   :  { %3345 = vmatpush1.bf16.msra.mxu0 %v9276_v8  ;;  %3305 = vmatprep.subr.bf16.mxu1 %v9283_v38  ;;  %v2510_v8 = vld [vmem:[#allocation22 + $0x198] sm:$0xff]  ;;  %v9215_v11 = vcombine.high %v2509_v6, %v2513_v7 }
 0x56b   :  { %3346 = vmatprep.subr.bf16.mxu0 %v9285_v9  ;;  %v2514_v38 = vld [vmem:[#allocation22 + $0x1b8] sm:$0xff]  ;;  %v9206_v9 = vcombine.low %v2501_v58, %v2505_v59 }
 0x56c   :  { %v9217_v12 = vcombine.high %v2510_v8, %v2514_v38  ;;  %v9216_v24 = vcombine.low %v2510_v8, %v2514_v38  ;;  %v2565_v38 = vld [vmem:[#allocation22 + $0x350] sm:$0xff] }
 0x56d   :  { %3306 = vmatpush1.bf16.msra.mxu1 %v9282_v19  ;;  %v2521_v19 = vld [vmem:[#allocation22 + $0x1f0] sm:$0xff] }
 0x56e   :  { %3347 = vmatpush1.bf16.msra.mxu0 %v9284_v21  ;;  %3357 = vmatprep.subr.bf16.mxu1 %v9167_v22  ;;  %v2518_v21 = vld [vmem:[#allocation22 + $0x1d8] sm:$0xff]  ;;  %v9223_v26 = vcombine.high %v2517_v13, %v2521_v19  ;;  %v9222_v36 = vcombine.low %v2517_v13, %v2521_v19 }
 0x56f   :  { %3398 = vmatprep.subr.bf16.mxu0 %v9169_v23  ;;  %v2522_v22 = vld [vmem:[#allocation22 + $0x1f8] sm:$0xff]  ;;  %v9214_v23 = vcombine.low %v2509_v6, %v2513_v7 }
 0x570   :  { %3308 = vmatmul.mubr.bf16.vlgmr.msra.gmra.mrb[16].mxu1 %v12557_v32  ;;  %v9224_v37 = vcombine.low %v2518_v21, %v2522_v22 }
 0x571   :  { %3349 = vmatmul.mubr.bf16.vlgmr.msra.gmra.mrb[16].mxu0 %v12557_v32  ;;  %3358 = vmatpush1.bf16.msra.mxu1 %v9166_v27  ;;  %v9225_v27 = vcombine.high %v2518_v21, %v2522_v22  ;;  %v2573_v22 = vld [vmem:[#allocation22 + $0x390] sm:$0xff] }
 0x572   :  { %3389 = vmatprep.mubr.bf16.mxu1 %v12550_v61  ;;  %3399 = vmatpush1.bf16.msra.mxu0 %v9168_v33  ;;  %v2526_v33 = vld [vmem:[#allocation22 + $0x218] sm:$0xff] }
 0x573   :  { %3430 = vmatprep.mubr.bf16.mxu0 %v12550_v61  ;;  %3359 = vmatprep.subr.bf16.mxu1 %v9175_v35  ;;  %v9190_v61 = vcombine.low %v2485_v46, %v2489_v47  ;;  %v2530_v35 = vld [vmem:[#allocation22 + $0x238] sm:$0xff] }
 0x574   :  { %3400 = vmatprep.subr.bf16.mxu0 %v9177_v40  ;;  %v9231_v40 = vcombine.high %v2525_v29, %v2529_v30  ;;  %v9233_v41 = vcombine.high %v2526_v33, %v2530_v35  ;;  %v9232_v46 = vcombine.low %v2526_v33, %v2530_v35  ;;  %v2581_v35 = vld [vmem:[#allocation22 + $0x3d0] sm:$0xff] }
 0x575   :  { %3360 = vmatpush1.bf16.msra.mxu1 %v9174_v43  ;;  %v2537_v43 = vld [vmem:[#allocation22 + $0x270] sm:$0xff] }
 0x576   :  { %3401 = vmatpush1.bf16.msra.mxu0 %v9176_v39  ;;  %3361 = vmatprep.subr.bf16.mxu1 %v9183_v44  ;;  %v2534_v39 = vld [vmem:[#allocation22 + $0x258] sm:$0xff]  ;;  %v9239_v47 = vcombine.high %v2533_v42, %v2537_v43 }
 0x577   :  { %3402 = vmatprep.subr.bf16.mxu0 %v9185_v45  ;;  %v2538_v44 = vld [vmem:[#allocation22 + $0x278] sm:$0xff]  ;;  %v9230_v45 = vcombine.low %v2525_v29, %v2529_v30 }
 0x578   :  { %v9241_v48 = vcombine.high %v2534_v39, %v2538_v44  ;;  %v9240_v54 = vcombine.low %v2534_v39, %v2538_v44 }
 0x579   :  { %3362 = vmatpush1.bf16.msra.mxu1 %v9182_v50  ;;  %v2545_v50 = vld [vmem:[#allocation22 + $0x2b0] sm:$0xff] }
 0x57a   :  { %3403 = vmatpush1.bf16.msra.mxu0 %v9184_v51  ;;  %3363 = vmatprep.subr.bf16.mxu1 %v9191_v52  ;;  %v2542_v51 = vld [vmem:[#allocation22 + $0x298] sm:$0xff]  ;;  %v9247_v14 = vcombine.high %v2541_v49, %v2545_v50 }
 0x57b   :  { %3404 = vmatprep.subr.bf16.mxu0 %v9193_v53  ;;  %v2546_v52 = vld [vmem:[#allocation22 + $0x2b8] sm:$0xff]  ;;  %v9238_v53 = vcombine.low %v2533_v42, %v2537_v43 }
 0x57c   :  { %v9249_v18 = vcombine.high %v2542_v51, %v2546_v52  ;;  %v9248_v58 = vcombine.low %v2542_v51, %v2546_v52  ;;  %v10680_v51 = vld [vmem:[#allocation27 + $0x10] sm:$0xff]   ;;  %v10681_v52 = vld [vmem:[#allocation27 + $0x58] sm:$0xff]  }
 0x57d   :  { %3364 = vmatpush1.bf16.msra.mxu1 %v9190_v61  ;;  %v2553_v61 = vld [vmem:[#allocation22 + $0x2f0] sm:$0xff] }
 0x57e   :  { %3405 = vmatpush1.bf16.msra.mxu0 %v9192_v55  ;;  %3365 = vmatprep.subr.bf16.mxu1 %v9199_v56  ;;  %v2550_v55 = vld [vmem:[#allocation22 + $0x2d8] sm:$0xff]  ;;  %v9255_v59 = vcombine.high %v2549_v20, %v2553_v61 }
 0x57f   :  { %3406 = vmatprep.subr.bf16.mxu0 %v9201_v57  ;;  %v2554_v56 = vld [vmem:[#allocation22 + $0x2f8] sm:$0xff]  ;;  %v9246_v57 = vcombine.low %v2541_v49, %v2545_v50  ;;  %v10678_v49 = vld [vmem:[#allocation27 + $0x8] sm:$0xff]  }
 0x580   :  { %v9257_v60 = vcombine.high %v2550_v55, %v2554_v56  ;;  %v9256_v6 = vcombine.low %v2550_v55, %v2554_v56  ;;  %v10679_v50 = vld [vmem:[#allocation27 + $0x50] sm:$0xff]   ;;  %v10686_v56 = vld [vmem:[#allocation27 + $0x28] sm:$0xff]  }
 0x581   :  { %3366 = vmatpush1.bf16.msra.mxu1 %v9198_v1  ;;  %v2561_v1 = vld [vmem:[#allocation22 + $0x330] sm:$0xff] }
 0x582   :  { %3407 = vmatpush1.bf16.msra.mxu0 %v9200_v2  ;;  %3367 = vmatprep.subr.bf16.mxu1 %v9207_v3  ;;  %v2558_v2 = vld [vmem:[#allocation22 + $0x318] sm:$0xff]  ;;  %v9263_v7 = vcombine.high %v2557_v62, %v2561_v1 }
 0x583   :  { %3408 = vmatprep.subr.bf16.mxu0 %v9209_v5  ;;  %v2562_v3 = vld [vmem:[#allocation22 + $0x338] sm:$0xff]  ;;  %v9254_v5 = vcombine.low %v2549_v20, %v2553_v61 }
 0x584   :  { %v9265_v8 = vcombine.high %v2558_v2, %v2562_v3  ;;  %v9264_v13 = vcombine.low %v2558_v2, %v2562_v3  ;;  %v10689_v2 = vld [vmem:[#allocation27 + $0x78] sm:$0xff]  }
 0x585   :  { %3368 = vmatpush1.bf16.msra.mxu1 %v9206_v9  ;;  %v2569_v9 = vld [vmem:[#allocation22 + $0x370] sm:$0xff]  ;;  %v10690_v3 = vld [vmem:[#allocation27 + $0x38] sm:$0xff]  }
 0x586   :  { %3409 = vmatpush1.bf16.msra.mxu0 %v9208_v10  ;;  %3369 = vmatprep.subr.bf16.mxu1 %v9215_v11  ;;  %v2566_v10 = vld [vmem:[#allocation22 + $0x358] sm:$0xff]  ;;  %v9271_v19 = vcombine.high %v2565_v38, %v2569_v9 }
 0x587   :  { %3410 = vmatprep.subr.bf16.mxu0 %v9217_v12  ;;  %v2570_v11 = vld [vmem:[#allocation22 + $0x378] sm:$0xff]  ;;  %v9262_v12 = vcombine.low %v2557_v62, %v2561_v1 }
 0x588   :  { %v9273_v21 = vcombine.high %v2566_v10, %v2570_v11  ;;  %v9272_v29 = vcombine.low %v2566_v10, %v2570_v11  ;;  %v10687_v62 = vld [vmem:[#allocation27 + $0x70] sm:$0xff]  }
 0x589   :  { %3370 = vmatpush1.bf16.msra.mxu1 %v9214_v23  ;;  %v2577_v23 = vld [vmem:[#allocation22 + $0x3b0] sm:$0xff]  ;;  %v10688_v1 = vld [vmem:[#allocation27 + $0x30] sm:$0xff]  }
 0x58a   :  { %3411 = vmatpush1.bf16.msra.mxu0 %v9216_v24  ;;  %3371 = vmatprep.subr.bf16.mxu1 %v9223_v26  ;;  %v2574_v24 = vld [vmem:[#allocation22 + $0x398] sm:$0xff]  ;;  %v9279_v30 = vcombine.high %v2573_v22, %v2577_v23 }
 0x58b   :  { %3412 = vmatprep.subr.bf16.mxu0 %v9225_v27  ;;  %v2578_v26 = vld [vmem:[#allocation22 + $0x3b8] sm:$0xff]  ;;  %v9270_v27 = vcombine.low %v2565_v38, %v2569_v9 }
 0x58c   :  { %v9281_v33 = vcombine.high %v2574_v24, %v2578_v26  ;;  %v9280_v42 = vcombine.low %v2574_v24, %v2578_v26 }
 0x58d   :  { %3372 = vmatpush1.bf16.msra.mxu1 %v9222_v36  ;;  %v2585_v36 = vld [vmem:[#allocation22 + $0x3f0] sm:$0xff] }
 0x58e   :  { %3413 = vmatpush1.bf16.msra.mxu0 %v9224_v37  ;;  %3373 = vmatprep.subr.bf16.mxu1 %v9231_v40  ;;  %v2582_v37 = vld [vmem:[#allocation22 + $0x3d8] sm:$0xff]  ;;  %v9287_v43 = vcombine.high %v2581_v35, %v2585_v36  ;;  %v9286_v44 = vcombine.low %v2581_v35, %v2585_v36 }
 0x58f   :  { %3414 = vmatprep.subr.bf16.mxu0 %v9233_v41  ;;  %v2586_v40 = vld [vmem:[#allocation22 + $0x3f8] sm:$0xff]  ;;  %v9278_v41 = vcombine.low %v2573_v22, %v2577_v23  ;;  %v12585_v23 = vld [vmem:[#allocation13] sm:$0xff] }
 0x590   :  { %v9289_v39 = vcombine.high %v2582_v37, %v2586_v40 }
 0x591   :  { %3374 = vmatpush1.bf16.msra.mxu1 %v9230_v45  ;;  %v9288_v45 = vcombine.low %v2582_v37, %v2586_v40 }
 0x592   :  { %3415 = vmatpush1.bf16.msra.mxu0 %v9232_v46  ;;  %3375 = vmatprep.subr.bf16.mxu1 %v9239_v47  ;;  %v10675_v46 = vld [vmem:[#allocation27 + $0x40] sm:$0xff]  }
 0x593   :  { %3416 = vmatprep.subr.bf16.mxu0 %v9241_v48  ;;  %v10676_v47 = vld [vmem:[#allocation27] sm:$0xff]   ;;  %v10677_v48 = vld [vmem:[#allocation27 + $0x48] sm:$0xff]  }
 0x595   :  { %3376 = vmatpush1.bf16.msra.mxu1 %v9238_v53  ;;  %v10682_v53 = vld [vmem:[#allocation27 + $0x18] sm:$0xff]  }
 0x596   :  { %3417 = vmatpush1.bf16.msra.mxu0 %v9240_v54  ;;  %3377 = vmatprep.subr.bf16.mxu1 %v9247_v14  ;;  %v10683_v54 = vld [vmem:[#allocation27 + $0x60] sm:$0xff]  }
 0x597   :  { %3418 = vmatprep.subr.bf16.mxu0 %v9249_v18  ;;  %v10684_v14 = vld [vmem:[#allocation27 + $0x20] sm:$0xff]  }
 0x599   :  { %3378 = vmatpush1.bf16.msra.mxu1 %v9246_v57 }
 0x59a   :  { %3419 = vmatpush1.bf16.msra.mxu0 %v9248_v58  ;;  %3379 = vmatprep.subr.bf16.mxu1 %v9255_v59 }
 0x59b   :  { %3420 = vmatprep.subr.bf16.mxu0 %v9257_v60 }
 0x59d   :  { %3380 = vmatpush1.bf16.msra.mxu1 %v9254_v5  ;;  %v10691_v5 = vld [vmem:[#allocation25 + $0x40] sm:$0xff]  }
 0x59e   :  { %3421 = vmatpush1.bf16.msra.mxu0 %v9256_v6  ;;  %3381 = vmatprep.subr.bf16.mxu1 %v9263_v7 }
 0x59f   :  { %3422 = vmatprep.subr.bf16.mxu0 %v9265_v8 }
 0x5a1   :  { %3382 = vmatpush1.bf16.msra.mxu1 %v9262_v12 }
 0x5a2   :  { %3423 = vmatpush1.bf16.msra.mxu0 %v9264_v13  ;;  %3383 = vmatprep.subr.bf16.mxu1 %v9271_v19  ;;  %v12579_v13 = vld [vmem:[#allocation21] sm:$0xff] }
 0x5a3   :  { %3424 = vmatprep.subr.bf16.mxu0 %v9273_v21  ;;  %v1514_v19 = vrot.slane %v12579_v13, %v12351_v16  ;;  %v12583_v21 = vld [vmem:[#allocation24] sm:$0xff] }
 0x5a4   :  { %v2592_v24 = vrot.slane %v12583_v21, %v12348_v15  ;;  %v2596_v26 = vrot.slane %v12583_v21, %v12351_v16 }
 0x5a5   :  { %3384 = vmatpush1.bf16.msra.mxu1 %v9270_v27 }
 0x5a6   :  { %3425 = vmatpush1.bf16.msra.mxu0 %v9272_v29  ;;  %3385 = vmatprep.subr.bf16.mxu1 %v9279_v30  ;;  %v2369_v29 = vrot.slane %v12585_v23, %v12351_v16 }
 0x5a7   :  { %3426 = vmatprep.subr.bf16.mxu0 %v9281_v33  ;;  %v12593_v33 = vld [vmem:[#allocation15] sm:$0xff] }
 0x5a9   :  { %3386 = vmatpush1.bf16.msra.mxu1 %v9278_v41 }
 0x5aa   :  { %3427 = vmatpush1.bf16.msra.mxu0 %v9280_v42  ;;  %3387 = vmatprep.subr.bf16.mxu1 %v9287_v43  ;;  %v2365_v43 = vrot.slane %v12585_v23, %v12348_v15 }
 0x5ab   :  { %3428 = vmatprep.subr.bf16.mxu0 %v9289_v39 }
 0x5ad   :  { %3388 = vmatpush1.bf16.msra.mxu1 %v9286_v44 }
 0x5ae   :  { %3429 = vmatpush1.bf16.msra.mxu0 %v9288_v45  ;;  %9930 = vmatprep.subr.bf16.mxu1 %v10675_v46 }
 0x5b0   :  { %3390 = vmatmul.mubr.bf16.vlgmr.msra.gmra.mrb[20].mxu1 %v12557_v32 }
 0x5b1   :  { %3431 = vmatmul.mubr.bf16.vlgmr.msra.gmra.mrb[20].mxu0 %v12557_v32  ;;  %9931 = vmatpush3.bf16.msra.mxu1 %v10676_v47  ;;  %v10685_v32 = vld [vmem:[#allocation27 + $0x68] sm:$0xff]   ;;  %v2418_v47 = vrot.slane %v12593_v33, %v12351_v16 }
 0x5b2   :  { %9932 = vmatprep.subr.bf16.mxu1 %v10677_v48 }
 0x5b5   :  { %9933 = vmatpush3.bf16.msra.mxu1 %v10678_v49 }
 0x5b6   :  { %9934 = vmatprep.subr.bf16.mxu1 %v10679_v50  ;;  %v2414_v50 = vrot.slane %v12593_v33, %v12348_v15 }
 0x5b9   :  { %9935 = vmatpush3.bf16.msra.mxu1 %v10680_v51 }
 0x5ba   :  { %9936 = vmatprep.subr.bf16.mxu1 %v10681_v52 }
 0x5bd   :  { %9937 = vmatpush3.bf16.msra.mxu1 %v10682_v53 }
 0x5be   :  { %9938 = vmatprep.subr.bf16.mxu1 %v10683_v54 }
 0x5c1   :  { %9939 = vmatpush3.bf16.msra.mxu1 %v10684_v14 }
 0x5c2   :  { %9940 = vmatprep.subr.bf16.mxu1 %v10685_v32 }
 0x5c3   :  { %v12565_v18 = vpop.f32.mrb[8].mxu1  ;;  %v12567_v20 = vpop.f32.mrb[8].mxu0 }
 0x5c4   :  { %v2223_v61 = vpop.f32.mrb[9].mxu1  ;;  %v12569_v55 = vpop.f32.mrb[9].mxu0 }
 0x5c5   :  { %v2225_v57 = vpop.f32.mrb[10].mxu1  ;;  %v2266_v58 = vpop.f32.mrb[10].mxu0  ;;  %9941 = vmatpush3.bf16.msra.mxu1 %v10686_v56  ;;  %v2224_v22 = vadd.f32 %v2223_v61, %v1514_v19  ;;  %v10692_v61 = vld [vmem:[#allocation25] sm:$0xff]  }
 0x5c6   :  { %v2226_v59 = vpop.f32.mrb[11].mxu1  ;;  %v2267_v60 = vpop.f32.mrb[11].mxu0  ;;  %9942 = vmatprep.subr.bf16.mxu1 %v10687_v62  ;;  %v10693_v57 = vld [vmem:[#allocation25 + $0x48] sm:$0xff]   ;;  %v10696_v62 = vld [vmem:[#allocation25 + $0x10] sm:$0xff]  }
 0x5c7   :  { %v2354_v27 = vmax.f32 %v2224_v22, 0.0  ;;  %v10694_v59 = vld [vmem:[#allocation25 + $0x8] sm:$0xff]   ;;  %v10695_v60 = vld [vmem:[#allocation25 + $0x50] sm:$0xff]  }
 0x5c8   :  { %v10703_v22 = vld [vmem:[#allocation25 + $0x70] sm:$0xff]  }
 0x5c9   :  { %9943 = vmatpush3.bf16.msra.mxu1 %v10688_v1  ;;  %v2403_v46 = vmul.f32 %v2369_v29, %v2354_v27  ;;  %v10697_v1 = vld [vmem:[#allocation25 + $0x58] sm:$0xff]  }
 0x5ca   :  { %9944 = vmatprep.subr.bf16.mxu1 %v10689_v2  ;;  %v10698_v2 = vld [vmem:[#allocation25 + $0x18] sm:$0xff]  }
 0x5cb   :  { %v12607_v54 = vadd.f32 %v2418_v47, %v2403_v46  ;;  %v10705_v27 = vld [vmem:[#allocation25 + $0x78] sm:$0xff]   ;;  %v10707_v46 = vld [vmem:[%s13168_s8] sm:$0xff]  }
 0x5cd   :  { %9945 = vmatpush3.bf16.msra.mxu1 %v10690_v3  ;;  %v3500_v58 = vpack.c.bf16 %v12607_v54, %v12607_v54  ;;  %v1510_v3 = vrot.slane %v12579_v13, %v12348_v15 }
 0x5ce   :  { %9952 = vmatprep.subr.bf16.mxu1 %v10691_v5  ;;  %v10699_v5 = vld [vmem:[#allocation25 + $0x60] sm:$0xff]  }
 0x603   :  { %v12571_v6 = vpop.f32.mrb[12].mxu1  ;;  %v12573_v7 = vpop.f32.mrb[12].mxu0 }
 0x604   :  { %v12575_v8 = vpop.f32.mrb[13].mxu1  ;;  %v12577_v38 = vpop.f32.mrb[13].mxu0 }
 0x605   :  { %v2307_v9 = vpop.f32.mrb[14].mxu1  ;;  %v2348_v10 = vpop.f32.mrb[14].mxu0 }
 0x606   :  { %v2308_v11 = vpop.f32.mrb[15].mxu1  ;;  %v2349_v12 = vpop.f32.mrb[15].mxu0  ;;  %v10700_v9 = vld [vmem:[#allocation25 + $0x20] sm:$0xff]   ;;  %v2222_v10 = vadd.f32 %v12565_v18, %v1510_v3 }
 0x607   :  { %v10701_v11 = vld [vmem:[#allocation25 + $0x68] sm:$0xff]  }
 0x608   :  { %v10702_v12 = vld [vmem:[#allocation25 + $0x28] sm:$0xff]   ;;  %v2353_v19 = vmax.f32 %v2222_v10, 0.0 }
 0x643   :  { %v3309_v30 = vpop.f32.mrb[16].mxu1 }
 0x644   :  { %v3310_v35 = vadd.f32 %v3309_v30, %v2592_v24  ;;  %v12595_v36 = vpop.f32.mrb[16].mxu0  ;;  %v3311_v37 = vpop.f32.mrb[17].mxu1  ;;  %v10704_v24 = vld [vmem:[#allocation25 + $0x30] sm:$0xff]  }
 0x645   :  { %v3312_v40 = vadd.f32 %v3311_v37, %v2596_v26  ;;  %v12597_v41 = vpop.f32.mrb[17].mxu0  ;;  %v3313_v42 = vpop.f32.mrb[18].mxu1  ;;  %v2402_v26 = vmul.f32 %v2365_v43, %v2353_v19  ;;  %v12656_v19 = vld [vmem:[%s13170_s18] ss:$0 sm:$0xff] }
 0x646   :  { %v3439_v39 = vmax.f32 %v3310_v35, 0.0  ;;  %v3354_v44 = vpop.f32.mrb[18].mxu0  ;;  %v3314_v45 = vpop.f32.mrb[19].mxu1 }
 0x647   :  { %v3440_v48 = vmax.f32 %v3312_v40, 0.0  ;;  %v3355_v49 = vpop.f32.mrb[19].mxu0  ;;  %v12620_v30 = vadd.f32 %v2414_v50, %v2402_v26 }
 0x648   :  { %v3447_v51 = vmul.f32 %v3439_v39, %v2365_v43  ;;  %v10709_v49 = vld [vmem:[%s13168_s8 + $0x10] sm:$0xff]  }
 0x649   :  { %v3448_v52 = vmul.f32 %v3440_v48, %v2369_v29  ;;  %v10706_v29 = vld [vmem:[#allocation25 + $0x38] sm:$0xff]   ;;  %v3499_v18 = vpack.c.bf16 %v12620_v30, %v12620_v30 }
 0x64a   :  { %v12605_v53 = vadd.f32 %v3447_v51, %v2414_v50  ;;  %v10708_v48 = vld [vmem:[%s13168_s8 + $0x8] sm:$0xff]   ;;  %v10710_v50 = vld [vmem:[%s13168_s8 + $0x18] sm:$0xff]   ;;  %v10711_v51 = vld [vmem:[%s13168_s8 + $0x20] sm:$0xff]  }
 0x64b   :  { %v12609_v14 = vadd.f32 %v3448_v52, %v2418_v47  ;;  %v11979_v47 = vmov 0.0   ;;  %v10712_v52 = vld [vmem:[%s13168_s8 + $0x28] sm:$0xff]  }
 0x64c   :  { %v3533_v56 = vpack.c.bf16 %v12605_v53, %v12605_v53  ;;  %10270 = vmatprep.subr.bf16.mxu0 %v11979_v47  ;;  %10286 = vmatprep.mubr.msk.bf16.mxu0 %vm11980_vm2, %v11979_v47 }
 0x64d   :  { %v3534_v32 = vpack.c.bf16 %v12609_v14, %v12609_v14  ;;  %10271 = vmatpush3.bf16.msra.mxu0 %v10707_v46 }
 0x64e   :  { %10272 = vmatprep.subr.bf16.mxu0 %v11979_v47 }
 0x64f   :  { %3663 = vmatprep.mubr.bf16.mxu1 %v3534_v32  ;;  %v10713_v32 = vld [vmem:[%s13168_s8 + $0x30] sm:$0xff]  }
 0x650   :  { %3664 = vmatmul.mubr.bf16.vlgmr.msra.gmra.mrb[24].mxu1 %v3533_v56  ;;  %v10715_v56 = vld [vmem:[%s13169_s16] sm:$0xff]  }
 0x651   :  { %9953 = vmatpush3.bf16.msra.mxu1 %v10692_v61  ;;  %3799 = vmatprep.mubr.bf16.mxu1 %v3500_v58  ;;  %v10714_v61 = vld [vmem:[%s13168_s8 + $0x38] sm:$0xff]  }
 0x652   :  { %9954 = vmatprep.subr.bf16.mxu1 %v10693_v57  ;;  %10273 = vmatpush3.bf16.msra.mxu0 %v10708_v48 }
 0x653   :  { %10274 = vmatprep.subr.bf16.mxu0 %v11979_v47 }
 0x655   :  { %9955 = vmatpush3.bf16.msra.mxu1 %v10694_v59 }
 0x656   :  { %9956 = vmatprep.subr.bf16.mxu1 %v10695_v60  ;;  %10275 = vmatpush3.bf16.msra.mxu0 %v10709_v49  ;;  %v12668_v49 = vld [vmem:[#allocation18] ss:$0 sm:$0xff] }
 0x657   :  { %10276 = vmatprep.subr.bf16.mxu0 %v11979_v47 }
 0x659   :  { %9957 = vmatpush3.bf16.msra.mxu1 %v10696_v62 }
 0x65a   :  { %9958 = vmatprep.subr.bf16.mxu1 %v10697_v1  ;;  %10277 = vmatpush3.bf16.msra.mxu0 %v10710_v50 }
 0x65b   :  { %10278 = vmatprep.subr.bf16.mxu0 %v11979_v47 }
 0x65d   :  { %9959 = vmatpush3.bf16.msra.mxu1 %v10698_v2 }
 0x65e   :  { %9960 = vmatprep.subr.bf16.mxu1 %v10699_v5  ;;  %10279 = vmatpush3.bf16.msra.mxu0 %v10711_v51 }
 0x65f   :  { %10280 = vmatprep.subr.bf16.mxu0 %v11979_v47 }
 0x661   :  { %9961 = vmatpush3.bf16.msra.mxu1 %v10700_v9  ;;  %v9322_v9 = vld [vmem:[#allocation28] ss:$0 sm:$0xff] }
 0x662   :  { %9962 = vmatprep.subr.bf16.mxu1 %v10701_v11  ;;  %10281 = vmatpush3.bf16.msra.mxu0 %v10712_v52 }
 0x663   :  { %10282 = vmatprep.subr.bf16.mxu0 %v11979_v47 }
 0x665   :  { %9963 = vmatpush3.bf16.msra.mxu1 %v10702_v12 }
 0x666   :  { %9964 = vmatprep.subr.bf16.mxu1 %v10703_v22  ;;  %10283 = vmatpush3.bf16.msra.mxu0 %v10713_v32  ;;  %v12670_v32 = vld [vmem:[#allocation19] ss:$0 sm:$0xff] }
 0x667   :  { %10284 = vmatprep.subr.bf16.mxu0 %v11979_v47 }
 0x669   :  { %9965 = vmatpush3.bf16.msra.mxu1 %v10704_v24  ;;  %v12658_v24 = vld [vmem:[#allocation16] ss:$0 sm:$0xff] }
 0x66a   :  { %9966 = vmatprep.subr.bf16.mxu1 %v10705_v27  ;;  %10285 = vmatpush3.bf16.msra.mxu0 %v10714_v61 }
 0x66d   :  { %9967 = vmatpush3.bf16.msra.mxu1 %v10706_v29 }
 0x66e   :  { %10290 = vmatprep.subr.bf16.mxu1 %v11979_v47 }
 0x670   :  { %3800 = vmatmul.mubr.bf16.vlgmr.msra.gmra.mrb[28].mxu1 %v3499_v18  ;;  %v10716_v18 = vld [vmem:[%s13169_s16 + $0x8] sm:$0xff]  }
 0x671   :  { %10298 = vmatprep.mubr.msk.bf16.mxu1 %vm11980_vm2, %v11979_v47  ;;  %10291 = vmatpush3.bf16.msra.mxu1 %v10715_v56 }
 0x672   :  { %10292 = vmatprep.subr.bf16.mxu1 %v11979_v47 }
 0x675   :  { %10293 = vmatpush3.bf16.msra.mxu1 %v10716_v18 }
 0x676   :  { %10294 = vmatprep.subr.bf16.mxu1 %v11979_v47 }
 0x683   :  { %v12624_v35 = vpop.f32.mrb[20].mxu1 }
 0x684   :  { %v12626_v37 = vpop.f32.mrb[20].mxu0  ;;  %v12628_v40 = vpop.f32.mrb[21].mxu1 }
 0x685   :  { %v12630_v42 = vpop.f32.mrb[21].mxu0  ;;  %v3395_v43 = vpop.f32.mrb[22].mxu1 }
 0x686   :  { %v3436_v39 = vpop.f32.mrb[22].mxu0  ;;  %v3396_v44 = vpop.f32.mrb[23].mxu1  ;;  %v10717_v43 = vld [vmem:[%s13169_s16 + $0x10] sm:$0xff]  }
 0x687   :  { %v3437_v45 = vpop.f32.mrb[23].mxu0  ;;  %10295 = vmatpush3.bf16.msra.mxu1 %v10717_v43  ;;  %v10718_v39 = vld [vmem:[%s13169_s16 + $0x18] sm:$0xff]   ;;  %v9325_v44 = vld [vmem:[#allocation30] ss:$0 sm:$0xff] }
 0x688   :  { %10296 = vmatprep.subr.bf16.mxu1 %v11979_v47 }
 0x68b   :  { %10297 = vmatpush3.bf16.msra.mxu1 %v10718_v39 }
 0x68c   :  { %10302 = vmatprep.subr.bf16.mxu1 %v11979_v47 }
 0x723   :  { %v9946_v57 = vpop.f32.mrb[24].mxu1 }
 0x724   :  { %v9947_v58 = vpop.f32.mrb[25].mxu1 }
 0x725   :  { %v9948_v59 = vadd.f32 %v9947_v58, %v9946_v57  ;;  %v9949_v60 = vpop.f32.mrb[26].mxu1  ;;  %v10719_v57 = vld [vmem:[%s13171_s22] sm:$0xff]  }
 0x726   :  { %v9950_v62 = vpop.f32.mrb[27].mxu1  ;;  %v10721_v60 = vld [vmem:[%s13171_s22 + $0x10] sm:$0xff]  }
 0x727   :  { %v10722_v62 = vld [vmem:[%s13171_s22 + $0x18] sm:$0xff]  }
 0x743   :  { %v9968_v1 = vpop.f32.mrb[28].mxu1 }
 0x744   :  { %v9969_v2 = vpop.f32.mrb[29].mxu1 }
 0x745   :  { %v9970_v3 = vadd.f32 %v9969_v2, %v9968_v1  ;;  %v9971_v5 = vpop.f32.mrb[30].mxu1  ;;  %v9336_v1 = vld [vmem:[#allocation31] ss:$0 sm:$0xff] }
 0x746   :  { %v9972_v10 = vpop.f32.mrb[31].mxu1 }
 0x747   :  { %v3802_v11 = vadd.f32 %v9970_v3, %v9948_v59  ;;  %v10720_v59 = vld [vmem:[%s13171_s22 + $0x8] sm:$0xff]  }
 0x749   :  { %v3814_v12 = vadd.f32 %v9322_v9, %v3802_v11 }
 0x74b   :  { %v3815_v22 = vmax.f32 %v3814_v12, 0.0 }
 0x74d   :  { %v3822_v26 = vmul.f32 %v12656_v19, %v3815_v22 }
 0x74f   :  { %v3829_v27 = vadd.f32 %v12658_v24, %v3822_v26 }
 0x751   :  { %v3846_v29 = vpack.c.bf16 %v3829_v27, %v3829_v27  ;;  %v9342_v27 = vld [vmem:[%s13172_s23] ss:$0 sm:$0xff] }
 0x753   :  { %10287 = vmatmul.mubr.bf16.vlgmr.msra.gmra.mrb[24].mxu0 %v3846_v29 }
 0x826   :  { %v3936_v45 = vpop.f32.mrb[24].mxu0 }
 0x827   :  { %v3937_v46 = vadd.f32 %v9325_v44, %v3936_v45  ;;  %v10288_v48 = vpop.f32.mrb[25].mxu0 }
 0x828   :  { %v3939_v50 = vpop.f32.mrb[26].mxu0 }
 0x829   :  { %v3942_v51 = vmax.f32 %v3937_v46, 0.0  ;;  %v10289_v52 = vpop.f32.mrb[27].mxu0 }
 0x82b   :  { %v3949_v61 = vmul.f32 %v12668_v49, %v3942_v51 }
 0x82d   :  { %v3956_v56 = vadd.f32 %v12670_v32, %v3949_v61  ;;  %v10723_v61 = vld [vmem:[#allocation33] ss:$8 sps:$4 sm:$0xff]  }
 0x82f   :  { %v3965_v58 = vpack.c.bf16 %v3956_v56, %v3956_v56  ;;  %v10725_v56 = vld [vmem:[#allocation33 + $0x4] ss:$8 sps:$4 sm:$0xff]  }
 0x831   :  { %10299 = vmatmul.mubr.msk.bf16.vlgmr.msra.gmra.mrb[32].mxu1 %vm3997_vm3, %v3965_v58  ;;  %v10729_v58 = vld [vmem:[#allocation34] ss:$8 sps:$4 sm:$0xff]  }
 0x832   :  { %10303 = vmatpush3.bf16.msra.mxu1 %v10719_v57  ;;  %10310 = vmatprep.mubr.msk.bf16.mxu1 %vm11980_vm2, %v11979_v47  ;;  %v10728_v57 = vld [vmem:[#allocation33 + $0x14] ss:$8 sps:$4 sm:$0xff]  }
 0x833   :  { %10304 = vmatprep.subr.bf16.mxu1 %v11979_v47 }
 0x836   :  { %10305 = vmatpush3.bf16.msra.mxu1 %v10720_v59  ;;  %v10731_v59 = vld [vmem:[#allocation34 + $0x4] ss:$8 sps:$4 sm:$0xff]  }
 0x837   :  { %10306 = vmatprep.subr.bf16.mxu1 %v11979_v47  ;;  %4380 = vmatprep.subr.bf16.mxu0 %v10731_v59  ;;  %v10771_v59 = vld [vmem:[#allocation34 + $0x70] ss:$8 sps:$4 sm:$0xff]  }
 0x838   :  { %4381 = vmatpush1.bf16.msra.mxu0 %v10729_v58  ;;  %v10770_v58 = vld [vmem:[#allocation33 + $0x84] ss:$8 sps:$4 sm:$0xff]  }
 0x83a   :  { %10307 = vmatpush3.bf16.msra.mxu1 %v10721_v60  ;;  %v10726_v60 = vld [vmem:[#allocation33 + $0x10] ss:$8 sps:$4 sm:$0xff]  }
 0x83b   :  { %10308 = vmatprep.subr.bf16.mxu1 %v11979_v47 }
 0x83e   :  { %10309 = vmatpush3.bf16.msra.mxu1 %v10722_v62  ;;  %v10737_v62 = vld [vmem:[#allocation34 + $0x14] ss:$8 sps:$4 sm:$0xff]  }
 0x83f   :  { %4581 = vmatprep.subr.bf16.mxu1 %v10725_v56  ;;  %4382 = vmatprep.subr.bf16.mxu0 %v10737_v62  ;;  %v10773_v56 = vld [vmem:[#allocation34 + $0x74] ss:$8 sps:$4 sm:$0xff]   ;;  %v10768_v62 = vld [vmem:[#allocation33 + $0x80] ss:$8 sps:$4 sm:$0xff]  }
 0x904   :  { %v4035_v2 = vpop.f32.mrb[32].mxu1 }
 0x905   :  { %v4036_v3 = vadd.f32 %v9336_v1, %v4035_v2  ;;  %v10300_v5 = vpop.f32.mrb[33].mxu1  ;;  %v10734_v1 = vld [vmem:[#allocation33 + $0x24] ss:$8 sps:$4 sm:$0xff]   ;;  %v10735_v2 = vld [vmem:[#allocation34 + $0x10] ss:$8 sps:$4 sm:$0xff]  }
 0x906   :  { %v4038_v9 = vpop.f32.mrb[34].mxu1  ;;  %v10732_v5 = vld [vmem:[#allocation33 + $0x20] ss:$8 sps:$4 sm:$0xff]   ;;  %4383 = vmatpush1.bf16.msra.mxu0 %v10735_v2 }
 0x907   :  { %v4041_v10 = vmax.f32 %v4036_v3, 0.0  ;;  %v10301_v11 = vpop.f32.mrb[35].mxu1  ;;  %v10743_v3 = vld [vmem:[#allocation34 + $0x24] ss:$8 sps:$4 sm:$0xff]   ;;  %v10740_v9 = vld [vmem:[#allocation33 + $0x34] ss:$8 sps:$4 sm:$0xff]  }
 0x908   :  { %4384 = vmatprep.subr.bf16.mxu0 %v10743_v3  ;;  %v10749_v11 = vld [vmem:[#allocation34 + $0x34] ss:$8 sps:$4 sm:$0xff]   ;;  %v10777_v2 = vld [vmem:[#allocation34 + $0x80] ss:$8 sps:$4 sm:$0xff]  }
 0x909   :  { %v4042_v12 = vmul.f32 %v12668_v49, %v4041_v10  ;;  %v10741_v10 = vld [vmem:[#allocation34 + $0x20] ss:$8 sps:$4 sm:$0xff]   ;;  %v10785_v3 = vld [vmem:[#allocation34 + $0x94] ss:$8 sps:$4 sm:$0xff]  }
 0x90a   :  { %4385 = vmatpush1.bf16.msra.mxu0 %v10741_v10  ;;  %v10783_v10 = vld [vmem:[#allocation34 + $0x90] ss:$8 sps:$4 sm:$0xff]  }
 0x90b   :  { %v4043_v22 = vadd.f32 %v12670_v32, %v4042_v12  ;;  %v10738_v12 = vld [vmem:[#allocation33 + $0x30] ss:$8 sps:$4 sm:$0xff]   ;;  %4386 = vmatprep.subr.bf16.mxu0 %v10749_v11  ;;  %v10791_v11 = vld [vmem:[#allocation34 + $0xa4] ss:$8 sps:$4 sm:$0xff]  }
 0x90d   :  { %v4052_v26 = vpack.c.bf16 %v4043_v22, %v4043_v22  ;;  %v10746_v22 = vld [vmem:[#allocation33 + $0x44] ss:$8 sps:$4 sm:$0xff]  }
 0x90f   :  { %10311 = vmatmul.mubr.msk.bf16.vlgmr.msra.gmra.mrb[36].mxu1 %vm3997_vm3, %v4052_v26  ;;  %v10747_v26 = vld [vmem:[#allocation34 + $0x30] ss:$8 sps:$4 sm:$0xff]  }
 0x910   :  { %4582 = vmatpush1.bf16.msra.mxu1 %v10723_v61  ;;  %4387 = vmatpush1.bf16.msra.mxu0 %v10747_v26  ;;  %v10765_v61 = vld [vmem:[#allocation34 + $0x60] ss:$8 sps:$4 sm:$0xff]  }
 0x911   :  { %4583 = vmatprep.subr.bf16.mxu1 %v10728_v57  ;;  %v10762_v57 = vld [vmem:[#allocation33 + $0x70] ss:$8 sps:$4 sm:$0xff]   ;;  %v10789_v26 = vld [vmem:[#allocation34 + $0xa0] ss:$8 sps:$4 sm:$0xff]  }
 0x914   :  { %4584 = vmatpush1.bf16.msra.mxu1 %v10726_v60  ;;  %v10779_v60 = vld [vmem:[#allocation34 + $0x84] ss:$8 sps:$4 sm:$0xff]  }
 0x915   :  { %4585 = vmatprep.subr.bf16.mxu1 %v10734_v1  ;;  %v10776_v1 = vld [vmem:[#allocation33 + $0x94] ss:$8 sps:$4 sm:$0xff]  }
 0x918   :  { %4586 = vmatpush1.bf16.msra.mxu1 %v10732_v5  ;;  %v10774_v5 = vld [vmem:[#allocation33 + $0x90] ss:$8 sps:$4 sm:$0xff]  }
 0x919   :  { %4587 = vmatprep.subr.bf16.mxu1 %v10740_v9  ;;  %v10782_v9 = vld [vmem:[#allocation33 + $0xa4] ss:$8 sps:$4 sm:$0xff]  }
 0x91c   :  { %4588 = vmatpush1.bf16.msra.mxu1 %v10738_v12  ;;  %v10780_v12 = vld [vmem:[#allocation33 + $0xa0] ss:$8 sps:$4 sm:$0xff]  }
 0x91d   :  { %4589 = vmatprep.subr.bf16.mxu1 %v10746_v22  ;;  %v10788_v22 = vld [vmem:[#allocation33 + $0xb4] ss:$8 sps:$4 sm:$0xff]  }
 0x9e2   :  { %v4121_v29 = vpop.f32.mrb[36].mxu1 }
 0x9e3   :  { %v4122_v18 = vadd.f32 %v9342_v27, %v4121_v29  ;;  %v10312_v43 = vpop.f32.mrb[37].mxu1  ;;  %v10755_v27 = vld [vmem:[#allocation34 + $0x44] ss:$8 sps:$4 sm:$0xff]   ;;  %v10744_v29 = vld [vmem:[#allocation33 + $0x40] ss:$8 sps:$4 sm:$0xff]  }
 0x9e4   :  { %v4124_v39 = vpop.f32.mrb[38].mxu1  ;;  %v10753_v43 = vld [vmem:[#allocation34 + $0x40] ss:$8 sps:$4 sm:$0xff]   ;;  %4388 = vmatprep.subr.bf16.mxu0 %v10755_v27  ;;  %4590 = vmatpush1.bf16.msra.mxu1 %v10744_v29  ;;  %v10797_v27 = vld [vmem:[#allocation34 + $0xb4] ss:$8 sps:$4 sm:$0xff]  }
 0x9e5   :  { %v10313_v44 = vpop.f32.mrb[39].mxu1  ;;  %v4128_v45 = vsel %vm4127_vm4, %v4122_v18, -inf  ;;  %v10761_v39 = vld [vmem:[#allocation34 + $0x54] ss:$8 sps:$4 sm:$0xff]   ;;  %4389 = vmatpush1.bf16.msra.mxu0 %v10753_v43  ;;  %v10786_v29 = vld [vmem:[#allocation33 + $0xb0] ss:$8 sps:$4 sm:$0xff]  }
 0x9e6   :  { %4129 = vmax.xlane.f32.xlu0 %v4128_v45  ;;  %v10750_v44 = vld [vmem:[#allocation33 + $0x50] ss:$8 sps:$4 sm:$0xff]   ;;  %v10758_v45 = vld [vmem:[#allocation33 + $0x64] ss:$8 sps:$4 sm:$0xff]   ;;  %4390 = vmatprep.subr.bf16.mxu0 %v10761_v39 }
 0x9e7   :  { %v10795_v43 = vld [vmem:[#allocation34 + $0xb0] ss:$8 sps:$4 sm:$0xff]   ;;  %v10803_v39 = vld [vmem:[#allocation34 + $0xc4] ss:$8 sps:$4 sm:$0xff]  }
 0xa73   :  { %v4130_v46 = vpop.xlane.xlu0 %4129 }
 0xa74   :  { %v4131_v48 = vsub.f32 %v4122_v18, %v4130_v46  ;;  %v10752_v18 = vld [vmem:[#allocation33 + $0x54] ss:$8 sps:$4 sm:$0xff]   ;;  %v10759_v46 = vld [vmem:[#allocation34 + $0x50] ss:$8 sps:$4 sm:$0xff]  }
 0xa75   :  { %4591 = vmatprep.subr.bf16.mxu1 %v10752_v18  ;;  %4391 = vmatpush1.bf16.msra.mxu0 %v10759_v46  ;;  %v10794_v18 = vld [vmem:[#allocation33 + $0xc4] ss:$8 sps:$4 sm:$0xff]   ;;  %v10801_v46 = vld [vmem:[#allocation34 + $0xc0] ss:$8 sps:$4 sm:$0xff]  }
 0xa76   :  { %v4132_v50 = vmul.f32 1.442695, %v4131_v48  ;;  %v10767_v48 = vld [vmem:[#allocation34 + $0x64] ss:$8 sps:$4 sm:$0xff]   ;;  %4592 = vmatpush1.bf16.msra.mxu1 %v10750_v44  ;;  %v10792_v44 = vld [vmem:[#allocation33 + $0xc0] ss:$8 sps:$4 sm:$0xff]  }
 0xa77   :  { %4593 = vmatprep.subr.bf16.mxu1 %v10758_v45  ;;  %4392 = vmatprep.subr.bf16.mxu0 %v10767_v48  ;;  %v10800_v45 = vld [vmem:[#allocation33 + $0xd4] ss:$8 sps:$4 sm:$0xff]  }
 0xa78   :  { %11315 = vpow2.f32 %v4132_v50  ;;  %v10756_v50 = vld [vmem:[#allocation33 + $0x60] ss:$8 sps:$4 sm:$0xff]   ;;  %v10809_v48 = vld [vmem:[#allocation34 + $0xd4] ss:$8 sps:$4 sm:$0xff]  }
 0xa79   :  { %4393 = vmatpush1.bf16.msra.mxu0 %v10765_v61  ;;  %v10807_v61 = vld [vmem:[#allocation34 + $0xd0] ss:$8 sps:$4 sm:$0xff]  }
 0xa7a   :  { %4594 = vmatpush1.bf16.msra.mxu1 %v10756_v50  ;;  %4394 = vmatprep.subr.bf16.mxu0 %v10773_v56  ;;  %v10798_v50 = vld [vmem:[#allocation33 + $0xd0] ss:$8 sps:$4 sm:$0xff]   ;;  %v10804_v56 = vld [vmem:[#allocation33 + $0xe0] ss:$8 sps:$4 sm:$0xff]  }
 0xa7d   :  { %4395 = vmatpush1.bf16.msra.mxu0 %v10771_v59 }
 0xa7e   :  { %4396 = vmatprep.subr.bf16.mxu0 %v10779_v60  ;;  %v10812_v60 = vld [vmem:[#allocation33 + $0xf4] ss:$8 sps:$4 sm:$0xff]  }
 0xa81   :  { %4397 = vmatpush1.bf16.msra.mxu0 %v10777_v2  ;;  %v10813_v2 = vld [vmem:[#allocation34 + $0xe0] ss:$8 sps:$4 sm:$0xff]  }
 0xa82   :  { %v12689_v51 = vpop.eup %11315  ;;  %4398 = vmatprep.subr.bf16.mxu0 %v10785_v3  ;;  %v10816_v3 = vld [vmem:[#allocation25 + $0xc0] sm:$0xff]  }
 0xa83   :  { %v4134_v52 = vsel %vm4127_vm4, %v12689_v51, 0.0 }
 0xa84   :  { %4135 = vadd.xlane.f32.xlu0 %v4134_v52  ;;  %v10764_v52 = vld [vmem:[#allocation33 + $0x74] ss:$8 sps:$4 sm:$0xff]  }
 0xa85   :  { %4595 = vmatprep.subr.bf16.mxu1 %v10764_v52  ;;  %4399 = vmatpush1.bf16.msra.mxu0 %v10783_v10  ;;  %v10806_v52 = vld [vmem:[#allocation33 + $0xe4] ss:$8 sps:$4 sm:$0xff]   ;;  %v10817_v10 = vld [vmem:[#allocation34 + $0xf0] ss:$8 sps:$4 sm:$0xff]  }
 0xa86   :  { %4596 = vmatpush1.bf16.msra.mxu1 %v10762_v57  ;;  %4400 = vmatprep.subr.bf16.mxu0 %v10791_v11  ;;  %v1522_v11 = vrot.slane %v12579_v13, %v12354_v17 }
 0xa87   :  { %4597 = vmatprep.subr.bf16.mxu1 %v10770_v58 }
 0xa89   :  { %4401 = vmatpush1.bf16.msra.mxu0 %v10789_v26 }
 0xa8a   :  { %4598 = vmatpush1.bf16.msra.mxu1 %v10768_v62  ;;  %4402 = vmatprep.subr.bf16.mxu0 %v10797_v27  ;;  %v10810_v62 = vld [vmem:[#allocation33 + $0xf0] ss:$8 sps:$4 sm:$0xff]   ;;  %v2377_v27 = vrot.slane %v12585_v23, %v12354_v17 }
 0xa8b   :  { %4599 = vmatprep.subr.bf16.mxu1 %v10776_v1  ;;  %v10815_v1 = vld [vmem:[#allocation34 + $0xe4] ss:$8 sps:$4 sm:$0xff]  }
 0xa8d   :  { %4403 = vmatpush1.bf16.msra.mxu0 %v10795_v43  ;;  %v2426_v43 = vrot.slane %v12593_v33, %v12354_v17 }
 0xa8e   :  { %4600 = vmatpush1.bf16.msra.mxu1 %v10774_v5  ;;  %4404 = vmatprep.subr.bf16.mxu0 %v10803_v39  ;;  %v11981_v5 = vmov 1  }
 0xa8f   :  { %4601 = vmatprep.subr.bf16.mxu1 %v10782_v9  ;;  %v10819_v9 = vld [vmem:[#allocation34 + $0xf4] ss:$8 sps:$4 sm:$0xff]  }
 0xa91   :  { %4405 = vmatpush1.bf16.msra.mxu0 %v10801_v46 }
 0xa92   :  { %4602 = vmatpush1.bf16.msra.mxu1 %v10780_v12  ;;  %4406 = vmatprep.subr.bf16.mxu0 %v10809_v48  ;;  %v2265_v12 = vadd.f32 %v12569_v55, %v1522_v11  ;;  %v1518_v11 = vrot.slane %v12579_v13, %v12365_v63  ;;  %v10839_v13 = vld [vmem:[#allocation25 + $0xa8] sm:$0xff]  }
 0xa93   :  { %4603 = vmatprep.subr.bf16.mxu1 %v10788_v22  ;;  %v2604_v22 = vrot.slane %v12583_v21, %v12354_v17 }
 0xa94   :  { %v2356_v26 = vmax.f32 %v2265_v12, 0.0  ;;  %v10832_v12 = vld [vmem:[#allocation27 + $0x90] sm:$0xff]  }
 0xa95   :  { %4407 = vmatpush1.bf16.msra.mxu0 %v10807_v61  ;;  %v10820_v61 = vld [vmem:[#allocation25 + $0x80] sm:$0xff]  }
 0xa96   :  { %4604 = vmatpush1.bf16.msra.mxu1 %v10786_v29  ;;  %4408 = vmatprep.subr.bf16.mxu0 %v10815_v1  ;;  %v3353_v29 = vadd.f32 %v12597_v41, %v2604_v22  ;;  %v10825_v1 = vld [vmem:[#allocation25 + $0xd0] sm:$0xff]   ;;  %v10833_v22 = vld [vmem:[#allocation25 + $0xe0] sm:$0xff]  }
 0xa97   :  { %4605 = vmatprep.subr.bf16.mxu1 %v10794_v18  ;;  %v2405_v18 = vmul.f32 %v2377_v27, %v2356_v26  ;;  %v10834_v26 = vld [vmem:[#allocation27 + $0xd8] sm:$0xff]  }
 0xa98   :  { %v3442_v39 = vmax.f32 %v3353_v29, 0.0  ;;  %v2263_v29 = vadd.f32 %v12567_v20, %v1518_v11  ;;  %v10858_v11 = vld [vmem:[%s13168_s8 + $0x78] sm:$0xff]  }
 0xa99   :  { %4409 = vmatpush1.bf16.msra.mxu0 %v10813_v2  ;;  %v10826_v2 = vld [vmem:[#allocation27 + $0xc8] sm:$0xff]  }
 0xa9a   :  { %4606 = vmatpush1.bf16.msra.mxu1 %v10792_v44  ;;  %4410 = vmatprep.subr.bf16.mxu0 %v10819_v9  ;;  %v3450_v48 = vmul.f32 %v3442_v39, %v2377_v27  ;;  %v10827_v9 = vld [vmem:[#allocation25 + $0x90] sm:$0xff]   ;;  %v10835_v27 = vld [vmem:[#allocation25 + $0xa0] sm:$0xff]   ;;  %v2600_v39 = vrot.slane %v12583_v21, %v12365_v63  ;;  %v2422_v21 = vrot.slane %v12593_v33, %v12365_v63  ;;  %v10850_v33 = vld [vmem:[#allocation27 + $0xb8] sm:$0xff]  }
 0xa9b   :  { %4607 = vmatprep.subr.bf16.mxu1 %v10800_v45  ;;  %v12705_v45 = vadd.f32 %v2426_v43, %v2405_v18  ;;  %v10836_v18 = vld [vmem:[#allocation27 + $0x98] sm:$0xff]  }
 0xa9c   :  { %v3351_v20 = vadd.f32 %v12595_v36, %v2600_v39  ;;  %v10848_v36 = vld [vmem:[#allocation27 + $0xb0] sm:$0xff]  }
 0xa9d   :  { %4411 = vmatpush1.bf16.msra.mxu0 %v10817_v10  ;;  %v4676_v41 = vpack.c.bf16 %v12705_v45, %v12705_v45  ;;  %v10830_v10 = vld [vmem:[#allocation27 + $0xd0] sm:$0xff]  }
 0xa9e   :  { %4608 = vmatpush1.bf16.msra.mxu1 %v10798_v50 }
 0xa9f   :  { %4609 = vmatprep.subr.bf16.mxu1 %v10806_v52 }
 0xaa2   :  { %4610 = vmatpush1.bf16.msra.mxu1 %v10804_v56  ;;  %v10821_v56 = vld [vmem:[#allocation25 + $0xc8] sm:$0xff]  }
 0xaa3   :  { %4611 = vmatprep.subr.bf16.mxu1 %v10812_v60 }
 0xaa6   :  { %4612 = vmatpush1.bf16.msra.mxu1 %v10810_v62  ;;  %v10824_v62 = vld [vmem:[#allocation27 + $0x80] sm:$0xff]  }
 0xaa7   :  { %10015 = vmatprep.subr.bf16.mxu1 %v10816_v3 }
 0xb11   :  { %v4136_v57 = vpop.xlane.xlu0 %4135 }
 0xb12   :  { %11317 = vrcp.f32 %v4136_v57 }
 0xb1c   :  { %v11318_v58 = vpop.eup %11317 }
 0xb1d   :  { %v4138_v59 = vmul.f32 %v11318_v58, %v12689_v51  ;;  %v10822_v51 = vld [vmem:[#allocation27 + $0xc0] sm:$0xff]   ;;  %v12711_v58 = vadd.f32 %v3450_v48, %v2426_v43  ;;  %v10837_v43 = vld [vmem:[#allocation25 + $0xe8] sm:$0xff]  }
 0xb1e   :  { %9993 = vmatprep.subr.bf16.mxu0 %v10822_v51  ;;  %v10831_v51 = vld [vmem:[#allocation25 + $0x98] sm:$0xff]   ;;  %v10840_v48 = vld [vmem:[#allocation27 + $0xa0] sm:$0xff]  }
 0xb1f   :  { %4141 = vperm.xlu1 %10526, %v4138_v59   ;;  %v4711_v3 = vpack.c.bf16 %v12711_v58, %v12711_v58 }
 0xb23   :  { %10527 = vset.pattern.permute.xlu1 %v11981_v5 }
 0xb24   :  { %4181 = vperm.xlu1 %10527, %v4138_v59  }
 0xb9e   :  { %v4142_v44 = vpop.permute.xlu1 %4141 }
 0xb9f   :  { %v4144_v46 = vmul.f32 %v4142_v44, %v12620_v30  ;;  %v4145_v55 = vmul.f32 %v4142_v44, %v12607_v54  ;;  %v10823_v54 = vld [vmem:[#allocation25 + $0x88] sm:$0xff]   ;;  %v10838_v44 = vld [vmem:[#allocation27 + $0xe0] sm:$0xff]  }
 0xba1   :  { %v4178_v50 = vpack.c.bf16 %v4144_v46, %v4144_v46  ;;  %v4179_v52 = vpack.c.bf16 %v4145_v55, %v4145_v55  ;;  %v2355_v46 = vmax.f32 %v2263_v29, 0.0  ;;  %v2373_v55 = vrot.slane %v12585_v23, %v12365_v63  ;;  %v10846_v23 = vld [vmem:[#allocation27 + $0xf0] sm:$0xff]  }
 0xba3   :  { %4613 = vmatprep.mubr.bf16.mxu1 %v4179_v52  ;;  %v4182_v57 = vpop.permute.xlu1 %4181  ;;  %v10842_v52 = vld [vmem:[#allocation27 + $0xe8] sm:$0xff]  }
 0xba4   :  { %v4184_v17 = vmul.f32 %v4182_v57, %v12605_v53  ;;  %v4185_v59 = vmul.f32 %v4182_v57, %v12609_v14  ;;  %4614 = vmatmul.mubr.bf16.vlgmr.msra.gmra.mrb[40].mxu1 %v4178_v50  ;;  %v10828_v53 = vld [vmem:[#allocation27 + $0x88] sm:$0xff]   ;;  %v10829_v14 = vld [vmem:[#allocation25 + $0xd8] sm:$0xff]   ;;  %v10841_v50 = vld [vmem:[#allocation25 + $0xf0] sm:$0xff]  }
 0xba5   :  { %10016 = vmatpush3.bf16.msra.mxu1 %v10820_v61  ;;  %4976 = vmatprep.mubr.bf16.mxu1 %v4676_v41  ;;  %v10843_v61 = vld [vmem:[#allocation25 + $0xb0] sm:$0xff]   ;;  %v10844_v57 = vld [vmem:[#allocation27 + $0xa8] sm:$0xff]   ;;  %v10845_v41 = vld [vmem:[#allocation25 + $0xf8] sm:$0xff]  }
 0xba6   :  { %v4218_v30 = vpack.c.bf16 %v4184_v17, %v4184_v17  ;;  %v4219_v60 = vpack.c.bf16 %v4185_v59, %v4185_v59  ;;  %10017 = vmatprep.subr.bf16.mxu1 %v10821_v56  ;;  %v2404_v56 = vmul.f32 %v2373_v55, %v2355_v46  ;;  %v3441_v17 = vmax.f32 %v3351_v20, 0.0  ;;  %v10847_v59 = vld [vmem:[#allocation25 + $0xb8] sm:$0xff]  }
 0xba8   :  { %4412 = vmatprep.mubr.bf16.mxu0 %v4219_v60  ;;  %v10849_v60 = vld [vmem:[#allocation27 + $0xf8] sm:$0xff]  }
 0xba9   :  { %10018 = vmatpush3.bf16.msra.mxu1 %v10823_v54  ;;  %4413 = vmatmul.mubr.bf16.vlgmr.msra.gmra.mrb[28].mxu0 %v4218_v30  ;;  %v12727_v54 = vadd.f32 %v2422_v21, %v2404_v56  ;;  %v3449_v30 = vmul.f32 %v3441_v17, %v2373_v55 }
 0xbaa   :  { %9994 = vmatpush3.bf16.msra.mxu0 %v10824_v62  ;;  %4840 = vmatprep.mubr.bf16.mxu0 %v4711_v3  ;;  %v10852_v3 = vld [vmem:[%s13168_s8 + $0x48] sm:$0xff]  }
 0xbab   :  { %10019 = vmatprep.subr.bf16.mxu1 %v10825_v1  ;;  %9995 = vmatprep.subr.bf16.mxu0 %v10826_v2  ;;  %v4675_v63 = vpack.c.bf16 %v12727_v54, %v12727_v54  ;;  %v12732_v62 = vadd.f32 %v3449_v30, %v2422_v21  ;;  %v10851_v2 = vld [vmem:[%s13168_s8 + $0x40] sm:$0xff]  }
 0xbad   :  { %10020 = vmatpush3.bf16.msra.mxu1 %v10827_v9  ;;  %v4710_v1 = vpack.c.bf16 %v12732_v62, %v12732_v62  ;;  %v10853_v9 = vld [vmem:[%s13168_s8 + $0x50] sm:$0xff]  }
 0xbae   :  { %9996 = vmatpush3.bf16.msra.mxu0 %v10828_v53  ;;  %10021 = vmatprep.subr.bf16.mxu1 %v10829_v14  ;;  %v10854_v53 = vld [vmem:[%s13168_s8 + $0x58] sm:$0xff]   ;;  %v10855_v14 = vld [vmem:[%s13168_s8 + $0x60] sm:$0xff]  }
 0xbaf   :  { %9997 = vmatprep.subr.bf16.mxu0 %v10830_v10  ;;  %v10856_v10 = vld [vmem:[%s13168_s8 + $0x68] sm:$0xff]  }
 0xbb1   :  { %10022 = vmatpush3.bf16.msra.mxu1 %v10831_v51  ;;  %v10857_v51 = vld [vmem:[%s13168_s8 + $0x70] sm:$0xff]  }
 0xbb2   :  { %9998 = vmatpush3.bf16.msra.mxu0 %v10832_v12  ;;  %10023 = vmatprep.subr.bf16.mxu1 %v10833_v22  ;;  %v10859_v12 = vld [vmem:[%s13169_s16 + $0x20] sm:$0xff]  }
 0xbb3   :  { %9999 = vmatprep.subr.bf16.mxu0 %v10834_v26 }
 0xbb5   :  { %10024 = vmatpush3.bf16.msra.mxu1 %v10835_v27 }
 0xbb6   :  { %10000 = vmatpush3.bf16.msra.mxu0 %v10836_v18  ;;  %10025 = vmatprep.subr.bf16.mxu1 %v10837_v43 }
 0xbb7   :  { %10001 = vmatprep.subr.bf16.mxu0 %v10838_v44 }
 0xbb9   :  { %10026 = vmatpush3.bf16.msra.mxu1 %v10839_v13 }
 0xbba   :  { %10002 = vmatpush3.bf16.msra.mxu0 %v10840_v48  ;;  %10027 = vmatprep.subr.bf16.mxu1 %v10841_v50 }
 0xbbb   :  { %10003 = vmatprep.subr.bf16.mxu0 %v10842_v52 }
 0xbbd   :  { %10028 = vmatpush3.bf16.msra.mxu1 %v10843_v61 }
 0xbbe   :  { %10004 = vmatpush3.bf16.msra.mxu0 %v10844_v57  ;;  %10029 = vmatprep.subr.bf16.mxu1 %v10845_v41  ;;  %v9444_v41 = vld [vmem:[#allocation28 + $0x1] ss:$0 sm:$0xff] }
 0xbbf   :  { %10005 = vmatprep.subr.bf16.mxu0 %v10846_v23 }
 0xbc1   :  { %10030 = vmatpush3.bf16.msra.mxu1 %v10847_v59 }
 0xbc2   :  { %10006 = vmatpush3.bf16.msra.mxu0 %v10848_v36  ;;  %10334 = vmatprep.subr.bf16.mxu1 %v11979_v47 }
 0xbc3   :  { %10007 = vmatprep.subr.bf16.mxu0 %v10849_v60 }
 0xbc4   :  { %4977 = vmatmul.mubr.bf16.vlgmr.msra.gmra.mrb[44].mxu1 %v4675_v63 }
 0xbc5   :  { %10342 = vmatprep.mubr.msk.bf16.mxu1 %vm11980_vm2, %v11979_v47  ;;  %10335 = vmatpush3.bf16.msra.mxu1 %v10859_v12  ;;  %v10863_v12 = vld [vmem:[%s13171_s22 + $0x20] sm:$0xff]  }
 0xbc6   :  { %10008 = vmatpush3.bf16.msra.mxu0 %v10850_v33  ;;  %10336 = vmatprep.subr.bf16.mxu1 %v11979_v47  ;;  %v10860_v33 = vld [vmem:[%s13169_s16 + $0x28] sm:$0xff]  }
 0xbc7   :  { %10314 = vmatprep.subr.bf16.mxu0 %v11979_v47 }
 0xbc9   :  { %4841 = vmatmul.mubr.bf16.vlgmr.msra.gmra.mrb[32].mxu0 %v4710_v1  ;;  %10337 = vmatpush3.bf16.msra.mxu1 %v10860_v33  ;;  %v10861_v1 = vld [vmem:[%s13169_s16 + $0x30] sm:$0xff]   ;;  %v10869_v33 = vld [vmem:[#allocation34 + $0x104] ss:$8 sps:$4 sm:$0xff]  }
 0xbca   :  { %10330 = vmatprep.mubr.msk.bf16.mxu0 %vm11980_vm2, %v11979_v47  ;;  %10315 = vmatpush3.bf16.msra.mxu0 %v10851_v2  ;;  %v10862_v2 = vld [vmem:[%s13169_s16 + $0x38] sm:$0xff]  }
 0xbcb   :  { %10316 = vmatprep.subr.bf16.mxu0 %v11979_v47  ;;  %10338 = vmatprep.subr.bf16.mxu1 %v11979_v47 }
 0xbcd   :  { %10339 = vmatpush3.bf16.msra.mxu1 %v10861_v1  ;;  %v10870_v1 = vld [vmem:[#allocation33 + $0x100] ss:$8 sps:$4 sm:$0xff]  }
 0xbce   :  { %10317 = vmatpush3.bf16.msra.mxu0 %v10852_v3  ;;  %10340 = vmatprep.subr.bf16.mxu1 %v11979_v47  ;;  %v9461_v3 = vld [vmem:[#allocation30 + $0x1] ss:$0 sm:$0xff] }
 0xbcf   :  { %10318 = vmatprep.subr.bf16.mxu0 %v11979_v47 }
 0xbd1   :  { %10341 = vmatpush3.bf16.msra.mxu1 %v10862_v2  ;;  %v10872_v2 = vld [vmem:[#allocation33 + $0x104] ss:$8 sps:$4 sm:$0xff]  }
 0xbd2   :  { %10319 = vmatpush3.bf16.msra.mxu0 %v10853_v9  ;;  %10346 = vmatprep.subr.bf16.mxu1 %v11979_v47 }
 0xbd3   :  { %10320 = vmatprep.subr.bf16.mxu0 %v11979_v47 }
 0xbd6   :  { %10321 = vmatpush3.bf16.msra.mxu0 %v10854_v53 }
 0xbd7   :  { %10322 = vmatprep.subr.bf16.mxu0 %v11979_v47 }
 0xbda   :  { %10323 = vmatpush3.bf16.msra.mxu0 %v10855_v14 }
 0xbdb   :  { %10324 = vmatprep.subr.bf16.mxu0 %v11979_v47 }
 0xbde   :  { %10325 = vmatpush3.bf16.msra.mxu0 %v10856_v10 }
 0xbdf   :  { %10326 = vmatprep.subr.bf16.mxu0 %v11979_v47 }
 0xbe2   :  { %10327 = vmatpush3.bf16.msra.mxu0 %v10857_v51 }
 0xbe3   :  { %10328 = vmatprep.subr.bf16.mxu0 %v11979_v47 }
 0xbe6   :  { %10329 = vmatpush3.bf16.msra.mxu0 %v10858_v11 }
 0xbe7   :  { %5540 = vmatprep.subr.bf16.mxu0 %v10869_v33  ;;  %v10929_v33 = vld [vmem:[#allocation34 + $0x1a4] ss:$8 sps:$4 sm:$0xff]  }
 0xc77   :  { %v4615_v22 = vpop.f32.mrb[40].mxu1 }
 0xc78   :  { %v4617_v26 = vpop.f32.mrb[41].mxu1 }
 0xc79   :  { %v4619_v27 = vpop.f32.mrb[42].mxu1 }
 0xc7a   :  { %v4620_v29 = vpop.f32.mrb[43].mxu1  ;;  %v10865_v27 = vld [vmem:[%s13171_s22 + $0x30] sm:$0xff]  }
 0xc7b   :  { %v10866_v29 = vld [vmem:[%s13171_s22 + $0x38] sm:$0xff]  }
 0xc7c   :  { %v4414_v18 = vpop.f32.mrb[28].mxu0 }
 0xc7d   :  { %v12758_v43 = vadd.f32 %v4615_v22, %v4414_v18  ;;  %v4416_v39 = vpop.f32.mrb[29].mxu0  ;;  %v9478_v18 = vld [vmem:[#allocation31 + $0x1] ss:$0 sm:$0xff] }
 0xc7e   :  { %v12760_v44 = vadd.f32 %v4617_v26, %v4416_v39  ;;  %v4418_v13 = vpop.f32.mrb[30].mxu0  ;;  %v10864_v26 = vld [vmem:[%s13171_s22 + $0x28] sm:$0xff]  }
 0xc7f   :  { %v4419_v46 = vpop.f32.mrb[31].mxu0 }
 0xc97   :  { %v10031_v55 = vpop.f32.mrb[44].mxu1 }
 0xc98   :  { %v10032_v48 = vpop.f32.mrb[45].mxu1 }
 0xc99   :  { %v10033_v50 = vadd.f32 %v10032_v48, %v10031_v55  ;;  %v10034_v20 = vpop.f32.mrb[46].mxu1 }
 0xc9a   :  { %v10035_v52 = vpop.f32.mrb[47].mxu1 }
 0xc9c   :  { %v10009_v61 = vpop.f32.mrb[32].mxu0 }
 0xc9d   :  { %v10010_v56 = vpop.f32.mrb[33].mxu0 }
 0xc9e   :  { %v10011_v21 = vadd.f32 %v10010_v56, %v10009_v61  ;;  %v10012_v57 = vpop.f32.mrb[34].mxu0  ;;  %v9493_v56 = vld [vmem:[%s13172_s23 + $0x1] ss:$0 sm:$0xff] }
 0xc9f   :  { %v10013_v17 = vpop.f32.mrb[35].mxu0 }
 0xca0   :  { %v4979_v23 = vadd.f32 %v10033_v50, %v10011_v21 }
 0xca2   :  { %v4992_v59 = vadd.f32 %v9444_v41, %v4979_v23 }
 0xca4   :  { %v4993_v36 = vmax.f32 %v4992_v59, 0.0 }
 0xca6   :  { %v4994_v30 = vmul.f32 %v12656_v19, %v4993_v36 }
 0xca8   :  { %v4995_v60 = vadd.f32 %v12658_v24, %v4994_v30 }
 0xcaa   :  { %v5013_v63 = vpack.c.bf16 %v4995_v60, %v4995_v60 }
 0xcac   :  { %10331 = vmatmul.mubr.bf16.vlgmr.msra.gmra.mrb[36].mxu0 %v5013_v63 }
 0xd7f   :  { %v5104_v19 = vpop.f32.mrb[36].mxu0 }
 0xd80   :  { %v5105_v9 = vadd.f32 %v9461_v3, %v5104_v19  ;;  %v10332_v24 = vpop.f32.mrb[37].mxu0  ;;  %v10875_v3 = vld [vmem:[#allocation34 + $0x114] ss:$8 sps:$4 sm:$0xff]  }
 0xd81   :  { %v5107_v53 = vpop.f32.mrb[38].mxu0  ;;  %v10878_v19 = vld [vmem:[#allocation33 + $0x114] ss:$8 sps:$4 sm:$0xff]   ;;  %v10876_v24 = vld [vmem:[#allocation33 + $0x110] ss:$8 sps:$4 sm:$0xff]  }
 0xd82   :  { %v5110_v14 = vmax.f32 %v5105_v9, 0.0  ;;  %v10333_v10 = vpop.f32.mrb[39].mxu0  ;;  %v10873_v9 = vld [vmem:[#allocation34 + $0x110] ss:$8 sps:$4 sm:$0xff]   ;;  %v10881_v53 = vld [vmem:[#allocation34 + $0x124] ss:$8 sps:$4 sm:$0xff]  }
 0xd83   :  { %v10879_v10 = vld [vmem:[#allocation34 + $0x120] ss:$8 sps:$4 sm:$0xff]  }
 0xd84   :  { %v5111_v51 = vmul.f32 %v12668_v49, %v5110_v14  ;;  %v10884_v14 = vld [vmem:[#allocation33 + $0x124] ss:$8 sps:$4 sm:$0xff]  }
 0xd86   :  { %v5112_v11 = vadd.f32 %v12670_v32, %v5111_v51  ;;  %v10882_v51 = vld [vmem:[#allocation33 + $0x120] ss:$8 sps:$4 sm:$0xff]  }
 0xd88   :  { %v5122_v22 = vpack.c.bf16 %v5112_v11, %v5112_v11  ;;  %v10887_v11 = vld [vmem:[#allocation34 + $0x134] ss:$8 sps:$4 sm:$0xff]  }
 0xd8a   :  { %10343 = vmatmul.mubr.msk.bf16.vlgmr.msra.gmra.mrb[48].mxu1 %vm3997_vm3, %v5122_v22  ;;  %v10885_v22 = vld [vmem:[#allocation34 + $0x130] ss:$8 sps:$4 sm:$0xff]  }
 0xd8b   :  { %10347 = vmatpush3.bf16.msra.mxu1 %v10863_v12  ;;  %10354 = vmatprep.mubr.msk.bf16.mxu1 %vm11980_vm2, %v11979_v47  ;;  %v10890_v12 = vld [vmem:[#allocation33 + $0x134] ss:$8 sps:$4 sm:$0xff]  }
 0xd8c   :  { %10348 = vmatprep.subr.bf16.mxu1 %v11979_v47 }
 0xd8f   :  { %10349 = vmatpush3.bf16.msra.mxu1 %v10864_v26  ;;  %v10888_v26 = vld [vmem:[#allocation33 + $0x130] ss:$8 sps:$4 sm:$0xff]  }
 0xd90   :  { %10350 = vmatprep.subr.bf16.mxu1 %v11979_v47 }
 0xd93   :  { %10351 = vmatpush3.bf16.msra.mxu1 %v10865_v27  ;;  %v10893_v27 = vld [vmem:[#allocation34 + $0x144] ss:$8 sps:$4 sm:$0xff]  }
 0xd94   :  { %10352 = vmatprep.subr.bf16.mxu1 %v11979_v47 }
 0xd97   :  { %10353 = vmatpush3.bf16.msra.mxu1 %v10866_v29  ;;  %v10896_v29 = vld [vmem:[#allocation33 + $0x144] ss:$8 sps:$4 sm:$0xff]  }
 0xd98   :  { %5741 = vmatprep.subr.bf16.mxu1 %v10872_v2  ;;  %v10927_v2 = vld [vmem:[#allocation34 + $0x1a0] ss:$8 sps:$4 sm:$0xff]  }
 0xe5d   :  { %v5192_v39 = vpop.f32.mrb[48].mxu1 }
 0xe5e   :  { %v5193_v13 = vadd.f32 %v9478_v18, %v5192_v39  ;;  %v10344_v46 = vpop.f32.mrb[49].mxu1  ;;  %v10891_v18 = vld [vmem:[#allocation34 + $0x140] ss:$8 sps:$4 sm:$0xff]  }
 0xe5f   :  { %v5195_v55 = vpop.f32.mrb[50].mxu1  ;;  %v10894_v39 = vld [vmem:[#allocation33 + $0x140] ss:$8 sps:$4 sm:$0xff]   ;;  %v10902_v46 = vld [vmem:[#allocation33 + $0x154] ss:$8 sps:$4 sm:$0xff]  }
 0xe60   :  { %v5198_v48 = vmax.f32 %v5193_v13, 0.0  ;;  %v10345_v50 = vpop.f32.mrb[51].mxu1  ;;  %v10899_v13 = vld [vmem:[#allocation34 + $0x154] ss:$8 sps:$4 sm:$0xff]   ;;  %v10897_v55 = vld [vmem:[#allocation34 + $0x150] ss:$8 sps:$4 sm:$0xff]  }
 0xe61   :  { %v10905_v50 = vld [vmem:[#allocation34 + $0x164] ss:$8 sps:$4 sm:$0xff]  }
 0xe62   :  { %v5199_v20 = vmul.f32 %v12668_v49, %v5198_v48  ;;  %v10900_v48 = vld [vmem:[#allocation33 + $0x150] ss:$8 sps:$4 sm:$0xff]  }
 0xe64   :  { %v5200_v52 = vadd.f32 %v12670_v32, %v5199_v20  ;;  %v10867_v32 = vld [vmem:[#allocation34 + $0x100] ss:$8 sps:$4 sm:$0xff]   ;;  %v10908_v20 = vld [vmem:[#allocation33 + $0x164] ss:$8 sps:$4 sm:$0xff]  }
 0xe65   :  { %5541 = vmatpush1.bf16.msra.mxu0 %v10867_v32  ;;  %v10924_v32 = vld [vmem:[#allocation33 + $0x190] ss:$8 sps:$4 sm:$0xff]  }
 0xe66   :  { %v5210_v61 = vpack.c.bf16 %v5200_v52, %v5200_v52  ;;  %5542 = vmatprep.subr.bf16.mxu0 %v10875_v3  ;;  %v10903_v52 = vld [vmem:[#allocation34 + $0x160] ss:$8 sps:$4 sm:$0xff]  }
 0xe67   :  { %v10930_v3 = vld [vmem:[#allocation33 + $0x1a0] ss:$8 sps:$4 sm:$0xff]  }
 0xe68   :  { %10355 = vmatmul.mubr.msk.bf16.vlgmr.msra.gmra.mrb[52].mxu1 %vm3997_vm3, %v5210_v61  ;;  %v10906_v61 = vld [vmem:[#allocation33 + $0x160] ss:$8 sps:$4 sm:$0xff]  }
 0xe69   :  { %5742 = vmatpush1.bf16.msra.mxu1 %v10870_v1  ;;  %5543 = vmatpush1.bf16.msra.mxu0 %v10873_v9  ;;  %v10932_v1 = vld [vmem:[#allocation33 + $0x1a4] ss:$8 sps:$4 sm:$0xff]   ;;  %v10938_v9 = vld [vmem:[#allocation33 + $0x1b4] ss:$8 sps:$4 sm:$0xff]  }
 0xe6a   :  { %5743 = vmatprep.subr.bf16.mxu1 %v10878_v19  ;;  %5544 = vmatprep.subr.bf16.mxu0 %v10881_v53  ;;  %v10935_v19 = vld [vmem:[#allocation34 + $0x1b4] ss:$8 sps:$4 sm:$0xff]   ;;  %v10936_v53 = vld [vmem:[#allocation33 + $0x1b0] ss:$8 sps:$4 sm:$0xff]  }
 0xe6d   :  { %5744 = vmatpush1.bf16.msra.mxu1 %v10876_v24  ;;  %5545 = vmatpush1.bf16.msra.mxu0 %v10879_v10  ;;  %v10933_v24 = vld [vmem:[#allocation34 + $0x1b0] ss:$8 sps:$4 sm:$0xff]   ;;  %v10944_v10 = vld [vmem:[#allocation33 + $0x1c4] ss:$8 sps:$4 sm:$0xff]  }
 0xe6e   :  { %5745 = vmatprep.subr.bf16.mxu1 %v10884_v14  ;;  %5546 = vmatprep.subr.bf16.mxu0 %v10887_v11  ;;  %v10941_v14 = vld [vmem:[#allocation34 + $0x1c4] ss:$8 sps:$4 sm:$0xff]   ;;  %v10942_v11 = vld [vmem:[#allocation33 + $0x1c0] ss:$8 sps:$4 sm:$0xff]  }
 0xe71   :  { %5746 = vmatpush1.bf16.msra.mxu1 %v10882_v51  ;;  %5547 = vmatpush1.bf16.msra.mxu0 %v10885_v22  ;;  %v10939_v51 = vld [vmem:[#allocation34 + $0x1c0] ss:$8 sps:$4 sm:$0xff]   ;;  %v10950_v22 = vld [vmem:[#allocation33 + $0x1d4] ss:$8 sps:$4 sm:$0xff]  }
 0xe72   :  { %5747 = vmatprep.subr.bf16.mxu1 %v10890_v12  ;;  %5548 = vmatprep.subr.bf16.mxu0 %v10893_v27  ;;  %v10947_v12 = vld [vmem:[#allocation34 + $0x1d4] ss:$8 sps:$4 sm:$0xff]   ;;  %v10948_v27 = vld [vmem:[#allocation33 + $0x1d0] ss:$8 sps:$4 sm:$0xff]  }
 0xe75   :  { %5748 = vmatpush1.bf16.msra.mxu1 %v10888_v26  ;;  %5549 = vmatpush1.bf16.msra.mxu0 %v10891_v18  ;;  %v10945_v26 = vld [vmem:[#allocation34 + $0x1d0] ss:$8 sps:$4 sm:$0xff]   ;;  %v10956_v18 = vld [vmem:[#allocation33 + $0x1e4] ss:$8 sps:$4 sm:$0xff]  }
 0xe76   :  { %5749 = vmatprep.subr.bf16.mxu1 %v10896_v29  ;;  %5550 = vmatprep.subr.bf16.mxu0 %v10899_v13  ;;  %v10953_v29 = vld [vmem:[#allocation34 + $0x1e4] ss:$8 sps:$4 sm:$0xff]   ;;  %v10954_v13 = vld [vmem:[#allocation33 + $0x1e0] ss:$8 sps:$4 sm:$0xff]  }
 0xe79   :  { %5750 = vmatpush1.bf16.msra.mxu1 %v10894_v39  ;;  %5551 = vmatpush1.bf16.msra.mxu0 %v10897_v55  ;;  %v10951_v39 = vld [vmem:[#allocation34 + $0x1e0] ss:$8 sps:$4 sm:$0xff]  }
 0xe7a   :  { %5751 = vmatprep.subr.bf16.mxu1 %v10902_v46  ;;  %5552 = vmatprep.subr.bf16.mxu0 %v10905_v50  ;;  %v10959_v50 = vld [vmem:[#allocation34 + $0x1f4] ss:$8 sps:$4 sm:$0xff]  }
 0xe7d   :  { %5752 = vmatpush1.bf16.msra.mxu1 %v10900_v48  ;;  %5553 = vmatpush1.bf16.msra.mxu0 %v10903_v52  ;;  %v10957_v52 = vld [vmem:[#allocation34 + $0x1f0] ss:$8 sps:$4 sm:$0xff]  }
 0xe7e   :  { %5753 = vmatprep.subr.bf16.mxu1 %v10908_v20  ;;  %v10962_v20 = vld [vmem:[#allocation33 + $0x1f4] ss:$8 sps:$4 sm:$0xff]  }
 0xe81   :  { %5754 = vmatpush1.bf16.msra.mxu1 %v10906_v61  ;;  %v10960_v61 = vld [vmem:[#allocation33 + $0x1f0] ss:$8 sps:$4 sm:$0xff]  }
 0xf3b   :  { %v5280_v21 = vpop.f32.mrb[52].mxu1 }
 0xf3c   :  { %v5281_v57 = vadd.f32 %v9493_v56, %v5280_v21  ;;  %v10356_v41 = vpop.f32.mrb[53].mxu1  ;;  %v10911_v56 = vld [vmem:[#allocation34 + $0x174] ss:$8 sps:$4 sm:$0xff]  }
 0xf3d   :  { %v5283_v17 = vpop.f32.mrb[54].mxu1  ;;  %v10914_v21 = vld [vmem:[#allocation33 + $0x174] ss:$8 sps:$4 sm:$0xff]   ;;  %5554 = vmatprep.subr.bf16.mxu0 %v10911_v56  ;;  %v10912_v41 = vld [vmem:[#allocation33 + $0x170] ss:$8 sps:$4 sm:$0xff]  }
 0xf3e   :  { %v10357_v23 = vpop.f32.mrb[55].mxu1  ;;  %v5286_v59 = vsel %vm4127_vm4, %v5281_v57, -inf  ;;  %v10917_v17 = vld [vmem:[#allocation34 + $0x184] ss:$8 sps:$4 sm:$0xff]   ;;  %5755 = vmatprep.subr.bf16.mxu1 %v10914_v21  ;;  %v10963_v56 = vld [vmem:[#allocation27 + $0x140] sm:$0xff]  }
 0xf3f   :  { %5287 = vmax.xlane.f32.xlu0 %v5286_v59  ;;  %v10920_v23 = vld [vmem:[#allocation33 + $0x184] ss:$8 sps:$4 sm:$0xff]   ;;  %v10915_v59 = vld [vmem:[#allocation34 + $0x180] ss:$8 sps:$4 sm:$0xff]   ;;  %5756 = vmatpush1.bf16.msra.mxu1 %v10912_v41  ;;  %v10964_v21 = vld [vmem:[#allocation25 + $0x140] sm:$0xff]  }
 0xf40   :  { %5757 = vmatprep.subr.bf16.mxu1 %v10920_v23  ;;  %v12793_v41 = vld [vmem:[#allocation21] sm:$0xff] }
 0xfcc   :  { %v5288_v36 = vpop.xlane.xlu0 %5287 }
 0xfcd   :  { %v5289_v30 = vsub.f32 %v5281_v57, %v5288_v36  ;;  %v10909_v57 = vld [vmem:[#allocation34 + $0x170] ss:$8 sps:$4 sm:$0xff]   ;;  %v10918_v36 = vld [vmem:[#allocation33 + $0x180] ss:$8 sps:$4 sm:$0xff]  }
 0xfce   :  { %5555 = vmatpush1.bf16.msra.mxu0 %v10909_v57  ;;  %5758 = vmatpush1.bf16.msra.mxu1 %v10918_v36  ;;  %v1529_v57 = vsub.s32 5, %v12313_v4 }
 0xfcf   :  { %v5290_v60 = vmul.f32 1.442695, %v5289_v30  ;;  %5556 = vmatprep.subr.bf16.mxu0 %v10917_v17  ;;  %v10923_v30 = vld [vmem:[#allocation34 + $0x194] ss:$8 sps:$4 sm:$0xff]   ;;  %v12796_v17 = vld [vmem:[#allocation24] sm:$0xff] }
 0xfd0   :  { %v2612_v23 = vrot.slane %v12796_v17, %v1529_v57 }
 0xfd1   :  { %11319 = vpow2.f32 %v5290_v60  ;;  %v10926_v60 = vld [vmem:[#allocation33 + $0x194] ss:$8 sps:$4 sm:$0xff]  }
 0xfd2   :  { %5557 = vmatpush1.bf16.msra.mxu0 %v10915_v59  ;;  %5759 = vmatprep.subr.bf16.mxu1 %v10926_v60  ;;  %v3394_v36 = vadd.f32 %v12628_v40, %v2612_v23  ;;  %v12801_v60 = vld [vmem:[#allocation13] sm:$0xff] }
 0xfd3   :  { %5558 = vmatprep.subr.bf16.mxu0 %v10923_v30  ;;  %5760 = vmatpush1.bf16.msra.mxu1 %v10924_v32  ;;  %v10981_v23 = vld [vmem:[#allocation27 + $0x120] sm:$0xff]  }
 0xfd4   :  { %5761 = vmatprep.subr.bf16.mxu1 %v10932_v1  ;;  %v3444_v32 = vmax.f32 %v3394_v36, 0.0  ;;  %v12804_v1 = vld [vmem:[#allocation15] sm:$0xff] }
 0xfd7   :  { %5762 = vmatpush1.bf16.msra.mxu1 %v10930_v3 }
 0xfd8   :  { %5763 = vmatprep.subr.bf16.mxu1 %v10938_v9 }
 0xfdb   :  { %v12787_v63 = vpop.eup %11319  ;;  %5764 = vmatpush1.bf16.msra.mxu1 %v10936_v53 }
 0xfdc   :  { %v5292_v49 = vsel %vm4127_vm4, %v12787_v63, 0.0  ;;  %5765 = vmatprep.subr.bf16.mxu1 %v10944_v10 }
 0xfdd   :  { %5293 = vadd.xlane.f32.xlu1 %v5292_v49  ;;  %v10921_v49 = vld [vmem:[#allocation34 + $0x190] ss:$8 sps:$4 sm:$0xff]  }
 0xfde   :  { %5559 = vmatpush1.bf16.msra.mxu0 %v10921_v49  ;;  %v2385_v49 = vrot.slane %v12801_v60, %v1529_v57 }
 0xfdf   :  { %5560 = vmatprep.subr.bf16.mxu0 %v10929_v33  ;;  %5766 = vmatpush1.bf16.msra.mxu1 %v10942_v11 }
 0xfe0   :  { %5767 = vmatprep.subr.bf16.mxu1 %v10950_v22  ;;  %v3452_v3 = vmul.f32 %v3444_v32, %v2385_v49  ;;  %v10984_v32 = vld [vmem:[#allocation25 + $0x168] sm:$0xff]  }
 0xfe2   :  { %5561 = vmatpush1.bf16.msra.mxu0 %v10927_v2  ;;  %v2434_v2 = vrot.slane %v12804_v1, %v1529_v57 }
 0xfe3   :  { %5562 = vmatprep.subr.bf16.mxu0 %v10935_v19  ;;  %5768 = vmatpush1.bf16.msra.mxu1 %v10948_v27  ;;  %v10966_v27 = vld [vmem:[#allocation25 + $0x100] sm:$0xff]  }
 0xfe4   :  { %5769 = vmatprep.subr.bf16.mxu1 %v10956_v18  ;;  %v12813_v10 = vadd.f32 %v3452_v3, %v2434_v2  ;;  %v10970_v18 = vld [vmem:[#allocation25 + $0x108] sm:$0xff]  }
 0xfe6   :  { %5563 = vmatpush1.bf16.msra.mxu0 %v10933_v24 }
 0xfe7   :  { %5564 = vmatprep.subr.bf16.mxu0 %v10941_v14  ;;  %5770 = vmatpush1.bf16.msra.mxu1 %v10954_v13  ;;  %v10972_v13 = vld [vmem:[#allocation25 + $0x150] sm:$0xff]  }
 0xfe8   :  { %5771 = vmatprep.subr.bf16.mxu1 %v10962_v20  ;;  %v10976_v20 = vld [vmem:[#allocation25 + $0x158] sm:$0xff]  }
 0xfea   :  { %5565 = vmatpush1.bf16.msra.mxu0 %v10939_v51 }
 0xfeb   :  { %5566 = vmatprep.subr.bf16.mxu0 %v10947_v12  ;;  %5772 = vmatpush1.bf16.msra.mxu1 %v10960_v61  ;;  %v10978_v61 = vld [vmem:[#allocation25 + $0x118] sm:$0xff]  }
 0xfec   :  { %10078 = vmatprep.subr.bf16.mxu1 %v10964_v21 }
 0xfee   :  { %5567 = vmatpush1.bf16.msra.mxu0 %v10945_v26  ;;  %v10965_v26 = vld [vmem:[#allocation27 + $0x100] sm:$0xff]  }
 0xfef   :  { %5568 = vmatprep.subr.bf16.mxu0 %v10953_v29  ;;  %v10967_v29 = vld [vmem:[#allocation27 + $0x148] sm:$0xff]  }
 0xff2   :  { %5569 = vmatpush1.bf16.msra.mxu0 %v10951_v39  ;;  %v10971_v39 = vld [vmem:[#allocation27 + $0x150] sm:$0xff]  }
 0xff3   :  { %5570 = vmatprep.subr.bf16.mxu0 %v10959_v50  ;;  %v10975_v50 = vld [vmem:[#allocation27 + $0x158] sm:$0xff]  }
 0xff6   :  { %5571 = vmatpush1.bf16.msra.mxu0 %v10957_v52  ;;  %v10977_v52 = vld [vmem:[#allocation27 + $0x118] sm:$0xff]  }
 0xff7   :  { %10056 = vmatprep.subr.bf16.mxu0 %v10963_v56 }
0x106a   :  { %v5294_v46 = vpop.xlane.xlu1 %5293 }
0x106b   :  { %11321 = vrcp.f32 %v5294_v46  ;;  %v10973_v46 = vld [vmem:[#allocation27 + $0x110] sm:$0xff]  }
0x1075   :  { %v11322_v55 = vpop.eup %11321 }
0x1076   :  { %v5296_v48 = vmul.f32 %v11322_v55, %v12787_v63  ;;  %v1530_v63 = vrot.slane %v12793_v41, %v1529_v57  ;;  %v10974_v55 = vld [vmem:[#allocation25 + $0x110] sm:$0xff]   ;;  %v10979_v57 = vld [vmem:[#allocation27 + $0x160] sm:$0xff]  }
0x1078   :  { %5340 = vperm.xlu1 %10527, %v5296_v48   ;;  %5299 = vperm.xlu0 %10528, %v5296_v48   ;;  %v2306_v59 = vadd.f32 %v12575_v8, %v1530_v63  ;;  %v1525_v48 = vsub.s32 4, %v12313_v4  ;;  %v10980_v63 = vld [vmem:[#allocation25 + $0x160] sm:$0xff]  }
0x107a   :  { %v2358_v30 = vmax.f32 %v2306_v59, 0.0  ;;  %v1526_v56 = vrot.slane %v12793_v41, %v1525_v48  ;;  %v2608_v21 = vrot.slane %v12796_v17, %v1525_v48  ;;  %v10982_v59 = vld [vmem:[#allocation25 + $0x120] sm:$0xff]  }
0x107c   :  { %v2407_v33 = vmul.f32 %v2385_v49, %v2358_v30  ;;  %v2304_v36 = vadd.f32 %v12571_v6, %v1526_v56  ;;  %v3392_v30 = vadd.f32 %v12624_v35, %v2608_v21  ;;  %v10983_v49 = vld [vmem:[#allocation27 + $0x168] sm:$0xff]   ;;  %v10989_v6 = vld [vmem:[#allocation27 + $0x130] sm:$0xff]  }
0x107d   :  { %v10990_v35 = vld [vmem:[#allocation25 + $0x130] sm:$0xff]  }
0x107e   :  { %v12811_v14 = vadd.f32 %v2434_v2, %v2407_v33  ;;  %v10985_v33 = vld [vmem:[#allocation27 + $0x128] sm:$0xff]   ;;  %v2357_v3 = vmax.f32 %v2304_v36, 0.0 }
0x107f   :  { %v10986_v2 = vld [vmem:[#allocation25 + $0x128] sm:$0xff]  }
0x10f7   :  { %v5341_v19 = vpop.permute.xlu1 %5340  ;;  %v5300_v9 = vpop.permute.xlu0 %5299 }
0x10f8   :  { %v5343_v24 = vmul.f32 %v5341_v19, %v12732_v62  ;;  %v5344_v8 = vmul.f32 %v5341_v19, %v12711_v58  ;;  %v5302_v40 = vmul.f32 %v5300_v9, %v12727_v54  ;;  %v5303_v53 = vmul.f32 %v5300_v9, %v12705_v45  ;;  %v10968_v62 = vld [vmem:[#allocation25 + $0x148] sm:$0xff]  }
0x10f9   :  { %v5872_v58 = vpack.c.bf16 %v12813_v10, %v12813_v10  ;;  %v5837_v45 = vpack.c.bf16 %v12811_v14, %v12811_v14  ;;  %v10969_v54 = vld [vmem:[#allocation27 + $0x108] sm:$0xff]   ;;  %v2381_v19 = vrot.slane %v12801_v60, %v1525_v48  ;;  %v3443_v9 = vmax.f32 %v3392_v30, 0.0 }
0x10fa   :  { %v5378_v51 = vpack.c.bf16 %v5343_v24, %v5343_v24  ;;  %v5379_v11 = vpack.c.bf16 %v5344_v8, %v5344_v8  ;;  %v5337_v12 = vpack.c.bf16 %v5302_v40, %v5302_v40  ;;  %v5338_v22 = vpack.c.bf16 %v5303_v53, %v5303_v53  ;;  %v10987_v24 = vld [vmem:[#allocation27 + $0x170] sm:$0xff]  }
0x10fb   :  { %v10988_v8 = vld [vmem:[#allocation25 + $0x170] sm:$0xff]   ;;  %v2406_v40 = vmul.f32 %v2381_v19, %v2357_v3  ;;  %v2430_v53 = vrot.slane %v12804_v1, %v1525_v48  ;;  %v11002_v48 = vld [vmem:[%s13168_s8 + $0xb8] sm:$0xff]  }
0x10fc   :  { %5572 = vmatprep.mubr.bf16.mxu0 %v5379_v11  ;;  %5773 = vmatprep.mubr.bf16.mxu1 %v5338_v22  ;;  %v10991_v11 = vld [vmem:[#allocation27 + $0x178] sm:$0xff]  }
0x10fd   :  { %5573 = vmatmul.mubr.bf16.vlgmr.msra.gmra.mrb[40].mxu0 %v5378_v51  ;;  %5774 = vmatmul.mubr.bf16.vlgmr.msra.gmra.mrb[56].mxu1 %v5337_v12  ;;  %v3451_v51 = vmul.f32 %v3443_v9, %v2381_v19  ;;  %v10992_v12 = vld [vmem:[#allocation25 + $0x178] sm:$0xff]  }
0x10fe   :  { %10057 = vmatpush3.bf16.msra.mxu0 %v10965_v26  ;;  %10079 = vmatpush3.bf16.msra.mxu1 %v10966_v27  ;;  %v10993_v22 = vld [vmem:[#allocation27 + $0x138] sm:$0xff]   ;;  %v12826_v27 = vadd.f32 %v2430_v53, %v2406_v40 }
0x10ff   :  { %6001 = vmatprep.mubr.bf16.mxu0 %v5872_v58  ;;  %6137 = vmatprep.mubr.bf16.mxu1 %v5837_v45  ;;  %v10994_v26 = vld [vmem:[#allocation25 + $0x138] sm:$0xff]   ;;  %v10995_v45 = vld [vmem:[%s13168_s8 + $0x80] sm:$0xff]  }
0x1100   :  { %10058 = vmatprep.subr.bf16.mxu0 %v10967_v29  ;;  %10080 = vmatprep.subr.bf16.mxu1 %v10968_v62  ;;  %v12828_v29 = vadd.f32 %v3451_v51, %v2430_v53  ;;  %v5836_v62 = vpack.c.bf16 %v12826_v27, %v12826_v27  ;;  %v12862_v51 = vld [vmem:[%s13170_s18] ss:$0 sm:$0xff] }
0x1102   :  { %10059 = vmatpush3.bf16.msra.mxu0 %v10969_v54  ;;  %10081 = vmatpush3.bf16.msra.mxu1 %v10970_v18  ;;  %v5871_v58 = vpack.c.bf16 %v12828_v29, %v12828_v29  ;;  %v10996_v54 = vld [vmem:[%s13168_s8 + $0x88] sm:$0xff]   ;;  %v10997_v18 = vld [vmem:[%s13168_s8 + $0x90] sm:$0xff]  }
0x1103   :  { %10060 = vmatprep.subr.bf16.mxu0 %v10971_v39  ;;  %10082 = vmatprep.subr.bf16.mxu1 %v10972_v13  ;;  %v10998_v39 = vld [vmem:[%s13168_s8 + $0x98] sm:$0xff]   ;;  %v10999_v13 = vld [vmem:[%s13168_s8 + $0xa0] sm:$0xff]  }
0x1106   :  { %10061 = vmatpush3.bf16.msra.mxu0 %v10973_v46  ;;  %10083 = vmatpush3.bf16.msra.mxu1 %v10974_v55  ;;  %v11000_v46 = vld [vmem:[%s13168_s8 + $0xa8] sm:$0xff]   ;;  %v11001_v55 = vld [vmem:[%s13168_s8 + $0xb0] sm:$0xff]  }
0x1107   :  { %10062 = vmatprep.subr.bf16.mxu0 %v10975_v50  ;;  %10084 = vmatprep.subr.bf16.mxu1 %v10976_v20  ;;  %v11003_v50 = vld [vmem:[%s13169_s16 + $0x40] sm:$0xff]  }
0x110a   :  { %10063 = vmatpush3.bf16.msra.mxu0 %v10977_v52  ;;  %10085 = vmatpush3.bf16.msra.mxu1 %v10978_v61 }
0x110b   :  { %10064 = vmatprep.subr.bf16.mxu0 %v10979_v57  ;;  %10086 = vmatprep.subr.bf16.mxu1 %v10980_v63 }
0x110e   :  { %10065 = vmatpush3.bf16.msra.mxu0 %v10981_v23  ;;  %10087 = vmatpush3.bf16.msra.mxu1 %v10982_v59 }
0x110f   :  { %10066 = vmatprep.subr.bf16.mxu0 %v10983_v49  ;;  %10088 = vmatprep.subr.bf16.mxu1 %v10984_v32 }
0x1112   :  { %10067 = vmatpush3.bf16.msra.mxu0 %v10985_v33  ;;  %10089 = vmatpush3.bf16.msra.mxu1 %v10986_v2 }
0x1113   :  { %10068 = vmatprep.subr.bf16.mxu0 %v10987_v24  ;;  %10090 = vmatprep.subr.bf16.mxu1 %v10988_v8  ;;  %v9595_v24 = vld [vmem:[#allocation28 + $0x2] ss:$0 sm:$0xff] }
0x1116   :  { %10069 = vmatpush3.bf16.msra.mxu0 %v10989_v6  ;;  %10091 = vmatpush3.bf16.msra.mxu1 %v10990_v35 }
0x1117   :  { %10070 = vmatprep.subr.bf16.mxu0 %v10991_v11  ;;  %10092 = vmatprep.subr.bf16.mxu1 %v10992_v12  ;;  %v12865_v12 = vld [vmem:[#allocation16] ss:$0 sm:$0xff] }
0x111a   :  { %10071 = vmatpush3.bf16.msra.mxu0 %v10993_v22  ;;  %10093 = vmatpush3.bf16.msra.mxu1 %v10994_v26 }
0x111b   :  { %10358 = vmatprep.subr.bf16.mxu0 %v11979_v47  ;;  %10378 = vmatprep.subr.bf16.mxu1 %v11979_v47 }
0x111d   :  { %6002 = vmatmul.mubr.bf16.vlgmr.msra.gmra.mrb[44].mxu0 %v5871_v58  ;;  %6138 = vmatmul.mubr.bf16.vlgmr.msra.gmra.mrb[60].mxu1 %v5836_v62  ;;  %v11004_v62 = vld [vmem:[%s13169_s16 + $0x48] sm:$0xff]   ;;  %v11005_v58 = vld [vmem:[%s13169_s16 + $0x50] sm:$0xff]  }
0x111e   :  { %10374 = vmatprep.mubr.msk.bf16.mxu0 %vm11980_vm2, %v11979_v47  ;;  %10386 = vmatprep.mubr.msk.bf16.mxu1 %vm11980_vm2, %v11979_v47 }
0x111f   :  { %10359 = vmatpush3.bf16.msra.mxu0 %v10995_v45  ;;  %10379 = vmatpush3.bf16.msra.mxu1 %v11003_v50  ;;  %v11006_v45 = vld [vmem:[%s13169_s16 + $0x58] sm:$0xff]  }
0x1120   :  { %10360 = vmatprep.subr.bf16.mxu0 %v11979_v47  ;;  %10380 = vmatprep.subr.bf16.mxu1 %v11979_v47  ;;  %v12874_v50 = vld [vmem:[#allocation18] ss:$0 sm:$0xff] }
0x1123   :  { %10361 = vmatpush3.bf16.msra.mxu0 %v10996_v54  ;;  %10381 = vmatpush3.bf16.msra.mxu1 %v11004_v62  ;;  %v9612_v54 = vld [vmem:[#allocation30 + $0x2] ss:$0 sm:$0xff] }
0x1124   :  { %10362 = vmatprep.subr.bf16.mxu0 %v11979_v47  ;;  %10382 = vmatprep.subr.bf16.mxu1 %v11979_v47 }
0x1127   :  { %10363 = vmatpush3.bf16.msra.mxu0 %v10997_v18  ;;  %10383 = vmatpush3.bf16.msra.mxu1 %v11005_v58 }
0x1128   :  { %10364 = vmatprep.subr.bf16.mxu0 %v11979_v47  ;;  %10384 = vmatprep.subr.bf16.mxu1 %v11979_v47 }
0x112b   :  { %10365 = vmatpush3.bf16.msra.mxu0 %v10998_v39  ;;  %10385 = vmatpush3.bf16.msra.mxu1 %v11006_v45 }
0x112c   :  { %10366 = vmatprep.subr.bf16.mxu0 %v11979_v47  ;;  %10390 = vmatprep.subr.bf16.mxu1 %v11979_v47 }
0x112f   :  { %10367 = vmatpush3.bf16.msra.mxu0 %v10999_v13 }
0x1130   :  { %10368 = vmatprep.subr.bf16.mxu0 %v11979_v47 }
0x1133   :  { %10369 = vmatpush3.bf16.msra.mxu0 %v11000_v46 }
0x1134   :  { %10370 = vmatprep.subr.bf16.mxu0 %v11979_v47 }
0x1137   :  { %10371 = vmatpush3.bf16.msra.mxu0 %v11001_v55 }
0x1138   :  { %10372 = vmatprep.subr.bf16.mxu0 %v11979_v47 }
0x113b   :  { %10373 = vmatpush3.bf16.msra.mxu0 %v11002_v48 }
0x11d0   :  { %v5574_v20 = vpop.f32.mrb[40].mxu0  ;;  %v5775_v52 = vpop.f32.mrb[56].mxu1 }
0x11d1   :  { %v12857_v61 = vadd.f32 %v5775_v52, %v5574_v20  ;;  %v5576_v56 = vpop.f32.mrb[41].mxu0  ;;  %v5777_v21 = vpop.f32.mrb[57].mxu1  ;;  %v12877_v52 = vld [vmem:[#allocation19] ss:$0 sm:$0xff] }
0x11d2   :  { %v12859_v57 = vadd.f32 %v5777_v21, %v5576_v56  ;;  %v5578_v63 = vpop.f32.mrb[42].mxu0  ;;  %v5779_v23 = vpop.f32.mrb[58].mxu1  ;;  %v11007_v21 = vld [vmem:[%s13171_s22 + $0x40] sm:$0xff]  }
0x11d3   :  { %v5579_v59 = vpop.f32.mrb[43].mxu0  ;;  %v5780_v36 = vpop.f32.mrb[59].mxu1  ;;  %v11008_v23 = vld [vmem:[%s13171_s22 + $0x48] sm:$0xff]  }
0x11d4   :  { %v11009_v59 = vld [vmem:[%s13171_s22 + $0x50] sm:$0xff]   ;;  %v11010_v36 = vld [vmem:[%s13171_s22 + $0x58] sm:$0xff]  }
0x11f0   :  { %v10072_v30 = vpop.f32.mrb[44].mxu0  ;;  %v10094_v49 = vpop.f32.mrb[60].mxu1 }
0x11f1   :  { %v10073_v32 = vpop.f32.mrb[45].mxu0  ;;  %v10095_v33 = vpop.f32.mrb[61].mxu1 }
0x11f2   :  { %v10074_v2 = vadd.f32 %v10073_v32, %v10072_v30  ;;  %v10096_v3 = vadd.f32 %v10095_v33, %v10094_v49  ;;  %v10075_v19 = vpop.f32.mrb[46].mxu0  ;;  %v10097_v9 = vpop.f32.mrb[62].mxu1  ;;  %v9629_v30 = vld [vmem:[#allocation31 + $0x2] ss:$0 sm:$0xff] }
0x11f3   :  { %v10076_v8 = vpop.f32.mrb[47].mxu0  ;;  %v10098_v6 = vpop.f32.mrb[63].mxu1 }
0x11f4   :  { %v6140_v35 = vadd.f32 %v10096_v3, %v10074_v2  ;;  %v9644_v6 = vld [vmem:[%s13172_s23 + $0x2] ss:$0 sm:$0xff] }
0x11f6   :  { %v6153_v40 = vadd.f32 %v9595_v24, %v6140_v35 }
0x11f8   :  { %v6154_v53 = vmax.f32 %v6153_v40, 0.0 }
0x11fa   :  { %v6155_v11 = vmul.f32 %v12862_v51, %v6154_v53 }
0x11fc   :  { %v6156_v22 = vadd.f32 %v12865_v12, %v6155_v11 }
0x11fe   :  { %v6174_v26 = vpack.c.bf16 %v6156_v22, %v6156_v22 }
0x1200   :  { %10375 = vmatmul.mubr.bf16.vlgmr.msra.gmra.mrb[48].mxu0 %v6174_v26 }
0x12d3   :  { %v6265_v18 = vpop.f32.mrb[48].mxu0 }
0x12d4   :  { %v6266_v39 = vadd.f32 %v9612_v54, %v6265_v18  ;;  %v10376_v13 = vpop.f32.mrb[49].mxu0 }
0x12d5   :  { %v6268_v46 = vpop.f32.mrb[50].mxu0  ;;  %v11013_v13 = vld [vmem:[#allocation34 + $0x204] ss:$8 sps:$4 sm:$0xff]  }
0x12d6   :  { %v6271_v55 = vmax.f32 %v6266_v39, 0.0  ;;  %v10377_v48 = vpop.f32.mrb[51].mxu0  ;;  %v11011_v39 = vld [vmem:[#allocation34 + $0x200] ss:$8 sps:$4 sm:$0xff]   ;;  %6701 = vmatprep.subr.bf16.mxu0 %v11013_v13 }
0x12d7   :  { %v11014_v46 = vld [vmem:[#allocation33 + $0x200] ss:$8 sps:$4 sm:$0xff]   ;;  %v11019_v48 = vld [vmem:[#allocation34 + $0x214] ss:$8 sps:$4 sm:$0xff]   ;;  %6702 = vmatpush1.bf16.msra.mxu0 %v11011_v39  ;;  %v11064_v39 = vld [vmem:[#allocation33 + $0x284] ss:$8 sps:$4 sm:$0xff]  }
0x12d8   :  { %v6272_v20 = vmul.f32 %v12874_v50, %v6271_v55  ;;  %v11016_v55 = vld [vmem:[#allocation33 + $0x204] ss:$8 sps:$4 sm:$0xff]   ;;  %6703 = vmatprep.subr.bf16.mxu0 %v11019_v48  ;;  %v11059_v13 = vld [vmem:[#allocation34 + $0x280] ss:$8 sps:$4 sm:$0xff]   ;;  %v11070_v48 = vld [vmem:[#allocation33 + $0x294] ss:$8 sps:$4 sm:$0xff]  }
0x12da   :  { %v6273_v56 = vadd.f32 %v12877_v52, %v6272_v20  ;;  %v11022_v20 = vld [vmem:[#allocation33 + $0x214] ss:$8 sps:$4 sm:$0xff]  }
0x12dc   :  { %v6283_v63 = vpack.c.bf16 %v6273_v56, %v6273_v56  ;;  %v11017_v56 = vld [vmem:[#allocation34 + $0x210] ss:$8 sps:$4 sm:$0xff]  }
0x12dd   :  { %6704 = vmatpush1.bf16.msra.mxu0 %v11017_v56  ;;  %v11068_v56 = vld [vmem:[#allocation33 + $0x290] ss:$8 sps:$4 sm:$0xff]  }
0x12de   :  { %10387 = vmatmul.mubr.msk.bf16.vlgmr.msra.gmra.mrb[64].mxu1 %vm3997_vm3, %v6283_v63  ;;  %v11025_v63 = vld [vmem:[#allocation34 + $0x224] ss:$8 sps:$4 sm:$0xff]  }
0x12df   :  { %10391 = vmatpush3.bf16.msra.mxu1 %v11007_v21  ;;  %10398 = vmatprep.mubr.msk.bf16.mxu1 %vm11980_vm2, %v11979_v47  ;;  %v11020_v21 = vld [vmem:[#allocation33 + $0x210] ss:$8 sps:$4 sm:$0xff]  }
0x12e0   :  { %10392 = vmatprep.subr.bf16.mxu1 %v11979_v47  ;;  %6705 = vmatprep.subr.bf16.mxu0 %v11025_v63  ;;  %v11076_v63 = vld [vmem:[#allocation33 + $0x2a4] ss:$8 sps:$4 sm:$0xff]  }
0x12e3   :  { %10393 = vmatpush3.bf16.msra.mxu1 %v11008_v23  ;;  %v11028_v23 = vld [vmem:[#allocation33 + $0x224] ss:$8 sps:$4 sm:$0xff]  }
0x12e4   :  { %10394 = vmatprep.subr.bf16.mxu1 %v11979_v47 }
0x12e7   :  { %10395 = vmatpush3.bf16.msra.mxu1 %v11009_v59  ;;  %v11023_v59 = vld [vmem:[#allocation34 + $0x220] ss:$8 sps:$4 sm:$0xff]  }
0x12e8   :  { %10396 = vmatprep.subr.bf16.mxu1 %v11979_v47  ;;  %6706 = vmatpush1.bf16.msra.mxu0 %v11023_v59  ;;  %v11074_v59 = vld [vmem:[#allocation33 + $0x2a0] ss:$8 sps:$4 sm:$0xff]  }
0x12eb   :  { %10397 = vmatpush3.bf16.msra.mxu1 %v11010_v36  ;;  %v11026_v36 = vld [vmem:[#allocation33 + $0x220] ss:$8 sps:$4 sm:$0xff]  }
0x12ec   :  { %6902 = vmatprep.subr.bf16.mxu1 %v11016_v55  ;;  %v11067_v55 = vld [vmem:[#allocation34 + $0x294] ss:$8 sps:$4 sm:$0xff]  }
0x13b1   :  { %v6353_v49 = vpop.f32.mrb[64].mxu1 }
0x13b2   :  { %v6354_v32 = vadd.f32 %v9629_v30, %v6353_v49  ;;  %v10388_v33 = vpop.f32.mrb[65].mxu1  ;;  %v11031_v30 = vld [vmem:[#allocation34 + $0x234] ss:$8 sps:$4 sm:$0xff]  }
0x13b3   :  { %v6356_v2 = vpop.f32.mrb[66].mxu1  ;;  %v11034_v49 = vld [vmem:[#allocation33 + $0x234] ss:$8 sps:$4 sm:$0xff]   ;;  %6707 = vmatprep.subr.bf16.mxu0 %v11031_v30  ;;  %v11032_v33 = vld [vmem:[#allocation33 + $0x230] ss:$8 sps:$4 sm:$0xff]  }
0x13b4   :  { %v6359_v3 = vmax.f32 %v6354_v32, 0.0  ;;  %v10389_v19 = vpop.f32.mrb[67].mxu1  ;;  %v11029_v32 = vld [vmem:[#allocation34 + $0x230] ss:$8 sps:$4 sm:$0xff]   ;;  %v11037_v2 = vld [vmem:[#allocation34 + $0x244] ss:$8 sps:$4 sm:$0xff]  }
0x13b5   :  { %6708 = vmatpush1.bf16.msra.mxu0 %v11029_v32  ;;  %v11035_v19 = vld [vmem:[#allocation34 + $0x240] ss:$8 sps:$4 sm:$0xff]   ;;  %v11082_v30 = vld [vmem:[#allocation33 + $0x2b4] ss:$8 sps:$4 sm:$0xff]   ;;  %v11080_v32 = vld [vmem:[#allocation33 + $0x2b0] ss:$8 sps:$4 sm:$0xff]  }
0x13b6   :  { %v6360_v9 = vmul.f32 %v12874_v50, %v6359_v3  ;;  %v11040_v3 = vld [vmem:[#allocation33 + $0x244] ss:$8 sps:$4 sm:$0xff]   ;;  %6709 = vmatprep.subr.bf16.mxu0 %v11037_v2 }
0x13b7   :  { %v11088_v2 = vld [vmem:[#allocation33 + $0x2c4] ss:$8 sps:$4 sm:$0xff]  }
0x13b8   :  { %v6361_v24 = vadd.f32 %v12877_v52, %v6360_v9  ;;  %v11038_v9 = vld [vmem:[#allocation33 + $0x240] ss:$8 sps:$4 sm:$0xff]  }
0x13b9   :  { %6710 = vmatpush1.bf16.msra.mxu0 %v11035_v19  ;;  %v11086_v19 = vld [vmem:[#allocation33 + $0x2c0] ss:$8 sps:$4 sm:$0xff]  }
0x13ba   :  { %v6371_v8 = vpack.c.bf16 %v6361_v24, %v6361_v24  ;;  %v11043_v24 = vld [vmem:[#allocation34 + $0x254] ss:$8 sps:$4 sm:$0xff]  }
0x13bb   :  { %6711 = vmatprep.subr.bf16.mxu0 %v11043_v24  ;;  %v11094_v24 = vld [vmem:[#allocation33 + $0x2d4] ss:$8 sps:$4 sm:$0xff]  }
0x13bc   :  { %10399 = vmatmul.mubr.msk.bf16.vlgmr.msra.gmra.mrb[68].mxu1 %vm3997_vm3, %v6371_v8  ;;  %v11046_v8 = vld [vmem:[#allocation33 + $0x254] ss:$8 sps:$4 sm:$0xff]  }
0x13bd   :  { %6903 = vmatpush1.bf16.msra.mxu1 %v11014_v46  ;;  %v11062_v46 = vld [vmem:[#allocation33 + $0x280] ss:$8 sps:$4 sm:$0xff]  }
0x13be   :  { %6904 = vmatprep.subr.bf16.mxu1 %v11022_v20  ;;  %v11065_v20 = vld [vmem:[#allocation34 + $0x290] ss:$8 sps:$4 sm:$0xff]  }
0x13c1   :  { %6905 = vmatpush1.bf16.msra.mxu1 %v11020_v21  ;;  %v11073_v21 = vld [vmem:[#allocation34 + $0x2a4] ss:$8 sps:$4 sm:$0xff]  }
0x13c2   :  { %6906 = vmatprep.subr.bf16.mxu1 %v11028_v23  ;;  %v11071_v23 = vld [vmem:[#allocation34 + $0x2a0] ss:$8 sps:$4 sm:$0xff]  }
0x13c5   :  { %6907 = vmatpush1.bf16.msra.mxu1 %v11026_v36  ;;  %v11079_v36 = vld [vmem:[#allocation34 + $0x2b4] ss:$8 sps:$4 sm:$0xff]  }
0x13c6   :  { %6908 = vmatprep.subr.bf16.mxu1 %v11034_v49  ;;  %v11077_v49 = vld [vmem:[#allocation34 + $0x2b0] ss:$8 sps:$4 sm:$0xff]  }
0x13c9   :  { %6909 = vmatpush1.bf16.msra.mxu1 %v11032_v33  ;;  %v11085_v33 = vld [vmem:[#allocation34 + $0x2c4] ss:$8 sps:$4 sm:$0xff]  }
0x13ca   :  { %6910 = vmatprep.subr.bf16.mxu1 %v11040_v3  ;;  %v11083_v3 = vld [vmem:[#allocation34 + $0x2c0] ss:$8 sps:$4 sm:$0xff]  }
0x13cd   :  { %6911 = vmatpush1.bf16.msra.mxu1 %v11038_v9  ;;  %v11091_v9 = vld [vmem:[#allocation34 + $0x2d4] ss:$8 sps:$4 sm:$0xff]  }
0x13ce   :  { %6912 = vmatprep.subr.bf16.mxu1 %v11046_v8  ;;  %v11089_v8 = vld [vmem:[#allocation34 + $0x2d0] ss:$8 sps:$4 sm:$0xff]  }
0x148f   :  { %v6441_v35 = vpop.f32.mrb[68].mxu1 }
0x1490   :  { %v6442_v40 = vadd.f32 %v9644_v6, %v6441_v35  ;;  %v10400_v53 = vpop.f32.mrb[69].mxu1  ;;  %v11041_v6 = vld [vmem:[#allocation34 + $0x250] ss:$8 sps:$4 sm:$0xff]  }
0x1491   :  { %v6444_v11 = vpop.f32.mrb[70].mxu1  ;;  %v11044_v35 = vld [vmem:[#allocation33 + $0x250] ss:$8 sps:$4 sm:$0xff]   ;;  %v11052_v53 = vld [vmem:[#allocation33 + $0x264] ss:$8 sps:$4 sm:$0xff]   ;;  %6712 = vmatpush1.bf16.msra.mxu0 %v11041_v6 }
0x1492   :  { %v10401_v22 = vpop.f32.mrb[71].mxu1  ;;  %v6447_v26 = vsel %vm4127_vm4, %v6442_v40, -inf  ;;  %v11047_v11 = vld [vmem:[#allocation34 + $0x260] ss:$8 sps:$4 sm:$0xff]   ;;  %6913 = vmatpush1.bf16.msra.mxu1 %v11044_v35  ;;  %v11092_v6 = vld [vmem:[#allocation33 + $0x2d0] ss:$8 sps:$4 sm:$0xff]  }
0x1493   :  { %6448 = vmax.xlane.f32.xlu0 %v6447_v26  ;;  %v11050_v22 = vld [vmem:[#allocation33 + $0x260] ss:$8 sps:$4 sm:$0xff]   ;;  %v11055_v26 = vld [vmem:[#allocation34 + $0x274] ss:$8 sps:$4 sm:$0xff]   ;;  %6914 = vmatprep.subr.bf16.mxu1 %v11052_v53  ;;  %v11097_v35 = vld [vmem:[#allocation34 + $0x2e4] ss:$8 sps:$4 sm:$0xff]  }
0x1494   :  { %v11095_v53 = vld [vmem:[#allocation34 + $0x2e0] ss:$8 sps:$4 sm:$0xff]  }
0x1496   :  { %6915 = vmatpush1.bf16.msra.mxu1 %v11050_v22 }
0x1520   :  { %v6449_v62 = vpop.xlane.xlu0 %6448 }
0x1521   :  { %v6450_v58 = vsub.f32 %v6442_v40, %v6449_v62  ;;  %v11049_v40 = vld [vmem:[#allocation34 + $0x264] ss:$8 sps:$4 sm:$0xff]   ;;  %v11058_v62 = vld [vmem:[#allocation33 + $0x274] ss:$8 sps:$4 sm:$0xff]  }
0x1522   :  { %6713 = vmatprep.subr.bf16.mxu0 %v11049_v40  ;;  %6916 = vmatprep.subr.bf16.mxu1 %v11058_v62  ;;  %v11100_v40 = vld [vmem:[#allocation33 + $0x2e4] ss:$8 sps:$4 sm:$0xff]  }
0x1523   :  { %v6451_v45 = vmul.f32 1.442695, %v6450_v58  ;;  %6714 = vmatpush1.bf16.msra.mxu0 %v11047_v11  ;;  %v11053_v58 = vld [vmem:[#allocation34 + $0x270] ss:$8 sps:$4 sm:$0xff]   ;;  %v11098_v11 = vld [vmem:[#allocation33 + $0x2e0] ss:$8 sps:$4 sm:$0xff]  }
0x1524   :  { %6715 = vmatprep.subr.bf16.mxu0 %v11055_v26 }
0x1525   :  { %11323 = vpow2.f32 %v6451_v45  ;;  %v11056_v45 = vld [vmem:[#allocation33 + $0x270] ss:$8 sps:$4 sm:$0xff]  }
0x1526   :  { %6917 = vmatpush1.bf16.msra.mxu1 %v11056_v45  ;;  %v11106_v45 = vld [vmem:[#allocation33 + $0x2f4] ss:$8 sps:$4 sm:$0xff]  }
0x1527   :  { %6716 = vmatpush1.bf16.msra.mxu0 %v11053_v58  ;;  %6918 = vmatprep.subr.bf16.mxu1 %v11064_v39  ;;  %v11103_v58 = vld [vmem:[#allocation34 + $0x2f4] ss:$8 sps:$4 sm:$0xff]   ;;  %v11104_v39 = vld [vmem:[#allocation33 + $0x2f0] ss:$8 sps:$4 sm:$0xff]  }
0x152a   :  { %6919 = vmatpush1.bf16.msra.mxu1 %v11062_v46  ;;  %v11108_v46 = vld [vmem:[#allocation25 + $0x1c0] sm:$0xff]  }
0x152b   :  { %6920 = vmatprep.subr.bf16.mxu1 %v11070_v48 }
0x152e   :  { %6921 = vmatpush1.bf16.msra.mxu1 %v11068_v56 }
0x152f   :  { %v12895_v54 = vpop.eup %11323  ;;  %6922 = vmatprep.subr.bf16.mxu1 %v11076_v63 }
0x1530   :  { %v6453_v18 = vsel %vm4127_vm4, %v12895_v54, 0.0 }
0x1531   :  { %6454 = vadd.xlane.f32.xlu1 %v6453_v18  ;;  %v11061_v18 = vld [vmem:[#allocation34 + $0x284] ss:$8 sps:$4 sm:$0xff]  }
0x1532   :  { %6717 = vmatprep.subr.bf16.mxu0 %v11061_v18  ;;  %6923 = vmatpush1.bf16.msra.mxu1 %v11074_v59  ;;  %v11101_v18 = vld [vmem:[#allocation34 + $0x2f0] ss:$8 sps:$4 sm:$0xff]  }
0x1533   :  { %6718 = vmatpush1.bf16.msra.mxu0 %v11059_v13  ;;  %6924 = vmatprep.subr.bf16.mxu1 %v11082_v30  ;;  %v11107_v13 = vld [vmem:[#allocation27 + $0x1c0] sm:$0xff]  }
0x1534   :  { %6719 = vmatprep.subr.bf16.mxu0 %v11067_v55  ;;  %v1537_v55 = vsub.s32 7, %v12313_v4 }
0x1536   :  { %6925 = vmatpush1.bf16.msra.mxu1 %v11080_v32  ;;  %v1538_v48 = vrot.slane %v12793_v41, %v1537_v55  ;;  %v2393_v63 = vrot.slane %v12801_v60, %v1537_v55 }
0x1537   :  { %6720 = vmatpush1.bf16.msra.mxu0 %v11065_v20  ;;  %6926 = vmatprep.subr.bf16.mxu1 %v11088_v2 }
0x1538   :  { %6721 = vmatprep.subr.bf16.mxu0 %v11073_v21  ;;  %v2347_v20 = vadd.f32 %v12577_v38, %v1538_v48 }
0x153a   :  { %6927 = vmatpush1.bf16.msra.mxu1 %v11086_v19  ;;  %v2360_v21 = vmax.f32 %v2347_v20, 0.0  ;;  %v11124_v20 = vld [vmem:[#allocation25 + $0x1e0] sm:$0xff]  }
0x153b   :  { %6722 = vmatpush1.bf16.msra.mxu0 %v11071_v23  ;;  %6928 = vmatprep.subr.bf16.mxu1 %v11094_v24 }
0x153c   :  { %6723 = vmatprep.subr.bf16.mxu0 %v11079_v36  ;;  %v2409_v59 = vmul.f32 %v2393_v63, %v2360_v21  ;;  %v2442_v36 = vrot.slane %v12804_v1, %v1537_v55 }
0x153e   :  { %6929 = vmatpush1.bf16.msra.mxu1 %v11092_v6  ;;  %v12911_v19 = vadd.f32 %v2442_v36, %v2409_v59  ;;  %v11128_v59 = vld [vmem:[#allocation25 + $0x1e8] sm:$0xff]  }
0x153f   :  { %6724 = vmatpush1.bf16.msra.mxu0 %v11077_v49  ;;  %6930 = vmatprep.subr.bf16.mxu1 %v11100_v40  ;;  %v11110_v40 = vld [vmem:[#allocation25 + $0x180] sm:$0xff]  }
0x1540   :  { %6725 = vmatprep.subr.bf16.mxu0 %v11085_v33 }
0x1542   :  { %6931 = vmatpush1.bf16.msra.mxu1 %v11098_v11  ;;  %v11114_v11 = vld [vmem:[#allocation25 + $0x188] sm:$0xff]  }
0x1543   :  { %6726 = vmatpush1.bf16.msra.mxu0 %v11083_v3  ;;  %6932 = vmatprep.subr.bf16.mxu1 %v11106_v45  ;;  %v1533_v45 = vsub.s32 6, %v12313_v4  ;;  %v11126_v4 = vld [vmem:[#allocation25 + $0x1a0] sm:$0xff]  }
0x1544   :  { %6727 = vmatprep.subr.bf16.mxu0 %v11091_v9 }
0x1545   :  { %v2616_v48 = vrot.slane %v12796_v17, %v1533_v45 }
0x1546   :  { %6933 = vmatpush1.bf16.msra.mxu1 %v11104_v39  ;;  %v11120_v39 = vld [vmem:[#allocation25 + $0x1d8] sm:$0xff]  }
0x1547   :  { %6728 = vmatpush1.bf16.msra.mxu0 %v11089_v8  ;;  %10141 = vmatprep.subr.bf16.mxu1 %v11108_v46  ;;  %v11122_v46 = vld [vmem:[#allocation25 + $0x198] sm:$0xff]  }
0x1548   :  { %6729 = vmatprep.subr.bf16.mxu0 %v11097_v35  ;;  %v11109_v35 = vld [vmem:[#allocation27 + $0x180] sm:$0xff]  }
0x154b   :  { %6730 = vmatpush1.bf16.msra.mxu0 %v11095_v53  ;;  %v11111_v53 = vld [vmem:[#allocation27 + $0x1c8] sm:$0xff]  }
0x154c   :  { %6731 = vmatprep.subr.bf16.mxu0 %v11103_v58  ;;  %v11118_v58 = vld [vmem:[#allocation25 + $0x190] sm:$0xff]  }
0x154f   :  { %6732 = vmatpush1.bf16.msra.mxu0 %v11101_v18  ;;  %v11119_v18 = vld [vmem:[#allocation27 + $0x1d8] sm:$0xff]  }
0x1550   :  { %10119 = vmatprep.subr.bf16.mxu0 %v11107_v13  ;;  %v11121_v13 = vld [vmem:[#allocation27 + $0x198] sm:$0xff]  }
0x15be   :  { %v6455_v22 = vpop.xlane.xlu1 %6454 }
0x15bf   :  { %11325 = vrcp.f32 %v6455_v22  ;;  %v11115_v22 = vld [vmem:[#allocation27 + $0x1d0] sm:$0xff]  }
0x15c9   :  { %v11326_v26 = vpop.eup %11325 }
0x15ca   :  { %v6457_v62 = vmul.f32 %v11326_v26, %v12895_v54  ;;  %v2620_v54 = vrot.slane %v12796_v17, %v1537_v55  ;;  %v11116_v26 = vld [vmem:[#allocation25 + $0x1d0] sm:$0xff]   ;;  %v1534_v55 = vrot.slane %v12793_v41, %v1533_v45  ;;  %v11129_v41 = vld [vmem:[#allocation27 + $0x1a8] sm:$0xff]  }
0x15cb   :  { %v11130_v17 = vld [vmem:[#allocation25 + $0x1a8] sm:$0xff]  }
0x15cc   :  { %6501 = vperm.xlu1 %10527, %v6457_v62   ;;  %6460 = vperm.xlu0 %10528, %v6457_v62   ;;  %v3435_v56 = vadd.f32 %v12630_v42, %v2620_v54  ;;  %v11117_v62 = vld [vmem:[#allocation27 + $0x190] sm:$0xff]   ;;  %v11123_v54 = vld [vmem:[#allocation27 + $0x1e0] sm:$0xff]   ;;  %v2345_v21 = vadd.f32 %v12573_v7, %v1534_v55 }
0x15cd   :  { %v11133_v7 = vld [vmem:[#allocation27 + $0x1b0] sm:$0xff]  }
0x15ce   :  { %v3446_v23 = vmax.f32 %v3435_v56, 0.0  ;;  %v11125_v56 = vld [vmem:[#allocation27 + $0x1a0] sm:$0xff]  }
0x15d0   :  { %v3454_v30 = vmul.f32 %v3446_v23, %v2393_v63  ;;  %v3433_v63 = vadd.f32 %v12626_v37, %v2616_v48  ;;  %v11127_v23 = vld [vmem:[#allocation27 + $0x1e8] sm:$0xff]   ;;  %v11134_v37 = vld [vmem:[#allocation25 + $0x1b0] sm:$0xff]  }
0x15d2   :  { %v12913_v42 = vadd.f32 %v3454_v30, %v2442_v36  ;;  %v2359_v36 = vmax.f32 %v2345_v21, 0.0  ;;  %v2389_v30 = vrot.slane %v12801_v60, %v1533_v45  ;;  %v11137_v60 = vld [vmem:[#allocation27 + $0x1b8] sm:$0xff]  }
0x164b   :  { %v6502_v49 = vpop.permute.xlu1 %6501  ;;  %v6461_v32 = vpop.permute.xlu0 %6460 }
0x164c   :  { %v6504_v33 = vmul.f32 %v6502_v49, %v12828_v29  ;;  %v6505_v2 = vmul.f32 %v6502_v49, %v12813_v10  ;;  %v6463_v3 = vmul.f32 %v6461_v32, %v12826_v27  ;;  %v6464_v38 = vmul.f32 %v6461_v32, %v12811_v14  ;;  %v11112_v29 = vld [vmem:[#allocation25 + $0x1c8] sm:$0xff]   ;;  %v11131_v32 = vld [vmem:[#allocation27 + $0x1f0] sm:$0xff]  }
0x164d   :  { %v7033_v10 = vpack.c.bf16 %v12913_v42, %v12913_v42  ;;  %v6998_v14 = vpack.c.bf16 %v12911_v19, %v12911_v19  ;;  %v11113_v27 = vld [vmem:[#allocation27 + $0x188] sm:$0xff]   ;;  %v3445_v49 = vmax.f32 %v3433_v63, 0.0 }
0x164e   :  { %v6539_v9 = vpack.c.bf16 %v6504_v33, %v6504_v33  ;;  %v6540_v24 = vpack.c.bf16 %v6505_v2, %v6505_v2  ;;  %v6498_v8 = vpack.c.bf16 %v6463_v3, %v6463_v3  ;;  %v6499_v6 = vpack.c.bf16 %v6464_v38, %v6464_v38  ;;  %v11132_v33 = vld [vmem:[#allocation25 + $0x1f0] sm:$0xff]  }
0x164f   :  { %v2408_v2 = vmul.f32 %v2389_v30, %v2359_v36  ;;  %v2438_v3 = vrot.slane %v12804_v1, %v1533_v45  ;;  %v3453_v38 = vmul.f32 %v3445_v49, %v2389_v30  ;;  %v9746_v36 = vld [vmem:[#allocation28 + $0x3] ss:$0 sm:$0xff] }
0x1650   :  { %6733 = vmatprep.mubr.bf16.mxu0 %v6540_v24  ;;  %6934 = vmatprep.mubr.bf16.mxu1 %v6499_v6  ;;  %v11136_v24 = vld [vmem:[#allocation25 + $0x1f8] sm:$0xff]  }
0x1651   :  { %6734 = vmatmul.mubr.bf16.vlgmr.msra.gmra.mrb[52].mxu0 %v6539_v9  ;;  %6935 = vmatmul.mubr.bf16.vlgmr.msra.gmra.mrb[72].mxu1 %v6498_v8  ;;  %v11135_v9 = vld [vmem:[#allocation27 + $0x1f8] sm:$0xff]   ;;  %v12926_v6 = vadd.f32 %v2438_v3, %v2408_v2 }
0x1652   :  { %10120 = vmatpush3.bf16.msra.mxu0 %v11109_v35  ;;  %10142 = vmatpush3.bf16.msra.mxu1 %v11110_v40  ;;  %v11138_v8 = vld [vmem:[#allocation25 + $0x1b8] sm:$0xff]   ;;  %v12928_v35 = vadd.f32 %v3453_v38, %v2438_v3 }
0x1653   :  { %7162 = vmatprep.mubr.bf16.mxu0 %v7033_v10  ;;  %7298 = vmatprep.mubr.bf16.mxu1 %v6998_v14  ;;  %v6997_v1 = vpack.c.bf16 %v12926_v6, %v12926_v6  ;;  %v11141_v10 = vld [vmem:[%s13168_s8 + $0xd0] sm:$0xff]   ;;  %v11142_v14 = vld [vmem:[%s13168_s8 + $0xd8] sm:$0xff]   ;;  %v11148_v38 = vld [vmem:[%s13169_s16 + $0x68] sm:$0xff]  }
0x1654   :  { %10121 = vmatprep.subr.bf16.mxu0 %v11111_v53  ;;  %10143 = vmatprep.subr.bf16.mxu1 %v11112_v29  ;;  %v7032_v40 = vpack.c.bf16 %v12928_v35, %v12928_v35  ;;  %v11139_v53 = vld [vmem:[%s13168_s8 + $0xc0] sm:$0xff]   ;;  %v11140_v29 = vld [vmem:[%s13168_s8 + $0xc8] sm:$0xff]  }
0x1656   :  { %10122 = vmatpush3.bf16.msra.mxu0 %v11113_v27  ;;  %10144 = vmatpush3.bf16.msra.mxu1 %v11114_v11  ;;  %v11143_v27 = vld [vmem:[%s13168_s8 + $0xe0] sm:$0xff]   ;;  %v11144_v11 = vld [vmem:[%s13168_s8 + $0xe8] sm:$0xff]  }
0x1657   :  { %10123 = vmatprep.subr.bf16.mxu0 %v11115_v22  ;;  %10145 = vmatprep.subr.bf16.mxu1 %v11116_v26  ;;  %v11145_v22 = vld [vmem:[%s13168_s8 + $0xf0] sm:$0xff]   ;;  %v11146_v26 = vld [vmem:[%s13168_s8 + $0xf8] sm:$0xff]  }
0x165a   :  { %10124 = vmatpush3.bf16.msra.mxu0 %v11117_v62  ;;  %10146 = vmatpush3.bf16.msra.mxu1 %v11118_v58  ;;  %v11147_v62 = vld [vmem:[%s13169_s16 + $0x60] sm:$0xff]  }
0x165b   :  { %10125 = vmatprep.subr.bf16.mxu0 %v11119_v18  ;;  %10147 = vmatprep.subr.bf16.mxu1 %v11120_v39 }
0x165e   :  { %10126 = vmatpush3.bf16.msra.mxu0 %v11121_v13  ;;  %10148 = vmatpush3.bf16.msra.mxu1 %v11122_v46 }
0x165f   :  { %10127 = vmatprep.subr.bf16.mxu0 %v11123_v54  ;;  %10149 = vmatprep.subr.bf16.mxu1 %v11124_v20 }
0x1662   :  { %10128 = vmatpush3.bf16.msra.mxu0 %v11125_v56  ;;  %10150 = vmatpush3.bf16.msra.mxu1 %v11126_v4 }
0x1663   :  { %10129 = vmatprep.subr.bf16.mxu0 %v11127_v23  ;;  %10151 = vmatprep.subr.bf16.mxu1 %v11128_v59 }
0x1666   :  { %10130 = vmatpush3.bf16.msra.mxu0 %v11129_v41  ;;  %10152 = vmatpush3.bf16.msra.mxu1 %v11130_v17 }
0x1667   :  { %10131 = vmatprep.subr.bf16.mxu0 %v11131_v32  ;;  %10153 = vmatprep.subr.bf16.mxu1 %v11132_v33 }
0x166a   :  { %10132 = vmatpush3.bf16.msra.mxu0 %v11133_v7  ;;  %10154 = vmatpush3.bf16.msra.mxu1 %v11134_v37 }
0x166b   :  { %10133 = vmatprep.subr.bf16.mxu0 %v11135_v9  ;;  %10155 = vmatprep.subr.bf16.mxu1 %v11136_v24  ;;  %v11149_v9 = vld [vmem:[%s13169_s16 + $0x70] sm:$0xff]   ;;  %v11150_v24 = vld [vmem:[%s13169_s16 + $0x78] sm:$0xff]  }
0x166e   :  { %10134 = vmatpush3.bf16.msra.mxu0 %v11137_v60  ;;  %10156 = vmatpush3.bf16.msra.mxu1 %v11138_v8  ;;  %v9763_v60 = vld [vmem:[#allocation30 + $0x3] ss:$0 sm:$0xff] }
0x166f   :  { %10402 = vmatprep.subr.bf16.mxu0 %v11979_v47  ;;  %10422 = vmatprep.subr.bf16.mxu1 %v11979_v47 }
0x1671   :  { %7163 = vmatmul.mubr.bf16.vlgmr.msra.gmra.mrb[56].mxu0 %v7032_v40  ;;  %7299 = vmatmul.mubr.bf16.vlgmr.msra.gmra.mrb[76].mxu1 %v6997_v1 }
0x1672   :  { %10418 = vmatprep.mubr.msk.bf16.mxu0 %vm11980_vm2, %v11979_v47  ;;  %10430 = vmatprep.mubr.msk.bf16.mxu1 %vm11980_vm2, %v11979_v47 }
0x1673   :  { %10403 = vmatpush3.bf16.msra.mxu0 %v11139_v53  ;;  %10423 = vmatpush3.bf16.msra.mxu1 %v11147_v62  ;;  %v9780_v62 = vld [vmem:[#allocation31 + $0x3] ss:$0 sm:$0xff] }
0x1674   :  { %10404 = vmatprep.subr.bf16.mxu0 %v11979_v47  ;;  %10424 = vmatprep.subr.bf16.mxu1 %v11979_v47 }
0x1677   :  { %10405 = vmatpush3.bf16.msra.mxu0 %v11140_v29  ;;  %10425 = vmatpush3.bf16.msra.mxu1 %v11148_v38  ;;  %v11164_v38 = vld [vmem:[#allocation33 + $0x310] ss:$8 sps:$4 sm:$0xff]  }
0x1678   :  { %10406 = vmatprep.subr.bf16.mxu0 %v11979_v47  ;;  %10426 = vmatprep.subr.bf16.mxu1 %v11979_v47 }
0x167b   :  { %10407 = vmatpush3.bf16.msra.mxu0 %v11141_v10  ;;  %10427 = vmatpush3.bf16.msra.mxu1 %v11149_v9  ;;  %v11169_v9 = vld [vmem:[#allocation34 + $0x324] ss:$8 sps:$4 sm:$0xff]  }
0x167c   :  { %10408 = vmatprep.subr.bf16.mxu0 %v11979_v47  ;;  %10428 = vmatprep.subr.bf16.mxu1 %v11979_v47 }
0x167f   :  { %10409 = vmatpush3.bf16.msra.mxu0 %v11142_v14  ;;  %10429 = vmatpush3.bf16.msra.mxu1 %v11150_v24  ;;  %v11151_v14 = vld [vmem:[%s13171_s22 + $0x60] sm:$0xff]  }
0x1680   :  { %10410 = vmatprep.subr.bf16.mxu0 %v11979_v47  ;;  %10434 = vmatprep.subr.bf16.mxu1 %v11979_v47  ;;  %v11172_v24 = vld [vmem:[#allocation33 + $0x324] ss:$8 sps:$4 sm:$0xff]  }
0x1683   :  { %10411 = vmatpush3.bf16.msra.mxu0 %v11143_v27 }
0x1684   :  { %10412 = vmatprep.subr.bf16.mxu0 %v11979_v47 }
0x1687   :  { %10413 = vmatpush3.bf16.msra.mxu0 %v11144_v11  ;;  %v11152_v11 = vld [vmem:[%s13171_s22 + $0x68] sm:$0xff]  }
0x1688   :  { %10414 = vmatprep.subr.bf16.mxu0 %v11979_v47 }
0x168b   :  { %10415 = vmatpush3.bf16.msra.mxu0 %v11145_v22  ;;  %v11153_v22 = vld [vmem:[%s13171_s22 + $0x70] sm:$0xff]  }
0x168c   :  { %10416 = vmatprep.subr.bf16.mxu0 %v11979_v47 }
0x168f   :  { %10417 = vmatpush3.bf16.msra.mxu0 %v11146_v26  ;;  %v11154_v26 = vld [vmem:[%s13171_s22 + $0x78] sm:$0xff]  }
0x1724   :  { %v6735_v58 = vpop.f32.mrb[52].mxu0  ;;  %v6936_v45 = vpop.f32.mrb[72].mxu1 }
0x1725   :  { %v12957_v18 = vadd.f32 %v6936_v45, %v6735_v58  ;;  %v6737_v39 = vpop.f32.mrb[53].mxu0  ;;  %v6938_v13 = vpop.f32.mrb[73].mxu1 }
0x1726   :  { %v12959_v46 = vadd.f32 %v6938_v13, %v6737_v39  ;;  %v6739_v55 = vpop.f32.mrb[54].mxu0  ;;  %v6940_v48 = vpop.f32.mrb[74].mxu1 }
0x1727   :  { %v6740_v54 = vpop.f32.mrb[55].mxu0  ;;  %v6941_v20 = vpop.f32.mrb[75].mxu1 }
0x1744   :  { %v10135_v56 = vpop.f32.mrb[56].mxu0  ;;  %v10157_v4 = vpop.f32.mrb[76].mxu1 }
0x1745   :  { %v10136_v21 = vpop.f32.mrb[57].mxu0  ;;  %v10158_v63 = vpop.f32.mrb[77].mxu1 }
0x1746   :  { %v10137_v23 = vadd.f32 %v10136_v21, %v10135_v56  ;;  %v10159_v59 = vadd.f32 %v10158_v63, %v10157_v4  ;;  %v10138_v41 = vpop.f32.mrb[58].mxu0  ;;  %v10160_v17 = vpop.f32.mrb[78].mxu1  ;;  %v9795_v4 = vld [vmem:[%s13172_s23 + $0x3] ss:$0 sm:$0xff] }
0x1747   :  { %v10139_v30 = vpop.f32.mrb[59].mxu0  ;;  %v10161_v49 = vpop.f32.mrb[79].mxu1 }
0x1748   :  { %v7301_v32 = vadd.f32 %v10159_v59, %v10137_v23 }
0x174a   :  { %v7314_v33 = vadd.f32 %v9746_v36, %v7301_v32  ;;  %v11157_v32 = vld [vmem:[#allocation34 + $0x304] ss:$8 sps:$4 sm:$0xff]  }
0x174b   :  { %7862 = vmatprep.subr.bf16.mxu0 %v11157_v32  ;;  %v11221_v32 = vld [vmem:[#allocation34 + $0x3b0] ss:$8 sps:$4 sm:$0xff]  }
0x174c   :  { %v7315_v7 = vmax.f32 %v7314_v33, 0.0  ;;  %v11158_v33 = vld [vmem:[#allocation33 + $0x300] ss:$8 sps:$4 sm:$0xff]  }
0x174e   :  { %v7316_v37 = vmul.f32 %v12862_v51, %v7315_v7  ;;  %v11160_v7 = vld [vmem:[#allocation33 + $0x304] ss:$8 sps:$4 sm:$0xff]  }
0x1750   :  { %v7317_v2 = vadd.f32 %v12865_v12, %v7316_v37  ;;  %v11163_v37 = vld [vmem:[#allocation34 + $0x314] ss:$8 sps:$4 sm:$0xff]  }
0x1752   :  { %v7335_v3 = vpack.c.bf16 %v7317_v2, %v7317_v2  ;;  %v11166_v2 = vld [vmem:[#allocation33 + $0x314] ss:$8 sps:$4 sm:$0xff]  }
0x1754   :  { %10419 = vmatmul.mubr.bf16.vlgmr.msra.gmra.mrb[60].mxu0 %v7335_v3  ;;  %v11161_v3 = vld [vmem:[#allocation34 + $0x310] ss:$8 sps:$4 sm:$0xff]  }
0x1827   :  { %v7426_v51 = vpop.f32.mrb[60].mxu0 }
0x1828   :  { %v7427_v8 = vadd.f32 %v9763_v60, %v7426_v51  ;;  %v10420_v12 = vpop.f32.mrb[61].mxu0  ;;  %v11167_v60 = vld [vmem:[#allocation34 + $0x320] ss:$8 sps:$4 sm:$0xff]  }
0x1829   :  { %v7429_v1 = vpop.f32.mrb[62].mxu0  ;;  %v11170_v51 = vld [vmem:[#allocation33 + $0x320] ss:$8 sps:$4 sm:$0xff]   ;;  %v11178_v12 = vld [vmem:[#allocation33 + $0x334] ss:$8 sps:$4 sm:$0xff]  }
0x182a   :  { %v7432_v40 = vmax.f32 %v7427_v8, 0.0  ;;  %v10421_v53 = vpop.f32.mrb[63].mxu0  ;;  %v11175_v8 = vld [vmem:[#allocation34 + $0x334] ss:$8 sps:$4 sm:$0xff]   ;;  %v11173_v1 = vld [vmem:[#allocation34 + $0x330] ss:$8 sps:$4 sm:$0xff]  }
0x182b   :  { %v11181_v53 = vld [vmem:[#allocation34 + $0x344] ss:$8 sps:$4 sm:$0xff]  }
0x182c   :  { %v7433_v29 = vmul.f32 %v12874_v50, %v7432_v40  ;;  %v11176_v40 = vld [vmem:[#allocation33 + $0x330] ss:$8 sps:$4 sm:$0xff]  }
0x182e   :  { %v7434_v10 = vadd.f32 %v12877_v52, %v7433_v29  ;;  %v11184_v29 = vld [vmem:[#allocation33 + $0x344] ss:$8 sps:$4 sm:$0xff]  }
0x1830   :  { %v7444_v27 = vpack.c.bf16 %v7434_v10, %v7434_v10  ;;  %v11179_v10 = vld [vmem:[#allocation34 + $0x340] ss:$8 sps:$4 sm:$0xff]  }
0x1832   :  { %10431 = vmatmul.mubr.msk.bf16.vlgmr.msra.gmra.mrb[80].mxu1 %vm3997_vm3, %v7444_v27  ;;  %v11187_v27 = vld [vmem:[#allocation34 + $0x354] ss:$8 sps:$4 sm:$0xff]  }
0x1833   :  { %10435 = vmatpush3.bf16.msra.mxu1 %v11151_v14  ;;  %10442 = vmatprep.mubr.msk.bf16.mxu1 %vm11980_vm2, %v11979_v47  ;;  %v11182_v14 = vld [vmem:[#allocation33 + $0x340] ss:$8 sps:$4 sm:$0xff]  }
0x1834   :  { %10436 = vmatprep.subr.bf16.mxu1 %v11979_v47 }
0x1837   :  { %10437 = vmatpush3.bf16.msra.mxu1 %v11152_v11  ;;  %v11190_v11 = vld [vmem:[#allocation33 + $0x354] ss:$8 sps:$4 sm:$0xff]  }
0x1838   :  { %10438 = vmatprep.subr.bf16.mxu1 %v11979_v47 }
0x183b   :  { %10439 = vmatpush3.bf16.msra.mxu1 %v11153_v22  ;;  %v11185_v22 = vld [vmem:[#allocation34 + $0x350] ss:$8 sps:$4 sm:$0xff]  }
0x183c   :  { %10440 = vmatprep.subr.bf16.mxu1 %v11979_v47 }
0x183f   :  { %10441 = vmatpush3.bf16.msra.mxu1 %v11154_v26  ;;  %v11188_v26 = vld [vmem:[#allocation33 + $0x350] ss:$8 sps:$4 sm:$0xff]  }
0x1840   :  { %8063 = vmatprep.subr.bf16.mxu1 %v11160_v7  ;;  %v11229_v7 = vld [vmem:[#allocation34 + $0x3c4] ss:$8 sps:$4 sm:$0xff]  }
0x1905   :  { %v7514_v58 = vpop.f32.mrb[80].mxu1 }
0x1906   :  { %v7515_v45 = vadd.f32 %v9780_v62, %v7514_v58  ;;  %v10432_v39 = vpop.f32.mrb[81].mxu1  ;;  %v11193_v62 = vld [vmem:[#allocation34 + $0x364] ss:$8 sps:$4 sm:$0xff]  }
0x1907   :  { %v7517_v13 = vpop.f32.mrb[82].mxu1  ;;  %v11196_v58 = vld [vmem:[#allocation33 + $0x364] ss:$8 sps:$4 sm:$0xff]   ;;  %v11194_v39 = vld [vmem:[#allocation33 + $0x360] ss:$8 sps:$4 sm:$0xff]  }
0x1908   :  { %v7520_v55 = vmax.f32 %v7515_v45, 0.0  ;;  %v10433_v48 = vpop.f32.mrb[83].mxu1  ;;  %v11191_v45 = vld [vmem:[#allocation34 + $0x360] ss:$8 sps:$4 sm:$0xff]   ;;  %v11199_v13 = vld [vmem:[#allocation34 + $0x374] ss:$8 sps:$4 sm:$0xff]  }
0x1909   :  { %v11197_v48 = vld [vmem:[#allocation34 + $0x370] ss:$8 sps:$4 sm:$0xff]  }
0x190a   :  { %v7521_v54 = vmul.f32 %v12874_v50, %v7520_v55  ;;  %v11202_v55 = vld [vmem:[#allocation33 + $0x374] ss:$8 sps:$4 sm:$0xff]  }
0x190c   :  { %v7522_v20 = vadd.f32 %v12877_v52, %v7521_v54  ;;  %v11155_v52 = vld [vmem:[#allocation34 + $0x300] ss:$8 sps:$4 sm:$0xff]   ;;  %v11200_v54 = vld [vmem:[#allocation33 + $0x370] ss:$8 sps:$4 sm:$0xff]  }
0x190d   :  { %7863 = vmatpush1.bf16.msra.mxu0 %v11155_v52  ;;  %v11226_v52 = vld [vmem:[#allocation33 + $0x3b4] ss:$8 sps:$4 sm:$0xff]  }
0x190e   :  { %v7532_v56 = vpack.c.bf16 %v7522_v20, %v7522_v20  ;;  %7864 = vmatprep.subr.bf16.mxu0 %v11163_v37  ;;  %v11205_v20 = vld [vmem:[#allocation34 + $0x384] ss:$8 sps:$4 sm:$0xff]  }
0x190f   :  { %v11232_v37 = vld [vmem:[#allocation33 + $0x3c4] ss:$8 sps:$4 sm:$0xff]  }
0x1910   :  { %10443 = vmatmul.mubr.msk.bf16.vlgmr.msra.gmra.mrb[84].mxu1 %vm3997_vm3, %v7532_v56  ;;  %v11208_v56 = vld [vmem:[#allocation33 + $0x384] ss:$8 sps:$4 sm:$0xff]  }
0x1911   :  { %8064 = vmatpush1.bf16.msra.mxu1 %v11158_v33  ;;  %7865 = vmatpush1.bf16.msra.mxu0 %v11161_v3  ;;  %v11224_v33 = vld [vmem:[#allocation33 + $0x3b0] ss:$8 sps:$4 sm:$0xff]   ;;  %v11230_v3 = vld [vmem:[#allocation33 + $0x3c0] ss:$8 sps:$4 sm:$0xff]  }
0x1912   :  { %8065 = vmatprep.subr.bf16.mxu1 %v11166_v2  ;;  %7866 = vmatprep.subr.bf16.mxu0 %v11169_v9  ;;  %v11227_v2 = vld [vmem:[#allocation34 + $0x3c0] ss:$8 sps:$4 sm:$0xff]   ;;  %v11238_v9 = vld [vmem:[#allocation33 + $0x3d4] ss:$8 sps:$4 sm:$0xff]  }
0x1915   :  { %8066 = vmatpush1.bf16.msra.mxu1 %v11164_v38  ;;  %7867 = vmatpush1.bf16.msra.mxu0 %v11167_v60  ;;  %v11235_v38 = vld [vmem:[#allocation34 + $0x3d4] ss:$8 sps:$4 sm:$0xff]   ;;  %v11236_v60 = vld [vmem:[#allocation33 + $0x3d0] ss:$8 sps:$4 sm:$0xff]  }
0x1916   :  { %8067 = vmatprep.subr.bf16.mxu1 %v11172_v24  ;;  %7868 = vmatprep.subr.bf16.mxu0 %v11175_v8  ;;  %v11233_v24 = vld [vmem:[#allocation34 + $0x3d0] ss:$8 sps:$4 sm:$0xff]   ;;  %v11244_v8 = vld [vmem:[#allocation33 + $0x3e4] ss:$8 sps:$4 sm:$0xff]  }
0x1919   :  { %8068 = vmatpush1.bf16.msra.mxu1 %v11170_v51  ;;  %7869 = vmatpush1.bf16.msra.mxu0 %v11173_v1  ;;  %v11241_v51 = vld [vmem:[#allocation34 + $0x3e4] ss:$8 sps:$4 sm:$0xff]   ;;  %v11242_v1 = vld [vmem:[#allocation33 + $0x3e0] ss:$8 sps:$4 sm:$0xff]  }
0x191a   :  { %8069 = vmatprep.subr.bf16.mxu1 %v11178_v12  ;;  %7870 = vmatprep.subr.bf16.mxu0 %v11181_v53  ;;  %v11239_v12 = vld [vmem:[#allocation34 + $0x3e0] ss:$8 sps:$4 sm:$0xff]  }
0x191d   :  { %8070 = vmatpush1.bf16.msra.mxu1 %v11176_v40  ;;  %7871 = vmatpush1.bf16.msra.mxu0 %v11179_v10  ;;  %v11247_v10 = vld [vmem:[#allocation34 + $0x3f4] ss:$8 sps:$4 sm:$0xff]  }
0x191e   :  { %8071 = vmatprep.subr.bf16.mxu1 %v11184_v29  ;;  %7872 = vmatprep.subr.bf16.mxu0 %v11187_v27  ;;  %v11245_v27 = vld [vmem:[#allocation34 + $0x3f0] ss:$8 sps:$4 sm:$0xff]  }
0x1921   :  { %8072 = vmatpush1.bf16.msra.mxu1 %v11182_v14  ;;  %7873 = vmatpush1.bf16.msra.mxu0 %v11185_v22  ;;  %v11250_v14 = vld [vmem:[#allocation33 + $0x3f4] ss:$8 sps:$4 sm:$0xff]   ;;  %v11251_v22 = vld [vmem:[%s12156_s6 + $0x40] sm:$0xff]  }
0x1922   :  { %8073 = vmatprep.subr.bf16.mxu1 %v11190_v11  ;;  %7874 = vmatprep.subr.bf16.mxu0 %v11193_v62  ;;  %v11248_v11 = vld [vmem:[#allocation33 + $0x3f0] ss:$8 sps:$4 sm:$0xff]   ;;  %v12994_v62 = vld [vmem:[#allocation36] sm:$0x3] }
0x1925   :  { %8074 = vmatpush1.bf16.msra.mxu1 %v11188_v26  ;;  %7875 = vmatpush1.bf16.msra.mxu0 %v11191_v45  ;;  %v11252_v26 = vld [vmem:[%s12156_s6 + $0xc0] sm:$0xff]  }
0x1926   :  { %8075 = vmatprep.subr.bf16.mxu1 %v11196_v58  ;;  %7876 = vmatprep.subr.bf16.mxu0 %v11199_v13  ;;  %v12996_v58 = vld [vmem:[#allocation36 + $0x2] sm:$0x3] }
0x1927   :  { %v5792_v45 = vrot.slane %v12996_v58, %v12351_v16 }
0x1929   :  { %8076 = vmatpush1.bf16.msra.mxu1 %v11194_v39  ;;  %7877 = vmatpush1.bf16.msra.mxu0 %v11197_v48  ;;  %v5796_v13 = vadd.f32 %v5792_v45, %v12859_v57  ;;  %v11277_v45 = vld [vmem:[%s12156_s6 + $0x30] sm:$0xff]  }
0x192a   :  { %8077 = vmatprep.subr.bf16.mxu1 %v11202_v55  ;;  %7878 = vmatprep.subr.bf16.mxu0 %v11205_v20 }
0x192b   :  { %v5798_v48 = vmax.f32 %v5796_v13, 0.0 }
0x192d   :  { %8078 = vmatpush1.bf16.msra.mxu1 %v11200_v54  ;;  %v5800_v54 = vmul.f32 %v5798_v48, %v12418_v28  ;;  %v11280_v48 = vld [vmem:[%s12156_s6 + $0xf8] sm:$0xff]  }
0x192e   :  { %8079 = vmatprep.subr.bf16.mxu1 %v11208_v56 }
0x19e3   :  { %v7602_v21 = vpop.f32.mrb[84].mxu1 }
0x19e4   :  { %v7603_v63 = vadd.f32 %v9795_v4, %v7602_v21  ;;  %v10444_v47 = vpop.f32.mrb[85].mxu1  ;;  %v11203_v4 = vld [vmem:[#allocation34 + $0x380] ss:$8 sps:$4 sm:$0xff]  }
0x19e5   :  { %v7605_v23 = vpop.f32.mrb[86].mxu1  ;;  %v11206_v21 = vld [vmem:[#allocation33 + $0x380] ss:$8 sps:$4 sm:$0xff]   ;;  %v11214_v47 = vld [vmem:[#allocation33 + $0x394] ss:$8 sps:$4 sm:$0xff]   ;;  %7879 = vmatpush1.bf16.msra.mxu0 %v11203_v4 }
0x19e6   :  { %v10445_v59 = vpop.f32.mrb[87].mxu1  ;;  %v7608_v41 = vsel %vm4127_vm4, %v7603_v63, -inf  ;;  %v11209_v23 = vld [vmem:[#allocation34 + $0x390] ss:$8 sps:$4 sm:$0xff]   ;;  %8080 = vmatpush1.bf16.msra.mxu1 %v11206_v21 }
0x19e7   :  { %7609 = vmax.xlane.f32.xlu0 %v7608_v41  ;;  %v11212_v59 = vld [vmem:[#allocation33 + $0x390] ss:$8 sps:$4 sm:$0xff]   ;;  %v11217_v41 = vld [vmem:[#allocation34 + $0x3a4] ss:$8 sps:$4 sm:$0xff]   ;;  %8081 = vmatprep.subr.bf16.mxu1 %v11214_v47  ;;  %v5802_v47 = vadd.f32 %v5800_v54, %v12424_v34 }
0x19e8   :  { %v11281_v54 = vld [vmem:[%s12156_s6 + $0x38] sm:$0xff]  }
0x19ea   :  { %8082 = vmatpush1.bf16.msra.mxu1 %v11212_v59 }
0x1a74   :  { %v7610_v17 = vpop.xlane.xlu0 %7609 }
0x1a75   :  { %v7611_v36 = vsub.f32 %v7603_v63, %v7610_v17  ;;  %v11211_v63 = vld [vmem:[#allocation34 + $0x394] ss:$8 sps:$4 sm:$0xff]   ;;  %v11220_v17 = vld [vmem:[#allocation33 + $0x3a4] ss:$8 sps:$4 sm:$0xff]  }
0x1a76   :  { %7880 = vmatprep.subr.bf16.mxu0 %v11211_v63  ;;  %8083 = vmatprep.subr.bf16.mxu1 %v11220_v17 }
0x1a77   :  { %v7612_v30 = vmul.f32 1.442695, %v7611_v36  ;;  %7881 = vmatpush1.bf16.msra.mxu0 %v11209_v23  ;;  %v11215_v36 = vld [vmem:[#allocation34 + $0x3a0] ss:$8 sps:$4 sm:$0xff]  }
0x1a78   :  { %7882 = vmatprep.subr.bf16.mxu0 %v11217_v41 }
0x1a79   :  { %11327 = vpow2.f32 %v7612_v30  ;;  %v11218_v30 = vld [vmem:[#allocation33 + $0x3a0] ss:$8 sps:$4 sm:$0xff]  }
0x1a7a   :  { %8084 = vmatpush1.bf16.msra.mxu1 %v11218_v30  ;;  %v11254_v30 = vld [vmem:[%s12156_s6 + $0x80] sm:$0xff]  }
0x1a7b   :  { %7883 = vmatpush1.bf16.msra.mxu0 %v11215_v36  ;;  %8085 = vmatprep.subr.bf16.mxu1 %v11226_v52  ;;  %v11253_v36 = vld [vmem:[%s12156_s6] sm:$0xff]   ;;  %v11258_v52 = vld [vmem:[%s12156_s6 + $0x88] sm:$0xff]  }
0x1a7e   :  { %8086 = vmatpush1.bf16.msra.mxu1 %v11224_v33  ;;  %v11260_v33 = vld [vmem:[%s12156_s6 + $0xd0] sm:$0xff]  }
0x1a7f   :  { %8087 = vmatprep.subr.bf16.mxu1 %v11232_v37  ;;  %v11262_v37 = vld [vmem:[%s12156_s6 + $0x90] sm:$0xff]  }
0x1a82   :  { %8088 = vmatpush1.bf16.msra.mxu1 %v11230_v3  ;;  %v11264_v3 = vld [vmem:[%s12156_s6 + $0xd8] sm:$0xff]  }
0x1a83   :  { %v12986_v49 = vpop.eup %11327  ;;  %8089 = vmatprep.subr.bf16.mxu1 %v11238_v9  ;;  %v11265_v9 = vld [vmem:[%s12156_s6 + $0x18] sm:$0xff]  }
0x1a84   :  { %v7614_v50 = vsel %vm4127_vm4, %v12986_v49, 0.0 }
0x1a85   :  { %7615 = vadd.xlane.f32.xlu1 %v7614_v50  ;;  %v11223_v50 = vld [vmem:[#allocation34 + $0x3b4] ss:$8 sps:$4 sm:$0xff]  }
0x1a86   :  { %7884 = vmatprep.subr.bf16.mxu0 %v11223_v50  ;;  %8090 = vmatpush1.bf16.msra.mxu1 %v11236_v60  ;;  %v11257_v50 = vld [vmem:[%s12156_s6 + $0x8] sm:$0xff]   ;;  %v4627_v60 = vrot.slane %v12994_v62, %v12348_v15 }
0x1a87   :  { %7885 = vmatpush1.bf16.msra.mxu0 %v11221_v32  ;;  %8091 = vmatprep.subr.bf16.mxu1 %v11244_v8  ;;  %v11259_v32 = vld [vmem:[%s12156_s6 + $0x50] sm:$0xff]   ;;  %v11267_v8 = vld [vmem:[%s12156_s6 + $0x60] sm:$0xff]  }
0x1a88   :  { %7886 = vmatprep.subr.bf16.mxu0 %v11229_v7  ;;  %v11261_v7 = vld [vmem:[%s12156_s6 + $0x10] sm:$0xff]  }
0x1a8a   :  { %8092 = vmatpush1.bf16.msra.mxu1 %v11242_v1 }
0x1a8b   :  { %7887 = vmatpush1.bf16.msra.mxu0 %v11227_v2  ;;  %8093 = vmatprep.subr.bf16.mxu1 %v11250_v14  ;;  %v11263_v2 = vld [vmem:[%s12156_s6 + $0x58] sm:$0xff]   ;;  %v11271_v14 = vld [vmem:[%s12156_s6 + $0x68] sm:$0xff]  }
0x1a8c   :  { %7888 = vmatprep.subr.bf16.mxu0 %v11235_v38  ;;  %v13024_v38 = vld [vmem:[#allocation36 + $0x4] sm:$0x3] }
0x1a8d   :  { %v6953_v1 = vrot.slane %v13024_v38, %v12351_v16 }
0x1a8e   :  { %8094 = vmatpush1.bf16.msra.mxu1 %v11248_v11 }
0x1a8f   :  { %7889 = vmatpush1.bf16.msra.mxu0 %v11233_v24  ;;  %10204 = vmatprep.subr.bf16.mxu1 %v11252_v26  ;;  %v11266_v24 = vld [vmem:[%s12156_s6 + $0x98] sm:$0xff]   ;;  %v6957_v11 = vadd.f32 %v6953_v1, %v12959_v46  ;;  %v11274_v26 = vld [vmem:[%s12156_s6 + $0xa8] sm:$0xff]  }
0x1a90   :  { %7890 = vmatprep.subr.bf16.mxu0 %v11241_v51  ;;  %v5788_v51 = vrot.slane %v12996_v58, %v12348_v15 }
0x1a93   :  { %7891 = vmatpush1.bf16.msra.mxu0 %v11239_v12  ;;  %v11268_v12 = vld [vmem:[%s12156_s6 + $0xe0] sm:$0xff]  }
0x1a94   :  { %7892 = vmatprep.subr.bf16.mxu0 %v11247_v10  ;;  %v5795_v10 = vadd.f32 %v5788_v51, %v12857_v61  ;;  %v11276_v61 = vld [vmem:[%s12156_s6 + $0xf0] sm:$0xff]  }
0x1a96   :  { %v5797_v58 = vmax.f32 %v5795_v10, 0.0  ;;  %v11308_v10 = vld [vmem:[%s12156_s6 + $0x1a0] sm:$0xff]  }
0x1a97   :  { %7893 = vmatpush1.bf16.msra.mxu0 %v11245_v27  ;;  %v11272_v27 = vld [vmem:[%s12156_s6 + $0xe8] sm:$0xff]  }
0x1a98   :  { %10182 = vmatprep.subr.bf16.mxu0 %v11251_v22  ;;  %v11273_v22 = vld [vmem:[%s12156_s6 + $0x28] sm:$0xff]   ;;  %v5799_v13 = vmul.f32 %v5797_v58, %v12415_v25  ;;  %v8105_v58 = vld [vmem:[#allocation36 + $0x6] sm:$0x3] }
0x1b12   :  { %v7616_v40 = vpop.xlane.xlu1 %7615 }
0x1b13   :  { %11329 = vrcp.f32 %v7616_v40  ;;  %v11269_v40 = vld [vmem:[%s12156_s6 + $0x20] sm:$0xff]  }
0x1b1d   :  { %v11330_v53 = vpop.eup %11329 }
0x1b1e   :  { %v7618_v29 = vmul.f32 %v11330_v53, %v12986_v49  ;;  %v4631_v49 = vrot.slane %v12994_v62, %v12351_v16  ;;  %v11270_v53 = vld [vmem:[%s12156_s6 + $0xa0] sm:$0xff]  }
0x1b20   :  { %7662 = vperm.xlu1 %10527, %v7618_v29   ;;  %7621 = vperm.xlu0 %10528, %v7618_v29   ;;  %v4635_v39 = vadd.f32 %v4631_v49, %v12760_v44  ;;  %v4634_v29 = vadd.f32 %v4627_v60, %v12758_v43  ;;  %v11275_v43 = vld [vmem:[%s12156_s6 + $0x70] sm:$0xff]   ;;  %v6959_v49 = vmax.f32 %v6957_v11, 0.0  ;;  %v11293_v60 = vld [vmem:[%s12156_s6 + $0x168] sm:$0xff]  }
0x1b21   :  { %v11311_v11 = vld [vmem:[%s12156_s6 + $0x1f0] sm:$0xff]  }
0x1b22   :  { %v4637_v55 = vmax.f32 %v4635_v39, 0.0  ;;  %v4636_v62 = vmax.f32 %v4634_v29, 0.0  ;;  %v11278_v39 = vld [vmem:[%s12156_s6 + $0xb0] sm:$0xff]  }
0x1b24   :  { %10529 = vset.pattern.permute.xlu0 %v11981_v5  ;;  %v4639_v5 = vmul.f32 %v4637_v55, %v12418_v28  ;;  %v4638_v46 = vmul.f32 %v4636_v62, %v12415_v25  ;;  %v11279_v55 = vld [vmem:[%s12156_s6 + $0x78] sm:$0xff]  }
0x1b25   :  { %v11314_v62 = vld [vmem:[%s12156_s6 + $0x1b8] sm:$0xff]  }
0x1b26   :  { %v4641_v63 = vadd.f32 %v4639_v5, %v12424_v34  ;;  %v6961_v5 = vmul.f32 %v6959_v49, %v12418_v28 }
0x1b9f   :  { %v7663_v20 = vpop.permute.xlu1 %7662  ;;  %v7622_v56 = vpop.permute.xlu0 %7621 }
0x1ba0   :  { %v7665_v4 = vmul.f32 %v7663_v20, %v12928_v35  ;;  %v7666_v21 = vmul.f32 %v7663_v20, %v12913_v42  ;;  %v7624_v44 = vmul.f32 %v7622_v56, %v12926_v6  ;;  %v7625_v57 = vmul.f32 %v7622_v56, %v12911_v19  ;;  %v11255_v42 = vld [vmem:[%s12156_s6 + $0x48] sm:$0xff]   ;;  %v11282_v20 = vld [vmem:[%s12156_s6 + $0xb8] sm:$0xff]  }
0x1ba1   :  { %v11256_v6 = vld [vmem:[%s12156_s6 + $0xc8] sm:$0xff]   ;;  %v8254_v19 = vpack.c.bf16 %v4641_v63, %v4641_v63  ;;  %v8256_v35 = vpack.c.bf16 %v5802_v47, %v5802_v47  ;;  %v4640_v56 = vadd.f32 %v4638_v46, %v12421_v31  ;;  %v11284_v63 = vld [vmem:[%s12156_s6 + $0x100] sm:$0xff]  }
0x1ba2   :  { %v7700_v23 = vpack.c.bf16 %v7665_v4, %v7665_v4  ;;  %v7701_v59 = vpack.c.bf16 %v7666_v21, %v7666_v21  ;;  %v7659_v41 = vpack.c.bf16 %v7624_v44, %v7624_v44  ;;  %v7660_v17 = vpack.c.bf16 %v7625_v57, %v7625_v57  ;;  %v11283_v21 = vld [vmem:[%s12156_s6 + $0x140] sm:$0xff]  }
0x1ba3   :  { %v5801_v4 = vadd.f32 %v5799_v13, %v12421_v31  ;;  %v11299_v44 = vld [vmem:[%s12156_s6 + $0x1c0] sm:$0xff]   ;;  %v6963_v57 = vadd.f32 %v6961_v5, %v12424_v34  ;;  %v8253_v47 = vpack.c.bf16 %v4640_v56, %v4640_v56 }
0x1ba4   :  { %7894 = vmatprep.mubr.bf16.mxu0 %v7701_v59  ;;  %8095 = vmatprep.mubr.bf16.mxu1 %v7660_v17  ;;  %v11285_v59 = vld [vmem:[%s12156_s6 + $0x148] sm:$0xff]  }
0x1ba5   :  { %7895 = vmatmul.mubr.bf16.vlgmr.msra.gmra.mrb[64].mxu0 %v7700_v23  ;;  %8096 = vmatmul.mubr.bf16.vlgmr.msra.gmra.mrb[88].mxu1 %v7659_v41  ;;  %v8255_v23 = vpack.c.bf16 %v5801_v4, %v5801_v4  ;;  %v11300_v41 = vld [vmem:[%s12156_s6 + $0x180] sm:$0xff]   ;;  %v8258_v17 = vpack.c.bf16 %v6963_v57, %v6963_v57 }
0x1ba6   :  { %10183 = vmatpush3.bf16.msra.mxu0 %v11253_v36  ;;  %10205 = vmatpush3.bf16.msra.mxu1 %v11254_v30  ;;  %v11301_v36 = vld [vmem:[%s12156_s6 + $0x1c8] sm:$0xff]  }
0x1ba7   :  { %8684 = vmatprep.mubr.bf16.mxu0 %v8254_v19  ;;  %8724 = vmatprep.mubr.bf16.mxu1 %v8256_v35  ;;  %v11286_v30 = vld [vmem:[%s12156_s6 + $0x108] sm:$0xff]   ;;  %v11303_v19 = vld [vmem:[%s12156_s6 + $0x1d0] sm:$0xff]  }
0x1ba8   :  { %10184 = vmatprep.subr.bf16.mxu0 %v11255_v42  ;;  %10206 = vmatprep.subr.bf16.mxu1 %v11256_v6  ;;  %v11287_v42 = vld [vmem:[%s12156_s6 + $0x150] sm:$0xff]   ;;  %v11302_v6 = vld [vmem:[%s12156_s6 + $0x188] sm:$0xff]  }
0x1ba9   :  { %v11288_v35 = vld [vmem:[%s12156_s6 + $0x110] sm:$0xff]  }
0x1baa   :  { %10185 = vmatpush3.bf16.msra.mxu0 %v11257_v50  ;;  %10207 = vmatpush3.bf16.msra.mxu1 %v11258_v52  ;;  %v11289_v50 = vld [vmem:[%s12156_s6 + $0x158] sm:$0xff]   ;;  %v11304_v52 = vld [vmem:[%s12156_s6 + $0x190] sm:$0xff]  }
0x1bab   :  { %10186 = vmatprep.subr.bf16.mxu0 %v11259_v32  ;;  %10208 = vmatprep.subr.bf16.mxu1 %v11260_v33  ;;  %v11305_v32 = vld [vmem:[%s12156_s6 + $0x1d8] sm:$0xff]  }
0x1bac   :  { %v11290_v33 = vld [vmem:[%s12156_s6 + $0x118] sm:$0xff]  }
0x1bae   :  { %10187 = vmatpush3.bf16.msra.mxu0 %v11261_v7  ;;  %10209 = vmatpush3.bf16.msra.mxu1 %v11262_v37  ;;  %v6949_v7 = vrot.slane %v13024_v38, %v12348_v15  ;;  %v11291_v37 = vld [vmem:[%s12156_s6 + $0x160] sm:$0xff]   ;;  %v11294_v38 = vld [vmem:[%s12156_s6 + $0x128] sm:$0xff]  }
0x1baf   :  { %10188 = vmatprep.subr.bf16.mxu0 %v11263_v2  ;;  %10210 = vmatprep.subr.bf16.mxu1 %v11264_v3  ;;  %v11306_v2 = vld [vmem:[%s12156_s6 + $0x198] sm:$0xff]   ;;  %v11307_v3 = vld [vmem:[%s12156_s6 + $0x1e0] sm:$0xff]  }
0x1bb2   :  { %10189 = vmatpush3.bf16.msra.mxu0 %v11265_v9  ;;  %10211 = vmatpush3.bf16.msra.mxu1 %v11266_v24  ;;  %v11292_v9 = vld [vmem:[%s12156_s6 + $0x120] sm:$0xff]   ;;  %v6956_v24 = vadd.f32 %v6949_v7, %v12957_v18  ;;  %v11297_v18 = vld [vmem:[%s12156_s6 + $0x178] sm:$0xff]  }
0x1bb3   :  { %10190 = vmatprep.subr.bf16.mxu0 %v11267_v8  ;;  %10212 = vmatprep.subr.bf16.mxu1 %v11268_v12  ;;  %v11295_v8 = vld [vmem:[%s12156_s6 + $0x170] sm:$0xff]  }
0x1bb4   :  { %v6958_v51 = vmax.f32 %v6956_v24, 0.0  ;;  %v11296_v12 = vld [vmem:[%s12156_s6 + $0x130] sm:$0xff]  }
0x1bb6   :  { %10191 = vmatpush3.bf16.msra.mxu0 %v11269_v40  ;;  %10213 = vmatpush3.bf16.msra.mxu1 %v11270_v53  ;;  %v6960_v1 = vmul.f32 %v6958_v51, %v12415_v25  ;;  %v11298_v40 = vld [vmem:[%s12156_s6 + $0x138] sm:$0xff]  }
0x1bb7   :  { %10192 = vmatprep.subr.bf16.mxu0 %v11271_v14  ;;  %10214 = vmatprep.subr.bf16.mxu1 %v11272_v27  ;;  %v11309_v14 = vld [vmem:[%s12156_s6 + $0x1e8] sm:$0xff]  }
0x1bb8   :  { %v6962_v53 = vadd.f32 %v6960_v1, %v12421_v31  ;;  %v11310_v27 = vld [vmem:[%s12156_s6 + $0x1a8] sm:$0xff]  }
0x1bba   :  { %10193 = vmatpush3.bf16.msra.mxu0 %v11273_v22  ;;  %10215 = vmatpush3.bf16.msra.mxu1 %v11274_v26  ;;  %v8257_v29 = vpack.c.bf16 %v6962_v53, %v6962_v53  ;;  %v11312_v22 = vld [vmem:[%s12156_s6 + $0x1b0] sm:$0xff]   ;;  %v11313_v26 = vld [vmem:[%s12156_s6 + $0x1f8] sm:$0xff]  }
0x1bbb   :  { %10194 = vmatprep.subr.bf16.mxu0 %v11275_v43  ;;  %10216 = vmatprep.subr.bf16.mxu1 %v11276_v61  ;;  %v8110_v43 = vrot.slane %v8105_v58, %v12348_v15 }
0x1bbe   :  { %10195 = vmatpush3.bf16.msra.mxu0 %v11277_v45  ;;  %10217 = vmatpush3.bf16.msra.mxu1 %v11278_v39  ;;  %v8114_v45 = vrot.slane %v8105_v58, %v12351_v16 }
0x1bbf   :  { %10196 = vmatprep.subr.bf16.mxu0 %v11279_v55  ;;  %10218 = vmatprep.subr.bf16.mxu1 %v11280_v48 }
0x1bc2   :  { %10197 = vmatpush3.bf16.msra.mxu0 %v11281_v54  ;;  %10219 = vmatpush3.bf16.msra.mxu1 %v11282_v20 }
0x1bc3   :  { %10226 = vmatprep.subr.bf16.mxu0 %v11283_v21  ;;  %10248 = vmatprep.subr.bf16.mxu1 %v11299_v44 }
0x1bc5   :  { %8685 = vmatmul.mubr.bf16.vlgmr.msra.gmra.mrb[68].mxu0 %v8253_v47  ;;  %8725 = vmatmul.mubr.bf16.vlgmr.msra.gmra.mrb[92].mxu1 %v8255_v23 }
0x1bc6   :  { %10227 = vmatpush3.bf16.msra.mxu0 %v11284_v63  ;;  %8764 = vmatprep.mubr.bf16.mxu0 %v8258_v17  ;;  %v9865_v17 = vld [vmem:[#allocation37] ss:$0 sm:$0xff] }
0x1bc7   :  { %10228 = vmatprep.subr.bf16.mxu0 %v11285_v59  ;;  %10249 = vmatpush3.bf16.msra.mxu1 %v11300_v41 }
0x1bc8   :  { %10250 = vmatprep.subr.bf16.mxu1 %v11301_v36 }
0x1bca   :  { %10229 = vmatpush3.bf16.msra.mxu0 %v11286_v30 }
0x1bcb   :  { %10230 = vmatprep.subr.bf16.mxu0 %v11287_v42  ;;  %10251 = vmatpush3.bf16.msra.mxu1 %v11302_v6 }
0x1bcc   :  { %10252 = vmatprep.subr.bf16.mxu1 %v11303_v19 }
0x1bce   :  { %10231 = vmatpush3.bf16.msra.mxu0 %v11288_v35 }
0x1bcf   :  { %10232 = vmatprep.subr.bf16.mxu0 %v11289_v50  ;;  %10253 = vmatpush3.bf16.msra.mxu1 %v11304_v52 }
0x1bd0   :  { %10254 = vmatprep.subr.bf16.mxu1 %v11305_v32 }
0x1bd2   :  { %10233 = vmatpush3.bf16.msra.mxu0 %v11290_v33 }
0x1bd3   :  { %10234 = vmatprep.subr.bf16.mxu0 %v11291_v37  ;;  %10255 = vmatpush3.bf16.msra.mxu1 %v11306_v2  ;;  %v8813_v2 = vand.u32 127, %v449_v0 }
0x1bd4   :  { %10256 = vmatprep.subr.bf16.mxu1 %v11307_v3  ;;  %v11982_v3 = vmov 3  }
0x1bd5   :  { %vm8816_vm5 = vcmp.lt.s32.totalorder %v8813_v2, 12  ;;  %vm8815_vm6 = vcmp.lt.s32.totalorder %v8813_v2, 6  ;;  %vm8814_vm7 = vcmp.lt.s32.totalorder %v8813_v2, 3 }
0x1bd6   :  { %10235 = vmatpush3.bf16.msra.mxu0 %v11292_v9  ;;  %v8817_v9 = vsel %vm8816_vm5, 2, %v11982_v3 }
0x1bd7   :  { %10236 = vmatprep.subr.bf16.mxu0 %v11293_v60  ;;  %10257 = vmatpush3.bf16.msra.mxu1 %v11308_v10  ;;  %v8818_v24 = vsel %vm8815_vm6, 1, %v8817_v9 }
0x1bd8   :  { %10258 = vmatprep.subr.bf16.mxu1 %v11309_v14 }
0x1bda   :  { %10237 = vmatpush3.bf16.msra.mxu0 %v11294_v38  ;;  %v8819_v38 = vsel %vm8814_vm7, 0, %v8818_v24 }
0x1bdb   :  { %10238 = vmatprep.subr.bf16.mxu0 %v11295_v8  ;;  %10259 = vmatpush3.bf16.msra.mxu1 %v11310_v27  ;;  %vm8836_vm8 = vcmp.eq.s32.totalorder %v8819_v38, 1  ;;  %vm8820_vm9 = vcmp.eq.s32.totalorder %v8819_v38, 0  ;;  %vm8851_vm11 = vcmp.eq.s32.totalorder %v8819_v38, 2  ;;  %vm8866_vm12 = vcmp.eq.s32.totalorder %v8819_v38, 3 }
0x1bdc   :  { %10260 = vmatprep.subr.bf16.mxu1 %v11311_v11 }
0x1bde   :  { %10239 = vmatpush3.bf16.msra.mxu0 %v11296_v12 }
0x1bdf   :  { %10240 = vmatprep.subr.bf16.mxu0 %v11297_v18  ;;  %10261 = vmatpush3.bf16.msra.mxu1 %v11312_v22 }
0x1be0   :  { %10262 = vmatprep.subr.bf16.mxu1 %v11313_v26 }
0x1be2   :  { %10241 = vmatpush3.bf16.msra.mxu0 %v11298_v40 }
0x1be3   :  { %10263 = vmatpush3.bf16.msra.mxu1 %v11314_v62 }
0x1be5   :  { %8765 = vmatmul.mubr.bf16.vlgmr.msra.gmra.mrb[72].mxu0 %v8257_v29 }
0x1c78   :  { %v7896_v61 = vpop.f32.mrb[64].mxu0  ;;  %v8097_v49 = vpop.f32.mrb[88].mxu1 }
0x1c79   :  { %v8098_v39 = vadd.f32 %v8097_v49, %v7896_v61  ;;  %v7898_v46 = vpop.f32.mrb[65].mxu0  ;;  %v8099_v13 = vpop.f32.mrb[89].mxu1 }
0x1c7a   :  { %v8100_v55 = vadd.f32 %v8099_v13, %v7898_v46  ;;  %v7900_v48 = vpop.f32.mrb[66].mxu0  ;;  %v8101_v5 = vpop.f32.mrb[90].mxu1 }
0x1c7b   :  { %v8117_v54 = vadd.f32 %v8110_v43, %v8098_v39  ;;  %v7901_v20 = vpop.f32.mrb[67].mxu0  ;;  %v8102_v56 = vpop.f32.mrb[91].mxu1 }
0x1c7c   :  { %v8118_v4 = vadd.f32 %v8114_v45, %v8100_v55 }
0x1c7d   :  { %v8119_v21 = vmax.f32 %v8117_v54, 0.0 }
0x1c7e   :  { %v8120_v44 = vmax.f32 %v8118_v4, 0.0 }
0x1c7f   :  { %v8121_v57 = vmul.f32 %v8119_v21, %v12415_v25 }
0x1c80   :  { %v8122_v15 = vmul.f32 %v8120_v44, %v12418_v28 }
0x1c81   :  { %v8123_v63 = vadd.f32 %v8121_v57, %v12421_v31 }
0x1c82   :  { %v8124_v16 = vadd.f32 %v8122_v15, %v12424_v34 }
0x1c83   :  { %v8259_v23 = vpack.c.bf16 %v8123_v63, %v8123_v63 }
0x1c84   :  { %v8260_v47 = vpack.c.bf16 %v8124_v16, %v8124_v16 }
0x1c86   :  { %8804 = vmatprep.mubr.bf16.mxu1 %v8260_v47 }
0x1c87   :  { %8805 = vmatmul.mubr.bf16.vlgmr.msra.gmra.mrb[96].mxu1 %v8259_v23 }
0x1c98   :  { %v10198_v59 = vpop.f32.mrb[68].mxu0  ;;  %v10220_v41 = vpop.f32.mrb[92].mxu1 }
0x1c99   :  { %v10199_v36 = vpop.f32.mrb[69].mxu0  ;;  %v10221_v30 = vpop.f32.mrb[93].mxu1 }
0x1c9a   :  { %v10200_v42 = vadd.f32 %v10199_v36, %v10198_v59  ;;  %v10222_v6 = vadd.f32 %v10221_v30, %v10220_v41  ;;  %v10201_v19 = vpop.f32.mrb[70].mxu0  ;;  %v10223_v35 = vpop.f32.mrb[94].mxu1 }
0x1c9b   :  { %v10202_v25 = vpop.f32.mrb[71].mxu0  ;;  %v10224_v50 = vpop.f32.mrb[95].mxu1 }
0x1c9c   :  { %v8687_v28 = vadd.f32 %v10200_v42, %v9865_v17 }
0x1c9e   :  { %v8727_v52 = vadd.f32 %v10222_v6, %v8687_v28 }
0x1cb8   :  { %v10242_v31 = vpop.f32.mrb[72].mxu0 }
0x1cb9   :  { %v10243_v32 = vpop.f32.mrb[73].mxu0 }
0x1cba   :  { %v10244_v34 = vadd.f32 %v10243_v32, %v10242_v31  ;;  %v10245_v33 = vpop.f32.mrb[74].mxu0 }
0x1cbb   :  { %v10246_v7 = vpop.f32.mrb[75].mxu0 }
0x1cbc   :  { %v8767_v37 = vadd.f32 %v10244_v34, %v8727_v52 }
0x1d5a   :  { %v10264_v60 = vpop.f32.mrb[96].mxu1 }
0x1d5b   :  { %v10265_v51 = vpop.f32.mrb[97].mxu1 }
0x1d5c   :  { %v10266_v8 = vadd.f32 %v10265_v51, %v10264_v60  ;;  %v10267_v12 = vpop.f32.mrb[98].mxu1 }
0x1d5d   :  { %v10268_v1 = vpop.f32.mrb[99].mxu1 }
0x1d5e   :  { %v8807_v18 = vadd.f32 %v10266_v8, %v8767_v37 }
0x1d60   :  { %v8837_v40 = vsel %vm8836_vm8, %v8807_v18, -inf  ;;  %v8821_v0 = vsel %vm8820_vm9, %v8807_v18, -inf  ;;  %v8852_v10 = vsel %vm8851_vm11, %v8807_v18, -inf  ;;  %v8867_v27 = vsel %vm8866_vm12, %v8807_v18, -inf }
0x1d61   :  { %v8838_v53 = vsel %vm8822_vm10, %v8837_v40, -inf  ;;  %v8823_v29 = vsel %vm8822_vm10, %v8821_v0, -inf  ;;  %v8853_v14 = vsel %vm8822_vm10, %v8852_v10, -inf  ;;  %v8868_v11 = vsel %vm8822_vm10, %v8867_v27, -inf }
0x1d62   :  { %8839 = vmax.xlane.f32.xlu1 %v8838_v53  ;;  %8824 = vmax.xlane.f32.xlu0 %v8823_v29 }
0x1d66   :  { %8854 = vmax.xlane.f32.xlu0 %v8853_v14 }
0x1d6a   :  { %8869 = vmax.xlane.f32.xlu0 %v8868_v11 }
0x1def   :  { %v8840_v22 = vpop.xlane.xlu1 %8839  ;;  %v8825_v26 = vpop.xlane.xlu0 %8824 }
0x1df0   :  { %v8841_v62 = vsub.f32 %v8807_v18, %v8840_v22  ;;  %v8826_v58 = vsub.f32 %v8807_v18, %v8825_v26 }
0x1df2   :  { %v8842_v43 = vmul.f32 1.442695, %v8841_v62  ;;  %v8827_v61 = vmul.f32 1.442695, %v8826_v58 }
0x1df3   :  { %v8855_v49 = vpop.xlane.xlu0 %8854 }
0x1df4   :  { %11331 = vpow2.f32 %v8842_v43  ;;  %v8856_v45 = vsub.f32 %v8807_v18, %v8855_v49 }
0x1df5   :  { %11333 = vpow2.f32 %v8827_v61 }
0x1df6   :  { %v8857_v39 = vmul.f32 1.442695, %v8856_v45 }
0x1df7   :  { %v8870_v46 = vpop.xlane.xlu0 %8869 }
0x1df8   :  { %11335 = vpow2.f32 %v8857_v39  ;;  %v8871_v13 = vsub.f32 %v8807_v18, %v8870_v46 }
0x1dfa   :  { %v8872_v55 = vmul.f32 1.442695, %v8871_v13 }
0x1dfc   :  { %11337 = vpow2.f32 %v8872_v55 }
0x1dfe   :  { %v11332_v48 = vpop.eup %11331 }
0x1dff   :  { %v11334_v5 = vpop.eup %11333  ;;  %v8844_v54 = vsel %vm8836_vm8, %v11332_v48, 0.0 }
0x1e00   :  { %v8845_v20 = vsel %vm8822_vm10, %v8844_v54, 0.0  ;;  %v8829_v56 = vsel %vm8820_vm9, %v11334_v5, 0.0 }
0x1e01   :  { %8846 = vadd.xlane.f32.xlu1 %v8845_v20  ;;  %v8830_v4 = vsel %vm8822_vm10, %v8829_v56, 0.0 }
0x1e02   :  { %v11336_v21 = vpop.eup %11335  ;;  %8831 = vadd.xlane.f32.xlu0 %v8830_v4 }
0x1e03   :  { %v8859_v44 = vsel %vm8851_vm11, %v11336_v21, 0.0 }
0x1e04   :  { %v8860_v57 = vsel %vm8822_vm10, %v8859_v44, 0.0 }
0x1e06   :  { %v11338_v15 = vpop.eup %11337  ;;  %8861 = vadd.xlane.f32.xlu0 %v8860_v57 }
0x1e07   :  { %v8874_v63 = vsel %vm8866_vm12, %v11338_v15, 0.0 }
0x1e08   :  { %v8875_v16 = vsel %vm8822_vm10, %v8874_v63, 0.0 }
0x1e09   :  { %8876 = vadd.xlane.f32.xlu1 %v8875_v16 }
0x1e8e   :  { %v8847_v47 = vpop.xlane.xlu1 %8846 }
0x1e8f   :  { %11339 = vrcp.f32 %v8847_v47  ;;  %v8832_v23 = vpop.xlane.xlu0 %8831 }
0x1e90   :  { %11341 = vrcp.f32 %v8832_v23 }
0x1e93   :  { %v8862_v59 = vpop.xlane.xlu0 %8861 }
0x1e94   :  { %11343 = vrcp.f32 %v8862_v59 }
0x1e96   :  { %v8877_v41 = vpop.xlane.xlu1 %8876 }
0x1e97   :  { %11345 = vrcp.f32 %v8877_v41 }
0x1e99   :  { %v11340_v17 = vpop.eup %11339 }
0x1e9a   :  { %v11342_v36 = vpop.eup %11341  ;;  %v8849_v30 = vmul.f32 %v11340_v17, %v8844_v54 }
0x1e9b   :  { %v8834_v42 = vmul.f32 %v11342_v36, %v8829_v56 }
0x1e9d   :  { %v8850_v35 = vadd.f32 %v8849_v30, %v8834_v42 }
0x1e9e   :  { %v11344_v6 = vpop.eup %11343 }
0x1e9f   :  { %v8864_v19 = vmul.f32 %v11344_v6, %v8859_v44 }
0x1ea1   :  { %v11346_v25 = vpop.eup %11345  ;;  %v8865_v50 = vadd.f32 %v8864_v19, %v8850_v35 }
0x1ea2   :  { %v8879_v28 = vmul.f32 %v11346_v25, %v8874_v63 }
0x1ea4   :  { %v8880_v52 = vadd.f32 %v8879_v28, %v8865_v50 }
0x1ea6   :  { %8881 = vst.msk [vmem:[%s12166_s19] sm:$0x3] %vm8822_vm10, %v8880_v52 }
0x1ea7   :  { %8886 = vsyncpa [#allocation3], 1 }
0x1ea8   :  { %8887 = vsyncpa [#allocation5], 1 }
0x1ea9   :  { %8888 = vsyncpa [#allocation8], 1 }
0x1eaa   :  { %8889 = vsyncpa [#allocation11], 1 }
0x1eab   :  { %8890 = vsyncpa [#allocation14], 1 }
0x1eac   :  { %8891 = vsyncpa [#allocation17], 1 }
0x1ead   :  { %8892 = vsyncpa [#allocation20], 1 }
0x1eae   :  { %8893 = vsyncpa [#allocation23], 1 }
0x1eaf   :  { %8894 = vsyncpa [#allocation26], 1 }
0x1eb0   :  { %8895 = vsyncpa [#allocation29], 1 }
0x1eb1   :  { %8896 = vsyncpa [#allocation32], 1 }
0x1eb2   :  { %8897 = vsyncpa [#allocation35], 1 }
0x1eb3   :  { %8898 = vsyncpa [#allocation38], 1 }

</bundles_post_ra>
